<compile_context>
chip_gen: v5e
topology: v5e:2x2
jax: 0.10.0
libtpu: 0.0.40
codegen_flags: <defaults>
</compile_context>

<pallas_src>
import jax
import jax.numpy as jnp
from jax.experimental import pallas as pl
from jax.experimental.pallas import tpu as pltpu

N_ATOMS = 16                 # padded atoms per molecule (power of two)
N_FEAT = 32                  # hidden feature width
N_SENS = 8                   # number of distance sensitivity functions
N_PAR = 8                    # SEQM per-atom learned parameters
N_PAR_PAD = 128              # lane-dense padded parameter width (full vreg lanes)
MOL_BLOCK = 8                # molecules per grid step -> 128 atom rows
ROWS = MOL_BLOCK * N_ATOMS   # 128 atom rows per step
R_CUT = 6.0
GAMMA = 2.0
MU = tuple(0.75 * (k + 1) for k in range(N_SENS))   # static gaussian centers
_MOL_SHIFT = N_ATOMS.bit_length() - 1               # log2(N_ATOMS)

SEQM_PAR_NAMES = ('U_ss', 'U_pp', 'zeta_s', 'zeta_p',
                  'beta_s', 'beta_p', 'g_ss', 'alpha')


def hipnn_par_kernel(posm_ref, post_ref, z_ref, w_es_ref, b1_ref,
                     w_dense_ref, b2_ref, w_out_ref, b_out_ref, out_ref):
    posm = posm_ref[...]                    # (ROWS, 4): x, y, z, real-atom mask
    post = post_ref[...]                    # (4, ROWS): coordinate-major view
    z = z_ref[...]                          # (ROWS, F) species embedding features
    w_es = w_es_ref[...]                    # (K*F + F, F): [w_env ; w_self]

    pos = posm[:, 0:3]                      # (ROWS, 3)
    mask = posm[:, 3:4]                     # (ROWS, 1) 1.0 real atom, 0.0 padding
    pos_t = post[0:3, :]                    # (3, ROWS)
    j_real = post[3:4, :]                   # (1, ROWS) neighbour-atom mask

    # -- pairwise squared distances via one MXU Gram matmul --------------------
    sq_i = jnp.sum(pos * pos, axis=1, keepdims=True)          # (ROWS, 1)
    sq_j = jnp.sum(pos_t * pos_t, axis=0, keepdims=True)      # (1, ROWS)
    gram = jnp.dot(pos, pos_t, preferred_element_type=jnp.float32)
    r2 = jnp.maximum(sq_i + sq_j - 2.0 * gram, 0.0)
    r = jnp.sqrt(r2 + 1e-12)

    # -- pair weights: same molecule (block-diagonal), no self pairs, ----------
    #    real neighbour, smooth radial cutoff
    row = jax.lax.broadcasted_iota(jnp.int32, (ROWS, ROWS), 0)
    col = jax.lax.broadcasted_iota(jnp.int32, (ROWS, ROWS), 1)
    same_mol = (row >> _MOL_SHIFT) == (col >> _MOL_SHIFT)
    valid = jnp.logical_and(same_mol, row != col).astype(jnp.float32)
    in_cut = (r < R_CUT).astype(jnp.float32)
    fcut = 0.5 * (jnp.cos(jnp.pi * jnp.minimum(r / R_CUT, 1.0)) + 1.0)
    pair_w = valid * j_real * in_cut * fcut                   # (ROWS, ROWS)

    # -- layer 1: self term + sensitivity-weighted environment -----------------
    #    h1_pre = z @ w_self + b1 + sum_k (s_k @ z) @ w_env_k   (no concat)
    h1_pre = jnp.dot(z, w_es[N_SENS * N_FEAT:, :],
                     preferred_element_type=jnp.float32) + b1_ref[...]
    for k in range(N_SENS):
        s_k = jnp.exp(-GAMMA * (r - MU[k]) ** 2) * pair_w     # (ROWS, ROWS)
        env_k = jnp.dot(s_k, z, preferred_element_type=jnp.float32)
        h1_pre = h1_pre + jnp.dot(env_k, w_es[k * N_FEAT:(k + 1) * N_FEAT, :],
                                  preferred_element_type=jnp.float32)
    h1 = jnp.tanh(h1_pre)

    # -- dense layer + (lane-padded) parameter head -----------------------------
    h2 = jnp.tanh(jnp.dot(h1, w_dense_ref[...],
                          preferred_element_type=jnp.float32) + b2_ref[...])
    par = jnp.dot(h2, w_out_ref[...],
                  preferred_element_type=jnp.float32) + b_out_ref[...]  # (ROWS, 128)

    # zero padded atoms (pack_par only keeps real atoms); full-lane store
    out_ref[...] = par * mask


def run_model(species, positions, params):
    n_mol = species.shape[0]
    n_mol_pad = -(-n_mol // MOL_BLOCK) * MOL_BLOCK
    pad = n_mol_pad - n_mol
    if pad:
        species = jnp.concatenate(
            [species, jnp.zeros((pad, N_ATOMS), species.dtype)], axis=0)
        positions = jnp.concatenate(
            [positions, jnp.zeros((pad, N_ATOMS, 3), positions.dtype)], axis=0)
    n_tot = n_mol_pad * N_ATOMS

    # glue (tiny, plain JAX): one-hot species embedding, real-atom mask, packing
    emb = params['emb']
    z = jnp.einsum('mas,sf->maf',
                   jax.nn.one_hot(species, emb.shape[0], dtype=jnp.float32),
                   emb).reshape(n_tot, N_FEAT)
    mask = (species > 0).astype(jnp.float32).reshape(n_tot, 1)
    posm = jnp.concatenate([positions.reshape(n_tot, 3), mask], axis=-1)  # (n_tot, 4)
    pos_t = jnp.transpose(posm)                                           # (4, n_tot)

    # packed first-layer weight [w_env ; w_self], lane-padded parameter head
    w_env_self = jnp.concatenate([params['w_env'], params['w_self']], axis=0)
    w_out_pad = jnp.zeros((N_FEAT, N_PAR_PAD), jnp.float32).at[:, :N_PAR].set(params['w_out'])
    b_out_pad = jnp.zeros((1, N_PAR_PAD), jnp.float32).at[:, :N_PAR].set(params['b_out'])

    grid_spec = pltpu.PrefetchScalarGridSpec(
        num_scalar_prefetch=0,
        grid=(n_mol_pad // MOL_BLOCK,),
        in_specs=[
            pl.BlockSpec((ROWS, 4), lambda i: (i, 0)),                        # posm
            pl.BlockSpec((4, ROWS), lambda i: (0, i)),                        # pos_t
            pl.BlockSpec((ROWS, N_FEAT), lambda i: (i, 0)),                   # z
            pl.BlockSpec((N_SENS * N_FEAT + N_FEAT, N_FEAT), lambda i: (0, 0)),
            pl.BlockSpec((1, N_FEAT), lambda i: (0, 0)),                      # b1
            pl.BlockSpec((N_FEAT, N_FEAT), lambda i: (0, 0)),                 # w_dense
            pl.BlockSpec((1, N_FEAT), lambda i: (0, 0)),                      # b2
            pl.BlockSpec((N_FEAT, N_PAR_PAD), lambda i: (0, 0)),              # w_out
            pl.BlockSpec((1, N_PAR_PAD), lambda i: (0, 0)),                   # b_out
        ],
        out_specs=pl.BlockSpec((ROWS, N_PAR_PAD), lambda i: (i, 0)),
    )
    out = pl.pallas_call(
        hipnn_par_kernel,
        out_shape=jax.ShapeDtypeStruct((n_tot, N_PAR_PAD), jnp.float32),
        grid_spec=grid_spec,
        compiler_params=pltpu.CompilerParams(dimension_semantics=("parallel",)),
    )(posm, pos_t, z, w_env_self, params['b1'], params['w_dense'],
      params['b2'], w_out_pad, b_out_pad)

    # drop lane padding and molecule padding; back to (n_mol, N_ATOMS, N_PAR)
    return out[:n_mol * N_ATOMS, :N_PAR].reshape(n_mol, N_ATOMS, N_PAR)


def pack_par(species, par):
    # TODO(synk): the real PYSEQM pack_par gathers only real (species > 0) atoms
    # into dynamically-sized per-parameter tensors and rescales by base SEQM
    # constants from the seqm_module; here we return a static padded layout
    # (padded atom rows are zero) keyed by parameter name.
    flat = par.reshape(-1, N_PAR)
    return {name: flat[:, i] for i, name in enumerate(SEQM_PAR_NAMES)}


if __name__ == "__main__":
    key = jax.random.PRNGKey(0)
    ks = jax.random.split(key, 10)
    params = {
        'emb':     0.1 * jax.random.normal(ks[0], (10, N_FEAT), jnp.float32),
        'w_env':   0.1 * jax.random.normal(ks[1], (N_SENS * N_FEAT, N_FEAT), jnp.float32),
        'w_self':  0.1 * jax.random.normal(ks[2], (N_FEAT, N_FEAT), jnp.float32),
        'b1':      0.1 * jax.random.normal(ks[3], (1, N_FEAT), jnp.float32),
        'w_dense': 0.1 * jax.random.normal(ks[4], (N_FEAT, N_FEAT), jnp.float32),
        'b2':      0.1 * jax.random.normal(ks[5], (1, N_FEAT), jnp.float32),
        'w_out':   0.1 * jax.random.normal(ks[6], (N_FEAT, N_PAR), jnp.float32),
        'b_out':   0.1 * jax.random.normal(ks[7], (1, N_PAR), jnp.float32),
    }

    n_mol = 2
    species = jax.random.randint(ks[8], (n_mol, N_ATOMS), 0, 10, dtype=jnp.int32)
    positions = 3.0 * jax.random.normal(ks[9], (n_mol, N_ATOMS, 3), jnp.float32)

    par = run_model(species, positions, params)
    learned_parameters = pack_par(species, par)
    jax.block_until_ready(learned_parameters)
    print("KERNEL_OK")
</pallas_src>

<mosaic_0001>
module attributes {stable_mosaic.version = 11 : i64} {
  func.func @hipnn_par_kernel(%arg0: i32, %arg1: memref<128x4xf32, #tpu.memory_space<vmem>>, %arg2: memref<4x128xf32, #tpu.memory_space<vmem>>, %arg3: memref<128x32xf32, #tpu.memory_space<vmem>>, %arg4: memref<288x32xf32, #tpu.memory_space<vmem>>, %arg5: memref<1x32xf32, #tpu.memory_space<vmem>>, %arg6: memref<32x32xf32, #tpu.memory_space<vmem>>, %arg7: memref<1x32xf32, #tpu.memory_space<vmem>>, %arg8: memref<32x128xf32, #tpu.memory_space<vmem>>, %arg9: memref<1x128xf32, #tpu.memory_space<vmem>>, %arg10: memref<128x128xf32, #tpu.memory_space<vmem>>) attributes {dimension_semantics = [#tpu.dimension_semantics<parallel>], iteration_bounds = array<i64: 1>, scalar_prefetch = 0 : i64, scratch_operands = 0 : i64, tpu.core_type = #tpu.core_type<tc>, window_params = [{transform_indices = @transform_0, window_bounds = array<i64: 128, 4>}, {transform_indices = @transform_1, window_bounds = array<i64: 4, 128>}, {transform_indices = @transform_2, window_bounds = array<i64: 128, 32>}, {pipeline_mode = #tpu.pipeline_mode<synchronous>, transform_indices = @transform_3, window_bounds = array<i64: 288, 32>}, {pipeline_mode = #tpu.pipeline_mode<synchronous>, transform_indices = @transform_4, window_bounds = array<i64: 1, 32>}, {pipeline_mode = #tpu.pipeline_mode<synchronous>, transform_indices = @transform_5, window_bounds = array<i64: 32, 32>}, {pipeline_mode = #tpu.pipeline_mode<synchronous>, transform_indices = @transform_6, window_bounds = array<i64: 1, 32>}, {pipeline_mode = #tpu.pipeline_mode<synchronous>, transform_indices = @transform_7, window_bounds = array<i64: 32, 128>}, {pipeline_mode = #tpu.pipeline_mode<synchronous>, transform_indices = @transform_8, window_bounds = array<i64: 1, 128>}, {transform_indices = @transform_9, window_bounds = array<i64: 128, 128>}]} {
    %c0 = arith.constant 0 : index
    %c0_0 = arith.constant 0 : index
    %0 = vector.load %arg1[%c0, %c0_0] : memref<128x4xf32, #tpu.memory_space<vmem>>, vector<128x4xf32>
    %c0_1 = arith.constant 0 : index
    %c0_2 = arith.constant 0 : index
    %1 = vector.load %arg2[%c0_1, %c0_2] : memref<4x128xf32, #tpu.memory_space<vmem>>, vector<4x128xf32>
    %c0_3 = arith.constant 0 : index
    %c0_4 = arith.constant 0 : index
    %2 = vector.load %arg3[%c0_3, %c0_4] : memref<128x32xf32, #tpu.memory_space<vmem>>, vector<128x32xf32>
    %c0_5 = arith.constant 0 : index
    %c0_6 = arith.constant 0 : index
    %3 = vector.load %arg4[%c0_5, %c0_6] : memref<288x32xf32, #tpu.memory_space<vmem>>, vector<288x32xf32>
    %4 = vector.extract_strided_slice %0 {offsets = [0, 0], sizes = [128, 3], strides = [1, 1]} : vector<128x4xf32> to vector<128x3xf32>
    %5 = vector.extract_strided_slice %0 {offsets = [0, 3], sizes = [128, 1], strides = [1, 1]} : vector<128x4xf32> to vector<128x1xf32>
    %6 = vector.extract_strided_slice %1 {offsets = [0, 0], sizes = [3, 128], strides = [1, 1]} : vector<4x128xf32> to vector<3x128xf32>
    %7 = vector.extract_strided_slice %1 {offsets = [3, 0], sizes = [1, 128], strides = [1, 1]} : vector<4x128xf32> to vector<1x128xf32>
    %8 = arith.mulf %4, %4 : vector<128x3xf32>
    %cst = arith.constant dense<0.000000e+00> : vector<128xf32>
    %9 = vector.multi_reduction <add>, %8, %cst [1] : vector<128x3xf32> to vector<128xf32>
    %10 = vector.shape_cast %9 : vector<128xf32> to vector<128x1xf32>
    %11 = arith.mulf %6, %6 : vector<3x128xf32>
    %cst_7 = arith.constant dense<0.000000e+00> : vector<128xf32>
    %12 = vector.multi_reduction <add>, %11, %cst_7 [0] : vector<3x128xf32> to vector<128xf32>
    %13 = vector.shape_cast %12 : vector<128xf32> to vector<1x128xf32>
    %cst_8 = arith.constant dense<0.000000e+00> : vector<128x128xf32>
    %14 = tpu.matmul %4, %6, %cst_8 {dimension_numbers = #tpu.dot_dimension_numbers<[1], [0], [0], [1], [0, 0, 1, 1], [], []>} : vector<128x3xf32>, vector<3x128xf32>, vector<128x128xf32> -> vector<128x128xf32>
    %15 = vector.broadcast %10 : vector<128x1xf32> to vector<128x128xf32>
    %16 = vector.broadcast %13 : vector<1x128xf32> to vector<128x128xf32>
    %17 = arith.addf %15, %16 : vector<128x128xf32>
    %cst_9 = arith.constant 2.000000e+00 : f32
    %18 = vector.broadcast %cst_9 : f32 to vector<128x128xf32>
    %19 = arith.mulf %18, %14 : vector<128x128xf32>
    %20 = arith.subf %17, %19 : vector<128x128xf32>
    %cst_10 = arith.constant 0.000000e+00 : f32
    %21 = vector.broadcast %cst_10 : f32 to vector<128x128xf32>
    %22 = arith.maximumf %20, %21 : vector<128x128xf32>
    %cst_11 = arith.constant 9.99999996E-13 : f32
    %23 = vector.broadcast %cst_11 : f32 to vector<128x128xf32>
    %24 = arith.addf %22, %23 : vector<128x128xf32>
    %25 = math.sqrt %24 : vector<128x128xf32>
    %26 = tpu.iota {dimensions = array<i32: 0>} : vector<128x128xi32>
    %27 = tpu.iota {dimensions = array<i32: 1>} : vector<128x128xi32>
    %c4_i32 = arith.constant 4 : i32
    %28 = vector.broadcast %c4_i32 : i32 to vector<128x128xi32>
    %29 = arith.shrsi %26, %28 : vector<128x128xi32>
    %c4_i32_12 = arith.constant 4 : i32
    %30 = vector.broadcast %c4_i32_12 : i32 to vector<128x128xi32>
    %31 = arith.shrsi %27, %30 : vector<128x128xi32>
    %32 = arith.cmpi eq, %29, %31 : vector<128x128xi32>
    %33 = arith.cmpi ne, %26, %27 : vector<128x128xi32>
    %34 = arith.andi %32, %33 : vector<128x128xi1>
    %35 = arith.extui %34 : vector<128x128xi1> to vector<128x128xi32>
    %36 = arith.sitofp %35 : vector<128x128xi32> to vector<128x128xf32>
    %cst_13 = arith.constant 6.000000e+00 : f32
    %37 = vector.broadcast %cst_13 : f32 to vector<128x128xf32>
    %38 = arith.cmpf olt, %25, %37 : vector<128x128xf32>
    %39 = arith.extui %38 : vector<128x128xi1> to vector<128x128xi32>
    %40 = arith.sitofp %39 : vector<128x128xi32> to vector<128x128xf32>
    %cst_14 = arith.constant 6.000000e+00 : f32
    %41 = vector.broadcast %cst_14 : f32 to vector<128x128xf32>
    %42 = arith.divf %25, %41 : vector<128x128xf32>
    %cst_15 = arith.constant 1.000000e+00 : f32
    %43 = vector.broadcast %cst_15 : f32 to vector<128x128xf32>
    %44 = arith.minimumf %42, %43 : vector<128x128xf32>
    %cst_16 = arith.constant 3.14159274 : f32
    %45 = vector.broadcast %cst_16 : f32 to vector<128x128xf32>
    %46 = arith.mulf %45, %44 : vector<128x128xf32>
    %47 = math.cos %46 : vector<128x128xf32>
    %cst_17 = arith.constant 1.000000e+00 : f32
    %48 = vector.broadcast %cst_17 : f32 to vector<128x128xf32>
    %49 = arith.addf %47, %48 : vector<128x128xf32>
    %cst_18 = arith.constant 5.000000e-01 : f32
    %50 = vector.broadcast %cst_18 : f32 to vector<128x128xf32>
    %51 = arith.mulf %50, %49 : vector<128x128xf32>
    %52 = vector.broadcast %7 : vector<1x128xf32> to vector<128x128xf32>
    %53 = arith.mulf %36, %52 : vector<128x128xf32>
    %54 = arith.mulf %53, %40 : vector<128x128xf32>
    %55 = arith.mulf %54, %51 : vector<128x128xf32>
    %56 = vector.extract_strided_slice %3 {offsets = [256, 0], sizes = [32, 32], strides = [1, 1]} : vector<288x32xf32> to vector<32x32xf32>
    %cst_19 = arith.constant dense<0.000000e+00> : vector<128x32xf32>
    %57 = tpu.matmul %2, %56, %cst_19 {dimension_numbers = #tpu.dot_dimension_numbers<[1], [0], [0], [1], [0, 0, 1, 1], [], []>} : vector<128x32xf32>, vector<32x32xf32>, vector<128x32xf32> -> vector<128x32xf32>
    %c0_20 = arith.constant 0 : index
    %c0_21 = arith.constant 0 : index
    %58 = vector.load %arg5[%c0_20, %c0_21] : memref<1x32xf32, #tpu.memory_space<vmem>>, vector<1x32xf32>
    %59 = vector.broadcast %58 : vector<1x32xf32> to vector<128x32xf32>
    %60 = arith.addf %57, %59 : vector<128x32xf32>
    %cst_22 = arith.constant 7.500000e-01 : f32
    %61 = vector.broadcast %cst_22 : f32 to vector<128x128xf32>
    %62 = arith.subf %25, %61 : vector<128x128xf32>
    %63 = arith.mulf %62, %62 : vector<128x128xf32>
    %cst_23 = arith.constant -2.000000e+00 : f32
    %64 = vector.broadcast %cst_23 : f32 to vector<128x128xf32>
    %65 = arith.mulf %64, %63 : vector<128x128xf32>
    %66 = math.exp %65 : vector<128x128xf32>
    %67 = arith.mulf %66, %55 : vector<128x128xf32>
    %cst_24 = arith.constant dense<0.000000e+00> : vector<128x32xf32>
    %68 = tpu.matmul %67, %2, %cst_24 {dimension_numbers = #tpu.dot_dimension_numbers<[1], [0], [0], [1], [0, 0, 1, 1], [], []>} : vector<128x128xf32>, vector<128x32xf32>, vector<128x32xf32> -> vector<128x32xf32>
    %69 = vector.extract_strided_slice %3 {offsets = [0, 0], sizes = [32, 32], strides = [1, 1]} : vector<288x32xf32> to vector<32x32xf32>
    %cst_25 = arith.constant dense<0.000000e+00> : vector<128x32xf32>
    %70 = tpu.matmul %68, %69, %cst_25 {dimension_numbers = #tpu.dot_dimension_numbers<[1], [0], [0], [1], [0, 0, 1, 1], [], []>} : vector<128x32xf32>, vector<32x32xf32>, vector<128x32xf32> -> vector<128x32xf32>
    %71 = arith.addf %60, %70 : vector<128x32xf32>
    %cst_26 = arith.constant 1.500000e+00 : f32
    %72 = vector.broadcast %cst_26 : f32 to vector<128x128xf32>
    %73 = arith.subf %25, %72 : vector<128x128xf32>
    %74 = arith.mulf %73, %73 : vector<128x128xf32>
    %cst_27 = arith.constant -2.000000e+00 : f32
    %75 = vector.broadcast %cst_27 : f32 to vector<128x128xf32>
    %76 = arith.mulf %75, %74 : vector<128x128xf32>
    %77 = math.exp %76 : vector<128x128xf32>
    %78 = arith.mulf %77, %55 : vector<128x128xf32>
    %cst_28 = arith.constant dense<0.000000e+00> : vector<128x32xf32>
    %79 = tpu.matmul %78, %2, %cst_28 {dimension_numbers = #tpu.dot_dimension_numbers<[1], [0], [0], [1], [0, 0, 1, 1], [], []>} : vector<128x128xf32>, vector<128x32xf32>, vector<128x32xf32> -> vector<128x32xf32>
    %80 = vector.extract_strided_slice %3 {offsets = [32, 0], sizes = [32, 32], strides = [1, 1]} : vector<288x32xf32> to vector<32x32xf32>
    %cst_29 = arith.constant dense<0.000000e+00> : vector<128x32xf32>
    %81 = tpu.matmul %79, %80, %cst_29 {dimension_numbers = #tpu.dot_dimension_numbers<[1], [0], [0], [1], [0, 0, 1, 1], [], []>} : vector<128x32xf32>, vector<32x32xf32>, vector<128x32xf32> -> vector<128x32xf32>
    %82 = arith.addf %71, %81 : vector<128x32xf32>
    %cst_30 = arith.constant 2.250000e+00 : f32
    %83 = vector.broadcast %cst_30 : f32 to vector<128x128xf32>
    %84 = arith.subf %25, %83 : vector<128x128xf32>
    %85 = arith.mulf %84, %84 : vector<128x128xf32>
    %cst_31 = arith.constant -2.000000e+00 : f32
    %86 = vector.broadcast %cst_31 : f32 to vector<128x128xf32>
    %87 = arith.mulf %86, %85 : vector<128x128xf32>
    %88 = math.exp %87 : vector<128x128xf32>
    %89 = arith.mulf %88, %55 : vector<128x128xf32>
    %cst_32 = arith.constant dense<0.000000e+00> : vector<128x32xf32>
    %90 = tpu.matmul %89, %2, %cst_32 {dimension_numbers = #tpu.dot_dimension_numbers<[1], [0], [0], [1], [0, 0, 1, 1], [], []>} : vector<128x128xf32>, vector<128x32xf32>, vector<128x32xf32> -> vector<128x32xf32>
    %91 = vector.extract_strided_slice %3 {offsets = [64, 0], sizes = [32, 32], strides = [1, 1]} : vector<288x32xf32> to vector<32x32xf32>
    %cst_33 = arith.constant dense<0.000000e+00> : vector<128x32xf32>
    %92 = tpu.matmul %90, %91, %cst_33 {dimension_numbers = #tpu.dot_dimension_numbers<[1], [0], [0], [1], [0, 0, 1, 1], [], []>} : vector<128x32xf32>, vector<32x32xf32>, vector<128x32xf32> -> vector<128x32xf32>
    %93 = arith.addf %82, %92 : vector<128x32xf32>
    %cst_34 = arith.constant 3.000000e+00 : f32
    %94 = vector.broadcast %cst_34 : f32 to vector<128x128xf32>
    %95 = arith.subf %25, %94 : vector<128x128xf32>
    %96 = arith.mulf %95, %95 : vector<128x128xf32>
    %cst_35 = arith.constant -2.000000e+00 : f32
    %97 = vector.broadcast %cst_35 : f32 to vector<128x128xf32>
    %98 = arith.mulf %97, %96 : vector<128x128xf32>
    %99 = math.exp %98 : vector<128x128xf32>
    %100 = arith.mulf %99, %55 : vector<128x128xf32>
    %cst_36 = arith.constant dense<0.000000e+00> : vector<128x32xf32>
    %101 = tpu.matmul %100, %2, %cst_36 {dimension_numbers = #tpu.dot_dimension_numbers<[1], [0], [0], [1], [0, 0, 1, 1], [], []>} : vector<128x128xf32>, vector<128x32xf32>, vector<128x32xf32> -> vector<128x32xf32>
    %102 = vector.extract_strided_slice %3 {offsets = [96, 0], sizes = [32, 32], strides = [1, 1]} : vector<288x32xf32> to vector<32x32xf32>
    %cst_37 = arith.constant dense<0.000000e+00> : vector<128x32xf32>
    %103 = tpu.matmul %101, %102, %cst_37 {dimension_numbers = #tpu.dot_dimension_numbers<[1], [0], [0], [1], [0, 0, 1, 1], [], []>} : vector<128x32xf32>, vector<32x32xf32>, vector<128x32xf32> -> vector<128x32xf32>
    %104 = arith.addf %93, %103 : vector<128x32xf32>
    %cst_38 = arith.constant 3.750000e+00 : f32
    %105 = vector.broadcast %cst_38 : f32 to vector<128x128xf32>
    %106 = arith.subf %25, %105 : vector<128x128xf32>
    %107 = arith.mulf %106, %106 : vector<128x128xf32>
    %cst_39 = arith.constant -2.000000e+00 : f32
    %108 = vector.broadcast %cst_39 : f32 to vector<128x128xf32>
    %109 = arith.mulf %108, %107 : vector<128x128xf32>
    %110 = math.exp %109 : vector<128x128xf32>
    %111 = arith.mulf %110, %55 : vector<128x128xf32>
    %cst_40 = arith.constant dense<0.000000e+00> : vector<128x32xf32>
    %112 = tpu.matmul %111, %2, %cst_40 {dimension_numbers = #tpu.dot_dimension_numbers<[1], [0], [0], [1], [0, 0, 1, 1], [], []>} : vector<128x128xf32>, vector<128x32xf32>, vector<128x32xf32> -> vector<128x32xf32>
    %113 = vector.extract_strided_slice %3 {offsets = [128, 0], sizes = [32, 32], strides = [1, 1]} : vector<288x32xf32> to vector<32x32xf32>
    %cst_41 = arith.constant dense<0.000000e+00> : vector<128x32xf32>
    %114 = tpu.matmul %112, %113, %cst_41 {dimension_numbers = #tpu.dot_dimension_numbers<[1], [0], [0], [1], [0, 0, 1, 1], [], []>} : vector<128x32xf32>, vector<32x32xf32>, vector<128x32xf32> -> vector<128x32xf32>
    %115 = arith.addf %104, %114 : vector<128x32xf32>
    %cst_42 = arith.constant 4.500000e+00 : f32
    %116 = vector.broadcast %cst_42 : f32 to vector<128x128xf32>
    %117 = arith.subf %25, %116 : vector<128x128xf32>
    %118 = arith.mulf %117, %117 : vector<128x128xf32>
    %cst_43 = arith.constant -2.000000e+00 : f32
    %119 = vector.broadcast %cst_43 : f32 to vector<128x128xf32>
    %120 = arith.mulf %119, %118 : vector<128x128xf32>
    %121 = math.exp %120 : vector<128x128xf32>
    %122 = arith.mulf %121, %55 : vector<128x128xf32>
    %cst_44 = arith.constant dense<0.000000e+00> : vector<128x32xf32>
    %123 = tpu.matmul %122, %2, %cst_44 {dimension_numbers = #tpu.dot_dimension_numbers<[1], [0], [0], [1], [0, 0, 1, 1], [], []>} : vector<128x128xf32>, vector<128x32xf32>, vector<128x32xf32> -> vector<128x32xf32>
    %124 = vector.extract_strided_slice %3 {offsets = [160, 0], sizes = [32, 32], strides = [1, 1]} : vector<288x32xf32> to vector<32x32xf32>
    %cst_45 = arith.constant dense<0.000000e+00> : vector<128x32xf32>
    %125 = tpu.matmul %123, %124, %cst_45 {dimension_numbers = #tpu.dot_dimension_numbers<[1], [0], [0], [1], [0, 0, 1, 1], [], []>} : vector<128x32xf32>, vector<32x32xf32>, vector<128x32xf32> -> vector<128x32xf32>
    %126 = arith.addf %115, %125 : vector<128x32xf32>
    %cst_46 = arith.constant 5.250000e+00 : f32
    %127 = vector.broadcast %cst_46 : f32 to vector<128x128xf32>
    %128 = arith.subf %25, %127 : vector<128x128xf32>
    %129 = arith.mulf %128, %128 : vector<128x128xf32>
    %cst_47 = arith.constant -2.000000e+00 : f32
    %130 = vector.broadcast %cst_47 : f32 to vector<128x128xf32>
    %131 = arith.mulf %130, %129 : vector<128x128xf32>
    %132 = math.exp %131 : vector<128x128xf32>
    %133 = arith.mulf %132, %55 : vector<128x128xf32>
    %cst_48 = arith.constant dense<0.000000e+00> : vector<128x32xf32>
    %134 = tpu.matmul %133, %2, %cst_48 {dimension_numbers = #tpu.dot_dimension_numbers<[1], [0], [0], [1], [0, 0, 1, 1], [], []>} : vector<128x128xf32>, vector<128x32xf32>, vector<128x32xf32> -> vector<128x32xf32>
    %135 = vector.extract_strided_slice %3 {offsets = [192, 0], sizes = [32, 32], strides = [1, 1]} : vector<288x32xf32> to vector<32x32xf32>
    %cst_49 = arith.constant dense<0.000000e+00> : vector<128x32xf32>
    %136 = tpu.matmul %134, %135, %cst_49 {dimension_numbers = #tpu.dot_dimension_numbers<[1], [0], [0], [1], [0, 0, 1, 1], [], []>} : vector<128x32xf32>, vector<32x32xf32>, vector<128x32xf32> -> vector<128x32xf32>
    %137 = arith.addf %126, %136 : vector<128x32xf32>
    %cst_50 = arith.constant 6.000000e+00 : f32
    %138 = vector.broadcast %cst_50 : f32 to vector<128x128xf32>
    %139 = arith.subf %25, %138 : vector<128x128xf32>
    %140 = arith.mulf %139, %139 : vector<128x128xf32>
    %cst_51 = arith.constant -2.000000e+00 : f32
    %141 = vector.broadcast %cst_51 : f32 to vector<128x128xf32>
    %142 = arith.mulf %141, %140 : vector<128x128xf32>
    %143 = math.exp %142 : vector<128x128xf32>
    %144 = arith.mulf %143, %55 : vector<128x128xf32>
    %cst_52 = arith.constant dense<0.000000e+00> : vector<128x32xf32>
    %145 = tpu.matmul %144, %2, %cst_52 {dimension_numbers = #tpu.dot_dimension_numbers<[1], [0], [0], [1], [0, 0, 1, 1], [], []>} : vector<128x128xf32>, vector<128x32xf32>, vector<128x32xf32> -> vector<128x32xf32>
    %146 = vector.extract_strided_slice %3 {offsets = [224, 0], sizes = [32, 32], strides = [1, 1]} : vector<288x32xf32> to vector<32x32xf32>
    %cst_53 = arith.constant dense<0.000000e+00> : vector<128x32xf32>
    %147 = tpu.matmul %145, %146, %cst_53 {dimension_numbers = #tpu.dot_dimension_numbers<[1], [0], [0], [1], [0, 0, 1, 1], [], []>} : vector<128x32xf32>, vector<32x32xf32>, vector<128x32xf32> -> vector<128x32xf32>
    %148 = arith.addf %137, %147 : vector<128x32xf32>
    %149 = math.tanh %148 : vector<128x32xf32>
    %c0_54 = arith.constant 0 : index
    %c0_55 = arith.constant 0 : index
    %150 = vector.load %arg6[%c0_54, %c0_55] : memref<32x32xf32, #tpu.memory_space<vmem>>, vector<32x32xf32>
    %cst_56 = arith.constant dense<0.000000e+00> : vector<128x32xf32>
    %151 = tpu.matmul %149, %150, %cst_56 {dimension_numbers = #tpu.dot_dimension_numbers<[1], [0], [0], [1], [0, 0, 1, 1], [], []>} : vector<128x32xf32>, vector<32x32xf32>, vector<128x32xf32> -> vector<128x32xf32>
    %c0_57 = arith.constant 0 : index
    %c0_58 = arith.constant 0 : index
    %152 = vector.load %arg7[%c0_57, %c0_58] : memref<1x32xf32, #tpu.memory_space<vmem>>, vector<1x32xf32>
    %153 = vector.broadcast %152 : vector<1x32xf32> to vector<128x32xf32>
    %154 = arith.addf %151, %153 : vector<128x32xf32>
    %155 = math.tanh %154 : vector<128x32xf32>
    %c0_59 = arith.constant 0 : index
    %c0_60 = arith.constant 0 : index
    %156 = vector.load %arg8[%c0_59, %c0_60] : memref<32x128xf32, #tpu.memory_space<vmem>>, vector<32x128xf32>
    %cst_61 = arith.constant dense<0.000000e+00> : vector<128x128xf32>
    %157 = tpu.matmul %155, %156, %cst_61 {dimension_numbers = #tpu.dot_dimension_numbers<[1], [0], [0], [1], [0, 0, 1, 1], [], []>} : vector<128x32xf32>, vector<32x128xf32>, vector<128x128xf32> -> vector<128x128xf32>
    %c0_62 = arith.constant 0 : index
    %c0_63 = arith.constant 0 : index
    %158 = vector.load %arg9[%c0_62, %c0_63] : memref<1x128xf32, #tpu.memory_space<vmem>>, vector<1x128xf32>
    %159 = vector.broadcast %158 : vector<1x128xf32> to vector<128x128xf32>
    %160 = arith.addf %157, %159 : vector<128x128xf32>
    %161 = vector.broadcast %5 : vector<128x1xf32> to vector<128x128xf32>
    %162 = arith.mulf %160, %161 : vector<128x128xf32>
    %c0_64 = arith.constant 0 : index
    %c0_65 = arith.constant 0 : index
    %163 = vector.load %arg10[%c0_64, %c0_65] : memref<128x128xf32, #tpu.memory_space<vmem>>, vector<128x128xf32>
    tpu.vector_store %arg10[%c0_64, %c0_65], %162 {strides = array<i32>} : memref<128x128xf32, #tpu.memory_space<vmem>>, vector<128x128xf32>,
    return
  }
  func.func @transform_0(%arg0: i32) -> (i32, i32) {
    %c0_i32 = arith.constant 0 : i32
    %c0_i32_0 = arith.constant 0 : i32
    return %arg0, %c0_i32 : i32, i32
  }
  func.func @transform_1(%arg0: i32) -> (i32, i32) {
    %c0_i32 = arith.constant 0 : i32
    %c0_i32_0 = arith.constant 0 : i32
    return %c0_i32, %arg0 : i32, i32
  }
  func.func @transform_2(%arg0: i32) -> (i32, i32) {
    %c0_i32 = arith.constant 0 : i32
    %c0_i32_0 = arith.constant 0 : i32
    return %arg0, %c0_i32 : i32, i32
  }
  func.func @transform_3(%arg0: i32) -> (i32, i32) {
    %c0_i32 = arith.constant 0 : i32
    %c0_i32_0 = arith.constant 0 : i32
    %c0_i32_1 = arith.constant 0 : i32
    return %c0_i32, %c0_i32_0 : i32, i32
  }
  func.func @transform_4(%arg0: i32) -> (i32, i32) {
    %c0_i32 = arith.constant 0 : i32
    %c0_i32_0 = arith.constant 0 : i32
    %c0_i32_1 = arith.constant 0 : i32
    return %c0_i32, %c0_i32_0 : i32, i32
  }
  func.func @transform_5(%arg0: i32) -> (i32, i32) {
    %c0_i32 = arith.constant 0 : i32
    %c0_i32_0 = arith.constant 0 : i32
    %c0_i32_1 = arith.constant 0 : i32
    return %c0_i32, %c0_i32_0 : i32, i32
  }
  func.func @transform_6(%arg0: i32) -> (i32, i32) {
    %c0_i32 = arith.constant 0 : i32
    %c0_i32_0 = arith.constant 0 : i32
    %c0_i32_1 = arith.constant 0 : i32
    return %c0_i32, %c0_i32_0 : i32, i32
  }
  func.func @transform_7(%arg0: i32) -> (i32, i32) {
    %c0_i32 = arith.constant 0 : i32
    %c0_i32_0 = arith.constant 0 : i32
    %c0_i32_1 = arith.constant 0 : i32
    return %c0_i32, %c0_i32_0 : i32, i32
  }
  func.func @transform_8(%arg0: i32) -> (i32, i32) {
    %c0_i32 = arith.constant 0 : i32
    %c0_i32_0 = arith.constant 0 : i32
    %c0_i32_1 = arith.constant 0 : i32
    return %c0_i32, %c0_i32_0 : i32, i32
  }
  func.func @transform_9(%arg0: i32) -> (i32, i32) {
    %c0_i32 = arith.constant 0 : i32
    %c0_i32_0 = arith.constant 0 : i32
    return %arg0, %c0_i32 : i32, i32
  }
}

</mosaic_0001>

<bundles_post_ra>
// kernel: tpu_custom_call.1
= control target key start
LH: loop header
LB: loop body
LE: loop exit
PB: predicated region body
PF: predicated region fallthrough
CT: control target
= control target key end

     0   :  { %vm168_vm0 = vcmask 1042432   ;;  %vm118_vm1 = vcmask 23552   ;;  %s11214_s0 = inlined_call_operand.vmem [shape: f32[128,4], index: 0, kind: input, shape index: {}]   ;;  %s11215_s1 = inlined_call_operand.vmem [shape: f32[4,128], index: 1, kind: input, shape index: {}]   ;;  %s11216_s2 = inlined_call_operand.vmem [shape: f32[128,32], index: 2, kind: input, shape index: {}]   ;;  %s11217_s3 = inlined_call_operand.vmem [shape: f32[288,32], index: 3, kind: input, shape index: {}]   ;;  %s11218_s4 = inlined_call_operand.vmem [shape: f32[1,32], index: 4, kind: input, shape index: {}]   ;;  %s11219_s5 = inlined_call_operand.vmem [shape: f32[32,32], index: 5, kind: input, shape index: {}]   ;;  %s11220_s6 = inlined_call_operand.vmem [shape: f32[1,32], index: 6, kind: input, shape index: {}]   ;;  %s11221_s7 = inlined_call_operand.vmem [shape: f32[32,128], index: 7, kind: input, shape index: {}]   ;;  %s11222_s8 = inlined_call_operand.vmem [shape: f32[1,128], index: 8, kind: input, shape index: {}]   ;;  %s11223_s9 = inlined_call_operand.hbm [shape: f32[128,128], index: 9, kind: output, shape index: {}]  }
   0x1   :  { %v7066_v0 = vld [vmem:[%s11215_s1] sm:$0xf]  ;;  %v35_v4 = vld [vmem:[%s11214_s0 + $0x10] sm:$0xff]  ;;  %v34_v8 = vld [vmem:[%s11214_s0 + $0x8] sm:$0xff] }
   0x2   :  { %v33_v1 = vld [vmem:[%s11214_s0] sm:$0xff]  ;;  %v167_v2 = vmul.f32 %v7066_v0, %v7066_v0  ;;  %6154 = vmatpush.msk.msra.mxu0 %vm168_vm0, %v7066_v0  ;;  %v104_v5 = vmul.f32 %v35_v4, %v35_v4 }
   0x3   :  { %v102_v3 = vmul.f32 %v33_v1, %v33_v1  ;;  %6155 = vmatmul.msk.f32.vlgmr.msra.gmra.mxu0 %vm118_vm1, %v33_v1 }
   0x4   :  { %v7078_v6 = vsel %vm168_vm0, %v167_v2, 0.0  ;;  %v125_v9 = vsel %vm118_vm1, %v104_v5, 0.0 }
   0x5   :  { %v119_v7 = vsel %vm118_vm1, %v102_v3, 0.0 }
   0x6   :  { %120 = vadd.xlane.f32.xlu0 %v119_v7 }
   0x7   :  { %14 = vsyncpa [#allocation3], 0  ;;  %v103_v10 = vmul.f32 %v34_v8, %v34_v8  ;;  %v36_v11 = vld [vmem:[%s11214_s0 + $0x18] sm:$0xff]  ;;  %126 = vadd.xlane.f32.xlu1 %v125_v9  ;;  %v37_v13 = vld [vmem:[%s11214_s0 + $0x20] sm:$0xff]  ;;  %v170_v51 = vrot.slane %v7078_v6, 4  ;;  %v7000_v61 = vmov 6.0  }
   0x8   :  { %v105_v12 = vmul.f32 %v36_v11, %v36_v11  ;;  %v106_v15 = vmul.f32 %v37_v13, %v37_v13  ;;  %v38_v18 = vld [vmem:[%s11214_s0 + $0x28] sm:$0xff]  ;;  %v39_v21 = vld [vmem:[%s11214_s0 + $0x30] sm:$0xff]  ;;  %v40_v24 = vld [vmem:[%s11214_s0 + $0x38] sm:$0xff]  ;;  %6582 = vrcp.f32 %v7000_v61  ;;  %v11237_v61 = vmov 0.0   ;;  %s6142_s12 = sshll.u32 %s11223_s9, 4  ;;  %s7011_s13 = smov 128   ;;  %s6143_s12 = int_to_ptr.hbm [resolvable:$true] %s6142_s12 }
   0x9   :  { %v122_v14 = vsel %vm118_vm1, %v103_v10, 0.0  ;;  %v107_v19 = vmul.f32 %v38_v18, %v38_v18  ;;  %v108_v22 = vmul.f32 %v39_v21, %v39_v21  ;;  %v109_v25 = vmul.f32 %v40_v24, %v40_v24  ;;  %v41_v27 = vld [vmem:[%s11214_s0 + $0x40] sm:$0xff]  ;;  %v42_v30 = vld [vmem:[%s11214_s0 + $0x48] sm:$0xff]  ;;  %v43_v33 = vld [vmem:[%s11214_s0 + $0x50] sm:$0xff]  ;;  %s7012_s14 = smov 8  }
   0xa   :  { %v128_v16 = vsel %vm118_vm1, %v105_v12, 0.0  ;;  %v131_v17 = vsel %vm118_vm1, %v106_v15, 0.0  ;;  %v110_v28 = vmul.f32 %v41_v27, %v41_v27  ;;  %v111_v31 = vmul.f32 %v42_v30, %v42_v30  ;;  %v44_v36 = vld [vmem:[%s11214_s0 + $0x58] sm:$0xff]  ;;  %v45_v39 = vld [vmem:[%s11214_s0 + $0x60] sm:$0xff]  ;;  %v46_v42 = vld [vmem:[%s11214_s0 + $0x68] sm:$0xff] }
   0xb   :  { %6156 = vmatmul.msk.f32.gmra.mxu0 %vm118_vm1, %v34_v8  ;;  %132 = vadd.xlane.f32.xlu2 %v131_v17  ;;  %v134_v20 = vsel %vm118_vm1, %v107_v19, 0.0  ;;  %v137_v23 = vsel %vm118_vm1, %v108_v22, 0.0  ;;  %v140_v26 = vsel %vm118_vm1, %v109_v25, 0.0  ;;  %v112_v34 = vmul.f32 %v43_v33, %v43_v33  ;;  %v47_v45 = vld [vmem:[%s11214_s0 + $0x70] sm:$0xff]  ;;  %v48_v48 = vld [vmem:[%s11214_s0 + $0x78] sm:$0xff] }
   0xc   :  { %v143_v29 = vsel %vm118_vm1, %v110_v28, 0.0  ;;  %v146_v32 = vsel %vm118_vm1, %v111_v31, 0.0  ;;  %v113_v37 = vmul.f32 %v44_v36, %v44_v36  ;;  %v114_v40 = vmul.f32 %v45_v39, %v45_v39 }
   0xd   :  { %v149_v35 = vsel %vm118_vm1, %v112_v34, 0.0  ;;  %v115_v43 = vmul.f32 %v46_v42, %v46_v42  ;;  %v116_v46 = vmul.f32 %v47_v45, %v47_v45  ;;  %v117_v49 = vmul.f32 %v48_v48, %v48_v48 }
   0xe   :  { %123 = vadd.xlane.f32.xlu0 %v122_v14  ;;  %v152_v38 = vsel %vm118_vm1, %v113_v37, 0.0  ;;  %v155_v41 = vsel %vm118_vm1, %v114_v40, 0.0  ;;  %v171_v52 = vadd.f32 %v170_v51, %v7078_v6  ;;  %v6583_v2 = vpop.eup %6582  ;;  %v564_v37 = vlaneseq }
   0xf   :  { %129 = vadd.xlane.f32.xlu1 %v128_v16  ;;  %v158_v44 = vsel %vm118_vm1, %v115_v43, 0.0  ;;  %v161_v47 = vsel %vm118_vm1, %v116_v46, 0.0  ;;  %v164_v50 = vsel %vm118_vm1, %v117_v49, 0.0  ;;  %v729_v3 = vmul.f32 6.0, %v6583_v2 }
  0x10   :  { %v172_v53 = vrot.slane %v171_v52, 2  ;;  %vm733_vm2 = vweird.f32 %v6583_v2  ;;  %v7176_v43 = vshrl.u32 %v564_v37, 7 }
  0x11   :  { %v730_v6 = vsub.f32 1.0, %v729_v3  ;;  %v11229_v3 = vmov 2102212464  }
  0x12   :  { %v173_v54 = vadd.f32 %v172_v53, %v171_v52  ;;  %11333 = vst [vmem:[#allocation6_spill] sm:$0xff] %v7176_v43 }
  0x13   :  { %6157 = vmatmul.msk.f32.gmra.mxu0 %vm118_vm1, %v35_v4  ;;  %135 = vadd.xlane.f32.xlu2 %v134_v20  ;;  %v731_v9 = vmul.f32 %v6583_v2, %v730_v6 }
  0x14   :  { %v174_v55 = vrot.slane %v173_v54, 1 }
  0x15   :  { %v732_v14 = vadd.f32 %v6583_v2, %v731_v9 }
  0x16   :  { %138 = vadd.xlane.f32.xlu0 %v137_v23  ;;  %v7155_v56 = vadd.f32 %v174_v55, %v173_v54 }
  0x17   :  { %141 = vadd.xlane.f32.xlu1 %v140_v26  ;;  %v7159_v20 = vsel %vm733_vm2, %v6583_v2, %v732_v14  ;;  %v11233_v14 = vmov 2475754826  }
  0x1b   :  { %6158 = vmatmul.msk.f32.gmra.mxu0 %vm118_vm1, %v36_v11  ;;  %144 = vadd.xlane.f32.xlu2 %v143_v29 }
  0x1e   :  { %147 = vadd.xlane.f32.xlu0 %v146_v32 }
  0x1f   :  { %150 = vadd.xlane.f32.xlu1 %v149_v35 }
  0x23   :  { %6159 = vmatmul.msk.f32.gmra.mxu0 %vm118_vm1, %v37_v13  ;;  %153 = vadd.xlane.f32.xlu2 %v152_v38 }
  0x26   :  { %156 = vadd.xlane.f32.xlu0 %v155_v41 }
  0x27   :  { %159 = vadd.xlane.f32.xlu1 %v158_v44  ;;  %v7178_v44 = vand.u32 127, %v564_v37 }
  0x29   :  { %11334 = vst [vmem:[#allocation7_spill] sm:$0xff] %v7178_v44  ;;  %v7183_v51 = vshra.s32 %v7178_v44, 4  ;;  %vm616_vm7 = vcmp.ne.s32.totalorder %v7176_v43, %v7178_v44 }
  0x2b   :  { %6160 = vmatmul.msk.f32.gmra.mxu0 %vm118_vm1, %v38_v18  ;;  %162 = vadd.xlane.f32.xlu2 %v161_v47  ;;  %11335 = vst [vmem:[#allocation8_spill] sm:$0xff] %v7183_v51 }
  0x2e   :  { %165 = vadd.xlane.f32.xlu0 %v164_v50  ;;  %v583_v50 = vshra.s32 %v7176_v43, 4 }
  0x30   :  { %vm7193_vm6 = vcmp.eq.s32.totalorder %v583_v50, %v7183_v51 }
  0x31   :  { %vm632_vm10 = vmand %vm7193_vm6, %vm616_vm7 }
  0x33   :  { %6161 = vmatmul.msk.f32.gmra.mxu0 %vm118_vm1, %v39_v21 }
  0x3b   :  { %6162 = vmatmul.msk.f32.gmra.mxu0 %vm118_vm1, %v40_v24 }
  0x43   :  { %6163 = vmatmul.msk.f32.gmra.mxu0 %vm118_vm1, %v41_v27 }
  0x4b   :  { %6164 = vmatmul.msk.f32.gmra.mxu0 %vm118_vm1, %v42_v30 }
  0x53   :  { %6165 = vmatmul.msk.f32.gmra.mxu0 %vm118_vm1, %v43_v33 }
  0x5b   :  { %6166 = vmatmul.msk.f32.gmra.mxu0 %vm118_vm1, %v44_v36 }
  0x63   :  { %6167 = vmatmul.msk.f32.gmra.mxu0 %vm118_vm1, %v45_v39 }
  0x6b   :  { %6168 = vmatmul.msk.f32.gmra.mxu0 %vm118_vm1, %v46_v42 }
  0x73   :  { %6169 = vmatmul.msk.f32.gmra.mxu0 %vm118_vm1, %v47_v45 }
  0x79   :  { %v121_v57 = vpop.xlane.xlu0 %120 }
  0x7a   :  { %v292_v58 = vadd.f32 %v7155_v56, %v121_v57  ;;  %v127_v33 = vpop.xlane.xlu1 %126 }
  0x7b   :  { %6170 = vmatmul.msk.f32.gmra.mxu0 %vm118_vm1, %v48_v48  ;;  %v294_v39 = vadd.f32 %v7155_v56, %v127_v33 }
  0x7e   :  { %v133_v36 = vpop.xlane.xlu2 %132 }
  0x80   :  { %v244_v59 = vpop.f32.mrf.mxu0 }
  0x81   :  { %v308_v60 = vmul.f32 2.0, %v244_v59  ;;  %v124_v11 = vpop.xlane.xlu0 %123 }
  0x82   :  { %v293_v17 = vadd.f32 %v7155_v56, %v124_v11  ;;  %v130_v49 = vpop.xlane.xlu1 %129 }
  0x83   :  { %v324_v62 = vsub.f32 %v292_v58, %v308_v60  ;;  %v295_v57 = vadd.f32 %v7155_v56, %v130_v49  ;;  %v7190_v60 = vadd.f32 %v7155_v56, %v133_v36 }
  0x85   :  { %v340_v63 = vmax.f32 %v324_v62, 0.0 }
  0x86   :  { %v136_v53 = vpop.xlane.xlu2 %135 }
  0x87   :  { %v356_v1 = vadd.f32 1e-12, %v340_v63  ;;  %v7198_v62 = vadd.f32 %v7155_v56, %v136_v53 }
  0x88   :  { %v247_v4 = vpop.f32.mrf.mxu0 }
  0x89   :  { %6584 = vrsqrt.f32 %v356_v1  ;;  %v309_v16 = vmul.f32 2.0, %v247_v4  ;;  %vm379_vm3 = vcmp.eq.f32.partialorder %v356_v1, inf  ;;  %v382_v19 = vand.u32 2147483648, %v356_v1 }
  0x8a   :  { %vm381_vm4 = vcmp.eq.f32.partialorder %v356_v1, 0.0 }
  0x8b   :  { %v325_v22 = vsub.f32 %v293_v17, %v309_v16 }
  0x8d   :  { %v341_v25 = vmax.f32 %v325_v22, 0.0 }
  0x8f   :  { %v6585_v5 = vpop.eup %6584  ;;  %v7165_v28 = vadd.f32 1e-12, %v341_v25  ;;  %v11235_v25 = vmov 683565275  }
  0x90   :  { %v373_v7 = vmul.f32 %v6585_v5, %v356_v1  ;;  %v250_v13 = vpop.f32.mrf.mxu0 }
  0x91   :  { %6586 = vrsqrt.f32 %v7165_v28  ;;  %v310_v40 = vmul.f32 2.0, %v250_v13  ;;  %v139_v13 = vpop.xlane.xlu0 %138  ;;  %vm391_vm13 = vcmp.eq.f32.partialorder %v7165_v28, inf  ;;  %vm393_vm14 = vcmp.eq.f32.partialorder %v7165_v28, 0.0 }
  0x92   :  { %v374_v8 = vmul.f32 %v6585_v5, %v373_v7 }
  0x93   :  { %v326_v45 = vsub.f32 %v294_v39, %v310_v40 }
  0x94   :  { %v375_v10 = vmul.f32 0.5, %v374_v8 }
  0x95   :  { %v342_v52 = vmax.f32 %v326_v45, 0.0 }
  0x96   :  { %v376_v12 = vsub.f32 1.5, %v375_v10  ;;  %v11225_v10 = vmov 1326507024  }
  0x97   :  { %v7171_v35 = vpop.eup %6586  ;;  %v7200_v63 = vadd.f32 1e-12, %v342_v52  ;;  %v7260_v52 = vperm.slane %v7066_v0, 3 }
  0x98   :  { %v377_v15 = vmul.f32 %v6585_v5, %v376_v12  ;;  %v253_v26 = vpop.f32.mrf.mxu0  ;;  %v385_v41 = vmul.f32 %v7171_v35, %v7165_v28  ;;  %v11227_v5 = vmov 920167782  }
  0x99   :  { %v311_v58 = vmul.f32 2.0, %v253_v26  ;;  %6588 = vrsqrt.f32 %v7200_v63  ;;  %vm405_vm7 = vcmp.eq.f32.partialorder %v7200_v63, 0.0 }
  0x9a   :  { %v378_v18 = vmul.f32 %v377_v15, %v356_v1  ;;  %v386_v48 = vmul.f32 %v7171_v35, %v385_v41 }
  0x9b   :  { %v327_v8 = vsub.f32 %v295_v57, %v311_v58 }
  0x9c   :  { %v380_v21 = vsel %vm379_vm3, %v356_v1, %v378_v18  ;;  %v387_v55 = vmul.f32 0.5, %v386_v48  ;;  %v11231_v1 = vmov 2131351028  }
  0x9d   :  { %v7161_v23 = vsel %vm381_vm4, %v382_v19, %v380_v21  ;;  %v343_v39 = vmax.f32 %v327_v8, 0.0  ;;  %vm403_vm4 = vcmp.eq.f32.partialorder %v7200_v63, inf }
  0x9e   :  { %11332 = vst [vmem:[#allocation5_spill] sm:$0xff] %v7161_v23  ;;  %v735_v24 = vmul.f32 %v7159_v20, %v7161_v23  ;;  %v388_v7 = vsub.f32 1.5, %v387_v55  ;;  %vm680_vm15 = vcmp.lt.f32.partialorder %v7161_v23, 6.0 }
  0x9f   :  { %v7265_v57 = vpop.eup %6588  ;;  %v7267_v58 = vadd.f32 1e-12, %v343_v39 }
  0xa0   :  { %v751_v27 = vmin.f32 %v735_v24, 1.0  ;;  %v256_v31 = vpop.f32.mrf.mxu0 }
  0xa1   :  { %v312_v19 = vmul.f32 2.0, %v256_v31  ;;  %6590 = vrsqrt.f32 %v7267_v58 }
  0xa2   :  { %v7167_v29 = vmul.f32 3.1415927, %v751_v27 }
  0xa3   :  { %v328_v40 = vsub.f32 %v7190_v60, %v312_v19 }
  0xa4   :  { %v786_v30 = vand.u32 2139095040, %v7167_v29  ;;  %v11224_v59 = vand.u32 2147483647, %v7167_v29 }
  0xa6   :  { %v787_v32 = vshrl.u32 %v786_v30, 23  ;;  %v790_v9 = vand.u32 8388607, %v11224_v59 }
  0xa8   :  { %v6203_v34 = vadd.s32 4294967169, %v787_v32  ;;  %v259_v46 = vpop.f32.mrf.mxu0  ;;  %v791_v36 = vor.u32 8388608, %v790_v9 }
  0xa9   :  { %v313_v21 = vmul.f32 2.0, %v259_v46 }
  0xaa   :  { %v793_v38 = vadd.s32 1, %v6203_v34  ;;  %v298_v34 = vadd.f32 %v7155_v56, %v139_v13 }
  0xab   :  { %v329_v41 = vsub.f32 %v7198_v62, %v313_v21  ;;  %v6171_v62 = vsel %vm632_vm10, 1.0, %v11237_v61  ;;  %vm417_vm10 = vcmp.eq.f32.partialorder %v7267_v58, 0.0 }
  0xac   :  { %vm794_vm5 = vcmp.gt.s32.totalorder %v793_v38, 0 }
  0xad   :  { %v795_v42 = vsel %vm794_vm5, %v793_v38, 0  ;;  %v389_v38 = vmul.f32 %v7171_v35, %v388_v7  ;;  %v142_v7 = vpop.xlane.xlu1 %141 }
  0xae   :  { %v797_v47 = vand.u32 31, %v795_v42  ;;  %v7217_v22 = vshrl.u32 %v795_v42, 5  ;;  %v7291_v19 = vadd.f32 %v7155_v56, %v142_v7  ;;  %v6187_v7 = vsel %vm680_vm15, 1.0, %v11237_v61  ;;  %v7445_v61 = vld [vmem:[%s11216_s2 + $0x38] sm:$0xff] }
  0xaf   :  { %v390_v53 = vmul.f32 %v389_v38, %v7165_v28 }
  0xb0   :  { %v7185_v54 = vsub.s32 32, %v797_v47  ;;  %v262_v12 = vpop.f32.mrf.mxu0  ;;  %v803_v16 = vshll.u32 %v11233_v14, %v797_v47  ;;  %v806_v17 = vshll.u32 %v11231_v1, %v797_v47  ;;  %v809_v18 = vshll.u32 %v11229_v3, %v797_v47 }
  0xb1   :  { %v812_v24 = vshll.u32 %v11227_v5, %v797_v47  ;;  %v800_v26 = vshll.u32 %v11235_v25, %v797_v47  ;;  %v314_v33 = vmul.f32 2.0, %v262_v12  ;;  %vm815_vm8 = vcmp.lt.s32.totalorder %v7217_v22, 1 }
  0xb2   :  { %v804_v2 = vshrl.u32 %v11231_v1, %v7185_v54  ;;  %v807_v4 = vshrl.u32 %v11229_v3, %v7185_v54  ;;  %v810_v6 = vshrl.u32 %v11227_v5, %v7185_v54  ;;  %v813_v11 = vshrl.u32 %v11225_v10, %v7185_v54 }
  0xb3   :  { %v801_v15 = vshrl.u32 %v11233_v14, %v7185_v54  ;;  %vm818_vm9 = vcmp.lt.s32.totalorder %v7217_v22, 4  ;;  %v330_v46 = vsub.f32 %v298_v34, %v314_v33  ;;  %vm817_vm11 = vcmp.lt.s32.totalorder %v7217_v22, 3 }
  0xb4   :  { %v7221_v27 = vor.u32 %v804_v2, %v803_v16  ;;  %v7223_v30 = vor.u32 %v807_v4, %v806_v17  ;;  %v811_v32 = vor.u32 %v810_v6, %v809_v18  ;;  %v814_v37 = vor.u32 %v813_v11, %v812_v24 }
  0xb5   :  { %v7229_v31 = vor.u32 %v801_v15, %v800_v26  ;;  %v7247_v47 = vshll.u32 %v791_v36, 8  ;;  %vm816_vm12 = vcmp.lt.s32.totalorder %v7217_v22, 2  ;;  %v344_v6 = vmax.f32 %v328_v40, 0.0  ;;  %v7306_v36 = vld [vmem:[%s11216_s2 + $0x78] sm:$0xff]  ;;  %v7315_v40 = vld [vmem:[%s11216_s2 + $0x70] sm:$0xff] }
  0xb6   :  { %v824_v42 = vsel %vm818_vm9, %v811_v32, 920167782  ;;  %v827_v45 = vsel %vm815_vm8, %v7221_v27, %v7223_v30  ;;  %v828_v35 = vsel %vm818_vm9, %v814_v37, 1326507024  ;;  %v345_v11 = vmax.f32 %v329_v41, 0.0  ;;  %11339 = vst [vmem:[#allocation10_spill] sm:$0xff] %v7306_v36  ;;  %3542 = vmatpush.msra.mxu2 %v7306_v36  ;;  %3832 = vmatpush.msrb.mxu0 %v7306_v36 }
  0xb7   :  { %v823_v48 = vsel %vm815_vm8, %v7229_v31, %v7221_v27  ;;  %v825_v49 = vsel %vm817_vm11, %v7223_v30, %v824_v42  ;;  %v829_v50 = vsel %vm817_vm11, %v811_v32, %v828_v35  ;;  %v832_v8 = vand.u32 65535, %v7247_v47  ;;  %11340 = vst [vmem:[#allocation11_spill] sm:$0xff] %v7315_v40 }
  0xb8   :  { %v830_v55 = vsel %vm816_vm12, %v827_v45, %v829_v50  ;;  %v265_v60 = vpop.f32.mrf.mxu0  ;;  %v7272_v0 = vsel %vm816_vm12, %v823_v48, %v825_v49  ;;  %v7276_v9 = vshrl.u32 %v7247_v47, 16  ;;  %v346_v12 = vmax.f32 %v330_v46, 0.0  ;;  %3543 = vmatpush.msra.mxu2 %v7315_v40  ;;  %3833 = vmatpush.msrb.mxu0 %v7315_v40 }
  0xb9   :  { %v834_v2 = vand.u32 65535, %v830_v55  ;;  %v835_v4 = vshrl.u32 %v830_v55, 16  ;;  %v392_v13 = vsel %vm391_vm13, %v7165_v28, %v390_v53  ;;  %v394_v15 = vand.u32 2147483648, %v7165_v28  ;;  %v7333_v53 = vpop.eup %6590 }
  0xba   :  { %v397_v18 = vmul.f32 %v7265_v57, %v7200_v63  ;;  %v857_v21 = vshrl.u32 %v7272_v0, 16  ;;  %v7294_v24 = vadd.f32 1e-12, %v344_v6  ;;  %v7299_v33 = vadd.f32 1e-12, %v345_v11 }
  0xbb   :  { %v7282_v16 = vmul.u32 %v835_v4, %v832_v8  ;;  %v7285_v17 = vmul.u32 %v834_v2, %v7276_v9  ;;  %v836_v26 = vmul.u32 %v834_v2, %v832_v8  ;;  %v7297_v32 = vsel %vm393_vm14, %v394_v15, %v392_v13 }
  0xbc   :  { %11338 = vst [vmem:[#allocation9_spill] sm:$0xff] %v7297_v32  ;;  %v7301_v34 = vadd.f32 1e-12, %v346_v12  ;;  %v315_v37 = vmul.f32 2.0, %v265_v60  ;;  %v839_v41 = vmul.u32 %v835_v4, %v7276_v9  ;;  %v11239_v42 = vmov 0   ;;  %v7341_v60 = vld [vmem:[%s11216_s2 + $0x68] sm:$0xff] }
  0xbd   :  { %v840_v28 = vshll.u32 %v7282_v16, 16  ;;  %v842_v38 = vshll.u32 %v7285_v17, 16  ;;  %v856_v46 = vand.u32 65535, %v7272_v0  ;;  %v7320_v35 = vmul.u32 %v857_v21, %v832_v8  ;;  %11343 = vst [vmem:[#allocation12_spill] sm:$0xff] %v7341_v60  ;;  %3544 = vmatpush.msra.mxu2 %v7341_v60  ;;  %3834 = vmatpush.msrb.mxu0 %v7341_v60 }
  0xbe   :  { %v398_v48 = vmul.f32 %v7265_v57, %v397_v18  ;;  %6592 = vrsqrt.f32 %v7294_v24  ;;  %v7331_v50 = vadd.s32 8, %v7176_v43  ;;  %v3280_v4 = vmul.f32 %v6171_v62, %v7260_v52  ;;  %v7358_v62 = vld [vmem:[%s11216_s2 + $0x60] sm:$0xff] }
  0xbf   :  { %vm844_vm0 = vc.u32 %v836_v26, %v840_v28  ;;  %v846_v39 = vadd.s32 %v840_v28, %v836_v26  ;;  %6594 = vrsqrt.f32 %v7299_v33  ;;  %v736_v6 = vmul.f32 %v7159_v20, %v7297_v32  ;;  %11344 = vst [vmem:[#allocation13_spill] sm:$0xff] %v7358_v62  ;;  %3545 = vmatpush.msra.mxu2 %v7358_v62 }
  0xc0   :  { %v845_v45 = vsel %vm844_vm0, 1, %v11239_v42  ;;  %v7336_v55 = vpop.f32.mrf.mxu0  ;;  %6596 = vrsqrt.f32 %v7301_v34  ;;  %v6267_v0 = vadd.f32 -0.75, %v7161_v23  ;;  %v6299_v11 = vadd.f32 -1.5, %v7161_v23  ;;  %3835 = vmatpush.msrb.mxu0 %v7358_v62 }
  0xc1   :  { %vm7326_vm1 = vc.u32 %v846_v39, %v842_v38  ;;  %v847_v2 = vadd.s32 %v845_v45, %v839_v41  ;;  %v331_v12 = vsub.f32 %v7291_v19, %v315_v37  ;;  %v858_v15 = vmul.u32 %v856_v46, %v832_v8  ;;  %v145_v39 = vpop.xlane.xlu2 %144  ;;  %v7378_v8 = vld [vmem:[%s11216_s2 + $0x58] sm:$0xff] }
  0xc2   :  { %v849_v13 = vsel %vm7326_vm1, 1, %v11239_v42  ;;  %v862_v18 = vshll.u32 %v7320_v35, 16  ;;  %v7364_v26 = vmul.f32 0.5, %v398_v48  ;;  %v7370_v19 = vmul.u32 %v856_v46, %v7276_v9  ;;  %11345 = vst [vmem:[#allocation14_spill] sm:$0xff] %v7378_v8  ;;  %3546 = vmatpush.msra.mxu2 %v7378_v8  ;;  %3836 = vmatpush.msrb.mxu0 %v7378_v8 }
  0xc3   :  { %v409_v38 = vmul.f32 %v7333_v53, %v7267_v58  ;;  %v851_v41 = vadd.s32 %v849_v13, %v847_v2  ;;  %v752_v45 = vmin.f32 %v736_v6, 1.0  ;;  %v861_v46 = vmul.u32 %v857_v21, %v7276_v9  ;;  %v7393_v2 = vld [vmem:[%s11216_s2 + $0x50] sm:$0xff] }
  0xc4   :  { %vm866_vm2 = vc.u32 %v858_v15, %v862_v18  ;;  %v7380_v48 = vpop.eup %6592  ;;  %v868_v59 = vadd.s32 %v862_v18, %v858_v15  ;;  %v7386_v10 = vmul.f32 %v6187_v7, %v3280_v4  ;;  %v347_v3 = vmax.f32 %v331_v12, 0.0  ;;  %11346 = vst [vmem:[#allocation15_spill] sm:$0xff] %v7393_v2  ;;  %3547 = vmatpush.msra.mxu2 %v7393_v2 }
  0xc5   :  { %v867_v49 = vsel %vm866_vm2, 1, %v11239_v42  ;;  %v7388_v5 = vpop.eup %6594  ;;  %v841_v6 = vshrl.u32 %v7282_v16, 16  ;;  %v3462_v13 = vmul.f32 %v6267_v0, %v6267_v0  ;;  %v7396_v1 = vmul.f32 %v6299_v11, %v6299_v11  ;;  %3837 = vmatpush.msrb.mxu0 %v7393_v2  ;;  %v7412_v0 = vld [vmem:[%s11216_s2 + $0x48] sm:$0xff] }
  0xc6   :  { %v7398_v14 = vpop.eup %6596  ;;  %v7402_v21 = vadd.f32 %v7155_v56, %v145_v39  ;;  %v864_v4 = vshll.u32 %v7370_v19, 16  ;;  %v869_v7 = vadd.s32 %v867_v49, %v861_v46  ;;  %v400_v12 = vsub.f32 1.5, %v7364_v26  ;;  %11347 = vst [vmem:[#allocation16_spill] sm:$0xff] %v7412_v0  ;;  %3548 = vmatpush.msra.mxu2 %v7412_v0  ;;  %v148_v46 = vpop.xlane.xlu0 %147  ;;  %v7432_v49 = vld [vmem:[%s11216_s2 + $0x40] sm:$0xff] }
  0xc7   :  { %v410_v16 = vmul.f32 %v7333_v53, %v409_v38  ;;  %v852_v11 = vadd.s32 %v851_v41, %v841_v6  ;;  %v7414_v15 = vmul.f32 3.1415927, %v752_v45  ;;  %v421_v18 = vmul.f32 %v7380_v48, %v7294_v24  ;;  %3838 = vmatpush.msrb.mxu0 %v7412_v0  ;;  %11349 = vst [vmem:[#allocation18_spill] sm:$0xff] %v7432_v49 }
  0xc8   :  { %v799_v26 = vshrl.u32 %v11235_v25, %v7185_v54  ;;  %v820_v38 = vsel %vm818_vm9, %v7223_v30, 2102212464  ;;  %vm870_vm3 = vc.u32 %v868_v59, %v864_v4  ;;  %v433_v39 = vmul.f32 %v7388_v5, %v7299_v33  ;;  %v271_v45 = vpop.f32.mrf.mxu0  ;;  %3549 = vmatpush.msra.mxu2 %v7432_v49 }
  0xc9   :  { %11348 = vst [vmem:[#allocation17_spill] sm:$0xff] %v7414_v15  ;;  %v7427_v41 = vadd.f32 1e-12, %v347_v3  ;;  %v843_v6 = vshrl.u32 %v7285_v17, 16  ;;  %v871_v54 = vsel %vm870_vm3, 1, %v11239_v42  ;;  %v445_v30 = vmul.f32 %v7398_v14, %v7301_v34  ;;  %3839 = vmatpush.msrb.mxu0 %v7432_v49 }
  0xca   :  { %v316_v25 = vmul.f32 2.0, %v7336_v55  ;;  %v863_v3 = vshrl.u32 %v7320_v35, 16  ;;  %v873_v9 = vadd.s32 %v871_v54, %v869_v7  ;;  %v819_v17 = vsel %vm815_vm8, %v799_v26, %v7229_v31  ;;  %3550 = vmatpush.msra.mxu2 %v7445_v61 }
  0xcb   :  { %v821_v55 = vsel %vm817_vm11, %v7221_v27, %v820_v38  ;;  %v7453_v42 = vadd.s32 %v852_v11, %v843_v6  ;;  %v940_v28 = vand.u32 2139095040, %v7414_v15  ;;  %v411_v37 = vmul.f32 0.5, %v410_v16  ;;  %3840 = vmatpush.msrb.mxu0 %v7445_v61  ;;  %v7468_v27 = vld [vmem:[%s11216_s2 + $0x30] sm:$0xff] }
  0xcc   :  { %v7457_v35 = vadd.f32 %v7155_v56, %v148_v46  ;;  %v865_v7 = vshrl.u32 %v7370_v19, 16  ;;  %v874_v54 = vadd.s32 %v873_v9, %v863_v3  ;;  %v422_v31 = vmul.f32 %v7380_v48, %v421_v18  ;;  %3551 = vmatpush.msra.mxu2 %v7468_v27  ;;  %v151_v3 = vpop.xlane.xlu1 %150 }
  0xcd   :  { %v434_v26 = vmul.f32 %v7388_v5, %v433_v39  ;;  %6598 = vrsqrt.f32 %v7427_v41  ;;  %v7470_v16 = vadd.s32 %v868_v59, %v864_v4  ;;  %v332_v11 = vsub.f32 %v7402_v21, %v316_v25  ;;  %3841 = vmatpush.msrb.mxu0 %v7468_v27  ;;  %v7482_v59 = vld [vmem:[%s11216_s2 + $0x28] sm:$0xff] }
  0xce   :  { %v317_v38 = vmul.f32 2.0, %v271_v45  ;;  %v822_v19 = vsel %vm816_vm12, %v819_v17, %v821_v55  ;;  %v875_v9 = vadd.s32 %v874_v54, %v865_v7  ;;  %v446_v18 = vmul.f32 %v7398_v14, %v445_v30  ;;  %3552 = vmatpush.msra.mxu2 %v7482_v59  ;;  %v101_v30 = vld [vmem:[%s11217_s3 + $0x118] sm:$0xff] }
  0xcf   :  { %vm878_vm5 = vc.u32 %v7453_v42, %v7470_v16  ;;  %v3478_v25 = vmul.f32 -2.0, %v3462_v13  ;;  %v941_v21 = vshrl.u32 %v940_v28, 23  ;;  %v401_v4 = vmul.f32 %v7265_v57, %v400_v12  ;;  %3842 = vmatpush.msrb.mxu0 %v7482_v59  ;;  %v7496_v28 = vld [vmem:[%s11216_s2 + $0x20] sm:$0xff]  ;;  %3393 = vmatpush.msra.mxu1 %v101_v30  ;;  %v7524_v54 = vld [vmem:[%s11216_s2 + $0x18] sm:$0xff] }
  0xd0   :  { %v412_v39 = vsub.f32 1.5, %v411_v37  ;;  %v879_v22 = vadd.s32 1, %v875_v9  ;;  %v3768_v45 = vmul.f32 -2.0, %v7396_v1  ;;  %v423_v46 = vmul.f32 0.5, %v422_v31  ;;  %11350 = vst [vmem:[#allocation19_spill] sm:$0xff] %v7496_v28  ;;  %3553 = vmatpush.msra.mxu2 %v7496_v28  ;;  %v274_v7 = vpop.f32.mrf.mxu0 }
  0xd1   :  { %v435_v6 = vmul.f32 0.5, %v434_v26  ;;  %v876_v57 = vmul.u32 %v7247_v47, %v822_v19  ;;  %v11351_v37 = vshra.s32 %v7331_v50, 4  ;;  %v348_v1 = vmax.f32 %v332_v11, 0.0  ;;  %3843 = vmatpush.msrb.mxu0 %v7496_v28  ;;  %11354 = vst [vmem:[#allocation20_spill] sm:$0xff] %v7524_v54 }
  0xd2   :  { %v333_v12 = vsub.f32 %v7457_v35, %v317_v38  ;;  %v880_v47 = vsel %vm878_vm5, %v879_v22, %v875_v9  ;;  %vm617_vm8 = vcmp.ne.s32.totalorder %v7331_v50, %v7178_v44  ;;  %vm415_vm9 = vcmp.eq.f32.partialorder %v7267_v58, inf  ;;  %v100_v35 = vld [vmem:[%s11217_s3 + $0x110] sm:$0xff]  ;;  %3554 = vmatpush.msra.mxu2 %v7524_v54 }
  0xd3   :  { %vm7502_vm6 = vcmp.eq.s32.totalorder %v11351_v37, %v7183_v51  ;;  %v7514_v17 = vpop.eup %6598  ;;  %v447_v55 = vmul.f32 0.5, %v446_v18  ;;  %v881_v31 = vadd.s32 %v880_v47, %v876_v57  ;;  %v3494_v26 = vmul.f32 1.442695, %v3478_v25  ;;  %3394 = vmatpush.msra.mxu1 %v100_v35  ;;  %3844 = vmatpush.msrb.mxu0 %v7524_v54  ;;  %v99_v25 = vld [vmem:[%s11217_s3 + $0x108] sm:$0xff]  ;;  %v98_v57 = vld [vmem:[%s11217_s3 + $0x100] sm:$0xff] }
  0xd4   :  { %v6206_v11 = vadd.s32 4294967169, %v941_v21  ;;  %v402_v38 = vmul.f32 %v401_v4, %v7200_v63  ;;  %v413_v19 = vmul.f32 %v7333_v53, %v412_v39  ;;  %v3784_v18 = vmul.f32 1.442695, %v3768_v45  ;;  %v7538_v53 = vld [vmem:[%s11216_s2 + $0x10] sm:$0xff]  ;;  %vm633_vm13 = vmand %vm7502_vm6, %vm617_vm8  ;;  %v160_v44 = vpop.xlane.xlu1 %159 }
  0xd5   :  { %v424_v22 = vsub.f32 1.5, %v423_v46  ;;  %v436_v30 = vsub.f32 1.5, %v435_v6  ;;  %v302_v37 = vadd.f32 %v7155_v56, %v151_v3  ;;  %11355 = vst [vmem:[#allocation21_spill] sm:$0xff] %v7538_v53  ;;  %v882_v21 = vadd.s32 536870912, %v881_v31  ;;  %3395 = vmatpush.msra.mxu1 %v99_v25  ;;  %3555 = vmatpush.msra.mxu2 %v7538_v53  ;;  %v7553_v3 = vld [vmem:[%s11216_s2 + $0x8] sm:$0xff] }
  0xd6   :  { %v457_v4 = vmul.f32 %v7514_v17, %v7427_v41  ;;  %v7543_v39 = vadd.f32 1e-12, %v348_v1  ;;  %v349_v45 = vmax.f32 %v333_v12, 0.0  ;;  %v318_v46 = vmul.f32 2.0, %v274_v7  ;;  %3845 = vmatpush.msrb.mxu0 %v7538_v53  ;;  %11356 = vst [vmem:[#allocation22_spill] sm:$0xff] %v7553_v3  ;;  %v7566_v7 = vld [vmem:[%s11216_s2] sm:$0xff] }
  0xd7   :  { %v448_v6 = vsub.f32 1.5, %v447_v55  ;;  %v7555_v47 = vshrl.u32 %v882_v21, 30  ;;  %6600 = vpow2.f32 %v3494_v26  ;;  %v947_v1 = vadd.s32 1, %v6206_v11  ;;  %3396 = vmatpush.msra.mxu1 %v98_v57  ;;  %3556 = vmatpush.msra.mxu2 %v7553_v3  ;;  %11357 = vst [vmem:[#allocation23_spill] sm:$0xff] %v7566_v7 }
  0xd8   :  { %v404_v12 = vsel %vm403_vm4, %v7200_v63, %v402_v38  ;;  %v414_v55 = vmul.f32 %v413_v19, %v7267_v58  ;;  %vm427_vm11 = vcmp.eq.f32.partialorder %v7294_v24, inf  ;;  %vm3332_vm12 = vcmask 261120   ;;  %3846 = vmatpush.msrb.mxu0 %v7553_v3 }
  0xd9   :  { %6602 = vpow2.f32 %v3784_v18  ;;  %v425_v35 = vmul.f32 %v7380_v48, %v424_v22  ;;  %v437_v26 = vmul.f32 %v7388_v5, %v436_v30  ;;  %6251 = vmatmul.msk.f32.vlgmr.msra.gmra.mxu1 %vm3332_vm12, %v7566_v7  ;;  %v884_v11 = vshll.u32 %v7555_v47, 30  ;;  %3557 = vmatpush.msra.mxu2 %v7566_v7 }
  0xda   :  { %vm681_vm14 = vcmp.lt.f32.partialorder %v7297_v32, 6.0  ;;  %v458_v38 = vmul.f32 %v7514_v17, %v457_v4  ;;  %6604 = vrsqrt.f32 %v7543_v39  ;;  %v7582_v5 = vadd.f32 1e-12, %v349_v45  ;;  %3847 = vmatpush.msrb.mxu0 %v7566_v7 }
  0xdb   :  { %v334_v48 = vsub.f32 %v302_v37, %v318_v46  ;;  %v11358_v19 = vand.u32 2147483648, %v7200_v63  ;;  %vm429_vm15 = vcmp.eq.f32.partialorder %v7294_v24, 0.0  ;;  %v449_v50 = vmul.f32 %v7398_v14, %v448_v6 }
  0xdc   :  { %v7594_v13 = vsub.s32 %v881_v31, %v884_v11  ;;  %vm948_vm0 = vcmp.gt.s32.totalorder %v947_v1, 0  ;;  %v416_v22 = vsel %vm415_vm9, %v7267_v58, %v414_v55  ;;  %vm439_vm1 = vcmp.eq.f32.partialorder %v7299_v33, inf  ;;  %4412 = vmatpush.msra.mxu0 %v7306_v36 }
  0xdd   :  { %v7589_v18 = vsel %vm405_vm7, %v11358_v19, %v404_v12  ;;  %v11360_v30 = vmov 0.0   ;;  %v7607_v14 = vpop.eup %6600  ;;  %v426_v31 = vmul.f32 %v425_v35, %v7294_v24  ;;  %v438_v25 = vmul.f32 %v437_v26, %v7299_v33  ;;  %v154_v26 = vpop.xlane.xlu2 %153 }
  0xde   :  { %11359 = vst [vmem:[#allocation24_spill] sm:$0xff] %v7589_v18  ;;  %v7601_v37 = vsel %vm633_vm13, 1.0, %v11360_v30  ;;  %v7604_v63 = vsel %vm681_vm14, 1.0, %v11360_v30  ;;  %vm886_vm2 = vcmp.lt.s32.totalorder %v7594_v13, 0  ;;  %v887_v21 = vsub.s32 0, %v7594_v13  ;;  %4413 = vmatpush.msra.mxu0 %v7315_v40 }
  0xdf   :  { %11361 = vst [vmem:[#allocation25_spill] sm:$0xff] %v7604_v63  ;;  %v7613_v4 = vpop.eup %6602  ;;  %v459_v45 = vmul.f32 0.5, %v458_v38  ;;  %6606 = vrsqrt.f32 %v7582_v5  ;;  %v350_v46 = vmax.f32 %v334_v48, 0.0  ;;  %v7616_v6 = vsel %vm948_vm0, %v947_v1, 0  ;;  %v277_v1 = vpop.f32.mrf.mxu0 }
  0xe0   :  { %v11362_v57 = vand.u32 2147483648, %v7267_v58  ;;  %vm441_vm3 = vcmp.eq.f32.partialorder %v7299_v33, 0.0  ;;  %v442_v55 = vand.u32 2147483648, %v7299_v33  ;;  %v450_v35 = vmul.f32 %v449_v50, %v7301_v34  ;;  %v7628_v11 = vpop.eup %6604  ;;  %4414 = vmatpush.msra.mxu0 %v7341_v60  ;;  %v157_v50 = vpop.xlane.xlu0 %156 }
  0xe1   :  { %vm451_vm4 = vcmp.eq.f32.partialorder %v7301_v34, inf  ;;  %vm453_vm5 = vcmp.eq.f32.partialorder %v7301_v34, 0.0  ;;  %v888_v58 = vsel %vm886_vm2, %v887_v21, %v7594_v13  ;;  %v428_v48 = vsel %vm427_vm11, %v7294_v24, %v426_v31  ;;  %6252 = vmatmul.msk.f32.gmra.mxu1 %vm3332_vm12, %v7553_v3 }
  0xe2   :  { %v7623_v12 = vsel %vm417_vm10, %v11362_v57, %v416_v22  ;;  %v454_v19 = vand.u32 2147483648, %v7301_v34  ;;  %v889_v22 = vclz %v888_v58  ;;  %v951_v57 = vand.u32 31, %v7616_v6  ;;  %4415 = vmatpush.msra.mxu0 %v7358_v62 }
  0xe3   :  { %11363 = vst [vmem:[#allocation26_spill] sm:$0xff] %v7623_v12  ;;  %v440_v21 = vsel %vm439_vm1, %v7299_v33, %v438_v25  ;;  %v460_v38 = vsub.f32 1.5, %v459_v45  ;;  %v7647_v9 = vadd.f32 1e-12, %v350_v46  ;;  %v7650_v23 = vadd.f32 %v7155_v56, %v154_v26 }
  0xe4   :  { %v452_v31 = vsel %vm451_vm4, %v7301_v34, %v450_v35  ;;  %v469_v58 = vmul.f32 %v7628_v11, %v7543_v39  ;;  %v319_v30 = vmul.f32 2.0, %v277_v1  ;;  %v6204_v51 = vadd.s32 4294967294, %v889_v22  ;;  %4416 = vmatpush.msra.mxu0 %v7378_v8 }
  0xe5   :  { %v7658_v43 = vpop.eup %6606  ;;  %v11364_v25 = vand.u32 2147483648, %v7294_v24  ;;  %v7668_v26 = vadd.f32 %v7155_v56, %v157_v50  ;;  %v11366_v35 = vand.u32 2147483647, %v7414_v15  ;;  %v7675_v1 = vsel %vm441_vm3, %v442_v55, %v440_v21 }
  0xe6   :  { %11367 = vst [vmem:[#allocation28_spill] sm:$0xff] %v7675_v1  ;;  %vm6205_vm6 = vcmp.lt.s32.totalorder %v6204_v51, 0  ;;  %v7678_v24 = vsub.s32 32, %v951_v57  ;;  %v461_v50 = vmul.f32 %v7514_v17, %v460_v38  ;;  %6608 = vrsqrt.f32 %v7647_v9  ;;  %4417 = vmatpush.msra.mxu0 %v7393_v2 }
  0xe7   :  { %v7664_v45 = vsel %vm429_vm15, %v11364_v25, %v428_v48  ;;  %v944_v12 = vand.u32 8388607, %v11366_v35  ;;  %v7682_v48 = vsel %vm453_vm5, %v454_v19, %v452_v31  ;;  %v7687_v25 = vadd.f32 %v7155_v56, %v160_v44 }
  0xe8   :  { %11365 = vst [vmem:[#allocation27_spill] sm:$0xff] %v7664_v45  ;;  %v470_v33 = vmul.f32 %v7628_v11, %v469_v58  ;;  %v481_v55 = vmul.f32 %v7658_v43, %v7582_v5  ;;  %v335_v21 = vsub.f32 %v7650_v23, %v319_v30  ;;  %v892_v35 = vsel %vm6205_vm6, 0, %v6204_v51  ;;  %4418 = vmatpush.msra.mxu0 %v7412_v0 }
  0xe9   :  { %11368 = vst [vmem:[#allocation29_spill] sm:$0xff] %v7682_v48  ;;  %v877_v34 = vadd.s32 %v7470_v16, %v7453_v42  ;;  %v893_v19 = vsub.s32 32, %v892_v35  ;;  %v897_v17 = vsub.s32 4294967266, %v892_v35  ;;  %v945_v38 = vor.u32 8388608, %v944_v12  ;;  %6253 = vmatmul.msk.f32.gmra.mxu1 %vm3332_vm12, %v7538_v53 }
  0xea   :  { %v11369_v44 = vmov 2475754826   ;;  %v11370_v22 = vmov 2131351028   ;;  %v11371_v46 = vmov 2102212464   ;;  %v894_v42 = vshll.u32 %v7594_v13, %v892_v35  ;;  %4419 = vmatpush.msra.mxu0 %v7432_v49 }
  0xeb   :  { %v955_v31 = vshrl.u32 %v11369_v44, %v7678_v24  ;;  %v958_v58 = vshrl.u32 %v11370_v22, %v7678_v24  ;;  %v961_v48 = vshrl.u32 %v11371_v46, %v7678_v24  ;;  %v11372_v23 = vmov 920167782  }
  0xec   :  { %v964_v51 = vshrl.u32 %v11372_v23, %v7678_v24  ;;  %v895_v16 = vshrl.u32 %v877_v34, %v893_v19  ;;  %v898_v30 = vadd.s32 127, %v897_v17  ;;  %v11373_v12 = vmov 1326507024   ;;  %v7716_v62 = vpop.eup %6608  ;;  %4420 = vmatpush.msra.mxu0 %v7445_v61 }
  0xed   :  { %v967_v1 = vshrl.u32 %v11373_v12, %v7678_v24  ;;  %vm463_vm7 = vcmp.eq.f32.partialorder %v7427_v41, inf  ;;  %v11374_v45 = vmov 683565275   ;;  %v957_v0 = vshll.u32 %v11369_v44, %v951_v57 }
  0xee   :  { %v954_v15 = vshll.u32 %v11374_v45, %v951_v57  ;;  %v960_v2 = vshll.u32 %v11370_v22, %v951_v57  ;;  %v963_v8 = vshll.u32 %v11371_v46, %v951_v57  ;;  %v896_v13 = vor.u32 %v895_v16, %v894_v42  ;;  %4421 = vmatpush.msra.mxu0 %v7468_v27 }
  0xef   :  { %v899_v35 = vshll.u32 %v898_v30, 23  ;;  %v7719_v34 = vshrl.u32 %v7616_v6, 5  ;;  %v966_v19 = vshll.u32 %v11372_v23, %v951_v57  ;;  %vm785_vm8 = vcmp.lt.s32.totalorder %v7167_v29, 0 }
  0xf0   :  { %v7724_v17 = vor.u32 %v955_v31, %v954_v15  ;;  %v7726_v12 = vor.u32 %v958_v58, %v957_v0  ;;  %v7728_v22 = vor.u32 %v961_v48, %v960_v2  ;;  %v965_v46 = vor.u32 %v964_v51, %v963_v8  ;;  %4422 = vmatpush.msra.mxu0 %v7482_v59 }
  0xf1   :  { %v462_v44 = vmul.f32 %v461_v50, %v7427_v41  ;;  %v471_v42 = vmul.f32 0.5, %v470_v33  ;;  %v11375_v16 = vand.u32 2147483647, %v7167_v29  ;;  %v900_v57 = vor.u32 4788187, %v899_v35  ;;  %6254 = vmatmul.msk.f32.gmra.mxu1 %vm3332_vm12, %v7524_v54 }
  0xf2   :  { %v968_v30 = vor.u32 %v967_v1, %v966_v19  ;;  %v482_v15 = vmul.f32 %v7658_v43, %v481_v55  ;;  %v493_v2 = vmul.f32 %v7716_v62, %v7647_v9  ;;  %v351_v0 = vmax.f32 %v335_v21, 0.0  ;;  %4423 = vmatpush.msra.mxu0 %v7496_v28 }
  0xf3   :  { %vm7733_vm9 = vcmp.le.f32.partialorder %v11375_v16, 0.7853982  ;;  %v7741_v8 = vshll.u32 %v945_v38, 8  ;;  %v901_v48 = vand.u32 2147483647, %v900_v57  ;;  %v903_v50 = vcvt.s32.f32 %v896_v13  ;;  %v280_v13 = vpop.f32.mrf.mxu0 }
  0xf4   :  { %vm969_vm10 = vcmp.lt.s32.totalorder %v7719_v34, 1  ;;  %vm972_vm11 = vcmp.lt.s32.totalorder %v7719_v34, 4  ;;  %vm971_vm13 = vcmp.lt.s32.totalorder %v7719_v34, 3  ;;  %vm970_vm14 = vcmp.lt.s32.totalorder %v7719_v34, 2  ;;  %4424 = vmatpush.msra.mxu0 %v7524_v54 }
  0xf5   :  { %v977_v1 = vsel %vm969_vm10, %v7724_v17, %v7726_v12  ;;  %v978_v33 = vsel %vm972_vm11, %v965_v46, 920167782  ;;  %v981_v55 = vsel %vm969_vm10, %v7726_v12, %v7728_v22  ;;  %v904_v21 = vmul.f32 %v903_v50, %v901_v48 }
  0xf6   :  { %v979_v38 = vsel %vm971_vm13, %v7728_v22, %v978_v33  ;;  %v982_v31 = vsel %vm972_vm11, %v968_v30, 1326507024  ;;  %v472_v58 = vsub.f32 1.5, %v471_v42  ;;  %v7766_v51 = vmul.f32 0.5, %v482_v15  ;;  %4425 = vmatpush.msra.mxu0 %v7538_v53 }
  0xf7   :  { %v980_v35 = vsel %vm970_vm14, %v977_v1, %v979_v38  ;;  %v983_v19 = vsel %vm971_vm13, %v965_v46, %v982_v31  ;;  %v7775_v16 = vsel %vm463_vm7, %v7427_v41, %v462_v44  ;;  %v7777_v57 = vadd.f32 1e-12, %v351_v0 }
  0xf8   :  { %v905_v30 = vxor.u32 2147483648, %v904_v21  ;;  %v984_v42 = vsel %vm970_vm14, %v981_v55, %v983_v19  ;;  %v986_v15 = vand.u32 65535, %v7741_v8  ;;  %v1011_v1 = vshrl.u32 %v980_v35, 16  ;;  %4426 = vmatpush.msra.mxu0 %v7553_v3 }
  0xf9   :  { %11378 = vst [vmem:[#allocation30_spill] sm:$0xff] %v7777_v57  ;;  %v988_v48 = vand.u32 65535, %v984_v42  ;;  %v989_v50 = vshrl.u32 %v984_v42, 16  ;;  %v494_v46 = vmul.f32 %v7716_v62, %v493_v2  ;;  %v320_v33 = vmul.f32 2.0, %v280_v13  ;;  %6255 = vmatmul.msk.f32.gmra.mxu1 %vm3332_vm12, %v7496_v28 }
  0xfa   :  { %v906_v44 = vsel %vm785_vm8, %v905_v30, %v904_v21  ;;  %v987_v0 = vshrl.u32 %v7741_v8, 16  ;;  %v7789_v38 = vmul.f32 %v7628_v11, %v472_v58  ;;  %6610 = vrsqrt.f32 %v7777_v57  ;;  %4427 = vmatpush.msra.mxu0 %v7566_v7 }
  0xfb   :  { %v7795_v31 = vsel %vm7733_vm9, %v7167_v29, %v906_v44  ;;  %v991_v19 = vmul.u32 %v989_v50, %v986_v15  ;;  %v907_v2 = vsub.s32 4, %v7555_v47  ;;  %v990_v11 = vmul.u32 %v988_v48, %v986_v15 }
  0xfc   :  { %v911_v21 = vmul.f32 %v7795_v31, %v7795_v31  ;;  %v7801_v13 = vmul.u32 %v988_v48, %v987_v0  ;;  %v1010_v30 = vand.u32 65535, %v980_v35  ;;  %v7804_v42 = vmul.u32 %v1011_v1, %v986_v15 }
  0xfd   :  { %v994_v58 = vshll.u32 %v991_v19, 16  ;;  %v7808_v44 = vmul.f32 0.5, %v494_v46  ;;  %v336_v55 = vsub.f32 %v7668_v26, %v320_v33  ;;  %v993_v23 = vmul.u32 %v989_v50, %v987_v0 }
  0xfe   :  { %v912_v53 = vmul.f32 -0.001358992, %v911_v21  ;;  %v919_v54 = vmul.f32 -0.00019511016, %v911_v21  ;;  %v996_v60 = vshll.u32 %v7801_v13, 16  ;;  %v908_v35 = vsel %vm785_vm8, %v907_v2, %v7555_v47 }
  0xff   :  { %vm998_vm15 = vc.u32 %v990_v11, %v994_v58  ;;  %v1000_v48 = vadd.s32 %v994_v58, %v990_v11  ;;  %v11379_v28 = vmov 0   ;;  %v1014_v26 = vmul.u32 %v1010_v30, %v987_v0 }
 0x100   :  { %v913_v3 = vadd.f32 0.041655596, %v912_v53  ;;  %v920_v49 = vadd.f32 0.008332121, %v919_v54  ;;  %v999_v46 = vsel %vm998_vm15, 1, %v11379_v28  ;;  %v1016_v33 = vshll.u32 %v7804_v42, 16  ;;  %v7818_v63 = vpop.eup %6610 }
 0x101   :  { %v1001_v40 = vadd.s32 %v999_v46, %v993_v23  ;;  %vm1002_vm0 = vc.u32 %v1000_v48, %v996_v60  ;;  %v1012_v11 = vmul.u32 %v1010_v30, %v986_v15  ;;  %v352_v58 = vmax.f32 %v336_v55, 0.0  ;;  %6256 = vmatmul.msk.f32.gmra.mxu1 %vm3332_vm12, %v7482_v59 }
 0x102   :  { %v914_v50 = vmul.f32 %v913_v3, %v911_v21  ;;  %v921_v7 = vmul.f32 %v920_v49, %v911_v21  ;;  %v1003_v36 = vsel %vm1002_vm0, 1, %v11379_v28  ;;  %v910_v47 = vsel %vm7733_vm9, 0, %v908_v35 }
 0x103   :  { %v995_v53 = vshrl.u32 %v991_v19, 16  ;;  %v1005_v54 = vadd.s32 %v1003_v36, %v1001_v40  ;;  %v1015_v23 = vmul.u32 %v1011_v1, %v987_v0  ;;  %vm1020_vm1 = vc.u32 %v1012_v11, %v1016_v33 }
 0x104   :  { %v915_v2 = vadd.f32 -0.4999988, %v914_v50  ;;  %v922_v32 = vadd.f32 -0.16666654, %v921_v7  ;;  %v496_v60 = vsub.f32 1.5, %v7808_v44  ;;  %v1018_v48 = vshll.u32 %v1014_v26, 16 }
 0x105   :  { %v1021_v46 = vsel %vm1020_vm1, 1, %v11379_v28  ;;  %v1022_v3 = vadd.s32 %v1016_v33, %v1012_v11  ;;  %v1006_v55 = vadd.s32 %v1005_v54, %v995_v53  ;;  %vm926_vm2 = vweird.f32 %v7167_v29 }
 0x106   :  { %v916_v49 = vmul.f32 %v915_v2, %v911_v21  ;;  %v923_v15 = vmul.f32 %v922_v32, %v911_v21  ;;  %v1023_v6 = vadd.s32 %v1021_v46, %v1015_v23  ;;  %v927_v36 = vand.u32 3, %v910_v47  ;;  %v283_v21 = vpop.f32.mrf.mxu0 }
 0x107   :  { %v953_v40 = vshrl.u32 %v11374_v45, %v7678_v24  ;;  %v974_v7 = vsel %vm972_vm11, %v7728_v22, 2102212464  ;;  %vm1024_vm3 = vc.u32 %v1022_v3, %v1018_v48  ;;  %v997_v19 = vshrl.u32 %v7801_v13, 16 }
 0x108   :  { %v917_v1 = vadd.f32 1.0, %v916_v49  ;;  %v924_v0 = vadd.f32 1.0, %v923_v15  ;;  %v1025_v30 = vsel %vm1024_vm3, 1, %v11379_v28  ;;  %v7835_v32 = vadd.f32 1e-12, %v352_v58 }
 0x109   :  { %v973_v44 = vsel %vm969_vm10, %v953_v40, %v7724_v17  ;;  %v1017_v24 = vshrl.u32 %v7804_v42, 16  ;;  %v1027_v35 = vadd.s32 %v1025_v30, %v1023_v6  ;;  %vm465_vm4 = vcmp.eq.f32.partialorder %v7427_v41, 0.0  ;;  %6257 = vmatmul.msk.f32.gmra.mxu1 %vm3332_vm12, %v7468_v27 }
 0x10a   :  { %11380 = vst [vmem:[#allocation31_spill] sm:$0xff] %v7835_v32  ;;  %v925_v22 = vmul.f32 %v924_v0, %v7795_v31  ;;  %v933_v33 = vxor.u32 2147483648, %v917_v1  ;;  %v975_v13 = vsel %vm971_vm13, %v7726_v12, %v974_v7  ;;  %v7846_v50 = vadd.s32 %v1006_v55, %v997_v19  ;;  %v163_v55 = vpop.xlane.xlu2 %162 }
 0x10b   :  { %vm475_vm5 = vcmp.eq.f32.partialorder %v7543_v39, inf  ;;  %v505_v11 = vmul.f32 %v7818_v63, %v7777_v57  ;;  %v1019_v17 = vshrl.u32 %v1014_v26, 16  ;;  %v1028_v58 = vadd.s32 %v1027_v35, %v1017_v24  ;;  %v166_v24 = vpop.xlane.xlu0 %165 }
 0x10c   :  { %v737_v42 = vmul.f32 %v7159_v20, %v7589_v18  ;;  %v321_v47 = vmul.f32 2.0, %v283_v21  ;;  %vm928_vm6 = vcmp.lt.s32.totalorder %v927_v36, 2  ;;  %v930_v31 = vxor.u32 2147483648, %v925_v22 }
 0x10d   :  { %v7853_v53 = vadd.s32 %v1022_v3, %v1018_v48  ;;  %vm929_vm7 = vcmp.eq.s32.totalorder %v927_v36, 0  ;;  %vm932_vm8 = vcmp.eq.s32.totalorder %v927_v36, 2  ;;  %v976_v12 = vsel %vm970_vm14, %v973_v44, %v975_v13 }
 0x10e   :  { %v1029_v54 = vadd.s32 %v1028_v58, %v1019_v17  ;;  %v931_v2 = vsel %vm929_vm7, %v917_v1, %v930_v31  ;;  %v934_v26 = vsel %vm932_vm8, %v933_v33, %v925_v22  ;;  %v753_v23 = vmin.f32 %v737_v42, 1.0 }
 0x10f   :  { %vm1032_vm9 = vc.u32 %v7846_v50, %v7853_v53  ;;  %v474_v46 = vmul.f32 %v7789_v38, %v7543_v39  ;;  %vm477_vm10 = vcmp.eq.f32.partialorder %v7543_v39, 0.0  ;;  %v11381_v48 = vsub.f32 1.5, %v7766_v51 }
 0x110   :  { %v935_v3 = vsel %vm928_vm6, %v931_v2, %v934_v26  ;;  %v1033_v49 = vadd.s32 1, %v1029_v54  ;;  %vm487_vm11 = vcmp.eq.f32.partialorder %v7582_v5, inf  ;;  %v497_v15 = vmul.f32 %v7716_v62, %v496_v60 }
 0x111   :  { %v485_v34 = vmul.f32 %v7658_v43, %v11381_v48  ;;  %v936_v6 = vsel %vm926_vm2, nan, %v935_v3  ;;  %v1030_v36 = vmul.u32 %v7741_v8, %v976_v12  ;;  %v7872_v40 = vmul.f32 3.1415927, %v753_v23  ;;  %6258 = vmatmul.msk.f32.gmra.mxu1 %vm3332_vm12, %v7445_v61  ;;  %v286_v48 = vpop.f32.mrf.mxu0  ;;  %v11389_v3 = vld [vmem:[#allocation10_spill] sm:$0xff] }
 0x112   :  { %v506_v38 = vmul.f32 %v7818_v63, %v505_v11  ;;  %6612 = vrsqrt.f32 %v7835_v32  ;;  %v3247_v51 = vadd.f32 1.0, %v936_v6  ;;  %v1034_v43 = vsel %vm1032_vm9, %v1033_v49, %v1029_v54 }
 0x113   :  { %v490_v7 = vand.u32 2147483648, %v7582_v5  ;;  %v337_v62 = vsub.f32 %v7687_v25, %v321_v47  ;;  %v1035_v60 = vadd.s32 %v1034_v43, %v1030_v36  ;;  %v1094_v29 = vand.u32 2139095040, %v7872_v40 }
 0x114   :  { %v11382_v8 = vand.u32 2147483648, %v7427_v41  ;;  %vm489_vm13 = vcmp.eq.f32.partialorder %v7582_v5, 0.0  ;;  %vm499_vm14 = vcmp.eq.f32.partialorder %v7647_v9, inf  ;;  %v7892_v0 = vadd.f32 %v7155_v56, %v163_v55 }
 0x115   :  { %v3263_v19 = vmul.f32 0.5, %v3247_v51  ;;  %v476_v25 = vsel %vm475_vm5, %v7543_v39, %v474_v46  ;;  %vm501_vm15 = vcmp.eq.f32.partialorder %v7647_v9, 0.0  ;;  %v1036_v30 = vadd.s32 536870912, %v1035_v60 }
 0x116   :  { %v7887_v1 = vsel %vm465_vm4, %v11382_v8, %v7775_v16  ;;  %v1095_v21 = vshrl.u32 %v1094_v29, 23  ;;  %v486_v41 = vmul.f32 %v485_v34, %v7582_v5  ;;  %v498_v16 = vmul.f32 %v497_v15, %v7647_v9  ;;  %v11390_v15 = vld [vmem:[#allocation25_spill] sm:$0xff] }
 0x117   :  { %v507_v44 = vmul.f32 0.5, %v506_v38  ;;  %v7901_v35 = vmul.f32 %v7386_v10, %v3263_v19  ;;  %v502_v22 = vand.u32 2147483648, %v7647_v9  ;;  %v353_v33 = vmax.f32 %v337_v62, 0.0  ;;  %v11392_v62 = vld [vmem:[#allocation11_spill] sm:$0xff] }
 0x118   :  { %v7906_v13 = vshrl.u32 %v1036_v30, 30  ;;  %v6209_v11 = vadd.s32 4294967169, %v1095_v21  ;;  %v7908_v17 = vpop.eup %6612  ;;  %v3281_v10 = vmul.f32 %v7601_v37, %v7260_v52  ;;  %v11277_v47 = vand.u32 2147483647, %v7872_v40 }
 0x119   :  { %11383 = vst [vmem:[#allocation32_spill] sm:$0xff] %v7901_v35  ;;  %v3526_v58 = vmul.f32 %v7607_v14, %v7901_v35  ;;  %v3816_v42 = vmul.f32 %v7613_v4, %v7901_v35  ;;  %v11384_v31 = vand.u32 2147483648, %v7543_v39  ;;  %v7924_v54 = vadd.f32 %v7155_v56, %v166_v24  ;;  %v11387_v39 = vld [vmem:[#allocation9_spill] sm:$0xff] }
 0x11a   :  { %v1038_v2 = vshll.u32 %v7906_v13, 30  ;;  %v1101_v14 = vadd.s32 1, %v6209_v11  ;;  %v488_v4 = vsel %vm487_vm11, %v7582_v5, %v486_v41  ;;  %v500_v37 = vsel %vm499_vm14, %v7647_v9, %v498_v16  ;;  %v11395_v9 = vld [vmem:[#allocation12_spill] sm:$0xff] }
 0x11b   :  { %v7921_v12 = vsel %vm477_vm10, %v11384_v31, %v476_v25  ;;  %11386 = vst [vmem:[#allocation34_spill] sm:$0xff] %v7924_v54  ;;  %v508_v26 = vsub.f32 1.5, %v507_v44  ;;  %3558 = vmatmul.f32.vlgmr.msra.gmra.mxu2 %v3526_v58  ;;  %3848 = vmatmul.f32.vlgmr.msrb.gmra.mxu0 %v3816_v42  ;;  %v6268_v23 = vadd.f32 -0.75, %v11387_v39  ;;  %v517_v56 = vmul.f32 %v7908_v17, %v7835_v32  ;;  %v11398_v42 = vld [vmem:[#allocation13_spill] sm:$0xff] }
 0x11c   :  { %11385 = vst [vmem:[#allocation33_spill] sm:$0xff] %v7921_v12  ;;  %v7936_v46 = vadd.f32 1e-12, %v353_v33  ;;  %v7938_v34 = vsub.s32 %v1035_v60, %v1038_v2  ;;  %vm1102_vm0 = vcmp.gt.s32.totalorder %v1101_v14, 0  ;;  %4992 = vmatpush.msrb.mxu0 %v11389_v3  ;;  %v7943_v55 = vmul.f32 %v11390_v15, %v3281_v10 }
 0x11d   :  { %v1098_v6 = vand.u32 8388607, %v11277_v47  ;;  %v1103_v36 = vsel %vm1102_vm0, %v1101_v14, 0  ;;  %v7949_v38 = vsel %vm489_vm13, %v490_v7, %v488_v4  ;;  %v7957_v60 = vsel %vm501_vm15, %v502_v22, %v500_v37  ;;  %v11394_v7 = vld [vmem:[#allocation18_spill] sm:$0xff] }
 0x11e   :  { %11388 = vst [vmem:[#allocation35_spill] sm:$0xff] %v7936_v46  ;;  %vm1040_vm1 = vcmp.lt.s32.totalorder %v7938_v34, 0  ;;  %v1041_v43 = vsub.s32 0, %v7938_v34  ;;  %4993 = vmatpush.msrb.mxu0 %v11392_v62  ;;  %v7960_v29 = vmul.f32 %v7818_v63, %v508_v26  ;;  %v7962_v8 = vmul.f32 2.0, %v286_v48  ;;  %6259 = vmatmul.msk.f32.gmra.mxu1 %vm3332_vm12, %v11394_v7  ;;  %v11402_v48 = vld [vmem:[#allocation14_spill] sm:$0xff] }
 0x11f   :  { %11391 = vst [vmem:[#allocation10_spill] sm:$0xff] %v7949_v38  ;;  %v1105_v5 = vand.u32 31, %v1103_v36  ;;  %v7967_v19 = vmul.f32 %v7908_v17, %v517_v56  ;;  %6614 = vrsqrt.f32 %v7936_v46  ;;  %v7971_v30 = vmul.f32 %v6268_v23, %v6268_v23 }
 0x120   :  { %11393 = vst [vmem:[#allocation25_spill] sm:$0xff] %v7957_v60  ;;  %v1042_v25 = vsel %vm1040_vm1, %v1041_v43, %v7938_v34  ;;  %4994 = vmatpush.msrb.mxu0 %v11395_v9  ;;  %v1031_v63 = vadd.s32 %v7853_v53, %v7846_v50  ;;  %v1099_v41 = vor.u32 8388608, %v1098_v6  ;;  %v7976_v44 = vshrl.u32 %v1103_v36, 5 }
 0x121   :  { %v1043_v21 = vclz %v1042_v25  ;;  %v1106_v16 = vsub.s32 32, %v1105_v5  ;;  %v1108_v24 = vshll.u32 %v11374_v45, %v1105_v5  ;;  %v11396_v22 = vmov 2475754826  }
 0x122   :  { %v1111_v33 = vshll.u32 %v11396_v22, %v1105_v5  ;;  %v11397_v11 = vmov 2131351028   ;;  %4995 = vmatpush.msrb.mxu0 %v11398_v42  ;;  %v11399_v14 = vmov 2102212464   ;;  %v11400_v4 = vmov 920167782  }
 0x123   :  { %v1114_v58 = vshll.u32 %v11397_v11, %v1105_v5  ;;  %v6207_v10 = vadd.s32 4294967294, %v1043_v21  ;;  %v1109_v31 = vshrl.u32 %v11396_v22, %v1106_v16  ;;  %v1112_v2 = vshrl.u32 %v11397_v11, %v1106_v16  ;;  %v11404_v21 = vld [vmem:[#allocation15_spill] sm:$0xff] }
 0x124   :  { %v1117_v50 = vshll.u32 %v11399_v14, %v1105_v5  ;;  %v1115_v53 = vshrl.u32 %v11399_v14, %v1106_v16  ;;  %v1118_v37 = vshrl.u32 %v11400_v4, %v1106_v16  ;;  %v1120_v26 = vshll.u32 %v11400_v4, %v1105_v5  ;;  %4996 = vmatpush.msrb.mxu0 %v11402_v48  ;;  %v11405_v48 = vld [vmem:[#allocation16_spill] sm:$0xff] }
 0x125   :  { %v11401_v23 = vmov 1326507024   ;;  %vm6208_vm2 = vcmp.lt.s32.totalorder %v6207_v10, 0  ;;  %v1110_v3 = vor.u32 %v1109_v31, %v1108_v24  ;;  %v7990_v15 = vor.u32 %v1112_v2, %v1111_v33  ;;  %v7994_v36 = vpop.eup %6614 }
 0x126   :  { %v1121_v56 = vshrl.u32 %v11401_v23, %v1106_v16  ;;  %v7992_v6 = vshll.u32 %v1099_v41, 8  ;;  %11403 = vst [vmem:[#allocation11_spill] sm:$0xff] %v7994_v36  ;;  %v1046_v43 = vsel %vm6208_vm2, 0, %v6207_v10  ;;  %v1116_v62 = vor.u32 %v1115_v53, %v1114_v58  ;;  %4997 = vmatpush.msrb.mxu0 %v11404_v21  ;;  %6260 = vmatmul.msk.f32.gmra.mxu1 %vm3332_vm12, %v11405_v48 }
 0x127   :  { %v1119_v25 = vor.u32 %v1118_v37, %v1117_v50  ;;  %v1047_v42 = vsub.s32 32, %v1046_v43  ;;  %v1051_v5 = vsub.s32 4294967266, %v1046_v43  ;;  %vm1123_vm3 = vcmp.lt.s32.totalorder %v7976_v44, 1 }
 0x128   :  { %v1122_v9 = vor.u32 %v1121_v56, %v1120_v26  ;;  %vm1126_vm4 = vcmp.lt.s32.totalorder %v7976_v44, 4  ;;  %vm1124_vm5 = vcmp.lt.s32.totalorder %v7976_v44, 2  ;;  %vm1125_vm6 = vcmp.lt.s32.totalorder %v7976_v44, 3  ;;  %4998 = vmatpush.msrb.mxu0 %v11405_v48 }
 0x129   :  { %v1131_v41 = vsel %vm1123_vm3, %v1110_v3, %v7990_v15  ;;  %v1132_v24 = vsel %vm1126_vm4, %v1119_v25, 920167782  ;;  %v1048_v33 = vshll.u32 %v7938_v34, %v1046_v43  ;;  %v1049_v58 = vshrl.u32 %v1031_v63, %v1047_v42  ;;  %v11406_v43 = vld [vmem:[#allocation17_spill] sm:$0xff] }
 0x12a   :  { %v1052_v10 = vadd.s32 127, %v1051_v5  ;;  %v1133_v31 = vsel %vm1125_vm6, %v1116_v62, %v1132_v24  ;;  %v1135_v50 = vsel %vm1123_vm3, %v7990_v15, %v1116_v62  ;;  %v1136_v53 = vsel %vm1126_vm4, %v1122_v9, 1326507024  ;;  %4999 = vmatpush.msrb.mxu0 %v11394_v7 }
 0x12b   :  { %v1134_v2 = vsel %vm1124_vm5, %v1131_v41, %v1133_v31  ;;  %v1140_v37 = vand.u32 65535, %v7992_v6  ;;  %v1050_v34 = vor.u32 %v1049_v58, %v1048_v33  ;;  %v1137_v26 = vsel %vm1125_vm6, %v1119_v25, %v1136_v53  ;;  %v11410_v31 = vld [vmem:[#allocation26_spill] sm:$0xff] }
 0x12c   :  { %v1053_v63 = vshll.u32 %v1052_v10, 23  ;;  %v1164_v56 = vand.u32 65535, %v1134_v2  ;;  %vm939_vm7 = vcmp.lt.s32.totalorder %v11406_v43, 0  ;;  %v1107_v21 = vshrl.u32 %v11374_v45, %v1106_v16  ;;  %5000 = vmatpush.msrb.mxu0 %v7445_v61 }
 0x12d   :  { %v1138_v42 = vsel %vm1124_vm5, %v1135_v50, %v1137_v26  ;;  %v1141_v5 = vshrl.u32 %v7992_v6, 16  ;;  %v1165_v9 = vshrl.u32 %v1134_v2, 16  ;;  %v11407_v7 = vand.u32 2147483647, %v11406_v43 }
 0x12e   :  { %v1054_v25 = vor.u32 4788187, %v1053_v63  ;;  %v6300_v41 = vadd.f32 -1.5, %v11387_v39  ;;  %v1142_v24 = vand.u32 65535, %v1138_v42  ;;  %v1143_v33 = vshrl.u32 %v1138_v42, 16  ;;  %5001 = vmatpush.msrb.mxu0 %v7468_v27  ;;  %v6936_v63 = vld [vmem:[%s11216_s2 + $0x50] sm:$0xff] }
 0x12f   :  { %vm8031_vm8 = vcmp.le.f32.partialorder %v11407_v7, 0.7853982  ;;  %v1127_v16 = vsel %vm1123_vm3, %v1107_v21, %v1110_v3  ;;  %v1167_v58 = vmul.u32 %v1165_v9, %v1140_v37  ;;  %v8038_v10 = vmul.u32 %v1164_v56, %v1141_v5  ;;  %6261 = vmatmul.msk.f32.gmra.mxu1 %vm3332_vm12, %v6936_v63  ;;  %v11411_v39 = vld [vmem:[#allocation19_spill] sm:$0xff] }
 0x130   :  { %v738_v61 = vmul.f32 %v7159_v20, %v11410_v31  ;;  %v1055_v2 = vand.u32 2147483647, %v1054_v25  ;;  %v1057_v50 = vcvt.s32.f32 %v1050_v34  ;;  %v1145_v53 = vmul.u32 %v1143_v33, %v1140_v37  ;;  %5002 = vmatpush.msrb.mxu0 %v7482_v59 }
 0x131   :  { %v1146_v26 = vmul.u32 %v1142_v24, %v1141_v5  ;;  %v1128_v3 = vsel %vm1126_vm4, %v1116_v62, 2102212464  ;;  %v1166_v21 = vmul.u32 %v1164_v56, %v1140_v37  ;;  %v1169_v42 = vmul.u32 %v1165_v9, %v1141_v5 }
 0x132   :  { %v1170_v7 = vshll.u32 %v1167_v58, 16  ;;  %v1058_v51 = vmul.f32 %v1057_v50, %v1055_v2  ;;  %v1144_v27 = vmul.u32 %v1142_v24, %v1140_v37  ;;  %v1147_v25 = vmul.u32 %v1143_v33, %v1141_v5  ;;  %5003 = vmatpush.msrb.mxu0 %v11411_v39  ;;  %v11412_v37 = vld [vmem:[#allocation20_spill] sm:$0xff] }
 0x133   :  { %v1148_v34 = vshll.u32 %v1145_v53, 16  ;;  %v1150_v49 = vshll.u32 %v1146_v26, 16  ;;  %v1172_v47 = vshll.u32 %v8038_v10, 16  ;;  %v1171_v9 = vshrl.u32 %v1167_v58, 16 }
 0x134   :  { %vm1174_vm9 = vc.u32 %v1166_v21, %v1170_v7  ;;  %v1176_v35 = vadd.s32 %v1170_v7, %v1166_v21  ;;  %v1059_v63 = vxor.u32 2147483648, %v1058_v51  ;;  %5004 = vmatpush.msrb.mxu0 %v11412_v37  ;;  %v754_v58 = vmin.f32 %v738_v61, 1.0  ;;  %v11413_v21 = vld [vmem:[#allocation21_spill] sm:$0xff]  ;;  %v6937_v7 = vld [vmem:[%s11216_s2 + $0x58] sm:$0xff] }
 0x135   :  { %vm1152_vm10 = vc.u32 %v1144_v27, %v1148_v34  ;;  %v1154_v60 = vadd.s32 %v1148_v34, %v1144_v27  ;;  %v1175_v62 = vsel %vm1174_vm9, 1, %v11379_v28  ;;  %v1061_v27 = vsub.s32 4, %v7906_v13 }
 0x136   :  { %v1153_v56 = vsel %vm1152_vm10, 1, %v11379_v28  ;;  %v1177_v59 = vadd.s32 %v1175_v62, %v1169_v42  ;;  %vm1178_vm11 = vc.u32 %v1176_v35, %v1172_v47  ;;  %v1060_v5 = vsel %vm939_vm7, %v1059_v63, %v1058_v51  ;;  %5005 = vmatpush.msrb.mxu0 %v11413_v21  ;;  %v11414_v63 = vld [vmem:[#allocation22_spill] sm:$0xff] }
 0x137   :  { %v1155_v24 = vadd.s32 %v1153_v56, %v1147_v25  ;;  %vm1156_vm13 = vc.u32 %v1154_v60, %v1150_v49  ;;  %v1179_v33 = vsel %vm1178_vm11, 1, %v11379_v28  ;;  %v8061_v39 = vsel %vm8031_vm8, %v11406_v43, %v1060_v5  ;;  %6262 = vmatmul.msk.f32.gmra.mxu1 %vm3332_vm12, %v6937_v7 }
 0x138   :  { %v1157_v2 = vsel %vm1156_vm13, 1, %v11379_v28  ;;  %v1181_v50 = vadd.s32 %v1179_v33, %v1177_v59  ;;  %v1065_v42 = vmul.f32 %v8061_v39, %v8061_v39  ;;  %v1129_v49 = vsel %vm1125_vm6, %v7990_v15, %v1128_v3  ;;  %5006 = vmatpush.msrb.mxu0 %v11414_v63 }
 0x139   :  { %v1149_v51 = vshrl.u32 %v1145_v53, 16  ;;  %v1159_v60 = vadd.s32 %v1157_v2, %v1155_v24  ;;  %v1173_v61 = vshrl.u32 %v8038_v10, 16  ;;  %v8076_v34 = vmul.f32 3.1415927, %v754_v58  ;;  %v11415_v24 = vld [vmem:[#allocation23_spill] sm:$0xff] }
 0x13a   :  { %v1182_v25 = vadd.s32 %v1181_v50, %v1171_v9  ;;  %v1066_v62 = vmul.f32 -0.001358992, %v1065_v42  ;;  %v1073_v56 = vmul.f32 -0.00019511016, %v1065_v42  ;;  %v1151_v15 = vshrl.u32 %v1146_v26, 16  ;;  %5007 = vmatpush.msrb.mxu0 %v11415_v24 }
 0x13b   :  { %v1160_v53 = vadd.s32 %v1159_v60, %v1149_v51  ;;  %v3753_v3 = vmul.f32 %v6300_v41, %v6300_v41  ;;  %v1130_v59 = vsel %vm1124_vm5, %v1127_v16, %v1129_v49  ;;  %v1248_v5 = vand.u32 2139095040, %v8076_v34 }
 0x13c   :  { %v1183_v37 = vadd.s32 %v1182_v25, %v1173_v61  ;;  %vm511_vm14 = vcmp.eq.f32.partialorder %v7777_v57, inf  ;;  %v1067_v10 = vadd.f32 0.041655596, %v1066_v62  ;;  %v1074_v9 = vadd.f32 0.008332121, %v1073_v56  ;;  %v11416_v62 = vld [vmem:[#allocation6_spill] sm:$0xff] }
 0x13d   :  { %v8084_v33 = vadd.s32 %v1160_v53, %v1151_v15  ;;  %v8086_v2 = vadd.s32 %v1176_v35, %v1172_v47  ;;  %v1062_v41 = vsel %vm939_vm7, %v1061_v27, %v7906_v13  ;;  %v3479_v44 = vmul.f32 -2.0, %v7971_v30  ;;  %v6938_v27 = vld [vmem:[%s11216_s2 + $0x60] sm:$0xff] }
 0x13e   :  { %v1187_v16 = vadd.s32 1, %v1183_v37  ;;  %v1249_v26 = vshrl.u32 %v1248_v5, 23  ;;  %v1068_v50 = vmul.f32 %v1067_v10, %v1065_v42  ;;  %v1075_v58 = vmul.f32 %v1074_v9, %v1065_v42 }
 0x13f   :  { %v1184_v21 = vmul.u32 %v7992_v6, %v1130_v59  ;;  %vm1186_vm15 = vc.u32 %v8084_v33, %v8086_v2  ;;  %v510_v49 = vmul.f32 %v7960_v29, %v7777_v57  ;;  %v3769_v35 = vmul.f32 -2.0, %v3753_v3  ;;  %6263 = vmatmul.msk.f32.gmra.mxu1 %vm3332_vm12, %v6938_v27 }
 0x140   :  { %v1188_v47 = vsel %vm1186_vm15, %v1187_v16, %v1183_v37  ;;  %v6212_v51 = vadd.s32 4294967169, %v1249_v26  ;;  %v1064_v13 = vsel %vm8031_vm8, 0, %v1062_v41  ;;  %v1069_v60 = vadd.f32 -0.4999988, %v1068_v50 }
 0x141   :  { %v1076_v30 = vadd.f32 -0.16666654, %v1075_v58  ;;  %v1189_v7 = vadd.s32 %v1188_v47, %v1184_v21  ;;  %v8104_v6 = vmul.f32 0.5, %v7967_v19  ;;  %v338_v29 = vsub.f32 %v7892_v0, %v7962_v8 }
 0x142   :  { %v3496_v61 = vmul.f32 1.442695, %v3479_v44  ;;  %v1255_v25 = vadd.s32 1, %v6212_v51  ;;  %v1070_v63 = vmul.f32 %v1069_v60, %v1065_v42  ;;  %v8109_v56 = vadd.s32 16, %v11416_v62 }
 0x143   :  { %v1077_v48 = vmul.f32 %v1076_v30, %v1065_v42  ;;  %v1190_v15 = vadd.s32 536870912, %v1189_v7  ;;  %vm1080_vm0 = vweird.f32 %v11406_v43  ;;  %v1081_v53 = vand.u32 3, %v1064_v13 }
 0x144   :  { %v3786_v3 = vmul.f32 1.442695, %v3769_v35  ;;  %v11282_v59 = vand.u32 2147483647, %v8076_v34  ;;  %vm1256_vm1 = vcmp.gt.s32.totalorder %v1255_v25, 0  ;;  %v1071_v19 = vadd.f32 1.0, %v1070_v63 }
 0x145   :  { %v1078_v37 = vadd.f32 1.0, %v1077_v48  ;;  %v8113_v5 = vshrl.u32 %v1190_v15, 30  ;;  %v1257_v0 = vsel %vm1256_vm1, %v1255_v25, 0  ;;  %v8118_v8 = vsel %vm511_vm14, %v7777_v57, %v510_v49 }
 0x146   :  { %11417 = vst [vmem:[#allocation18_spill] sm:$0xff] %v8118_v8  ;;  %v8121_v24 = vmax.f32 %v338_v29, 0.0  ;;  %v1259_v10 = vand.u32 31, %v1257_v0  ;;  %v1087_v44 = vxor.u32 2147483648, %v1071_v19  ;;  %6616 = vpow2.f32 %v3496_v61 }
 0x147   :  { %v1079_v41 = vmul.f32 %v1078_v37, %v8061_v39  ;;  %v1192_v16 = vshll.u32 %v8113_v5, 30  ;;  %v585_v26 = vshra.s32 %v8109_v56, 4  ;;  %v1252_v50 = vand.u32 8388607, %v11282_v59  ;;  %v6939_v39 = vld [vmem:[%s11216_s2 + $0x68] sm:$0xff] }
 0x148   :  { %v8129_v58 = vsub.s32 32, %v1259_v10  ;;  %vm1086_vm2 = vcmp.eq.s32.totalorder %v1081_v53, 2  ;;  %6618 = vpow2.f32 %v3786_v3  ;;  %6264 = vmatmul.msk.f32.gmra.mxu1 %vm3332_vm12, %v6939_v39  ;;  %vm1082_vm3 = vcmp.lt.s32.totalorder %v1081_v53, 2 }
 0x149   :  { %v1084_v21 = vxor.u32 2147483648, %v1079_v41  ;;  %v8131_v49 = vsub.s32 %v1189_v7, %v1192_v16  ;;  %vm1083_vm4 = vcmp.eq.s32.totalorder %v1081_v53, 0  ;;  %v1088_v35 = vsel %vm1086_vm2, %v1087_v44, %v1079_v41 }
 0x14a   :  { %v1263_v47 = vshrl.u32 %v11396_v22, %v8129_v58  ;;  %v1266_v60 = vshrl.u32 %v11397_v11, %v8129_v58  ;;  %v1253_v7 = vor.u32 8388608, %v1252_v50  ;;  %v8143_v27 = vshrl.u32 %v1257_v0, 5 }
 0x14b   :  { %v1085_v51 = vsel %vm1083_vm4, %v1071_v19, %v1084_v21  ;;  %vm1194_vm5 = vcmp.lt.s32.totalorder %v8131_v49, 0  ;;  %v1195_v13 = vsub.s32 0, %v8131_v49  ;;  %v1262_v29 = vshll.u32 %v11374_v45, %v1259_v10 }
 0x14c   :  { %v1089_v30 = vsel %vm1082_vm3, %v1085_v51, %v1088_v35  ;;  %v1265_v63 = vshll.u32 %v11396_v22, %v1259_v10  ;;  %v1269_v48 = vshrl.u32 %v11399_v14, %v8129_v58  ;;  %v6617_v15 = vpop.eup %6616  ;;  %v1268_v37 = vshll.u32 %v11397_v11, %v1259_v10 }
 0x14d   :  { %v1090_v61 = vsel %vm1080_vm0, nan, %v1089_v30  ;;  %v1196_v25 = vsel %vm1194_vm5, %v1195_v13, %v8131_v49  ;;  %v8152_v19 = vor.u32 %v1263_v47, %v1262_v29  ;;  %v1271_v43 = vshll.u32 %v11399_v14, %v1259_v10 }
 0x14e   :  { %v3248_v53 = vadd.f32 1.0, %v1090_v61  ;;  %v1197_v3 = vclz %v1196_v25  ;;  %v6619_v0 = vpop.eup %6618  ;;  %v8155_v41 = vor.u32 %v1266_v60, %v1265_v63  ;;  %v1272_v44 = vshrl.u32 %v11400_v4, %v8129_v58  ;;  %v6940_v60 = vld [vmem:[%s11216_s2 + $0x70] sm:$0xff] }
 0x14f   :  { %v1275_v16 = vshrl.u32 %v11401_v23, %v8129_v58  ;;  %v8163_v39 = vadd.f32 -0.75, %v7589_v18  ;;  %v1274_v35 = vshll.u32 %v11400_v4, %v1259_v10  ;;  %v1185_v47 = vadd.s32 %v8086_v2, %v8084_v33 }
 0x150   :  { %v3264_v50 = vmul.f32 0.5, %v3248_v53  ;;  %v6210_v21 = vadd.s32 4294967294, %v1197_v3  ;;  %v1270_v51 = vor.u32 %v1269_v48, %v1268_v37  ;;  %v1273_v13 = vor.u32 %v1272_v44, %v1271_v43  ;;  %6265 = vmatmul.msk.f32.gmra.mxu1 %vm3332_vm12, %v6940_v60 }
 0x151   :  { %vm1277_vm6 = vcmp.lt.s32.totalorder %v8143_v27, 1  ;;  %v1276_v29 = vor.u32 %v1275_v16, %v1274_v35  ;;  %vm1280_vm8 = vcmp.lt.s32.totalorder %v8143_v27, 4  ;;  %v8183_v61 = vshll.u32 %v1253_v7, 8 }
 0x152   :  { %v8174_v30 = vmul.f32 %v7943_v55, %v3264_v50  ;;  %vm6211_vm7 = vcmp.lt.s32.totalorder %v6210_v21, 0  ;;  %v1285_v33 = vsel %vm1277_vm6, %v8152_v19, %v8155_v41  ;;  %v1286_v2 = vsel %vm1280_vm8, %v1273_v13, 920167782 }
 0x153   :  { %v1200_v10 = vsel %vm6211_vm7, 0, %v6210_v21  ;;  %vm1279_vm9 = vcmp.lt.s32.totalorder %v8143_v27, 3  ;;  %vm1278_vm10 = vcmp.lt.s32.totalorder %v8143_v27, 2  ;;  %v1289_v3 = vsel %vm1277_vm6, %v8155_v41, %v1270_v51 }
 0x154   :  { %11418 = vst [vmem:[#allocation12_spill] sm:$0xff] %v8174_v30  ;;  %v3527_v25 = vmul.f32 %v6617_v15, %v8174_v30  ;;  %v3817_v55 = vmul.f32 %v6619_v0, %v8174_v30  ;;  %v1201_v63 = vsub.s32 32, %v1200_v10  ;;  %v1205_v48 = vsub.s32 4294967266, %v1200_v10 }
 0x155   :  { %v1287_v53 = vsel %vm1279_vm9, %v1270_v51, %v1286_v2  ;;  %v1202_v7 = vshll.u32 %v8131_v49, %v1200_v10  ;;  %v1290_v0 = vsel %vm1280_vm8, %v1276_v29, 1326507024  ;;  %v1294_v60 = vand.u32 65535, %v8183_v61 }
 0x156   :  { %3561 = vmatmul.f32.gmra.mxu2 %v3527_v25  ;;  %3851 = vmatmul.f32.gmra.mxu0 %v3817_v55  ;;  %v1203_v15 = vshrl.u32 %v1185_v47, %v1201_v63  ;;  %v1288_v37 = vsel %vm1278_vm10, %v1285_v33, %v1287_v53  ;;  %v1206_v43 = vadd.s32 127, %v1205_v48  ;;  %v1291_v44 = vsel %vm1279_vm9, %v1273_v13, %v1290_v0  ;;  %v6941_v13 = vld [vmem:[%s11216_s2 + $0x78] sm:$0xff] }
 0x157   :  { %v1318_v16 = vand.u32 65535, %v1288_v37  ;;  %v1319_v50 = vshrl.u32 %v1288_v37, 16  ;;  %v1292_v35 = vsel %vm1278_vm10, %v1289_v3, %v1291_v44  ;;  %v1295_v49 = vshrl.u32 %v8183_v61, 16 }
 0x158   :  { %v1204_v21 = vor.u32 %v1203_v15, %v1202_v7  ;;  %v1207_v47 = vshll.u32 %v1206_v43, 23  ;;  %v8206_v10 = vadd.f32 -1.5, %v7589_v18  ;;  %v1296_v33 = vand.u32 65535, %v1292_v35  ;;  %6266 = vmatmul.msk.f32.gmra.mxu1 %vm3332_vm12, %v6941_v13  ;;  %v11425_v13 = vld [vmem:[#allocation7_spill] sm:$0xff] }
 0x159   :  { %v1297_v29 = vshrl.u32 %v1292_v35, 16  ;;  %vm1093_vm11 = vcmp.lt.s32.totalorder %v7872_v40, 0  ;;  %v1261_v2 = vshrl.u32 %v11374_v45, %v8129_v58  ;;  %v1321_v25 = vmul.u32 %v1319_v50, %v1294_v60  ;;  %v11422_v35 = vld [vmem:[#allocation8_spill] sm:$0xff] }
 0x15a   :  { %v1322_v55 = vmul.u32 %v1318_v16, %v1295_v49  ;;  %v11419_v63 = vand.u32 2147483647, %v7872_v40  ;;  %v1208_v53 = vor.u32 4788187, %v1207_v47  ;;  %v1282_v3 = vsel %vm1280_vm8, %v1270_v51, 2102212464 }
 0x15b   :  { %v1299_v7 = vmul.u32 %v1297_v29, %v1294_v60  ;;  %v1300_v15 = vmul.u32 %v1296_v33, %v1295_v49  ;;  %v1211_v37 = vcvt.s32.f32 %v1204_v21  ;;  %v1320_v0 = vmul.u32 %v1318_v16, %v1294_v60 }
 0x15c   :  { %vm8217_vm13 = vcmp.le.f32.partialorder %v11419_v63, 0.7853982  ;;  %v1323_v43 = vmul.u32 %v1319_v50, %v1295_v49  ;;  %v1324_v44 = vshll.u32 %v1321_v25, 16  ;;  %vm8226_vm14 = vcmp.eq.s32.totalorder %v585_v26, %v11422_v35 }
 0x15d   :  { %vm618_vm15 = vcmp.ne.s32.totalorder %v8109_v56, %v11425_v13  ;;  %v1209_v47 = vand.u32 2147483647, %v1208_v53  ;;  %v1298_v63 = vmul.u32 %v1296_v33, %v1294_v60  ;;  %v1301_v42 = vmul.u32 %v1297_v29, %v1295_v49 }
 0x15e   :  { %v1302_v51 = vshll.u32 %v1299_v7, 16  ;;  %v1304_v9 = vshll.u32 %v1300_v15, 16  ;;  %v1326_v59 = vshll.u32 %v1322_v55, 16  ;;  %vm1328_vm0 = vc.u32 %v1320_v0, %v1324_v44  ;;  %vm634_vm4 = vmand %vm8226_vm14, %vm618_vm15 }
 0x15f   :  { %v1330_v16 = vadd.s32 %v1324_v44, %v1320_v0  ;;  %v1212_v50 = vmul.f32 %v1211_v37, %v1209_v47  ;;  %v1329_v30 = vsel %vm1328_vm0, 1, %v11379_v28  ;;  %v1281_v26 = vsel %vm1277_vm6, %v1261_v2, %v8152_v19 }
 0x160   :  { %vm1306_vm1 = vc.u32 %v1298_v63, %v1302_v51  ;;  %v1308_v21 = vadd.s32 %v1302_v51, %v1298_v63  ;;  %v1331_v54 = vadd.s32 %v1329_v30, %v1323_v43  ;;  %v1283_v29 = vsel %vm1279_vm9, %v8155_v41, %v1282_v3  ;;  %v11426_v30 = vld [vmem:[#allocation27_spill] sm:$0xff] }
 0x161   :  { %v1307_v38 = vsel %vm1306_vm1, 1, %v11379_v28  ;;  %vm1332_vm2 = vc.u32 %v1330_v16, %v1326_v59  ;;  %v1213_v60 = vxor.u32 2147483648, %v1212_v50  ;;  %v1325_v37 = vshrl.u32 %v1321_v25, 16 }
 0x162   :  { %v1309_v49 = vadd.s32 %v1307_v38, %v1301_v42  ;;  %vm1310_vm3 = vc.u32 %v1308_v21, %v1304_v9  ;;  %v1333_v33 = vsel %vm1332_vm2, 1, %v11379_v28  ;;  %v1303_v2 = vshrl.u32 %v1299_v7, 16 }
 0x163   :  { %v1311_v53 = vsel %vm1310_vm3, 1, %v11379_v28  ;;  %v1335_v0 = vadd.s32 %v1333_v33, %v1331_v54  ;;  %v1214_v19 = vsel %vm1093_vm11, %v1213_v60, %v1212_v50  ;;  %v739_v43 = vmul.f32 %v7159_v20, %v11426_v30 }
 0x164   :  { %v1313_v44 = vadd.s32 %v1311_v53, %v1309_v49  ;;  %v1217_v38 = vsel %vm8217_vm13, %v7872_v40, %v1214_v19  ;;  %v568_v42 = vadd.s32 24, %v11416_v62  ;;  %v1327_v9 = vshrl.u32 %v1322_v55, 16 }
 0x165   :  { %v1336_v41 = vadd.s32 %v1335_v0, %v1325_v37  ;;  %v1219_v3 = vmul.f32 %v1217_v38, %v1217_v38  ;;  %v1305_v47 = vshrl.u32 %v1300_v15, 16  ;;  %v755_v54 = vmin.f32 %v739_v43, 1.0 }
 0x166   :  { %v1314_v25 = vadd.s32 %v1313_v44, %v1303_v2  ;;  %v3464_v63 = vmul.f32 %v8163_v39, %v8163_v39  ;;  %v1284_v7 = vsel %vm1278_vm10, %v1281_v26, %v1283_v29  ;;  %v8254_v51 = vadd.s32 %v1330_v16, %v1326_v59 }
 0x167   :  { %v1337_v50 = vadd.s32 %v1336_v41, %v1327_v9  ;;  %v1220_v21 = vmul.f32 -0.001358992, %v1219_v3  ;;  %v1227_v60 = vmul.f32 -0.00019511016, %v1219_v3  ;;  %v8258_v33 = vmul.f32 3.1415927, %v755_v54 }
 0x168   :  { %v8256_v49 = vadd.s32 %v1314_v25, %v1305_v47  ;;  %v1215_v39 = vsub.s32 4, %v8113_v5  ;;  %v3754_v27 = vmul.f32 %v8206_v10, %v8206_v10  ;;  %v586_v59 = vshra.s32 %v568_v42, 4 }
 0x169   :  { %v1341_v55 = vadd.s32 1, %v1337_v50  ;;  %v1221_v15 = vadd.f32 0.041655596, %v1220_v21  ;;  %v1228_v16 = vadd.f32 0.008332121, %v1227_v60  ;;  %v1338_v26 = vmul.u32 %v8183_v61, %v1284_v7 }
 0x16a   :  { %vm1340_vm5 = vc.u32 %v8256_v49, %v8254_v51  ;;  %vm682_vm6 = vcmp.lt.f32.partialorder %v7589_v18, 6.0  ;;  %v3480_v56 = vmul.f32 -2.0, %v3464_v63  ;;  %v1402_v58 = vand.u32 2139095040, %v8258_v33 }
 0x16b   :  { %v1342_v29 = vsel %vm1340_vm5, %v1341_v55, %v1337_v50  ;;  %v11427_v53 = vmov 0.0   ;;  %v1222_v0 = vmul.f32 %v1221_v15, %v1219_v3  ;;  %v1229_v19 = vmul.f32 %v1228_v16, %v1219_v3 }
 0x16c   :  { %v6173_v37 = vsel %vm634_vm4, 1.0, %v11427_v53  ;;  %v1343_v10 = vadd.s32 %v1342_v29, %v1338_v26  ;;  %v1216_v2 = vsel %vm1093_vm11, %v1215_v39, %v8113_v5  ;;  %v3770_v44 = vmul.f32 -2.0, %v3754_v27 }
 0x16d   :  { %vm619_vm7 = vcmp.ne.s32.totalorder %v568_v42, %v11425_v13  ;;  %v1403_v61 = vshrl.u32 %v1402_v58, 23  ;;  %v1223_v43 = vadd.f32 -0.4999988, %v1222_v0  ;;  %v1230_v9 = vadd.f32 -0.16666654, %v1229_v19 }
 0x16e   :  { %vm603_vm8 = vcmp.eq.s32.totalorder %v586_v59, %v11422_v35  ;;  %v1344_v41 = vadd.s32 536870912, %v1343_v10  ;;  %v6189_v47 = vsel %vm682_vm6, 1.0, %v11427_v53  ;;  %v3282_v25 = vmul.f32 %v6173_v37, %v7260_v52 }
 0x16f   :  { %v3498_v54 = vmul.f32 1.442695, %v3480_v56  ;;  %v6215_v63 = vadd.s32 4294967169, %v1403_v61  ;;  %v1218_v5 = vsel %vm8217_vm13, 0, %v1216_v2  ;;  %v1224_v7 = vmul.f32 %v1223_v43, %v1219_v3  ;;  %vm635_vm10 = vmand %vm603_vm8, %vm619_vm7 }
 0x170   :  { %v1231_v50 = vmul.f32 %v1230_v9, %v1219_v3  ;;  %v8285_v21 = vshrl.u32 %v1344_v41, 30  ;;  %vm1234_vm9 = vweird.f32 %v7872_v40  ;;  %v3788_v60 = vmul.f32 1.442695, %v3770_v44 }
 0x171   :  { %vm683_vm11 = vcmp.lt.f32.partialorder %v11410_v31, 6.0  ;;  %v1409_v39 = vadd.s32 1, %v6215_v63  ;;  %v1225_v27 = vadd.f32 1.0, %v1224_v7  ;;  %v11287_v48 = vand.u32 2147483647, %v8258_v33 }
 0x172   :  { %v1232_v59 = vadd.f32 1.0, %v1231_v50  ;;  %v1346_v55 = vshll.u32 %v8285_v21, 30  ;;  %v1235_v15 = vand.u32 3, %v1218_v5  ;;  %v3298_v16 = vmul.f32 %v6189_v47, %v3282_v25 }
 0x173   :  { %6620 = vpow2.f32 %v3498_v54  ;;  %vm1410_vm13 = vcmp.gt.s32.totalorder %v1409_v39, 0  ;;  %v1241_v26 = vxor.u32 2147483648, %v1225_v27  ;;  %v6174_v56 = vsel %vm635_vm10, 1.0, %v11427_v53 }
 0x174   :  { %v1233_v3 = vmul.f32 %v1232_v59, %v1217_v38  ;;  %v1347_v29 = vsub.s32 %v1343_v10, %v1346_v55  ;;  %6622 = vpow2.f32 %v3788_v60  ;;  %v8295_v42 = vsel %vm683_vm11, 1.0, %v11427_v53 }
 0x175   :  { %v6270_v58 = vadd.f32 -0.75, %v11410_v31  ;;  %v1411_v37 = vsel %vm1410_vm13, %v1409_v39, 0  ;;  %v1406_v2 = vand.u32 8388607, %v11287_v48  ;;  %vm1237_vm15 = vcmp.eq.s32.totalorder %v1235_v15, 0 }
 0x176   :  { %v1238_v0 = vxor.u32 2147483648, %v1233_v3  ;;  %vm1348_vm14 = vcmp.lt.s32.totalorder %v1347_v29, 0  ;;  %v1349_v19 = vsub.s32 0, %v1347_v29  ;;  %vm1240_vm0 = vcmp.eq.s32.totalorder %v1235_v15, 2 }
 0x177   :  { %v8301_v38 = vmul.f32 %v6174_v56, %v7260_v52  ;;  %v1413_v44 = vand.u32 31, %v1411_v37  ;;  %vm1236_vm1 = vcmp.lt.s32.totalorder %v1235_v15, 2  ;;  %v1242_v61 = vsel %vm1240_vm0, %v1241_v26, %v1233_v3 }
 0x178   :  { %v1239_v10 = vsel %vm1237_vm15, %v1225_v27, %v1238_v0  ;;  %v1350_v43 = vsel %vm1348_vm14, %v1349_v19, %v1347_v29  ;;  %v3465_v25 = vmul.f32 %v6270_v58, %v6270_v58  ;;  %v6302_v54 = vadd.f32 -1.5, %v11410_v31 }
 0x179   :  { %v6621_v9 = vpop.eup %6620  ;;  %v1243_v41 = vsel %vm1236_vm1, %v1239_v10, %v1242_v61  ;;  %v1351_v47 = vclz %v1350_v43  ;;  %v1339_v5 = vadd.s32 %v8254_v51, %v8256_v49  ;;  %v1407_v7 = vor.u32 8388608, %v1406_v2 }
 0x17a   :  { %v1244_v63 = vsel %vm1234_vm9, nan, %v1243_v41  ;;  %v8308_v50 = vsub.s32 32, %v1413_v44  ;;  %v6623_v60 = vpop.eup %6622  ;;  %v8310_v59 = vshrl.u32 %v1411_v37, 5  ;;  %v1416_v55 = vshll.u32 %v11374_v45, %v1413_v44 }
 0x17b   :  { %v3249_v39 = vadd.f32 1.0, %v1244_v63  ;;  %v6213_v27 = vadd.s32 4294967294, %v1351_v47  ;;  %v1419_v3 = vshll.u32 %v11396_v22, %v1413_v44  ;;  %v1422_v26 = vshll.u32 %v11397_v11, %v1413_v44 }
 0x17c   :  { %v1417_v15 = vshrl.u32 %v11396_v22, %v8308_v50  ;;  %v1420_v40 = vshrl.u32 %v11397_v11, %v8308_v50  ;;  %v1423_v51 = vshrl.u32 %v11399_v14, %v8308_v50  ;;  %v1426_v56 = vshrl.u32 %v11400_v4, %v8308_v50 }
 0x17d   :  { %v3265_v49 = vmul.f32 0.5, %v3249_v39  ;;  %vm6214_vm2 = vcmp.lt.s32.totalorder %v6213_v27, 0  ;;  %v1425_v19 = vshll.u32 %v11399_v14, %v1413_v44  ;;  %v1428_v63 = vshll.u32 %v11400_v4, %v1413_v44 }
 0x17e   :  { %v1354_v58 = vsel %vm6214_vm2, 0, %v6213_v27  ;;  %v8323_v37 = vor.u32 %v1417_v15, %v1416_v55  ;;  %v8325_v0 = vor.u32 %v1420_v40, %v1419_v3  ;;  %v1424_v43 = vor.u32 %v1423_v51, %v1422_v26 }
 0x17f   :  { %v8328_v2 = vmul.f32 %v3298_v16, %v3265_v49  ;;  %v1355_v10 = vsub.s32 32, %v1354_v58  ;;  %v1359_v61 = vsub.s32 4294967266, %v1354_v58  ;;  %v1356_v41 = vshll.u32 %v1347_v29, %v1354_v58 }
 0x180   :  { %v1427_v47 = vor.u32 %v1426_v56, %v1425_v19  ;;  %v1429_v39 = vshrl.u32 %v11401_v23, %v8308_v50  ;;  %v8335_v40 = vmul.f32 -2.0, %v3465_v25  ;;  %v8338_v16 = vadd.s32 32, %v11416_v62 }
 0x181   :  { %11428 = vst [vmem:[#allocation13_spill] sm:$0xff] %v8328_v2  ;;  %v3528_v27 = vmul.f32 %v6621_v9, %v8328_v2  ;;  %v3818_v55 = vmul.f32 %v6623_v60, %v8328_v2  ;;  %v1357_v15 = vshrl.u32 %v1339_v5, %v1355_v10  ;;  %v1360_v3 = vadd.s32 127, %v1359_v61  ;;  %v11429_v5 = vld [vmem:[#allocation28_spill] sm:$0xff] }
 0x182   :  { %v1430_v49 = vor.u32 %v1429_v39, %v1428_v63  ;;  %v8340_v51 = vshll.u32 %v1407_v7, 8  ;;  %vm1431_vm3 = vcmp.lt.s32.totalorder %v8310_v59, 1  ;;  %vm1434_vm4 = vcmp.lt.s32.totalorder %v8310_v59, 4 }
 0x183   :  { %3564 = vmatmul.f32.gmra.mxu2 %v3528_v27  ;;  %3854 = vmatmul.f32.gmra.mxu0 %v3818_v55  ;;  %v1358_v29 = vor.u32 %v1357_v15, %v1356_v41  ;;  %v1361_v44 = vshll.u32 %v1360_v3, 23  ;;  %vm1247_vm5 = vcmp.lt.s32.totalorder %v8076_v34, 0  ;;  %vm1433_vm6 = vcmp.lt.s32.totalorder %v8310_v59, 3 }
 0x184   :  { %v1439_v9 = vsel %vm1431_vm3, %v8323_v37, %v8325_v0  ;;  %v1440_v25 = vsel %vm1434_vm4, %v1427_v47, 920167782  ;;  %v740_v7 = vmul.f32 %v7159_v20, %v11429_v5  ;;  %v11430_v60 = vand.u32 2147483647, %v8076_v34 }
 0x185   :  { %v1362_v56 = vor.u32 4788187, %v1361_v44  ;;  %vm1432_vm8 = vcmp.lt.s32.totalorder %v8310_v59, 2  ;;  %v1441_v58 = vsel %vm1433_vm6, %v1424_v43, %v1440_v25  ;;  %v1443_v19 = vsel %vm1431_vm3, %v8325_v0, %v1424_v43 }
 0x186   :  { %vm8356_vm7 = vcmp.le.f32.partialorder %v11430_v60, 0.7853982  ;;  %v3755_v10 = vmul.f32 %v6302_v54, %v6302_v54  ;;  %v587_v61 = vshra.s32 %v8338_v16, 4  ;;  %v1442_v41 = vsel %vm1432_vm8, %v1439_v9, %v1441_v58 }
 0x187   :  { %v1444_v63 = vsel %vm1434_vm4, %v1430_v49, 1326507024  ;;  %v1363_v39 = vand.u32 2147483647, %v1362_v56  ;;  %v1365_v27 = vcvt.s32.f32 %v1358_v29  ;;  %v1473_v15 = vshrl.u32 %v1442_v41, 16 }
 0x188   :  { %v1445_v55 = vsel %vm1433_vm6, %v1427_v47, %v1444_v63  ;;  %v1448_v44 = vand.u32 65535, %v8340_v51  ;;  %v1472_v54 = vand.u32 65535, %v1442_v41  ;;  %v756_v25 = vmin.f32 %v740_v7, 1.0 }
 0x189   :  { %v1446_v3 = vsel %vm1432_vm8, %v1443_v19, %v1445_v55  ;;  %v1366_v60 = vmul.f32 %v1365_v27, %v1363_v39  ;;  %v1449_v48 = vshrl.u32 %v8340_v51, 16  ;;  %v1369_v49 = vsub.s32 4, %v8285_v21 }
 0x18a   :  { %v1450_v9 = vand.u32 65535, %v1446_v3  ;;  %v1451_v58 = vshrl.u32 %v1446_v3, 16  ;;  %v8378_v56 = vmul.f32 -2.0, %v3755_v10  ;;  %v1415_v47 = vshrl.u32 %v11374_v45, %v8308_v50 }
 0x18b   :  { %v1475_v29 = vmul.u32 %v1473_v15, %v1448_v44  ;;  %v1367_v63 = vxor.u32 2147483648, %v1366_v60  ;;  %v1436_v19 = vsel %vm1434_vm4, %v1424_v43, 2102212464  ;;  %v1474_v7 = vmul.u32 %v1472_v54, %v1448_v44 }
 0x18c   :  { %v1453_v55 = vmul.u32 %v1451_v58, %v1448_v44  ;;  %v1454_v41 = vmul.u32 %v1450_v9, %v1449_v48  ;;  %v1476_v39 = vmul.u32 %v1472_v54, %v1449_v48  ;;  %v8384_v2 = vmul.f32 3.1415927, %v756_v25 }
 0x18d   :  { %v1478_v27 = vshll.u32 %v1475_v29, 16  ;;  %v1368_v3 = vsel %vm1247_vm5, %v1367_v63, %v1366_v60  ;;  %v1452_v10 = vmul.u32 %v1450_v9, %v1448_v44  ;;  %v1477_v18 = vmul.u32 %v1473_v15, %v1449_v48 }
 0x18e   :  { %v1456_v31 = vshll.u32 %v1453_v55, 16  ;;  %v1371_v50 = vsel %vm8356_vm7, %v8076_v34, %v1368_v3  ;;  %v1455_v12 = vmul.u32 %v1451_v58, %v1449_v48  ;;  %v1458_v36 = vshll.u32 %v1454_v41, 16 }
 0x18f   :  { %vm1482_vm9 = vc.u32 %v1474_v7, %v1478_v27  ;;  %v1373_v43 = vmul.f32 %v1371_v50, %v1371_v50  ;;  %v1480_v32 = vshll.u32 %v1476_v39, 16  ;;  %v1484_v8 = vadd.s32 %v1478_v27, %v1474_v7 }
 0x190   :  { %vm1460_vm10 = vc.u32 %v1452_v10, %v1456_v31  ;;  %v1462_v46 = vadd.s32 %v1456_v31, %v1452_v10  ;;  %v1483_v54 = vsel %vm1482_vm9, 1, %v11379_v28  ;;  %vm8394_vm11 = vcmp.eq.s32.totalorder %v587_v61, %v11422_v35 }
 0x191   :  { %v1461_v25 = vsel %vm1460_vm10, 1, %v11379_v28  ;;  %v1485_v60 = vadd.s32 %v1483_v54, %v1477_v18  ;;  %v1374_v44 = vmul.f32 -0.001358992, %v1373_v43  ;;  %v1381_v9 = vmul.f32 -0.00019511016, %v1373_v43 }
 0x192   :  { %v1463_v48 = vadd.s32 %v1461_v25, %v1455_v12  ;;  %vm1464_vm13 = vc.u32 %v1462_v46, %v1458_v36  ;;  %v1435_v31 = vsel %vm1431_vm3, %v1415_v47, %v8323_v37  ;;  %v1457_v58 = vshrl.u32 %v1453_v55, 16 }
 0x193   :  { %v1465_v63 = vsel %vm1464_vm13, 1, %v11379_v28  ;;  %vm1486_vm14 = vc.u32 %v1484_v8, %v1480_v32  ;;  %v1375_v3 = vadd.f32 0.041655596, %v1374_v44  ;;  %v1382_v7 = vadd.f32 0.008332121, %v1381_v9 }
 0x194   :  { %v1467_v18 = vadd.s32 %v1465_v63, %v1463_v48  ;;  %v1487_v27 = vsel %vm1486_vm14, 1, %v11379_v28  ;;  %v1437_v61 = vsel %vm1433_vm6, %v8325_v0, %v1436_v19  ;;  %v1479_v10 = vshrl.u32 %v1475_v29, 16 }
 0x195   :  { %v1489_v12 = vadd.s32 %v1487_v27, %v1485_v60  ;;  %v1556_v46 = vand.u32 2139095040, %v8384_v2  ;;  %v1376_v36 = vmul.f32 %v1375_v3, %v1373_v43  ;;  %v1383_v54 = vmul.f32 %v1382_v7, %v1373_v43 }
 0x196   :  { %v1459_v37 = vshrl.u32 %v1454_v41, 16  ;;  %v1468_v47 = vadd.s32 %v1467_v18, %v1457_v58  ;;  %v1370_v55 = vsel %vm1247_vm5, %v1369_v49, %v8285_v21  ;;  %v1481_v25 = vshrl.u32 %v1476_v39, 16 }
 0x197   :  { %v1490_v44 = vadd.s32 %v1489_v12, %v1479_v10  ;;  %v1557_v9 = vshrl.u32 %v1556_v46, 23  ;;  %v1377_v48 = vadd.f32 -0.4999988, %v1376_v36  ;;  %v1384_v63 = vadd.f32 -0.16666654, %v1383_v54 }
 0x198   :  { %v8410_v57 = vadd.s32 %v1468_v47, %v1459_v37  ;;  %v8412_v0 = vadd.s32 %v1484_v8, %v1480_v32  ;;  %vm620_vm15 = vcmp.ne.s32.totalorder %v8338_v16, %v11425_v13  ;;  %v1438_v29 = vsel %vm1432_vm8, %v1435_v31, %v1437_v61 }
 0x199   :  { %v1491_v19 = vadd.s32 %v1490_v44, %v1481_v25  ;;  %v6218_v41 = vadd.s32 4294967169, %v1557_v9  ;;  %v1372_v21 = vsel %vm8356_vm7, 0, %v1370_v55  ;;  %v1378_v49 = vmul.f32 %v1377_v48, %v1373_v43  ;;  %vm636_vm1 = vmand %vm8394_vm11, %vm620_vm15 }
 0x19a   :  { %v1385_v39 = vmul.f32 %v1384_v63, %v1373_v43  ;;  %vm1494_vm0 = vc.u32 %v8410_v57, %v8412_v0  ;;  %v3500_v60 = vmul.f32 1.442695, %v8335_v40  ;;  %v11301_v8 = vand.u32 2147483647, %v8384_v2 }
 0x19b   :  { %v1495_v32 = vadd.s32 1, %v1491_v19  ;;  %v1563_v58 = vadd.s32 1, %v6218_v41  ;;  %v1379_v3 = vadd.f32 1.0, %v1378_v49  ;;  %v3790_v59 = vmul.f32 1.442695, %v8378_v56 }
 0x19c   :  { %v1386_v7 = vadd.f32 1.0, %v1385_v39  ;;  %v1492_v31 = vmul.u32 %v8340_v51, %v1438_v29  ;;  %v1389_v18 = vand.u32 3, %v1372_v21  ;;  %v3299_v26 = vmul.f32 %v8295_v42, %v8301_v38 }
 0x19d   :  { %v1496_v40 = vsel %vm1494_vm0, %v1495_v32, %v1491_v19  ;;  %vm1564_vm2 = vcmp.gt.s32.totalorder %v1563_v58, 0  ;;  %v1395_v27 = vxor.u32 2147483648, %v1379_v3  ;;  %vm1388_vm3 = vweird.f32 %v8076_v34 }
 0x19e   :  { %v1387_v43 = vmul.f32 %v1386_v7, %v1371_v50  ;;  %v1497_v61 = vadd.s32 %v1496_v40, %v1492_v31  ;;  %v1565_v10 = vsel %vm1564_vm2, %v1563_v58, 0  ;;  %6624 = vpow2.f32 %v3500_v60 }
 0x19f   :  { %v1560_v51 = vand.u32 8388607, %v11301_v8  ;;  %v1567_v56 = vand.u32 31, %v1565_v10  ;;  %6626 = vpow2.f32 %v3790_v59  ;;  %v8437_v38 = vsel %vm636_vm1, 1.0, %v11427_v53 }
 0x1a0   :  { %v1392_v42 = vxor.u32 2147483648, %v1387_v43  ;;  %v1498_v16 = vadd.s32 536870912, %v1497_v61  ;;  %vm1391_vm4 = vcmp.eq.s32.totalorder %v1389_v18, 0  ;;  %vm1394_vm5 = vcmp.eq.s32.totalorder %v1389_v18, 2 }
 0x1a1   :  { %vm684_vm6 = vcmp.lt.f32.partialorder %v11426_v30, 6.0  ;;  %v8440_v50 = vsub.s32 32, %v1567_v56  ;;  %vm1390_vm7 = vcmp.lt.s32.totalorder %v1389_v18, 2  ;;  %v1396_v12 = vsel %vm1394_vm5, %v1395_v27, %v1387_v43 }
 0x1a2   :  { %v1393_v15 = vsel %vm1391_vm4, %v1379_v3, %v1392_v42  ;;  %v8442_v46 = vshrl.u32 %v1498_v16, 30  ;;  %v1561_v54 = vor.u32 8388608, %v1560_v51  ;;  %v8451_v44 = vshrl.u32 %v1565_v10, 5 }
 0x1a3   :  { %v1397_v36 = vsel %vm1390_vm7, %v1393_v15, %v1396_v12  ;;  %v1571_v37 = vshrl.u32 %v11396_v22, %v8440_v50  ;;  %v1574_v47 = vshrl.u32 %v11397_v11, %v8440_v50  ;;  %v1577_v9 = vshrl.u32 %v11399_v14, %v8440_v50 }
 0x1a4   :  { %v1398_v55 = vsel %vm1388_vm3, nan, %v1397_v36  ;;  %v1500_v25 = vshll.u32 %v8442_v46, 30  ;;  %v6625_v48 = vpop.eup %6624  ;;  %v1570_v29 = vshll.u32 %v11374_v45, %v1567_v56  ;;  %v1573_v19 = vshll.u32 %v11396_v22, %v1567_v56 }
 0x1a5   :  { %v3250_v63 = vadd.f32 1.0, %v1398_v55  ;;  %v1580_v41 = vshrl.u32 %v11400_v4, %v8440_v50  ;;  %v6627_v21 = vpop.eup %6626  ;;  %v1576_v34 = vshll.u32 %v11397_v11, %v1567_v56  ;;  %v1579_v39 = vshll.u32 %v11399_v14, %v1567_v56 }
 0x1a6   :  { %v8459_v49 = vsub.s32 %v1497_v61, %v1500_v25  ;;  %v1583_v60 = vshrl.u32 %v11401_v23, %v8440_v50  ;;  %v8465_v58 = vor.u32 %v1571_v37, %v1570_v29  ;;  %v8467_v3 = vor.u32 %v1574_v47, %v1573_v19 }
 0x1a7   :  { %v3266_v32 = vmul.f32 0.5, %v3250_v63  ;;  %v1582_v7 = vshll.u32 %v11400_v4, %v1567_v56  ;;  %v1578_v31 = vor.u32 %v1577_v9, %v1576_v34  ;;  %v1581_v18 = vor.u32 %v1580_v41, %v1579_v39 }
 0x1a8   :  { %vm1502_vm8 = vcmp.lt.s32.totalorder %v8459_v49, 0  ;;  %v1503_v59 = vsub.s32 0, %v8459_v49  ;;  %v8477_v43 = vsel %vm684_vm6, 1.0, %v11427_v53  ;;  %v6271_v27 = vadd.f32 -0.75, %v11426_v30 }
 0x1a9   :  { %v8472_v40 = vmul.f32 %v3299_v26, %v3266_v32  ;;  %v1584_v61 = vor.u32 %v1583_v60, %v1582_v7  ;;  %v6303_v51 = vadd.f32 -1.5, %v11426_v30  ;;  %vm1585_vm9 = vcmp.lt.s32.totalorder %v8451_v44, 1 }
 0x1aa   :  { %v1504_v10 = vsel %vm1502_vm8, %v1503_v59, %v8459_v49  ;;  %v8483_v56 = vshll.u32 %v1561_v54, 8  ;;  %vm1588_vm10 = vcmp.lt.s32.totalorder %v8451_v44, 4  ;;  %vm1587_vm11 = vcmp.lt.s32.totalorder %v8451_v44, 3 }
 0x1ab   :  { %11435 = vst [vmem:[#allocation14_spill] sm:$0xff] %v8472_v40  ;;  %v3529_v42 = vmul.f32 %v6625_v48, %v8472_v40  ;;  %v3819_v26 = vmul.f32 %v6627_v21, %v8472_v40  ;;  %v1505_v16 = vclz %v1504_v10  ;;  %v1593_v15 = vsel %vm1585_vm9, %v8465_v58, %v8467_v3 }
 0x1ac   :  { %v1594_v12 = vsel %vm1588_vm10, %v1581_v18, 920167782  ;;  %v1597_v36 = vsel %vm1585_vm9, %v8467_v3, %v1578_v31  ;;  %vm1586_vm13 = vcmp.lt.s32.totalorder %v8451_v44, 2  ;;  %v1598_v47 = vsel %vm1588_vm10, %v1584_v61, 1326507024 }
 0x1ad   :  { %3567 = vmatmul.f32.gmra.mxu2 %v3529_v42  ;;  %3857 = vmatmul.f32.gmra.mxu0 %v3819_v26  ;;  %v6216_v54 = vadd.s32 4294967294, %v1505_v16  ;;  %v1595_v37 = vsel %vm1587_vm11, %v1578_v31, %v1594_v12  ;;  %v8504_v55 = vadd.s32 40, %v11416_v62  ;;  %v1599_v9 = vsel %vm1587_vm11, %v1581_v18, %v1598_v47 }
 0x1ae   :  { %v1596_v25 = vsel %vm1586_vm13, %v1593_v15, %v1595_v37  ;;  %v1602_v48 = vand.u32 65535, %v8483_v56  ;;  %v1600_v63 = vsel %vm1586_vm13, %v1597_v36, %v1599_v9  ;;  %v1603_v21 = vshrl.u32 %v8483_v56, 16 }
 0x1af   :  { %vm6217_vm14 = vcmp.lt.s32.totalorder %v6216_v54, 0  ;;  %v1626_v29 = vand.u32 65535, %v1596_v25  ;;  %v1627_v19 = vshrl.u32 %v1596_v25, 16  ;;  %v1604_v34 = vand.u32 65535, %v1600_v63 }
 0x1b0   :  { %v1508_v41 = vsel %vm6217_vm14, 0, %v6216_v54  ;;  %v1605_v39 = vshrl.u32 %v1600_v63, 16  ;;  %v1493_v60 = vadd.s32 %v8412_v0, %v8410_v57  ;;  %v3466_v59 = vmul.f32 %v6271_v27, %v6271_v27 }
 0x1b1   :  { %v1509_v32 = vsub.s32 32, %v1508_v41  ;;  %v1513_v7 = vsub.s32 4294967266, %v1508_v41  ;;  %v1510_v18 = vshll.u32 %v8459_v49, %v1508_v41  ;;  %v8517_v61 = vmul.f32 %v6303_v51, %v6303_v51 }
 0x1b2   :  { %v1607_v10 = vmul.u32 %v1605_v39, %v1602_v48  ;;  %v1608_v42 = vmul.u32 %v1604_v34, %v1603_v21  ;;  %v1629_v15 = vmul.u32 %v1627_v19, %v1602_v48  ;;  %v1630_v12 = vmul.u32 %v1626_v29, %v1603_v21 }
 0x1b3   :  { %v1511_v26 = vshrl.u32 %v1493_v60, %v1509_v32  ;;  %v1514_v16 = vadd.s32 127, %v1513_v7  ;;  %v588_v36 = vshra.s32 %v8504_v55, 4  ;;  %v1590_v54 = vsel %vm1588_vm10, %v1578_v31, 2102212464 }
 0x1b4   :  { %v1606_v37 = vmul.u32 %v1604_v34, %v1602_v48  ;;  %v1610_v57 = vshll.u32 %v1607_v10, 16  ;;  %v1628_v27 = vmul.u32 %v1626_v29, %v1602_v48  ;;  %v1632_v25 = vshll.u32 %v1629_v15, 16 }
 0x1b5   :  { %v1512_v0 = vor.u32 %v1511_v26, %v1510_v18  ;;  %v1515_v47 = vshll.u32 %v1514_v16, 23  ;;  %v1609_v49 = vmul.u32 %v1605_v39, %v1603_v21  ;;  %v1612_v51 = vshll.u32 %v1608_v42, 16 }
 0x1b6   :  { %vm1614_vm15 = vc.u32 %v1606_v37, %v1610_v57  ;;  %v1616_v9 = vadd.s32 %v1610_v57, %v1606_v37  ;;  %v1631_v60 = vmul.u32 %v1627_v19, %v1603_v21  ;;  %v1634_v32 = vshll.u32 %v1630_v12, 16 }
 0x1b7   :  { %v1516_v63 = vor.u32 4788187, %v1515_v47  ;;  %v1615_v41 = vsel %vm1614_vm15, 1, %v11379_v28  ;;  %vm1636_vm1 = vc.u32 %v1628_v27, %v1632_v25  ;;  %v1638_v8 = vadd.s32 %v1632_v25, %v1628_v27  ;;  %v11436_v25 = vld [vmem:[#allocation29_spill] sm:$0xff] }
 0x1b8   :  { %v1617_v7 = vadd.s32 %v1615_v41, %v1609_v49  ;;  %vm1618_vm0 = vc.u32 %v1616_v9, %v1612_v51  ;;  %v1519_v34 = vcvt.s32.f32 %v1512_v0  ;;  %v1637_v48 = vsel %vm1636_vm1, 1, %v11379_v28 }
 0x1b9   :  { %v1517_v31 = vand.u32 2147483647, %v1516_v63  ;;  %v1619_v18 = vsel %vm1618_vm0, 1, %v11379_v28  ;;  %v1611_v29 = vshrl.u32 %v1607_v10, 16  ;;  %v1639_v26 = vadd.s32 %v1637_v48, %v1631_v60 }
 0x1ba   :  { %v1621_v39 = vadd.s32 %v1619_v18, %v1617_v7  ;;  %vm1640_vm2 = vc.u32 %v1638_v8, %v1634_v32  ;;  %v1569_v37 = vshrl.u32 %v11374_v45, %v8440_v50  ;;  %v1613_v19 = vshrl.u32 %v1608_v42, 16 }
 0x1bb   :  { %v1520_v16 = vmul.f32 %v1519_v34, %v1517_v31  ;;  %v1641_v21 = vsel %vm1640_vm2, 1, %v11379_v28  ;;  %v1633_v47 = vshrl.u32 %v1629_v15, 16  ;;  %v741_v0 = vmul.f32 %v7159_v20, %v11436_v25 }
 0x1bc   :  { %v1622_v57 = vadd.s32 %v1621_v39, %v1611_v29  ;;  %v1643_v27 = vadd.s32 %v1641_v21, %v1639_v26  ;;  %vm1401_vm3 = vcmp.lt.s32.totalorder %v8258_v33, 0  ;;  %v1589_v10 = vsel %vm1585_vm9, %v1569_v37, %v8465_v58 }
 0x1bd   :  { %v1521_v49 = vxor.u32 2147483648, %v1520_v16  ;;  %v1591_v50 = vsel %vm1587_vm11, %v8467_v3, %v1590_v54  ;;  %v1635_v51 = vshrl.u32 %v1630_v12, 16  ;;  %v757_v15 = vmin.f32 %v741_v0, 1.0 }
 0x1be   :  { %v8537_v42 = vadd.s32 %v1622_v57, %v1613_v19  ;;  %v1644_v9 = vadd.s32 %v1643_v27, %v1633_v47  ;;  %v11437_v63 = vand.u32 2147483647, %v8258_v33  ;;  %v3482_v7 = vmul.f32 -2.0, %v3466_v59 }
 0x1bf   :  { %v1522_v60 = vsel %vm1401_vm3, %v1521_v49, %v1520_v16  ;;  %v8547_v58 = vadd.s32 %v1638_v8, %v1634_v32  ;;  %v1592_v12 = vsel %vm1586_vm13, %v1589_v10, %v1591_v50  ;;  %v6272_v31 = vadd.f32 -0.75, %v11429_v5 }
 0x1c0   :  { %vm8541_vm4 = vcmp.le.f32.partialorder %v11437_v63, 0.7853982  ;;  %v1645_v54 = vadd.s32 %v1644_v9, %v1635_v51  ;;  %v3284_v18 = vmul.f32 %v8437_v38, %v7260_v52  ;;  %v8563_v8 = vmul.f32 3.1415927, %v757_v15 }
 0x1c1   :  { %v8552_v3 = vsel %vm8541_vm4, %v8258_v33, %v1522_v60  ;;  %vm1648_vm5 = vc.u32 %v8537_v42, %v8547_v58  ;;  %v1523_v59 = vsub.s32 4, %v8442_v46  ;;  %v3772_v32 = vmul.f32 -2.0, %v8517_v61 }
 0x1c2   :  { %v1527_v34 = vmul.f32 %v8552_v3, %v8552_v3  ;;  %vm8568_vm6 = vcmp.eq.s32.totalorder %v588_v36, %v11422_v35  ;;  %v1649_v48 = vadd.s32 1, %v1645_v54  ;;  %v1646_v26 = vmul.u32 %v8483_v56, %v1592_v12 }
 0x1c3   :  { %v11302_v38 = vand.u32 2147483647, %v8563_v8  ;;  %v3502_v16 = vmul.f32 1.442695, %v3482_v7  ;;  %v3467_v19 = vmul.f32 %v6272_v31, %v6272_v31  ;;  %v1710_v21 = vand.u32 2139095040, %v8563_v8 }
 0x1c4   :  { %v1528_v29 = vmul.f32 -0.001358992, %v1527_v34  ;;  %v1535_v39 = vmul.f32 -0.00019511016, %v1527_v34  ;;  %v1650_v37 = vsel %vm1648_vm5, %v1649_v48, %v1645_v54  ;;  %vm621_vm7 = vcmp.ne.s32.totalorder %v8504_v55, %v11425_v13 }
 0x1c5   :  { %v1651_v61 = vadd.s32 %v1650_v37, %v1646_v26  ;;  %v1524_v36 = vsel %vm1401_vm3, %v1523_v59, %v8442_v46  ;;  %v3792_v27 = vmul.f32 1.442695, %v3772_v32  ;;  %v1711_v0 = vshrl.u32 %v1710_v21, 23  ;;  %vm637_vm8 = vmand %vm8568_vm6, %vm621_vm7 }
 0x1c6   :  { %v1529_v57 = vadd.f32 0.041655596, %v1528_v29  ;;  %v1536_v47 = vadd.f32 0.008332121, %v1535_v39  ;;  %v1714_v56 = vand.u32 8388607, %v11302_v38  ;;  %v8583_v50 = vmul.f32 %v8477_v43, %v3284_v18 }
 0x1c7   :  { %v1652_v51 = vadd.s32 536870912, %v1651_v61  ;;  %6628 = vpow2.f32 %v3502_v16  ;;  %v3483_v55 = vmul.f32 -2.0, %v3467_v19  ;;  %v6304_v9 = vadd.f32 -1.5, %v11429_v5 }
 0x1c8   :  { %v1530_v49 = vmul.f32 %v1529_v57, %v1527_v34  ;;  %v1537_v10 = vmul.f32 %v1536_v47, %v1527_v34  ;;  %v6221_v15 = vadd.s32 4294967169, %v1711_v0  ;;  %v1526_v46 = vsel %vm8541_vm4, 0, %v1524_v36 }
 0x1c9   :  { %v8590_v7 = vshrl.u32 %v1652_v51, 30  ;;  %6630 = vpow2.f32 %v3792_v27  ;;  %vm685_vm9 = vcmp.lt.f32.partialorder %v11429_v5, 6.0  ;;  %v1715_v43 = vor.u32 8388608, %v1714_v56 }
 0x1ca   :  { %v1531_v63 = vadd.f32 -0.4999988, %v1530_v49  ;;  %v1538_v60 = vadd.f32 -0.16666654, %v1537_v10  ;;  %v1717_v12 = vadd.s32 1, %v6221_v15  ;;  %v6176_v18 = vsel %vm637_vm8, 1.0, %v11427_v53 }
 0x1cb   :  { %v1654_v59 = vshll.u32 %v8590_v7, 30  ;;  %vm1542_vm10 = vweird.f32 %v8258_v33  ;;  %v1543_v32 = vand.u32 3, %v1526_v46  ;;  %v3504_v41 = vmul.f32 1.442695, %v3483_v55 }
 0x1cc   :  { %v1532_v54 = vmul.f32 %v1531_v63, %v1527_v34  ;;  %v1539_v31 = vmul.f32 %v1538_v60, %v1527_v34  ;;  %v3757_v44 = vmul.f32 %v6304_v9, %v6304_v9  ;;  %vm1718_vm11 = vcmp.gt.s32.totalorder %v1717_v12, 0 }
 0x1cd   :  { %v8597_v39 = vsel %vm685_vm9, 1.0, %v11427_v53  ;;  %v8599_v26 = vsub.s32 %v1651_v61, %v1654_v59  ;;  %v6629_v16 = vpop.eup %6628  ;;  %v8602_v34 = vmul.f32 %v6176_v18, %v7260_v52  ;;  %v1719_v37 = vsel %vm1718_vm11, %v1717_v12, 0 }
 0x1ce   :  { %v1533_v48 = vadd.f32 1.0, %v1532_v54  ;;  %v1540_v29 = vadd.f32 1.0, %v1539_v31  ;;  %v8604_v19 = vshll.u32 %v1715_v43, 8  ;;  %v8608_v21 = vmul.f32 %v7159_v20, %v7887_v1 }
 0x1cf   :  { %vm1656_vm13 = vcmp.lt.s32.totalorder %v8599_v26, 0  ;;  %v1657_v36 = vsub.s32 0, %v8599_v26  ;;  %v6631_v61 = vpop.eup %6630  ;;  %vm1544_vm14 = vcmp.lt.s32.totalorder %v1543_v32, 2  ;;  %6632 = vpow2.f32 %v3504_v41 }
 0x1d0   :  { %v1541_v57 = vmul.f32 %v1540_v29, %v8552_v3  ;;  %v1549_v47 = vxor.u32 2147483648, %v1533_v48  ;;  %v8613_v27 = vmul.f32 -2.0, %v3757_v44  ;;  %v1721_v0 = vand.u32 31, %v1719_v37 }
 0x1d1   :  { %vm1545_vm15 = vcmp.eq.s32.totalorder %v1543_v32, 0  ;;  %vm1548_vm0 = vcmp.eq.s32.totalorder %v1543_v32, 2  ;;  %v1658_v49 = vsel %vm1656_vm13, %v1657_v36, %v8599_v26  ;;  %vm1555_vm1 = vcmp.lt.s32.totalorder %v8384_v2, 0 }
 0x1d2   :  { %v1546_v56 = vxor.u32 2147483648, %v1541_v57  ;;  %v1647_v3 = vadd.s32 %v8547_v58, %v8537_v42  ;;  %v1659_v10 = vclz %v1658_v49  ;;  %v1677_v51 = vsub.s32 4, %v8590_v7 }
 0x1d3   :  { %v8621_v55 = vand.u32 65535, %v8604_v19  ;;  %v1550_v15 = vsel %vm1548_vm0, %v1549_v47, %v1541_v57  ;;  %v1722_v46 = vsub.s32 32, %v1721_v0  ;;  %v758_v63 = vmin.f32 %v8608_v21, 1.0 }
 0x1d4   :  { %v1547_v9 = vsel %vm1545_vm15, %v1533_v48, %v1546_v56  ;;  %v6219_v43 = vadd.s32 4294967294, %v1659_v10  ;;  %v8625_v12 = vshrl.u32 %v1719_v37, 5  ;;  %v1724_v54 = vshll.u32 %v11374_v45, %v1721_v0 }
 0x1d5   :  { %v1551_v60 = vsel %vm1544_vm14, %v1547_v9, %v1550_v15  ;;  %v1725_v58 = vshrl.u32 %v11396_v22, %v1722_v46  ;;  %v1727_v31 = vshll.u32 %v11396_v22, %v1721_v0  ;;  %v1728_v18 = vshrl.u32 %v11397_v11, %v1722_v46  ;;  %v8633_v59 = vpop.eup %6632 }
 0x1d6   :  { %v1552_v42 = vsel %vm1542_vm10, nan, %v1551_v60  ;;  %v11442_v32 = vand.u32 2147483647, %v8384_v2  ;;  %vm6220_vm3 = vcmp.lt.s32.totalorder %v6219_v43, 0  ;;  %v1731_v48 = vshrl.u32 %v11399_v14, %v1722_v46 }
 0x1d7   :  { %v3251_v41 = vadd.f32 1.0, %v1552_v42  ;;  %v1734_v33 = vshrl.u32 %v11400_v4, %v1722_v46  ;;  %v1662_v29 = vsel %vm6220_vm3, 0, %v6219_v43  ;;  %v1726_v37 = vor.u32 %v1725_v58, %v1724_v54 }
 0x1d8   :  { %vm8637_vm2 = vcmp.le.f32.partialorder %v11442_v32, 0.7853982  ;;  %v1730_v21 = vshll.u32 %v11397_v11, %v1721_v0  ;;  %v1733_v57 = vshll.u32 %v11399_v14, %v1721_v0  ;;  %v1663_v36 = vsub.s32 32, %v1662_v29 }
 0x1d9   :  { %v3267_v47 = vmul.f32 0.5, %v3251_v41  ;;  %v1667_v56 = vsub.s32 4294967266, %v1662_v29  ;;  %v8645_v49 = vor.u32 %v1728_v18, %v1727_v31  ;;  %v1664_v10 = vshll.u32 %v8599_v26, %v1662_v29 }
 0x1da   :  { %v1735_v9 = vor.u32 %v1734_v33, %v1733_v57  ;;  %v1736_v15 = vshll.u32 %v11400_v4, %v1721_v0  ;;  %v1737_v60 = vshrl.u32 %v11401_v23, %v1722_v46  ;;  %v1665_v43 = vshrl.u32 %v1647_v3, %v1663_v36 }
 0x1db   :  { %v8651_v42 = vmul.f32 %v8583_v50, %v3267_v47  ;;  %v1668_v54 = vadd.s32 127, %v1667_v56  ;;  %v1732_v58 = vor.u32 %v1731_v48, %v1730_v21  ;;  %v1678_v41 = vsel %vm1555_vm1, %v1677_v51, %v8590_v7 }
 0x1dc   :  { %v1738_v32 = vor.u32 %v1737_v60, %v1736_v15  ;;  %vm1739_vm4 = vcmp.lt.s32.totalorder %v8625_v12, 1  ;;  %vm1742_vm5 = vcmp.lt.s32.totalorder %v8625_v12, 4  ;;  %v1666_v31 = vor.u32 %v1665_v43, %v1664_v10 }
 0x1dd   :  { %11445 = vst [vmem:[#allocation15_spill] sm:$0xff] %v8651_v42  ;;  %v3530_v26 = vmul.f32 %v6629_v16, %v8651_v42  ;;  %v3820_v0 = vmul.f32 %v6631_v61, %v8651_v42  ;;  %v1669_v18 = vshll.u32 %v1668_v54, 23  ;;  %vm1741_vm6 = vcmp.lt.s32.totalorder %v8625_v12, 3 }
 0x1de   :  { %v1747_v50 = vsel %vm1739_vm4, %v1726_v37, %v8645_v49  ;;  %v1748_v7 = vsel %vm1742_vm5, %v1735_v9, 920167782  ;;  %v8666_v3 = vmul.f32 3.1415927, %v758_v63  ;;  %vm1740_vm7 = vcmp.lt.s32.totalorder %v8625_v12, 2 }
 0x1df   :  { %3570 = vmatmul.f32.gmra.mxu2 %v3530_v26  ;;  %3860 = vmatmul.f32.gmra.mxu0 %v3820_v0  ;;  %v1670_v51 = vor.u32 4788187, %v1669_v18  ;;  %v1749_v16 = vsel %vm1741_vm6, %v1732_v58, %v1748_v7  ;;  %v1751_v61 = vsel %vm1739_vm4, %v8645_v49, %v1732_v58  ;;  %v1673_v48 = vcvt.s32.f32 %v1666_v31 }
 0x1e0   :  { %v1680_v33 = vsel %vm8637_vm2, 0, %v1678_v41  ;;  %v1750_v63 = vsel %vm1740_vm7, %v1747_v50, %v1749_v16  ;;  %v1752_v29 = vsel %vm1742_vm5, %v1738_v32, 1326507024  ;;  %v1723_v56 = vshrl.u32 %v11374_v45, %v1722_v46 }
 0x1e1   :  { %v1671_v21 = vand.u32 2147483647, %v1670_v51  ;;  %v1753_v57 = vsel %vm1741_vm6, %v1735_v9, %v1752_v29  ;;  %v1780_v47 = vand.u32 65535, %v1750_v63  ;;  %v1781_v36 = vshrl.u32 %v1750_v63, 16 }
 0x1e2   :  { %v1754_v10 = vsel %vm1740_vm7, %v1751_v61, %v1753_v57  ;;  %v1757_v15 = vshrl.u32 %v8604_v19, 16  ;;  %v1864_v60 = vand.u32 2139095040, %v8666_v3  ;;  %v8687_v54 = vand.u32 3, %v1680_v33 }
 0x1e3   :  { %v1674_v43 = vmul.f32 %v1673_v48, %v1671_v21  ;;  %v1758_v41 = vand.u32 65535, %v1754_v10  ;;  %v1759_v32 = vshrl.u32 %v1754_v10, 16  ;;  %v1743_v26 = vsel %vm1739_vm4, %v1723_v56, %v1726_v37 }
 0x1e4   :  { %v1783_v9 = vmul.u32 %v1781_v36, %v8621_v55  ;;  %v1784_v0 = vmul.u32 %v1780_v47, %v1757_v15  ;;  %v1744_v18 = vsel %vm1742_vm5, %v1732_v58, 2102212464  ;;  %v1782_v51 = vmul.u32 %v1780_v47, %v8621_v55 }
 0x1e5   :  { %v1675_v31 = vxor.u32 2147483648, %v1674_v43  ;;  %v1761_v50 = vmul.u32 %v1759_v32, %v8621_v55  ;;  %v1762_v7 = vmul.u32 %v1758_v41, %v1757_v15  ;;  %v1785_v16 = vmul.u32 %v1781_v36, %v1757_v15 }
 0x1e6   :  { %v1786_v61 = vshll.u32 %v1783_v9, 16  ;;  %v1865_v48 = vshrl.u32 %v1864_v60, 23  ;;  %v1760_v33 = vmul.u32 %v1758_v41, %v8621_v55  ;;  %v1763_v63 = vmul.u32 %v1759_v32, %v1757_v15 }
 0x1e7   :  { %v1676_v37 = vsel %vm1555_vm1, %v1675_v31, %v1674_v43  ;;  %v1764_v29 = vshll.u32 %v1761_v50, 16  ;;  %v1766_v58 = vshll.u32 %v1762_v7, 16  ;;  %v1788_v57 = vshll.u32 %v1784_v0, 16 }
 0x1e8   :  { %v1679_v21 = vsel %vm8637_vm2, %v8384_v2, %v1676_v37  ;;  %vm1790_vm8 = vc.u32 %v1782_v51, %v1786_v61  ;;  %v1792_v60 = vadd.s32 %v1786_v61, %v1782_v51  ;;  %v6224_v31 = vadd.s32 4294967169, %v1865_v48 }
 0x1e9   :  { %v1681_v56 = vmul.f32 %v1679_v21, %v1679_v21  ;;  %vm1768_vm9 = vc.u32 %v1760_v33, %v1764_v29  ;;  %v1770_v47 = vadd.s32 %v1764_v29, %v1760_v33  ;;  %v1791_v36 = vsel %vm1790_vm8, 1, %v11379_v28 }
 0x1ea   :  { %v1769_v10 = vsel %vm1768_vm9, 1, %v11379_v28  ;;  %v1793_v43 = vadd.s32 %v1791_v36, %v1785_v16  ;;  %v1745_v44 = vsel %vm1741_vm6, %v8645_v49, %v1744_v18  ;;  %v1765_v32 = vshrl.u32 %v1761_v50, 16 }
 0x1eb   :  { %v1682_v55 = vmul.f32 -0.001358992, %v1681_v56  ;;  %v1689_v15 = vmul.f32 -0.00019511016, %v1681_v56  ;;  %v1771_v41 = vadd.s32 %v1769_v10, %v1763_v63  ;;  %vm1772_vm10 = vc.u32 %v1770_v47, %v1766_v58 }
 0x1ec   :  { %v1773_v37 = vsel %vm1772_vm10, 1, %v11379_v28  ;;  %vm1794_vm11 = vc.u32 %v1792_v60, %v1788_v57  ;;  %v1787_v51 = vshrl.u32 %v1783_v9, 16  ;;  %v11446_v61 = vand.u32 2147483647, %v8666_v3 }
 0x1ed   :  { %v1683_v33 = vadd.f32 0.041655596, %v1682_v55  ;;  %v1690_v29 = vadd.f32 0.008332121, %v1689_v15  ;;  %v1775_v38 = vadd.s32 %v1773_v37, %v1771_v41  ;;  %v1795_v46 = vsel %vm1794_vm11, 1, %v11379_v28 }
 0x1ee   :  { %v1797_v16 = vadd.s32 %v1795_v46, %v1793_v43  ;;  %v1868_v48 = vand.u32 8388607, %v11446_v61  ;;  %v1871_v63 = vadd.s32 1, %v6224_v31  ;;  %v1767_v36 = vshrl.u32 %v1762_v7, 16 }
 0x1ef   :  { %v1684_v58 = vmul.f32 %v1683_v33, %v1681_v56  ;;  %v1691_v47 = vmul.f32 %v1690_v29, %v1681_v56  ;;  %v1776_v10 = vadd.s32 %v1775_v38, %v1765_v32  ;;  %v1789_v49 = vshrl.u32 %v1784_v0, 16 }
 0x1f0   :  { %v8712_v18 = vadd.s32 %v1792_v60, %v1788_v57  ;;  %v1798_v50 = vadd.s32 %v1797_v16, %v1787_v51  ;;  %vm1872_vm13 = vcmp.gt.s32.totalorder %v1871_v63, 0  ;;  %v3794_v9 = vmul.f32 1.442695, %v8613_v27 }
 0x1f1   :  { %v1685_v55 = vadd.f32 -0.4999988, %v1684_v58  ;;  %v1692_v15 = vadd.f32 -0.16666654, %v1691_v47  ;;  %v8714_v41 = vadd.s32 %v1776_v10, %v1767_v36  ;;  %v1873_v37 = vsel %vm1872_vm13, %v1871_v63, 0 }
 0x1f2   :  { %v1746_v46 = vsel %vm1740_vm7, %v1743_v26, %v1745_v44  ;;  %v1799_v43 = vadd.s32 %v1798_v50, %v1789_v49  ;;  %v1875_v31 = vand.u32 31, %v1873_v37  ;;  %vm1698_vm14 = vcmp.lt.s32.totalorder %v8687_v54, 2 }
 0x1f3   :  { %v1686_v33 = vmul.f32 %v1685_v55, %v1681_v56  ;;  %v1693_v7 = vmul.f32 %v1692_v15, %v1681_v56  ;;  %vm1802_vm15 = vc.u32 %v8714_v41, %v8712_v18  ;;  %vm1696_vm0 = vweird.f32 %v8384_v2 }
 0x1f4   :  { %vm1699_vm1 = vcmp.eq.s32.totalorder %v8687_v54, 0  ;;  %vm1702_vm2 = vcmp.eq.s32.totalorder %v8687_v54, 2  ;;  %v1803_v38 = vadd.s32 1, %v1799_v43  ;;  %v8725_v27 = vsub.s32 32, %v1875_v31 }
 0x1f5   :  { %v1687_v12 = vadd.f32 1.0, %v1686_v33  ;;  %v1694_v26 = vadd.f32 1.0, %v1693_v7  ;;  %v1800_v0 = vmul.u32 %v8604_v19, %v1746_v46  ;;  %v1869_v57 = vor.u32 8388608, %v1868_v48 }
 0x1f6   :  { %v1804_v56 = vsel %vm1802_vm15, %v1803_v38, %v1799_v43  ;;  %v1878_v60 = vshll.u32 %v11374_v45, %v1875_v31  ;;  %v1879_v44 = vshrl.u32 %v11396_v22, %v8725_v27  ;;  %v1882_v32 = vshrl.u32 %v11397_v11, %v8725_v27 }
 0x1f7   :  { %v1695_v29 = vmul.f32 %v1694_v26, %v1679_v21  ;;  %v1703_v51 = vxor.u32 2147483648, %v1687_v12  ;;  %v1805_v16 = vadd.s32 %v1804_v56, %v1800_v0  ;;  %v1885_v61 = vshrl.u32 %v11399_v14, %v8725_v27 }
 0x1f8   :  { %v8735_v63 = vshrl.u32 %v1873_v37, 5  ;;  %v1881_v19 = vshll.u32 %v11396_v22, %v1875_v31  ;;  %v1887_v48 = vshll.u32 %v11399_v14, %v1875_v31  ;;  %v1888_v58 = vshrl.u32 %v11400_v4, %v8725_v27 }
 0x1f9   :  { %v1700_v47 = vxor.u32 2147483648, %v1695_v29  ;;  %v1806_v36 = vadd.s32 536870912, %v1805_v16  ;;  %v8741_v10 = vor.u32 %v1879_v44, %v1878_v60  ;;  %v1884_v21 = vshll.u32 %v11397_v11, %v1875_v31 }
 0x1fa   :  { %v8744_v49 = vor.u32 %v1882_v32, %v1881_v19  ;;  %v1889_v50 = vor.u32 %v1888_v58, %v1887_v48  ;;  %v1890_v55 = vshll.u32 %v11400_v4, %v1875_v31  ;;  %v1891_v15 = vshrl.u32 %v11401_v23, %v8725_v27 }
 0x1fb   :  { %v1701_v37 = vsel %vm1699_vm1, %v1687_v12, %v1700_v47  ;;  %v1704_v46 = vsel %vm1702_vm2, %v1703_v51, %v1695_v29  ;;  %v8753_v43 = vshrl.u32 %v1806_v36, 30  ;;  %v8755_v33 = vor.u32 %v1885_v61, %v1884_v21 }
 0x1fc   :  { %v1705_v7 = vsel %vm1698_vm14, %v1701_v37, %v1704_v46  ;;  %6634 = vpow2.f32 %v3794_v9  ;;  %v1892_v38 = vor.u32 %v1891_v15, %v1890_v55  ;;  %v8759_v26 = vshll.u32 %v1869_v57, 8 }
 0x1fd   :  { %v1706_v31 = vsel %vm1696_vm0, nan, %v1705_v7  ;;  %v1808_v0 = vshll.u32 %v8753_v43, 30  ;;  %vm1893_vm3 = vcmp.lt.s32.totalorder %v8735_v63, 1  ;;  %vm1896_vm4 = vcmp.lt.s32.totalorder %v8735_v63, 4 }
 0x1fe   :  { %v3252_v12 = vadd.f32 1.0, %v1706_v31  ;;  %vm1895_vm5 = vcmp.lt.s32.totalorder %v8735_v63, 3  ;;  %v1901_v54 = vsel %vm1893_vm3, %v8741_v10, %v8744_v49  ;;  %v1902_v9 = vsel %vm1896_vm4, %v1889_v50, 920167782 }
 0x1ff   :  { %v8773_v57 = vsub.s32 %v1805_v16, %v1808_v0  ;;  %vm1894_vm6 = vcmp.lt.s32.totalorder %v8735_v63, 2  ;;  %v1903_v2 = vsel %vm1895_vm5, %v8755_v33, %v1902_v9  ;;  %v1905_v56 = vsel %vm1893_vm3, %v8744_v49, %v8755_v33  ;;  %v11458_v63 = vld [vmem:[#allocation33_spill] sm:$0xff] }
 0x200   :  { %v3268_v60 = vmul.f32 0.5, %v3252_v12  ;;  %v3301_v44 = vmul.f32 %v8597_v39, %v8602_v34  ;;  %v1904_v32 = vsel %vm1894_vm6, %v1901_v54, %v1903_v2  ;;  %v1906_v29 = vsel %vm1896_vm4, %v1892_v38, 1326507024 }
 0x201   :  { %v8790_v51 = vadd.s32 48, %v11416_v62  ;;  %vm1810_vm7 = vcmp.lt.s32.totalorder %v8773_v57, 0  ;;  %v1811_v16 = vsub.s32 0, %v8773_v57  ;;  %v1907_v61 = vsel %vm1895_vm5, %v1889_v50, %v1906_v29 }
 0x202   :  { %v6635_v19 = vpop.eup %6634  ;;  %v8796_v48 = vmul.f32 %v3301_v44, %v3268_v60  ;;  %v1908_v39 = vsel %vm1894_vm6, %v1905_v56, %v1907_v61  ;;  %v1934_v34 = vand.u32 65535, %v1904_v32  ;;  %v1935_v58 = vshrl.u32 %v1904_v32, 16 }
 0x203   :  { %v8801_v47 = vadd.f32 1e-12, %v8121_v24  ;;  %v1812_v36 = vsel %vm1810_vm7, %v1811_v16, %v8773_v57  ;;  %v1910_v21 = vand.u32 65535, %v8759_v26  ;;  %v1911_v55 = vshrl.u32 %v8759_v26, 16 }
 0x204   :  { %11447 = vst [vmem:[#allocation16_spill] sm:$0xff] %v8796_v48  ;;  %v3531_v50 = vmul.f32 %v8633_v59, %v8796_v48  ;;  %v3821_v15 = vmul.f32 %v6635_v19, %v8796_v48  ;;  %v1813_v37 = vclz %v1812_v36  ;;  %v1912_v46 = vand.u32 65535, %v1908_v39 }
 0x205   :  { %v11448_v7 = vsub.f32 1.5, %v8104_v6  ;;  %v1913_v24 = vshrl.u32 %v1908_v39, 16  ;;  %v1937_v31 = vmul.u32 %v1935_v58, %v1910_v21  ;;  %v1938_v0 = vmul.u32 %v1934_v34, %v1911_v55 }
 0x206   :  { %3573 = vmatmul.f32.gmra.mxu2 %v3531_v50  ;;  %3863 = vmatmul.f32.gmra.mxu0 %v3821_v15  ;;  %v589_v12 = vshra.s32 %v8790_v51, 4  ;;  %v1801_v54 = vadd.s32 %v8712_v18, %v8714_v41  ;;  %v6222_v59 = vadd.s32 4294967294, %v1813_v37  ;;  %v1916_v9 = vmul.u32 %v1912_v46, %v1911_v55  ;;  %v11449_v41 = vld [vmem:[#allocation30_spill] sm:$0xff] }
 0x207   :  { %v8812_v38 = vmul.f32 %v7908_v17, %v11448_v7  ;;  %v1877_v2 = vshrl.u32 %v11374_v45, %v8725_v27  ;;  %v1915_v56 = vmul.u32 %v1913_v24, %v1910_v21  ;;  %v1936_v6 = vmul.u32 %v1934_v34, %v1910_v21 }
 0x208   :  { %v1940_v60 = vshll.u32 %v1937_v31, 16  ;;  %vm6223_vm8 = vcmp.lt.s32.totalorder %v6222_v59, 0  ;;  %v1914_v17 = vmul.u32 %v1912_v46, %v1910_v21  ;;  %v1917_v44 = vmul.u32 %v1913_v24, %v1911_v55 }
 0x209   :  { %v1939_v32 = vmul.u32 %v1935_v58, %v1911_v55  ;;  %v1816_v29 = vsel %vm6223_vm8, 0, %v6222_v59  ;;  %v1918_v16 = vshll.u32 %v1915_v56, 16  ;;  %v1920_v61 = vshll.u32 %v1916_v9, 16 }
 0x20a   :  { %v1942_v19 = vshll.u32 %v1938_v0, 16  ;;  %v1817_v39 = vsub.s32 32, %v1816_v29  ;;  %v1818_v36 = vshll.u32 %v8773_v57, %v1816_v29  ;;  %v1821_v18 = vsub.s32 4294967266, %v1816_v29 }
 0x20b   :  { %vm1944_vm9 = vc.u32 %v1936_v6, %v1940_v60  ;;  %vm513_vm10 = vcmp.eq.f32.partialorder %v11449_v41, 0.0  ;;  %vm1922_vm11 = vc.u32 %v1914_v17, %v1918_v16  ;;  %v1924_v27 = vadd.s32 %v1918_v16, %v1914_v17 }
 0x20c   :  { %v1945_v34 = vsel %vm1944_vm9, 1, %v11379_v28  ;;  %v1946_v50 = vadd.s32 %v1940_v60, %v1936_v6  ;;  %v1819_v15 = vshrl.u32 %v1801_v54, %v1817_v39  ;;  %v1822_v21 = vadd.s32 127, %v1821_v18 }
 0x20d   :  { %v1923_v58 = vsel %vm1922_vm11, 1, %v11379_v28  ;;  %v1947_v55 = vadd.s32 %v1945_v34, %v1939_v32  ;;  %v1898_v37 = vsel %vm1896_vm4, %v8755_v33, 2102212464  ;;  %vm1926_vm13 = vc.u32 %v1924_v27, %v1920_v61  ;;  %v11455_v34 = vld [vmem:[#allocation31_spill] sm:$0xff] }
 0x20e   :  { %v1925_v46 = vadd.s32 %v1923_v58, %v1917_v44  ;;  %vm1948_vm14 = vc.u32 %v1946_v50, %v1942_v19  ;;  %v1820_v57 = vor.u32 %v1819_v15, %v1818_v36  ;;  %v1823_v7 = vshll.u32 %v1822_v21, 23  ;;  %v11456_v15 = vld [vmem:[#allocation35_spill] sm:$0xff] }
 0x20f   :  { %v1927_v24 = vsel %vm1926_vm13, 1, %v11379_v28  ;;  %v1949_v59 = vsel %vm1948_vm14, 1, %v11379_v28  ;;  %v1919_v17 = vshrl.u32 %v1915_v56, 16  ;;  %v1941_v54 = vshrl.u32 %v1937_v31, 16  ;;  %v11457_v21 = vld [vmem:[#allocation11_spill] sm:$0xff] }
 0x210   :  { %v1929_v6 = vadd.s32 %v1927_v24, %v1925_v46  ;;  %v1951_v60 = vadd.s32 %v1949_v59, %v1947_v55  ;;  %vm622_vm15 = vcmp.ne.s32.totalorder %v8790_v51, %v11425_v13  ;;  %v1824_v32 = vor.u32 4788187, %v1823_v7  ;;  %v289_v24 = vpop.f32.mrf.mxu0 }
 0x211   :  { %v1897_v33 = vsel %vm1893_vm3, %v1877_v2, %v8741_v10  ;;  %v1899_v44 = vsel %vm1895_vm5, %v8744_v49, %v1898_v37  ;;  %v1921_v29 = vshrl.u32 %v1916_v9, 16  ;;  %v1943_v61 = vshrl.u32 %v1938_v0, 16  ;;  %v11452_v9 = vld [vmem:[#allocation18_spill] sm:$0xff] }
 0x212   :  { %v1930_v16 = vadd.s32 %v1929_v6, %v1919_v17  ;;  %v1952_v39 = vadd.s32 %v1951_v60, %v1941_v54  ;;  %vm8837_vm0 = vcmp.eq.s32.totalorder %v589_v12, %v11422_v35  ;;  %v1825_v56 = vand.u32 2147483647, %v1824_v32 }
 0x213   :  { %v1827_v36 = vcvt.s32.f32 %v1820_v57  ;;  %v6273_v18 = vadd.f32 -0.75, %v11436_v25  ;;  %v1900_v10 = vsel %vm1894_vm6, %v1897_v33, %v1899_v44  ;;  %v8846_v27 = vadd.s32 %v1946_v50, %v1942_v19  ;;  %vm638_vm3 = vmand %vm8837_vm0, %vm622_vm15 }
 0x214   :  { %v8844_v2 = vadd.s32 %v1930_v16, %v1921_v29  ;;  %v1953_v49 = vadd.s32 %v1952_v39, %v1943_v61  ;;  %v11453_v0 = vand.u32 2147483648, %v11449_v41  ;;  %vm523_vm1 = vcmp.eq.f32.partialorder %v11455_v34, inf }
 0x215   :  { %v529_v58 = vmul.f32 %v11457_v21, %v11456_v15  ;;  %v1828_v55 = vmul.f32 %v1827_v36, %v1825_v56  ;;  %v743_v37 = vmul.f32 %v7159_v20, %v11458_v63  ;;  %6636 = vrsqrt.f32 %v8801_v47 }
 0x216   :  { %v8853_v12 = vsel %vm513_vm10, %v11453_v0, %v11452_v9  ;;  %v6305_v19 = vadd.f32 -1.5, %v11436_v25  ;;  %vm1956_vm2 = vc.u32 %v8844_v2, %v8846_v27  ;;  %v1957_v50 = vadd.s32 1, %v1953_v49 }
 0x217   :  { %11454 = vst [vmem:[#allocation17_spill] sm:$0xff] %v8853_v12  ;;  %v522_v41 = vmul.f32 %v8812_v38, %v11455_v34  ;;  %v1829_v46 = vxor.u32 2147483648, %v1828_v55  ;;  %v1954_v57 = vmul.u32 %v8759_v26, %v1900_v10  ;;  %v759_v7 = vmin.f32 %v743_v37, 1.0 }
 0x218   :  { %vm1709_vm4 = vcmp.lt.s32.totalorder %v8563_v8, 0  ;;  %v1831_v59 = vsub.s32 4, %v8753_v43  ;;  %v3468_v17 = vmul.f32 %v6273_v18, %v6273_v18  ;;  %v1958_v6 = vsel %vm1956_vm2, %v1957_v50, %v1953_v49 }
 0x219   :  { %v11459_v54 = vand.u32 2147483647, %v8563_v8  ;;  %v1830_v51 = vsel %vm1709_vm4, %v1829_v46, %v1828_v55  ;;  %v1959_v60 = vadd.s32 %v1958_v6, %v1954_v57  ;;  %v8882_v32 = vmul.f32 3.1415927, %v759_v7 }
 0x21a   :  { %v6177_v33 = vsel %vm638_vm3, 1.0, %v11427_v53  ;;  %v3758_v29 = vmul.f32 %v6305_v19, %v6305_v19  ;;  %v8889_v16 = vmul.f32 2.0, %v289_v24  ;;  %vm686_vm6 = vcmp.lt.f32.partialorder %v11436_v25, 6.0  ;;  %v11463_v24 = vld [vmem:[#allocation34_spill] sm:$0xff] }
 0x21b   :  { %vm8876_vm5 = vcmp.le.f32.partialorder %v11459_v54, 0.7853982  ;;  %11462 = vst [vmem:[#allocation19_spill] sm:$0xff] %v8882_v32  ;;  %v1960_v39 = vadd.s32 536870912, %v1959_v60  ;;  %v8892_v31 = vpop.eup %6636  ;;  %v8895_v56 = vmul.f32 %v11457_v21, %v529_v58  ;;  %v1832_v36 = vsel %vm1709_vm4, %v1831_v59, %v8753_v43 }
 0x21c   :  { %v1833_v44 = vsel %vm8876_vm5, %v8563_v8, %v1830_v51  ;;  %v3484_v18 = vmul.f32 -2.0, %v3468_v17  ;;  %v2018_v10 = vand.u32 2139095040, %v8882_v32  ;;  %v3286_v0 = vmul.f32 %v6177_v33, %v7260_v52 }
 0x21d   :  { %v1835_v61 = vmul.f32 %v1833_v44, %v1833_v44  ;;  %v8902_v55 = vshrl.u32 %v1960_v39, 30  ;;  %v8907_v37 = vsel %vm523_vm1, %v11455_v34, %v522_v41  ;;  %v6193_v58 = vsel %vm686_vm6, 1.0, %v11427_v53 }
 0x21e   :  { %v3774_v19 = vmul.f32 -2.0, %v3758_v29  ;;  %v2019_v50 = vshrl.u32 %v2018_v10, 23  ;;  %v1834_v43 = vsel %vm8876_vm5, 0, %v1832_v36  ;;  %v3506_v17 = vmul.f32 1.442695, %v3484_v18 }
 0x21f   :  { %v1836_v49 = vmul.f32 -0.001358992, %v1835_v61  ;;  %v1843_v9 = vmul.f32 -0.00019511016, %v1835_v61  ;;  %v1962_v7 = vshll.u32 %v8902_v55, 30  ;;  %v8916_v6 = vadd.s32 56, %v11416_v62 }
 0x220   :  { %v6227_v41 = vadd.s32 4294967169, %v2019_v50  ;;  %v8918_v33 = vmul.f32 %v6193_v58, %v3286_v0  ;;  %v1851_v39 = vand.u32 3, %v1834_v43  ;;  %v3796_v38 = vmul.f32 1.442695, %v3774_v19 }
 0x221   :  { %v1837_v46 = vadd.f32 0.041655596, %v1836_v49  ;;  %v1844_v57 = vadd.f32 0.008332121, %v1843_v9  ;;  %v1963_v29 = vsub.s32 %v1959_v60, %v1962_v7  ;;  %v11303_v36 = vand.u32 2147483647, %v8882_v32 }
 0x222   :  { %v2025_v10 = vadd.s32 1, %v6227_v41  ;;  %6638 = vpow2.f32 %v3506_v17  ;;  %v6274_v59 = vadd.f32 -0.75, %v7887_v1  ;;  %vm1850_vm9 = vweird.f32 %v8563_v8 }
 0x223   :  { %v1838_v54 = vmul.f32 %v1837_v46, %v1835_v61  ;;  %v1845_v51 = vmul.f32 %v1844_v57, %v1835_v61  ;;  %vm1964_vm7 = vcmp.lt.s32.totalorder %v1963_v29, 0  ;;  %v1965_v26 = vsub.s32 0, %v1963_v29 }
 0x224   :  { %vm2026_vm8 = vcmp.gt.s32.totalorder %v2025_v10, 0  ;;  %vm1852_vm10 = vcmp.lt.s32.totalorder %v1851_v39, 2  ;;  %6640 = vpow2.f32 %v3796_v38  ;;  %v2022_v19 = vand.u32 8388607, %v11303_v36 }
 0x225   :  { %v1839_v49 = vadd.f32 -0.4999988, %v1838_v54  ;;  %v1846_v9 = vadd.f32 -0.16666654, %v1845_v51  ;;  %v1966_v0 = vsel %vm1964_vm7, %v1965_v26, %v1963_v29  ;;  %v2027_v58 = vsel %vm2026_vm8, %v2025_v10, 0 }
 0x226   :  { %v1967_v60 = vclz %v1966_v0  ;;  %vm1853_vm11 = vcmp.eq.s32.totalorder %v1851_v39, 0  ;;  %v2029_v7 = vand.u32 31, %v2027_v58  ;;  %vm1856_vm13 = vcmp.eq.s32.totalorder %v1851_v39, 2 }
 0x227   :  { %v1840_v50 = vmul.f32 %v1839_v49, %v1835_v61  ;;  %v1847_v46 = vmul.f32 %v1846_v9, %v1835_v61  ;;  %v8926_v41 = vmul.f32 %v6274_v59, %v6274_v59  ;;  %v8929_v61 = vadd.f32 -1.5, %v7887_v1 }
 0x228   :  { %v6225_v17 = vadd.s32 4294967294, %v1967_v60  ;;  %v1955_v51 = vadd.s32 %v8846_v27, %v8844_v2  ;;  %v8933_v38 = vsub.s32 32, %v2029_v7  ;;  %v6639_v10 = vpop.eup %6638  ;;  %v2023_v49 = vor.u32 8388608, %v2022_v19 }
 0x229   :  { %v1841_v43 = vadd.f32 1.0, %v1840_v50  ;;  %v1848_v57 = vadd.f32 1.0, %v1847_v46  ;;  %v8935_v9 = vshrl.u32 %v2027_v58, 5  ;;  %v2032_v50 = vshll.u32 %v11374_v45, %v2029_v7 }
 0x22a   :  { %vm6226_vm14 = vcmp.lt.s32.totalorder %v6225_v17, 0  ;;  %v2035_v0 = vshll.u32 %v11396_v22, %v2029_v7  ;;  %v2041_v60 = vshll.u32 %v11399_v14, %v2029_v7  ;;  %v2033_v27 = vshrl.u32 %v11396_v22, %v8933_v38 }
 0x22b   :  { %v1849_v26 = vmul.f32 %v1848_v57, %v1833_v44  ;;  %v1857_v54 = vxor.u32 2147483648, %v1841_v43  ;;  %v1970_v59 = vsel %vm6226_vm14, 0, %v6225_v17  ;;  %v6641_v44 = vpop.eup %6640  ;;  %v2036_v58 = vshrl.u32 %v11397_v11, %v8933_v38 }
 0x22c   :  { %v1971_v36 = vsub.s32 32, %v1970_v59  ;;  %v1975_v2 = vsub.s32 4294967266, %v1970_v59  ;;  %v2039_v17 = vshrl.u32 %v11399_v14, %v8933_v38  ;;  %v2042_v18 = vshrl.u32 %v11400_v4, %v8933_v38 }
 0x22d   :  { %v1854_v46 = vxor.u32 2147483648, %v1849_v26  ;;  %v1858_v57 = vsel %vm1856_vm13, %v1857_v54, %v1849_v26  ;;  %v1972_v42 = vshll.u32 %v1963_v29, %v1970_v59  ;;  %v2034_v40 = vor.u32 %v2033_v27, %v2032_v50 }
 0x22e   :  { %v1973_v26 = vshrl.u32 %v1955_v51, %v1971_v36  ;;  %v1976_v54 = vadd.s32 127, %v1975_v2  ;;  %v8953_v5 = vor.u32 %v2036_v58, %v2035_v0  ;;  %v2043_v15 = vor.u32 %v2042_v18, %v2041_v60 }
 0x22f   :  { %v1855_v19 = vsel %vm1853_vm11, %v1841_v43, %v1854_v46  ;;  %v2038_v43 = vshll.u32 %v11397_v11, %v2029_v7  ;;  %vm1863_vm15 = vcmp.lt.s32.totalorder %v8666_v3, 0  ;;  %v1985_v39 = vsub.s32 4, %v8902_v55 }
 0x230   :  { %v1859_v48 = vsel %vm1852_vm10, %v1855_v19, %v1858_v57  ;;  %v1974_v30 = vor.u32 %v1973_v26, %v1972_v42  ;;  %v1977_v12 = vshll.u32 %v1976_v54, 23  ;;  %v2044_v29 = vshll.u32 %v11400_v4, %v2029_v7 }
 0x231   :  { %v1860_v25 = vsel %vm1850_vm9, nan, %v1859_v48  ;;  %v2040_v57 = vor.u32 %v2039_v17, %v2038_v43  ;;  %v2045_v8 = vshrl.u32 %v11401_v23, %v8933_v38  ;;  %v11464_v36 = vand.u32 2147483647, %v8666_v3 }
 0x232   :  { %v3253_v46 = vadd.f32 1.0, %v1860_v25  ;;  %v1978_v25 = vor.u32 4788187, %v1977_v12  ;;  %vm2047_vm1 = vcmp.lt.s32.totalorder %v8935_v9, 1  ;;  %v8968_v42 = vshll.u32 %v2023_v49, 8 }
 0x233   :  { %vm8963_vm0 = vcmp.le.f32.partialorder %v11464_v36, 0.7853982  ;;  %v2046_v18 = vor.u32 %v2045_v8, %v2044_v29  ;;  %vm2049_vm2 = vcmp.lt.s32.totalorder %v8935_v9, 3  ;;  %vm2050_vm3 = vcmp.lt.s32.totalorder %v8935_v9, 4 }
 0x234   :  { %v3269_v48 = vmul.f32 0.5, %v3253_v46  ;;  %v2055_v7 = vsel %vm2047_vm1, %v2034_v40, %v8953_v5  ;;  %v1979_v59 = vand.u32 2147483647, %v1978_v25  ;;  %v1981_v0 = vcvt.s32.f32 %v1974_v30 }
 0x235   :  { %v2056_v12 = vsel %vm2050_vm3, %v2043_v15, 920167782  ;;  %vm2048_vm4 = vcmp.lt.s32.totalorder %v8935_v9, 2  ;;  %v2059_v60 = vsel %vm2047_vm1, %v8953_v5, %v2040_v57  ;;  %v2060_v2 = vsel %vm2050_vm3, %v2046_v18, 1326507024 }
 0x236   :  { %v8976_v50 = vmul.f32 %v8918_v33, %v3269_v48  ;;  %v2057_v49 = vsel %vm2049_vm2, %v2040_v57, %v2056_v12  ;;  %v1982_v30 = vmul.f32 %v1981_v0, %v1979_v59  ;;  %v2061_v58 = vsel %vm2049_vm2, %v2043_v15, %v2060_v2 }
 0x237   :  { %v2058_v19 = vsel %vm2048_vm4, %v2055_v7, %v2057_v49  ;;  %v2064_v17 = vand.u32 65535, %v8968_v42  ;;  %v8997_v46 = vmul.f32 %v8929_v61, %v8929_v61  ;;  %v2031_v29 = vshrl.u32 %v11374_v45, %v8933_v38 }
 0x238   :  { %11467 = vst [vmem:[#allocation20_spill] sm:$0xff] %v8976_v50  ;;  %v3532_v33 = vmul.f32 %v6639_v10, %v8976_v50  ;;  %v3822_v27 = vmul.f32 %v6641_v44, %v8976_v50  ;;  %v2088_v26 = vand.u32 65535, %v2058_v19  ;;  %v2089_v54 = vshrl.u32 %v2058_v19, 16 }
 0x239   :  { %v1983_v43 = vxor.u32 2147483648, %v1982_v30  ;;  %v2062_v10 = vsel %vm2048_vm4, %v2059_v60, %v2061_v58  ;;  %v2065_v44 = vshrl.u32 %v8968_v42, 16  ;;  %v9009_v25 = vsel %vm1863_vm15, %v1985_v39, %v8902_v55 }
 0x23a   :  { %3576 = vmatmul.f32.gmra.mxu2 %v3532_v33  ;;  %3866 = vmatmul.f32.gmra.mxu0 %v3822_v27  ;;  %v2066_v15 = vand.u32 65535, %v2062_v10  ;;  %v2067_v8 = vshrl.u32 %v2062_v10, 16  ;;  %v2091_v48 = vmul.u32 %v2089_v54, %v2064_v17  ;;  %v9012_v61 = vmul.f32 -2.0, %v8926_v41 }
 0x23b   :  { %v1984_v36 = vsel %vm1863_vm15, %v1983_v43, %v1982_v30  ;;  %v2092_v18 = vmul.u32 %v2088_v26, %v2065_v44  ;;  %v2051_v38 = vsel %vm2047_vm1, %v2031_v29, %v2034_v40  ;;  %v2052_v55 = vsel %vm2050_vm3, %v2040_v57, 2102212464 }
 0x23c   :  { %v9017_v7 = vsel %vm8963_vm0, %v8666_v3, %v1984_v36  ;;  %v2069_v59 = vmul.u32 %v2067_v8, %v2064_v17  ;;  %v2070_v0 = vmul.u32 %v2066_v15, %v2065_v44  ;;  %v2090_v39 = vmul.u32 %v2088_v26, %v2064_v17 }
 0x23d   :  { %v1989_v12 = vmul.f32 %v9017_v7, %v9017_v7  ;;  %v2094_v41 = vshll.u32 %v2091_v48, 16  ;;  %v2068_v49 = vmul.u32 %v2066_v15, %v2064_v17  ;;  %v2071_v60 = vmul.u32 %v2067_v8, %v2065_v44 }
 0x23e   :  { %v2072_v2 = vshll.u32 %v2069_v59, 16  ;;  %v2093_v33 = vmul.u32 %v2089_v54, %v2065_v44  ;;  %v11468_v27 = vshra.s32 %v8916_v6, 4  ;;  %vm623_vm6 = vcmp.ne.s32.totalorder %v8916_v6, %v11425_v13 }
 0x23f   :  { %v1990_v40 = vmul.f32 -0.001358992, %v1989_v12  ;;  %v1997_v19 = vmul.f32 -0.00019511016, %v1989_v12  ;;  %v2074_v58 = vshll.u32 %v2070_v0, 16  ;;  %v2096_v57 = vshll.u32 %v2092_v18, 16 }
 0x240   :  { %vm9028_vm5 = vcmp.eq.s32.totalorder %v11468_v27, %v11422_v35  ;;  %vm2076_vm7 = vc.u32 %v2068_v49, %v2072_v2  ;;  %v2078_v26 = vadd.s32 %v2072_v2, %v2068_v49  ;;  %vm2098_vm8 = vc.u32 %v2090_v39, %v2094_v41 }
 0x241   :  { %v2100_v17 = vadd.s32 %v2094_v41, %v2090_v39  ;;  %v1991_v43 = vadd.f32 0.041655596, %v1990_v40  ;;  %v1998_v54 = vadd.f32 0.008332121, %v1997_v19  ;;  %v2077_v10 = vsel %vm2076_vm7, 1, %v11379_v28  ;;  %vm639_vm13 = vmand %vm9028_vm5, %vm623_vm6 }
 0x242   :  { %v2099_v44 = vsel %vm2098_vm8, 1, %v11379_v28  ;;  %v2079_v29 = vadd.s32 %v2077_v10, %v2071_v60  ;;  %vm2080_vm9 = vc.u32 %v2078_v26, %v2074_v58  ;;  %v2073_v32 = vshrl.u32 %v2069_v59, 16  ;;  %v11471_v60 = vld [vmem:[#allocation10_spill] sm:$0xff] }
 0x243   :  { %v2101_v15 = vadd.s32 %v2099_v44, %v2093_v33  ;;  %vm2102_vm10 = vc.u32 %v2100_v17, %v2096_v57  ;;  %v1992_v8 = vmul.f32 %v1991_v43, %v1989_v12  ;;  %v1999_v36 = vmul.f32 %v1998_v54, %v1989_v12 }
 0x244   :  { %v2081_v27 = vsel %vm2080_vm9, 1, %v11379_v28  ;;  %v2103_v50 = vsel %vm2102_vm10, 1, %v11379_v28  ;;  %v2095_v2 = vshrl.u32 %v2091_v48, 16  ;;  %v2053_v19 = vsel %vm2049_vm2, %v8953_v5, %v2052_v55 }
 0x245   :  { %v2083_v49 = vadd.s32 %v2081_v27, %v2079_v29  ;;  %v2105_v39 = vadd.s32 %v2103_v50, %v2101_v15  ;;  %v1993_v41 = vadd.f32 -0.4999988, %v1992_v8  ;;  %v2000_v40 = vadd.f32 -0.16666654, %v1999_v36 }
 0x246   :  { %v744_v33 = vmul.f32 %v7159_v20, %v11471_v60  ;;  %v2075_v58 = vshrl.u32 %v2070_v0, 16  ;;  %v2097_v43 = vshrl.u32 %v2092_v18, 16  ;;  %v1988_v59 = vsel %vm8963_vm0, 0, %v9009_v25 }
 0x247   :  { %v2084_v26 = vadd.s32 %v2083_v49, %v2073_v32  ;;  %v2106_v54 = vadd.s32 %v2105_v39, %v2095_v2  ;;  %v1994_v10 = vmul.f32 %v1993_v41, %v1989_v12  ;;  %v2001_v48 = vmul.f32 %v2000_v40, %v1989_v12 }
 0x248   :  { %v760_v50 = vmin.f32 %v744_v33, 1.0  ;;  %v2054_v44 = vsel %vm2048_vm4, %v2051_v38, %v2053_v19  ;;  %v9050_v5 = vadd.s32 %v2100_v17, %v2096_v57  ;;  %v3775_v32 = vmul.f32 -2.0, %v8997_v46 }
 0x249   :  { %v9048_v29 = vadd.s32 %v2084_v26, %v2075_v58  ;;  %v2107_v55 = vadd.s32 %v2106_v54, %v2097_v43  ;;  %v1995_v15 = vadd.f32 1.0, %v1994_v10  ;;  %v2002_v0 = vadd.f32 1.0, %v2001_v48 }
 0x24a   :  { %v9053_v18 = vmul.f32 3.1415927, %v760_v50  ;;  %vm525_vm11 = vcmp.eq.f32.partialorder %v11455_v34, 0.0  ;;  %v531_v51 = vmul.f32 0.5, %v8895_v56  ;;  %v2005_v9 = vand.u32 3, %v1988_v59 }
 0x24b   :  { %vm2110_vm14 = vc.u32 %v9048_v29, %v9050_v5  ;;  %v2111_v25 = vadd.s32 1, %v2107_v55  ;;  %v11472_v46 = vsub.f32 %v11463_v24, %v8889_v16  ;;  %v2003_v12 = vmul.f32 %v2002_v0, %v9017_v7 }
 0x24c   :  { %v2011_v57 = vxor.u32 2147483648, %v1995_v15  ;;  %v2108_v56 = vmul.u32 %v8968_v42, %v2054_v44  ;;  %vm687_vm15 = vcmp.lt.f32.partialorder %v7887_v1, 6.0  ;;  %v3508_v6 = vmul.f32 1.442695, %v9012_v61 }
 0x24d   :  { %v355_v38 = vmax.f32 %v11472_v46, 0.0  ;;  %v2112_v30 = vsel %vm2110_vm14, %v2111_v25, %v2107_v55  ;;  %v2172_v17 = vand.u32 2139095040, %v9053_v18  ;;  %v6178_v8 = vsel %vm639_vm13, 1.0, %v11427_v53 }
 0x24e   :  { %v2008_v36 = vxor.u32 2147483648, %v2003_v12  ;;  %v3798_v27 = vmul.f32 1.442695, %v3775_v32  ;;  %v2113_v49 = vadd.s32 %v2112_v30, %v2108_v56  ;;  %vm2004_vm0 = vweird.f32 %v8666_v3 }
 0x24f   :  { %vm2007_vm1 = vcmp.eq.s32.totalorder %v2005_v9, 0  ;;  %vm2010_vm2 = vcmp.eq.s32.totalorder %v2005_v9, 2  ;;  %v2173_v16 = vshrl.u32 %v2172_v17, 23  ;;  %vm2006_vm3 = vcmp.lt.s32.totalorder %v2005_v9, 2 }
 0x250   :  { %v2009_v24 = vsel %vm2007_vm1, %v1995_v15, %v2008_v36  ;;  %v2012_v42 = vsel %vm2010_vm2, %v2011_v57, %v2003_v12  ;;  %v2114_v7 = vadd.s32 536870912, %v2113_v49  ;;  %v3287_v61 = vmul.f32 %v6178_v8, %v7260_v52 }
 0x251   :  { %v2013_v2 = vsel %vm2006_vm3, %v2009_v24, %v2012_v42  ;;  %6642 = vpow2.f32 %v3508_v6  ;;  %v6230_v39 = vadd.s32 4294967169, %v2173_v16  ;;  %v6194_v41 = vsel %vm687_vm15, 1.0, %v11427_v53 }
 0x252   :  { %v2014_v40 = vsel %vm2004_vm0, nan, %v2013_v2  ;;  %6644 = vpow2.f32 %v3798_v27  ;;  %v9078_v19 = vshrl.u32 %v2114_v7, 30  ;;  %v532_v3 = vsub.f32 1.5, %v531_v51 }
 0x253   :  { %v3254_v33 = vadd.f32 1.0, %v2014_v40  ;;  %v11318_v58 = vand.u32 2147483647, %v9053_v18  ;;  %v2179_v26 = vadd.s32 1, %v6230_v39  ;;  %v11473_v43 = vand.u32 2147483648, %v11455_v34 }
 0x254   :  { %v541_v59 = vmul.f32 %v8892_v31, %v8801_v47  ;;  %v9090_v10 = vadd.f32 1e-12, %v355_v38  ;;  %v2116_v48 = vshll.u32 %v9078_v19, 30  ;;  %v3303_v44 = vmul.f32 %v6194_v41, %v3287_v61 }
 0x255   :  { %v9086_v54 = vsel %vm525_vm11, %v11473_v43, %v8907_v37  ;;  %v3270_v50 = vmul.f32 0.5, %v3254_v33  ;;  %v9094_v55 = vadd.s32 64, %v11416_v62  ;;  %vm2180_vm4 = vcmp.gt.s32.totalorder %v2179_v26, 0 }
 0x256   :  { %v9096_v15 = vsub.s32 %v2113_v49, %v2116_v48  ;;  %v6275_v0 = vadd.f32 -0.75, %v11458_v63  ;;  %v6307_v34 = vadd.f32 -1.5, %v11458_v63  ;;  %v2181_v37 = vsel %vm2180_vm4, %v2179_v26, 0 }
 0x257   :  { %v6643_v32 = vpop.eup %6642  ;;  %v9101_v51 = vmul.f32 %v11457_v21, %v532_v3  ;;  %v9103_v9 = vmul.f32 %v3303_v44, %v3270_v50  ;;  %v2176_v25 = vand.u32 8388607, %v11318_v58  ;;  %v2183_v46 = vand.u32 31, %v2181_v37 }
 0x258   :  { %v6645_v38 = vpop.eup %6644  ;;  %v9108_v12 = vmul.f32 %v8892_v31, %v541_v59  ;;  %6646 = vrsqrt.f32 %v9090_v10  ;;  %vm2118_vm5 = vcmp.lt.s32.totalorder %v9096_v15, 0  ;;  %v2119_v57 = vsub.s32 0, %v9096_v15 }
 0x259   :  { %11474 = vst [vmem:[#allocation21_spill] sm:$0xff] %v9103_v9  ;;  %v3533_v56 = vmul.f32 %v6643_v32, %v9103_v9  ;;  %v3823_v21 = vmul.f32 %v6645_v38, %v9103_v9  ;;  %v591_v6 = vshra.s32 %v9094_v55, 4  ;;  %v2184_v30 = vsub.s32 32, %v2183_v46 }
 0x25a   :  { %v2109_v17 = vadd.s32 %v9050_v5, %v9048_v29  ;;  %v2120_v8 = vsel %vm2118_vm5, %v2119_v57, %v9096_v15  ;;  %v9119_v36 = vmul.f32 %v6275_v0, %v6275_v0  ;;  %v9121_v27 = vmul.f32 %v6307_v34, %v6307_v34 }
 0x25b   :  { %3579 = vmatmul.f32.gmra.mxu2 %v3533_v56  ;;  %3869 = vmatmul.f32.gmra.mxu0 %v3823_v21  ;;  %v2121_v49 = vclz %v2120_v8  ;;  %v2177_v16 = vor.u32 8388608, %v2176_v25  ;;  %v9123_v24 = vshrl.u32 %v2181_v37, 5  ;;  %v2187_v42 = vshrl.u32 %v11396_v22, %v2184_v30  ;;  %v11475_v37 = vld [vmem:[#allocation25_spill] sm:$0xff] }
 0x25c   :  { %v2186_v7 = vshll.u32 %v11374_v45, %v2183_v46  ;;  %v2189_v2 = vshll.u32 %v11396_v22, %v2183_v46  ;;  %v2190_v29 = vshrl.u32 %v11397_v11, %v2184_v30  ;;  %v2193_v5 = vshrl.u32 %v11399_v14, %v2184_v30 }
 0x25d   :  { %v6228_v61 = vadd.s32 4294967294, %v2121_v49  ;;  %v2192_v39 = vshll.u32 %v11397_v11, %v2183_v46  ;;  %v2195_v41 = vshll.u32 %v11399_v14, %v2183_v46  ;;  %v2196_v40 = vshrl.u32 %v11400_v4, %v2184_v30 }
 0x25e   :  { %v9133_v3 = vpop.eup %6646  ;;  %v2188_v33 = vor.u32 %v2187_v42, %v2186_v7  ;;  %v9135_v26 = vor.u32 %v2190_v29, %v2189_v2  ;;  %v2198_v43 = vshll.u32 %v11400_v4, %v2183_v46  ;;  %v2199_v59 = vshrl.u32 %v11401_v23, %v2184_v30 }
 0x25f   :  { %vm6229_vm6 = vcmp.lt.s32.totalorder %v6228_v61, 0  ;;  %v2194_v48 = vor.u32 %v2193_v5, %v2192_v39  ;;  %v2197_v50 = vor.u32 %v2196_v40, %v2195_v41  ;;  %v9139_v44 = vshll.u32 %v2177_v16, 8  ;;  %v11478_v41 = vld [vmem:[#allocation19_spill] sm:$0xff] }
 0x260   :  { %v2124_v0 = vsel %vm6229_vm6, 0, %v6228_v61  ;;  %v2200_v34 = vor.u32 %v2199_v59, %v2198_v43  ;;  %vm2201_vm7 = vcmp.lt.s32.totalorder %v9123_v24, 1  ;;  %v745_v32 = vmul.f32 %v7159_v20, %v11475_v37 }
 0x261   :  { %v2125_v25 = vsub.s32 32, %v2124_v0  ;;  %v2129_v38 = vsub.s32 4294967266, %v2124_v0  ;;  %vm2202_vm8 = vcmp.lt.s32.totalorder %v9123_v24, 2  ;;  %vm2204_vm9 = vcmp.lt.s32.totalorder %v9123_v24, 4 }
 0x262   :  { %v2126_v46 = vshll.u32 %v9096_v15, %v2124_v0  ;;  %vm2203_vm10 = vcmp.lt.s32.totalorder %v9123_v24, 3  ;;  %v2209_v57 = vsel %vm2201_vm7, %v2188_v33, %v9135_v26  ;;  %v2210_v56 = vsel %vm2204_vm9, %v2197_v50, 920167782 }
 0x263   :  { %v2127_v21 = vshrl.u32 %v2109_v17, %v2125_v25  ;;  %v2130_v8 = vadd.s32 127, %v2129_v38  ;;  %v2211_v49 = vsel %vm2203_vm10, %v2194_v48, %v2210_v56  ;;  %v2213_v16 = vsel %vm2201_vm7, %v9135_v26, %v2194_v48 }
 0x264   :  { %v2212_v15 = vsel %vm2202_vm8, %v2209_v57, %v2211_v49  ;;  %v2214_v42 = vsel %vm2204_vm9, %v2200_v34, 1326507024  ;;  %v2218_v7 = vand.u32 65535, %v9139_v44  ;;  %v2219_v2 = vshrl.u32 %v9139_v44, 16 }
 0x265   :  { %v2128_v29 = vor.u32 %v2127_v21, %v2126_v46  ;;  %v2131_v17 = vshll.u32 %v2130_v8, 23  ;;  %v2215_v5 = vsel %vm2203_vm10, %v2197_v50, %v2214_v42  ;;  %v2242_v61 = vand.u32 65535, %v2212_v15 }
 0x266   :  { %vm9167_vm11 = vcmp.eq.s32.totalorder %v591_v6, %v11422_v35  ;;  %vm624_vm13 = vcmp.ne.s32.totalorder %v9094_v55, %v11425_v13  ;;  %vm2017_vm14 = vcmp.lt.s32.totalorder %v11478_v41, 0  ;;  %v2185_v40 = vshrl.u32 %v11374_v45, %v2184_v30 }
 0x267   :  { %v2216_v43 = vsel %vm2202_vm8, %v2213_v16, %v2215_v5  ;;  %v2243_v59 = vshrl.u32 %v2212_v15, 16  ;;  %v761_v0 = vmin.f32 %v745_v32, 1.0  ;;  %v11479_v50 = vand.u32 2147483647, %v11478_v41  ;;  %vm640_vm5 = vmand %vm9167_vm11, %vm624_vm13 }
 0x268   :  { %v2132_v6 = vor.u32 4788187, %v2131_v17  ;;  %v2220_v25 = vand.u32 65535, %v2216_v43  ;;  %v2221_v38 = vshrl.u32 %v2216_v43, 16  ;;  %v2205_v46 = vsel %vm2201_vm7, %v2185_v40, %v2188_v33 }
 0x269   :  { %vm9179_vm15 = vcmp.le.f32.partialorder %v11479_v50, 0.7853982  ;;  %v2206_v30 = vsel %vm2204_vm9, %v2194_v48, 2102212464  ;;  %v2245_v57 = vmul.u32 %v2243_v59, %v2218_v7  ;;  %v2246_v56 = vmul.u32 %v2242_v61, %v2219_v2 }
 0x26a   :  { %v2133_v21 = vand.u32 2147483647, %v2132_v6  ;;  %v2135_v8 = vcvt.s32.f32 %v2128_v29  ;;  %v2223_v32 = vmul.u32 %v2221_v38, %v2218_v7  ;;  %v2224_v49 = vmul.u32 %v2220_v25, %v2219_v2 }
 0x26b   :  { %v2244_v16 = vmul.u32 %v2242_v61, %v2218_v7  ;;  %v2247_v15 = vmul.u32 %v2243_v59, %v2219_v2  ;;  %v2248_v42 = vshll.u32 %v2245_v57, 16  ;;  %v9187_v5 = vmul.f32 3.1415927, %v761_v0 }
 0x26c   :  { %v2136_v17 = vmul.f32 %v2135_v8, %v2133_v21  ;;  %v2222_v50 = vmul.u32 %v2220_v25, %v2218_v7  ;;  %v2225_v43 = vmul.u32 %v2221_v38, %v2219_v2  ;;  %v2226_v58 = vshll.u32 %v2223_v32, 16 }
 0x26d   :  { %v2228_v9 = vshll.u32 %v2224_v49, 16  ;;  %v2250_v33 = vshll.u32 %v2246_v56, 16  ;;  %vm2252_vm0 = vc.u32 %v2244_v16, %v2248_v42  ;;  %v2254_v40 = vadd.s32 %v2248_v42, %v2244_v16 }
 0x26e   :  { %vm688_vm1 = vcmp.lt.f32.partialorder %v11458_v63, 6.0  ;;  %v2137_v48 = vxor.u32 2147483648, %v2136_v17  ;;  %vm2230_vm2 = vc.u32 %v2222_v50, %v2226_v58  ;;  %v2232_v29 = vadd.s32 %v2226_v58, %v2222_v50 }
 0x26f   :  { %v2253_v6 = vsel %vm2252_vm0, 1, %v11379_v28  ;;  %v2207_v61 = vsel %vm2203_vm10, %v9135_v26, %v2206_v30  ;;  %v2231_v59 = vsel %vm2230_vm2, 1, %v11379_v28  ;;  %vm2256_vm3 = vc.u32 %v2254_v40, %v2250_v33 }
 0x270   :  { %v2255_v7 = vadd.s32 %v2253_v6, %v2247_v15  ;;  %v2138_v2 = vsel %vm2017_vm14, %v2137_v48, %v2136_v17  ;;  %v2233_v0 = vadd.s32 %v2231_v59, %v2225_v43  ;;  %vm2234_vm4 = vc.u32 %v2232_v29, %v2228_v9 }
 0x271   :  { %v2257_v25 = vsel %vm2256_vm3, 1, %v11379_v28  ;;  %v2141_v58 = vsel %vm9179_vm15, %v11478_v41, %v2138_v2  ;;  %v2235_v38 = vsel %vm2234_vm4, 1, %v11379_v28  ;;  %v2249_v21 = vshrl.u32 %v2245_v57, 16 }
 0x272   :  { %v2259_v8 = vadd.s32 %v2257_v25, %v2255_v7  ;;  %v2143_v26 = vmul.f32 %v2141_v58, %v2141_v58  ;;  %v2227_v30 = vshrl.u32 %v2223_v32, 16  ;;  %v2237_v16 = vadd.s32 %v2235_v38, %v2233_v0 }
 0x273   :  { %v2326_v9 = vand.u32 2139095040, %v9187_v5  ;;  %v2139_v15 = vsub.s32 4, %v9078_v19  ;;  %v2229_v42 = vshrl.u32 %v2224_v49, 16  ;;  %v2251_v17 = vshrl.u32 %v2246_v56, 16 }
 0x274   :  { %v2260_v50 = vadd.s32 %v2259_v8, %v2249_v21  ;;  %v2144_v43 = vmul.f32 -0.001358992, %v2143_v26  ;;  %v2151_v48 = vmul.f32 -0.00019511016, %v2143_v26  ;;  %v2238_v57 = vadd.s32 %v2237_v16, %v2227_v30 }
 0x275   :  { %v2327_v29 = vshrl.u32 %v2326_v9, 23  ;;  %v6179_v6 = vsel %vm640_vm5, 1.0, %v11427_v53  ;;  %v2208_v55 = vsel %vm2202_vm8, %v2205_v46, %v2207_v61  ;;  %v9212_v39 = vadd.s32 %v2254_v40, %v2250_v33 }
 0x276   :  { %v2261_v32 = vadd.s32 %v2260_v50, %v2251_v17  ;;  %v2145_v59 = vadd.f32 0.041655596, %v2144_v43  ;;  %v2152_v7 = vadd.f32 0.008332121, %v2151_v48  ;;  %v9214_v2 = vadd.s32 %v2238_v57, %v2229_v42  ;;  %v11482_v43 = vld [vmem:[#allocation35_spill] sm:$0xff] }
 0x277   :  { %v6233_v0 = vadd.s32 4294967169, %v2327_v29  ;;  %v2140_v56 = vsel %vm2017_vm14, %v2139_v15, %v9078_v19  ;;  %v3486_v49 = vmul.f32 -2.0, %v9119_v36  ;;  %v3776_v25 = vmul.f32 -2.0, %v9121_v27 }
 0x278   :  { %v2265_v38 = vadd.s32 1, %v2261_v32  ;;  %v2146_v21 = vmul.f32 %v2145_v59, %v2143_v26  ;;  %v2153_v24 = vmul.f32 %v2152_v7, %v2143_v26  ;;  %v2262_v46 = vmul.u32 %v9139_v44, %v2208_v55 }
 0x279   :  { %vm2264_vm6 = vc.u32 %v9214_v2, %v9212_v39  ;;  %v6195_v33 = vsel %vm688_vm1, 1.0, %v11427_v53  ;;  %v11321_v61 = vand.u32 2147483647, %v9187_v5  ;;  %v2333_v19 = vadd.s32 1, %v6233_v0 }
 0x27a   :  { %v2266_v40 = vsel %vm2264_vm6, %v2265_v38, %v2261_v32  ;;  %v2142_v36 = vsel %vm9179_vm15, 0, %v2140_v56  ;;  %v2147_v27 = vadd.f32 -0.4999988, %v2146_v21  ;;  %v2154_v8 = vadd.f32 -0.16666654, %v2153_v24 }
 0x27b   :  { %v2267_v30 = vadd.s32 %v2266_v40, %v2262_v46  ;;  %v3288_v16 = vmul.f32 %v6179_v6, %v7260_v52  ;;  %v3510_v44 = vmul.f32 1.442695, %v3486_v49  ;;  %v3800_v9 = vmul.f32 1.442695, %v3776_v25 }
 0x27c   :  { %vm2334_vm7 = vcmp.gt.s32.totalorder %v2333_v19, 0  ;;  %v2148_v15 = vmul.f32 %v2147_v27, %v2143_v26  ;;  %v2155_v42 = vmul.f32 %v2154_v8, %v2143_v26  ;;  %v9233_v48 = vmul.f32 %v9101_v51, %v11482_v43 }
 0x27d   :  { %v2268_v17 = vadd.s32 536870912, %v2267_v30  ;;  %v2335_v50 = vsel %vm2334_vm7, %v2333_v19, 0  ;;  %v2159_v57 = vand.u32 3, %v2142_v36  ;;  %v2330_v34 = vand.u32 8388607, %v11321_v61 }
 0x27e   :  { %v2337_v29 = vand.u32 31, %v2335_v50  ;;  %v9238_v55 = vmul.f32 0.5, %v9108_v12  ;;  %v2149_v6 = vadd.f32 1.0, %v2148_v15  ;;  %v2156_v32 = vadd.f32 1.0, %v2155_v42 }
 0x27f   :  { %v9240_v59 = vshrl.u32 %v2268_v17, 30  ;;  %vm2158_vm8 = vweird.f32 %v11478_v41  ;;  %v3304_v26 = vmul.f32 %v6195_v33, %v3288_v16  ;;  %6648 = vpow2.f32 %v3510_v44 }
 0x280   :  { %v9243_v7 = vsub.s32 32, %v2337_v29  ;;  %v2157_v51 = vmul.f32 %v2156_v32, %v2141_v58  ;;  %v2165_v0 = vxor.u32 2147483648, %v2149_v6  ;;  %6650 = vpow2.f32 %v3800_v9 }
 0x281   :  { %v2270_v56 = vshll.u32 %v9240_v59, 30  ;;  %vm2160_vm9 = vcmp.lt.s32.totalorder %v2159_v57, 2  ;;  %vm2161_vm10 = vcmp.eq.s32.totalorder %v2159_v57, 0  ;;  %vm2164_vm11 = vcmp.eq.s32.totalorder %v2159_v57, 2 }
 0x282   :  { %v2331_v12 = vor.u32 8388608, %v2330_v34  ;;  %v2162_v49 = vxor.u32 2147483648, %v2157_v51  ;;  %v2341_v38 = vshrl.u32 %v11396_v22, %v9243_v7  ;;  %v2344_v21 = vshrl.u32 %v11397_v11, %v9243_v7 }
 0x283   :  { %v9246_v25 = vsub.s32 %v2267_v30, %v2270_v56  ;;  %v9252_v24 = vshrl.u32 %v2335_v50, 5  ;;  %v2340_v58 = vshll.u32 %v11374_v45, %v2337_v29  ;;  %v2343_v46 = vshll.u32 %v11396_v22, %v2337_v29 }
 0x284   :  { %v2347_v33 = vshrl.u32 %v11399_v14, %v9243_v7  ;;  %v2163_v40 = vsel %vm2161_vm10, %v2149_v6, %v2162_v49  ;;  %v2166_v19 = vsel %vm2164_vm11, %v2165_v0, %v2157_v51  ;;  %v2346_v30 = vshll.u32 %v11397_v11, %v2337_v29 }
 0x285   :  { %vm2272_vm13 = vcmp.lt.s32.totalorder %v9246_v25, 0  ;;  %v2273_v36 = vsub.s32 0, %v9246_v25  ;;  %v6649_v27 = vpop.eup %6648  ;;  %v2167_v8 = vsel %vm2160_vm9, %v2163_v40, %v2166_v19  ;;  %v2349_v16 = vshll.u32 %v11399_v14, %v2337_v29 }
 0x286   :  { %v2350_v44 = vshrl.u32 %v11400_v4, %v9243_v7  ;;  %v6651_v9 = vpop.eup %6650  ;;  %v2168_v15 = vsel %vm2158_vm8, nan, %v2167_v8  ;;  %v9268_v17 = vor.u32 %v2341_v38, %v2340_v58  ;;  %v9270_v50 = vor.u32 %v2344_v21, %v2343_v46 }
 0x287   :  { %v2274_v42 = vsel %vm2272_vm13, %v2273_v36, %v9246_v25  ;;  %v3255_v34 = vadd.f32 1.0, %v2168_v15  ;;  %v2348_v6 = vor.u32 %v2347_v33, %v2346_v30  ;;  %v9273_v51 = vadd.s32 72, %v11416_v62 }
 0x288   :  { %v2275_v57 = vclz %v2274_v42  ;;  %v2351_v32 = vor.u32 %v2350_v44, %v2349_v16  ;;  %v2352_v0 = vshll.u32 %v11400_v4, %v2337_v29  ;;  %v2353_v56 = vshrl.u32 %v11401_v23, %v9243_v7 }
 0x289   :  { %v9278_v41 = vshll.u32 %v2331_v12, 8  ;;  %v3271_v49 = vmul.f32 0.5, %v3255_v34  ;;  %vm2355_vm14 = vcmp.lt.s32.totalorder %v9252_v24, 1  ;;  %vm2358_vm15 = vcmp.lt.s32.totalorder %v9252_v24, 4 }
 0x28a   :  { %v6231_v40 = vadd.s32 4294967294, %v2275_v57  ;;  %v2354_v38 = vor.u32 %v2353_v56, %v2352_v0  ;;  %vm2357_vm0 = vcmp.lt.s32.totalorder %v9252_v24, 3  ;;  %v2363_v21 = vsel %vm2355_vm14, %v9268_v17, %v9270_v50 }
 0x28b   :  { %v2364_v29 = vsel %vm2358_vm15, %v2351_v32, 920167782  ;;  %v9289_v58 = vmul.f32 %v3304_v26, %v3271_v49  ;;  %vm2356_vm2 = vcmp.lt.s32.totalorder %v9252_v24, 2  ;;  %v2263_v46 = vadd.s32 %v9212_v39, %v9214_v2 }
 0x28c   :  { %vm6232_vm1 = vcmp.lt.s32.totalorder %v6231_v40, 0  ;;  %v2365_v12 = vsel %vm2357_vm0, %v2348_v6, %v2364_v29  ;;  %v2372_v36 = vand.u32 65535, %v9278_v41  ;;  %v2367_v16 = vsel %vm2355_vm14, %v9270_v50, %v2348_v6 }
 0x28d   :  { %11483 = vst [vmem:[#allocation22_spill] sm:$0xff] %v9289_v58  ;;  %v2278_v33 = vsel %vm6232_vm1, 0, %v6231_v40  ;;  %v2366_v19 = vsel %vm2356_vm2, %v2363_v21, %v2365_v12  ;;  %v3534_v8 = vmul.f32 %v6649_v27, %v9289_v58  ;;  %v3824_v26 = vmul.f32 %v6651_v9, %v9289_v58 }
 0x28e   :  { %v2279_v30 = vsub.s32 32, %v2278_v33  ;;  %v2283_v44 = vsub.s32 4294967266, %v2278_v33  ;;  %v2368_v15 = vsel %vm2358_vm15, %v2354_v38, 1326507024  ;;  %v2396_v39 = vand.u32 65535, %v2366_v19 }
 0x28f   :  { %v2397_v2 = vshrl.u32 %v2366_v19, 16  ;;  %3582 = vmatmul.f32.gmra.mxu2 %v3534_v8  ;;  %3872 = vmatmul.f32.gmra.mxu0 %v3824_v26  ;;  %v592_v42 = vshra.s32 %v9273_v51, 4  ;;  %v2280_v34 = vshll.u32 %v9246_v25, %v2278_v33  ;;  %v2369_v9 = vsel %vm2357_vm0, %v2351_v32, %v2368_v15 }
 0x290   :  { %v2281_v27 = vshrl.u32 %v2263_v46, %v2279_v30  ;;  %v2284_v57 = vadd.s32 127, %v2283_v44  ;;  %v2370_v0 = vsel %vm2356_vm2, %v2367_v16, %v2369_v9  ;;  %v2373_v56 = vshrl.u32 %v9278_v41, 16 }
 0x291   :  { %v2399_v49 = vmul.u32 %v2397_v2, %v2372_v36  ;;  %v6276_v38 = vadd.f32 -0.75, %v11471_v60  ;;  %v2374_v21 = vand.u32 65535, %v2370_v0  ;;  %v2375_v29 = vshrl.u32 %v2370_v0, 16 }
 0x292   :  { %v2282_v40 = vor.u32 %v2281_v27, %v2280_v34  ;;  %v2285_v12 = vshll.u32 %v2284_v57, 23  ;;  %v9315_v19 = vadd.f32 -1.5, %v11471_v60  ;;  %v2400_v25 = vmul.u32 %v2396_v39, %v2373_v56 }
 0x293   :  { %v2402_v46 = vshll.u32 %v2399_v49, 16  ;;  %vm2171_vm3 = vcmp.lt.s32.totalorder %v9053_v18, 0  ;;  %v2339_v32 = vshrl.u32 %v11374_v45, %v9243_v7  ;;  %v2377_v33 = vmul.u32 %v2375_v29, %v2372_v36 }
 0x294   :  { %v2378_v8 = vmul.u32 %v2374_v21, %v2373_v56  ;;  %v2286_v26 = vor.u32 4788187, %v2285_v12  ;;  %v2360_v30 = vsel %vm2358_vm15, %v2348_v6, 2102212464  ;;  %v2398_v16 = vmul.u32 %v2396_v39, %v2372_v36 }
 0x295   :  { %v2401_v44 = vmul.u32 %v2397_v2, %v2373_v56  ;;  %vm535_vm4 = vcmp.eq.f32.partialorder %v11482_v43, inf  ;;  %vm9324_vm5 = vcmp.eq.s32.totalorder %v592_v42, %v11422_v35  ;;  %vm625_vm6 = vcmp.ne.s32.totalorder %v9273_v51, %v11425_v13 }
 0x296   :  { %v2289_v34 = vcvt.s32.f32 %v2282_v40  ;;  %v2376_v7 = vmul.u32 %v2374_v21, %v2372_v36  ;;  %v2379_v27 = vmul.u32 %v2375_v29, %v2373_v56  ;;  %v2380_v9 = vshll.u32 %v2377_v33, 16 }
 0x297   :  { %v2287_v57 = vand.u32 2147483647, %v2286_v26  ;;  %v2404_v0 = vshll.u32 %v2400_v25, 16  ;;  %vm2406_vm7 = vc.u32 %v2398_v16, %v2402_v46  ;;  %v2408_v6 = vadd.s32 %v2402_v46, %v2398_v16 }
 0x298   :  { %v2382_v39 = vshll.u32 %v2378_v8, 16  ;;  %vm2384_vm8 = vc.u32 %v2376_v7, %v2380_v9  ;;  %v2386_v2 = vadd.s32 %v2380_v9, %v2376_v7  ;;  %v2407_v12 = vsel %vm2406_vm7, 1, %v11379_v28  ;;  %v11486_v7 = vld [vmem:[#allocation17_spill] sm:$0xff] }
 0x299   :  { %v2290_v42 = vmul.f32 %v2289_v34, %v2287_v57  ;;  %v2385_v61 = vsel %vm2384_vm8, 1, %v11379_v28  ;;  %v2409_v58 = vadd.s32 %v2407_v12, %v2401_v44  ;;  %vm2410_vm9 = vc.u32 %v2408_v6, %v2404_v0 }
 0x29a   :  { %v2359_v36 = vsel %vm2355_vm14, %v2339_v32, %v9268_v17  ;;  %v2387_v56 = vadd.s32 %v2385_v61, %v2379_v27  ;;  %vm2388_vm10 = vc.u32 %v2386_v2, %v2382_v39  ;;  %v2411_v40 = vsel %vm2410_vm9, 1, %v11379_v28  ;;  %vm641_vm14 = vmand %vm9324_vm5, %vm625_vm6 }
 0x29b   :  { %v2291_v21 = vxor.u32 2147483648, %v2290_v42  ;;  %v2389_v29 = vsel %vm2388_vm10, 1, %v11379_v28  ;;  %v2403_v46 = vshrl.u32 %v2399_v49, 16  ;;  %v2413_v26 = vadd.s32 %v2411_v40, %v2409_v58 }
 0x29c   :  { %v2361_v16 = vsel %vm2357_vm0, %v9270_v50, %v2360_v30  ;;  %v2381_v34 = vshrl.u32 %v2377_v33, 16  ;;  %v2391_v44 = vadd.s32 %v2389_v29, %v2387_v56  ;;  %v746_v9 = vmul.f32 %v7159_v20, %v11486_v7 }
 0x29d   :  { %vm537_vm11 = vcmp.eq.f32.partialorder %v11482_v43, 0.0  ;;  %v11487_v61 = vand.u32 2147483647, %v9053_v18  ;;  %v2292_v58 = vsel %vm2171_vm3, %v2291_v21, %v2290_v42  ;;  %v2405_v49 = vshrl.u32 %v2400_v25, 16 }
 0x29e   :  { %v2414_v32 = vadd.s32 %v2413_v26, %v2403_v46  ;;  %v2383_v33 = vshrl.u32 %v2378_v8, 16  ;;  %v2392_v30 = vadd.s32 %v2391_v44, %v2381_v34  ;;  %v762_v27 = vmin.f32 %v746_v9, 1.0 }
 0x29f   :  { %vm9345_vm13 = vcmp.le.f32.partialorder %v11487_v61, 0.7853982  ;;  %v536_v57 = vsel %vm535_vm4, %v11482_v43, %v9233_v48  ;;  %v2362_v2 = vsel %vm2356_vm2, %v2359_v36, %v2361_v16  ;;  %v3471_v42 = vmul.f32 %v6276_v38, %v6276_v38 }
 0x2a0   :  { %v2295_v50 = vsel %vm9345_vm13, %v9053_v18, %v2292_v58  ;;  %v2415_v12 = vadd.s32 %v2414_v32, %v2405_v49  ;;  %v9360_v25 = vadd.s32 %v2392_v30, %v2383_v33  ;;  %v9362_v56 = vadd.s32 %v2408_v6, %v2404_v0 }
 0x2a1   :  { %v2297_v39 = vmul.f32 %v2295_v50, %v2295_v50  ;;  %v9364_v40 = vmul.f32 3.1415927, %v762_v27  ;;  %v2293_v48 = vsub.s32 4, %v9240_v59  ;;  %vm689_vm15 = vcmp.lt.f32.partialorder %v11471_v60, 6.0 }
 0x2a2   :  { %v2419_v24 = vadd.s32 1, %v2415_v12  ;;  %v3761_v38 = vmul.f32 %v9315_v19, %v9315_v19  ;;  %v2416_v0 = vmul.u32 %v9278_v41, %v2362_v2  ;;  %vm2418_vm0 = vc.u32 %v9360_v25, %v9362_v56 }
 0x2a3   :  { %v2298_v8 = vmul.f32 -0.001358992, %v2297_v39  ;;  %v2305_v21 = vmul.f32 -0.00019511016, %v2297_v39  ;;  %v2480_v15 = vand.u32 2139095040, %v9364_v40  ;;  %v6180_v29 = vsel %vm641_vm14, 1.0, %v11427_v53 }
 0x2a4   :  { %v2420_v36 = vsel %vm2418_vm0, %v2419_v24, %v2415_v12  ;;  %v3487_v46 = vmul.f32 -2.0, %v3471_v42  ;;  %v11324_v16 = vand.u32 2147483647, %v9364_v40  ;;  %v2294_v19 = vsel %vm2171_vm3, %v2293_v48, %v9240_v59 }
 0x2a5   :  { %v2299_v6 = vadd.f32 0.041655596, %v2298_v8  ;;  %v2306_v51 = vadd.f32 0.008332121, %v2305_v21  ;;  %v2421_v26 = vadd.s32 %v2420_v36, %v2416_v0  ;;  %v2481_v44 = vshrl.u32 %v2480_v15, 23 }
 0x2a6   :  { %v11490_v9 = vand.u32 2147483648, %v11482_v43  ;;  %v544_v58 = vsub.f32 1.5, %v9238_v55  ;;  %v3777_v49 = vmul.f32 -2.0, %v3761_v38  ;;  %v6196_v33 = vsel %vm689_vm15, 1.0, %v11427_v53 }
 0x2a7   :  { %v2300_v34 = vmul.f32 %v2299_v6, %v2297_v39  ;;  %v2307_v41 = vmul.f32 %v2306_v51, %v2297_v39  ;;  %v2422_v32 = vadd.s32 536870912, %v2421_v26  ;;  %v6236_v59 = vadd.s32 4294967169, %v2481_v44 }
 0x2a8   :  { %v9388_v61 = vsel %vm537_vm11, %v11490_v9, %v536_v57  ;;  %v2296_v2 = vsel %vm9345_vm13, 0, %v2294_v19  ;;  %v3289_v12 = vmul.f32 %v6180_v29, %v7260_v52  ;;  %v2484_v43 = vand.u32 8388607, %v11324_v16 }
 0x2a9   :  { %v2301_v30 = vadd.f32 -0.4999988, %v2300_v34  ;;  %v2308_v27 = vadd.f32 -0.16666654, %v2307_v41  ;;  %v9397_v42 = vshrl.u32 %v2422_v32, 30  ;;  %v2487_v8 = vadd.s32 1, %v6236_v59 }
 0x2aa   :  { %v3512_v48 = vmul.f32 1.442695, %v3487_v46  ;;  %v9402_v21 = vmul.f32 %v8892_v31, %v544_v58  ;;  %v3802_v24 = vmul.f32 1.442695, %v3777_v49  ;;  %v9405_v38 = vadd.s32 80, %v11416_v62 }
 0x2ab   :  { %v2302_v55 = vmul.f32 %v2301_v30, %v2297_v39  ;;  %v2309_v57 = vmul.f32 %v2308_v27, %v2297_v39  ;;  %v2424_v17 = vshll.u32 %v9397_v42, 30  ;;  %v2313_v51 = vand.u32 3, %v2296_v2 }
 0x2ac   :  { %vm2488_vm1 = vcmp.gt.s32.totalorder %v2487_v8, 0  ;;  %v3305_v36 = vmul.f32 %v6196_v33, %v3289_v12  ;;  %v2485_v29 = vor.u32 8388608, %v2484_v43  ;;  %vm2312_vm2 = vweird.f32 %v9053_v18 }
 0x2ad   :  { %v2303_v0 = vadd.f32 1.0, %v2302_v55  ;;  %v2310_v6 = vadd.f32 1.0, %v2309_v57  ;;  %v2425_v15 = vsub.s32 %v2421_v26, %v2424_v17  ;;  %v2489_v19 = vsel %vm2488_vm1, %v2487_v8, 0 }
 0x2ae   :  { %6652 = vpow2.f32 %v3512_v48  ;;  %v593_v31 = vshra.s32 %v9405_v38, 4  ;;  %v2491_v41 = vand.u32 31, %v2489_v19  ;;  %vm2314_vm4 = vcmp.lt.s32.totalorder %v2313_v51, 2 }
 0x2af   :  { %v2311_v39 = vmul.f32 %v2310_v6, %v2295_v50  ;;  %v2319_v46 = vxor.u32 2147483648, %v2303_v0  ;;  %vm2426_vm3 = vcmp.lt.s32.totalorder %v2425_v15, 0  ;;  %v2427_v34 = vsub.s32 0, %v2425_v15 }
 0x2b0   :  { %vm2315_vm5 = vcmp.eq.s32.totalorder %v2313_v51, 0  ;;  %6654 = vpow2.f32 %v3802_v24  ;;  %vm2318_vm6 = vcmp.eq.s32.totalorder %v2313_v51, 2  ;;  %v2417_v26 = vadd.s32 %v9362_v56, %v9360_v25 }
 0x2b1   :  { %v2316_v44 = vxor.u32 2147483648, %v2311_v39  ;;  %v2428_v9 = vsel %vm2426_vm3, %v2427_v34, %v2425_v15  ;;  %v9412_v58 = vshll.u32 %v2485_v29, 8  ;;  %v2320_v49 = vsel %vm2318_vm6, %v2319_v46, %v2311_v39 }
 0x2b2   :  { %v2429_v32 = vclz %v2428_v9  ;;  %v2492_v33 = vsub.s32 32, %v2491_v41  ;;  %v9414_v27 = vshrl.u32 %v2489_v19, 5  ;;  %v2494_v59 = vshll.u32 %v11374_v45, %v2491_v41 }
 0x2b3   :  { %v2317_v50 = vsel %vm2315_vm5, %v2303_v0, %v2316_v44  ;;  %v2497_v2 = vshll.u32 %v11396_v22, %v2491_v41  ;;  %v2500_v56 = vshll.u32 %v11397_v11, %v2491_v41  ;;  %v2503_v6 = vshll.u32 %v11399_v14, %v2491_v41 }
 0x2b4   :  { %v2321_v30 = vsel %vm2314_vm4, %v2317_v50, %v2320_v49  ;;  %v6653_v12 = vpop.eup %6652  ;;  %v6234_v55 = vadd.s32 4294967294, %v2429_v32  ;;  %v2495_v25 = vshrl.u32 %v11396_v22, %v2492_v33  ;;  %v2498_v48 = vshrl.u32 %v11397_v11, %v2492_v33 }
 0x2b5   :  { %v2322_v43 = vsel %vm2312_vm2, nan, %v2321_v30  ;;  %v2501_v8 = vshrl.u32 %v11399_v14, %v2492_v33  ;;  %v2504_v24 = vshrl.u32 %v11400_v4, %v2492_v33  ;;  %v2507_v18 = vshrl.u32 %v11401_v23, %v2492_v33 }
 0x2b6   :  { %v3256_v57 = vadd.f32 1.0, %v2322_v43  ;;  %v6655_v17 = vpop.eup %6654  ;;  %vm6235_vm7 = vcmp.lt.s32.totalorder %v6234_v55, 0  ;;  %v2496_v0 = vor.u32 %v2495_v25, %v2494_v59  ;;  %v2499_v19 = vor.u32 %v2498_v48, %v2497_v2 }
 0x2b7   :  { %v2432_v29 = vsel %vm6235_vm7, 0, %v6234_v55  ;;  %v2506_v39 = vshll.u32 %v11400_v4, %v2491_v41  ;;  %v2505_v44 = vor.u32 %v2504_v24, %v2503_v6  ;;  %v2526_v9 = vand.u32 65535, %v9412_v58 }
 0x2b8   :  { %v3272_v51 = vmul.f32 0.5, %v3256_v57  ;;  %v2433_v46 = vsub.s32 32, %v2432_v29  ;;  %v2437_v34 = vsub.s32 4294967266, %v2432_v29  ;;  %v2502_v49 = vor.u32 %v2501_v8, %v2500_v56 }
 0x2b9   :  { %v2508_v32 = vor.u32 %v2507_v18, %v2506_v39  ;;  %v2527_v30 = vshrl.u32 %v9412_v58, 16  ;;  %v2434_v59 = vshll.u32 %v2425_v15, %v2432_v29  ;;  %vm2509_vm8 = vcmp.lt.s32.totalorder %v9414_v27, 1 }
 0x2ba   :  { %v9429_v50 = vmul.f32 %v3305_v36, %v3272_v51  ;;  %v2435_v43 = vshrl.u32 %v2417_v26, %v2433_v46  ;;  %v2438_v25 = vadd.s32 127, %v2437_v34  ;;  %vm2512_vm9 = vcmp.lt.s32.totalorder %v9414_v27, 4 }
 0x2bb   :  { %v2517_v55 = vsel %vm2509_vm8, %v2496_v0, %v2499_v19  ;;  %vm2511_vm10 = vcmp.lt.s32.totalorder %v9414_v27, 3  ;;  %v2518_v15 = vsel %vm2512_vm9, %v2505_v44, 920167782  ;;  %vm2325_vm11 = vcmp.lt.s32.totalorder %v9187_v5, 0 }
 0x2bc   :  { %11491 = vst [vmem:[#allocation23_spill] sm:$0xff] %v9429_v50  ;;  %v3535_v2 = vmul.f32 %v6653_v12, %v9429_v50  ;;  %v3825_v41 = vmul.f32 %v6655_v17, %v9429_v50  ;;  %v2436_v36 = vor.u32 %v2435_v43, %v2434_v59  ;;  %v2439_v57 = vshll.u32 %v2438_v25, 23 }
 0x2bd   :  { %vm2510_vm13 = vcmp.lt.s32.totalorder %v9414_v27, 2  ;;  %v2519_v26 = vsel %vm2511_vm10, %v2502_v49, %v2518_v15  ;;  %v2521_v12 = vsel %vm2509_vm8, %v2499_v19, %v2502_v49  ;;  %v2522_v56 = vsel %vm2512_vm9, %v2508_v32, 1326507024 }
 0x2be   :  { %3585 = vmatmul.f32.gmra.mxu2 %v3535_v2  ;;  %3875 = vmatmul.f32.gmra.mxu0 %v3825_v41  ;;  %v11492_v48 = vand.u32 2147483647, %v9187_v5  ;;  %v2440_v24 = vor.u32 4788187, %v2439_v57  ;;  %v2493_v17 = vshrl.u32 %v11374_v45, %v2492_v33  ;;  %v2520_v6 = vsel %vm2510_vm13, %v2517_v55, %v2519_v26 }
 0x2bf   :  { %v2523_v18 = vsel %vm2511_vm10, %v2505_v44, %v2522_v56  ;;  %v2514_v51 = vsel %vm2512_vm9, %v2502_v49, 2102212464  ;;  %v2550_v39 = vand.u32 65535, %v2520_v6  ;;  %v2551_v46 = vshrl.u32 %v2520_v6, 16 }
 0x2c0   :  { %vm9451_vm14 = vcmp.le.f32.partialorder %v11492_v48, 0.7853982  ;;  %v2524_v29 = vsel %vm2510_vm13, %v2521_v12, %v2523_v18  ;;  %v2441_v34 = vand.u32 2147483647, %v2440_v24  ;;  %v2443_v32 = vcvt.s32.f32 %v2436_v36 }
 0x2c1   :  { %v2528_v59 = vand.u32 65535, %v2524_v29  ;;  %v2529_v43 = vshrl.u32 %v2524_v29, 16  ;;  %v2447_v33 = vsub.s32 4, %v9397_v42  ;;  %v6277_v25 = vadd.f32 -0.75, %v11475_v37 }
 0x2c2   :  { %v2553_v2 = vmul.u32 %v2551_v46, %v2526_v9  ;;  %v2554_v41 = vmul.u32 %v2550_v39, %v2527_v30  ;;  %v2444_v55 = vmul.f32 %v2443_v32, %v2441_v34  ;;  %v2513_v44 = vsel %vm2509_vm8, %v2493_v17, %v2496_v0 }
 0x2c3   :  { %v2531_v49 = vmul.u32 %v2529_v43, %v2526_v9  ;;  %v2532_v57 = vmul.u32 %v2528_v59, %v2527_v30  ;;  %v2515_v15 = vsel %vm2511_vm10, %v2499_v19, %v2514_v51  ;;  %v2552_v26 = vmul.u32 %v2550_v39, %v2526_v9 }
 0x2c4   :  { %v2555_v12 = vmul.u32 %v2551_v46, %v2527_v30  ;;  %v2556_v36 = vshll.u32 %v2553_v2, 16  ;;  %v2445_v56 = vxor.u32 2147483648, %v2444_v55  ;;  %v2530_v48 = vmul.u32 %v2528_v59, %v2526_v9 }
 0x2c5   :  { %v2533_v24 = vmul.u32 %v2529_v43, %v2527_v30  ;;  %v2534_v6 = vshll.u32 %v2531_v49, 16  ;;  %vm9473_vm15 = vcmp.eq.s32.totalorder %v593_v31, %v11422_v35  ;;  %vm626_vm0 = vcmp.ne.s32.totalorder %v9405_v38, %v11425_v13 }
 0x2c6   :  { %v2536_v0 = vshll.u32 %v2532_v57, 16  ;;  %v2558_v17 = vshll.u32 %v2554_v41, 16  ;;  %vm2560_vm1 = vc.u32 %v2552_v26, %v2556_v36  ;;  %v2562_v19 = vadd.s32 %v2556_v36, %v2552_v26  ;;  %vm642_vm6 = vmand %vm9473_vm15, %vm626_vm0 }
 0x2c7   :  { %v2446_v51 = vsel %vm2325_vm11, %v2445_v56, %v2444_v55  ;;  %vm2538_vm2 = vc.u32 %v2530_v48, %v2534_v6  ;;  %v2540_v9 = vadd.s32 %v2534_v6, %v2530_v48  ;;  %v2561_v30 = vsel %vm2560_vm1, 1, %v11379_v28 }
 0x2c8   :  { %v9485_v31 = vsel %vm9451_vm14, %v9187_v5, %v2446_v51  ;;  %v2539_v29 = vsel %vm2538_vm2, 1, %v11379_v28  ;;  %v2563_v39 = vadd.s32 %v2561_v30, %v2555_v12  ;;  %vm2564_vm3 = vc.u32 %v2562_v19, %v2558_v17 }
 0x2c9   :  { %v2451_v46 = vmul.f32 %v9485_v31, %v9485_v31  ;;  %v2541_v34 = vadd.s32 %v2539_v29, %v2533_v24  ;;  %vm2542_vm4 = vc.u32 %v2540_v9, %v2536_v0  ;;  %v2565_v32 = vsel %vm2564_vm3, 1, %v11379_v28 }
 0x2ca   :  { %v2535_v59 = vshrl.u32 %v2531_v49, 16  ;;  %v2543_v43 = vsel %vm2542_vm4, 1, %v11379_v28  ;;  %v2557_v55 = vshrl.u32 %v2553_v2, 16  ;;  %v2567_v26 = vadd.s32 %v2565_v32, %v2563_v39 }
 0x2cb   :  { %v2452_v36 = vmul.f32 -0.001358992, %v2451_v46  ;;  %v2459_v56 = vmul.f32 -0.00019511016, %v2451_v46  ;;  %v2545_v48 = vadd.s32 %v2543_v43, %v2541_v34  ;;  %v747_v6 = vmul.f32 %v7159_v20, %v9086_v54 }
 0x2cc   :  { %v6309_v12 = vadd.f32 -1.5, %v11475_v37  ;;  %v2537_v51 = vshrl.u32 %v2532_v57, 16  ;;  %v2559_v30 = vshrl.u32 %v2554_v41, 16  ;;  %v2568_v16 = vadd.s32 %v2567_v26, %v2557_v55 }
 0x2cd   :  { %vm547_vm5 = vcmp.eq.f32.partialorder %v8801_v47, inf  ;;  %v2453_v24 = vadd.f32 0.041655596, %v2452_v36  ;;  %v2460_v0 = vadd.f32 0.008332121, %v2459_v56  ;;  %v2546_v49 = vadd.s32 %v2545_v48, %v2535_v59 }
 0x2ce   :  { %v763_v9 = vmin.f32 %v747_v6, 1.0  ;;  %v2448_v2 = vsel %vm2325_vm11, %v2447_v33, %v9397_v42  ;;  %v2516_v29 = vsel %vm2510_vm13, %v2513_v44, %v2515_v15  ;;  %v9501_v39 = vadd.s32 %v2562_v19, %v2558_v17 }
 0x2cf   :  { %v2569_v34 = vadd.s32 %v2568_v16, %v2559_v30  ;;  %v2454_v32 = vmul.f32 %v2453_v24, %v2451_v46  ;;  %v2461_v57 = vmul.f32 %v2460_v0, %v2451_v46  ;;  %v9503_v41 = vadd.s32 %v2546_v49, %v2537_v51 }
 0x2d0   :  { %v9505_v43 = vmul.f32 3.1415927, %v763_v9  ;;  %v553_v59 = vmul.f32 %v9133_v3, %v9090_v10  ;;  %v3472_v55 = vmul.f32 %v6277_v25, %v6277_v25  ;;  %v3762_v26 = vmul.f32 %v6309_v12, %v6309_v12 }
 0x2d1   :  { %v2573_v36 = vadd.s32 1, %v2569_v34  ;;  %v2455_v42 = vadd.f32 -0.4999988, %v2454_v32  ;;  %v2462_v16 = vadd.f32 -0.16666654, %v2461_v57  ;;  %v2570_v27 = vmul.u32 %v9412_v58, %v2516_v29 }
 0x2d2   :  { %vm2572_vm7 = vc.u32 %v9503_v41, %v9501_v39  ;;  %v546_v33 = vmul.f32 %v9402_v21, %v8801_v47  ;;  %v2450_v25 = vsel %vm9451_vm14, 0, %v2448_v2  ;;  %v2634_v15 = vand.u32 2139095040, %v9505_v43 }
 0x2d3   :  { %v2574_v44 = vsel %vm2572_vm7, %v2573_v36, %v2569_v34  ;;  %vm690_vm8 = vcmp.lt.f32.partialorder %v11475_v37, 6.0  ;;  %v2456_v38 = vmul.f32 %v2455_v42, %v2451_v46  ;;  %v2463_v18 = vmul.f32 %v2462_v16, %v2451_v46 }
 0x2d4   :  { %v2575_v17 = vadd.s32 %v2574_v44, %v2570_v27  ;;  %v6181_v19 = vsel %vm642_vm6, 1.0, %v11427_v53  ;;  %v3488_v58 = vmul.f32 -2.0, %v3472_v55  ;;  %v3778_v56 = vmul.f32 -2.0, %v3762_v26 }
 0x2d5   :  { %v2635_v48 = vshrl.u32 %v2634_v15, 23  ;;  %v2457_v6 = vadd.f32 1.0, %v2456_v38  ;;  %v2464_v12 = vadd.f32 1.0, %v2463_v18  ;;  %v2467_v51 = vand.u32 3, %v2450_v25 }
 0x2d6   :  { %v2576_v21 = vadd.s32 536870912, %v2575_v17  ;;  %v9527_v8 = vsel %vm547_vm5, %v8801_v47, %v546_v33  ;;  %v9530_v30 = vmul.f32 %v9133_v3, %v553_v59  ;;  %v11325_v46 = vand.u32 2147483647, %v9505_v43 }
 0x2d7   :  { %v6239_v24 = vadd.s32 4294967169, %v2635_v48  ;;  %v6197_v0 = vsel %vm690_vm8, 1.0, %v11427_v53  ;;  %v2465_v49 = vmul.f32 %v2464_v12, %v9485_v31  ;;  %v2473_v9 = vxor.u32 2147483648, %v2457_v6 }
 0x2d8   :  { %v9537_v2 = vshrl.u32 %v2576_v21, 30  ;;  %v3290_v29 = vmul.f32 %v6181_v19, %v7260_v52  ;;  %v3514_v34 = vmul.f32 1.442695, %v3488_v58  ;;  %v9541_v32 = vadd.s32 88, %v11416_v62 }
 0x2d9   :  { %v2641_v57 = vadd.s32 1, %v6239_v24  ;;  %vm2468_vm9 = vcmp.lt.s32.totalorder %v2467_v51, 2  ;;  %v2470_v59 = vxor.u32 2147483648, %v2465_v49  ;;  %v3804_v55 = vmul.f32 1.442695, %v3778_v56 }
 0x2da   :  { %v2578_v26 = vshll.u32 %v9537_v2, 30  ;;  %vm2469_vm10 = vcmp.eq.s32.totalorder %v2467_v51, 0  ;;  %vm2472_vm11 = vcmp.eq.s32.totalorder %v2467_v51, 2  ;;  %v2638_v31 = vand.u32 8388607, %v11325_v46 }
 0x2db   :  { %vm2642_vm13 = vcmp.gt.s32.totalorder %v2641_v57, 0  ;;  %v2471_v36 = vsel %vm2469_vm10, %v2457_v6, %v2470_v59  ;;  %v2474_v42 = vsel %vm2472_vm11, %v2473_v9, %v2465_v49  ;;  %vm2466_vm14 = vweird.f32 %v9187_v5 }
 0x2dc   :  { %v9546_v16 = vsub.s32 %v2575_v17, %v2578_v26  ;;  %v2643_v27 = vsel %vm2642_vm13, %v2641_v57, 0  ;;  %v2475_v33 = vsel %vm2468_vm9, %v2471_v36, %v2474_v42  ;;  %6656 = vpow2.f32 %v3514_v34 }
 0x2dd   :  { %v2645_v25 = vand.u32 31, %v2643_v27  ;;  %v2476_v44 = vsel %vm2466_vm14, nan, %v2475_v33  ;;  %6658 = vpow2.f32 %v3804_v55  ;;  %v3306_v18 = vmul.f32 %v6197_v0, %v3290_v29 }
 0x2de   :  { %vm2580_vm15 = vcmp.lt.s32.totalorder %v9546_v16, 0  ;;  %v2581_v15 = vsub.s32 0, %v9546_v16  ;;  %v3257_v38 = vadd.f32 1.0, %v2476_v44  ;;  %v594_v19 = vshra.s32 %v9541_v32, 4 }
 0x2df   :  { %v2646_v58 = vsub.s32 32, %v2645_v25  ;;  %v6278_v56 = vadd.f32 -0.75, %v11486_v7  ;;  %v2639_v48 = vor.u32 8388608, %v2638_v31  ;;  %v9554_v5 = vshrl.u32 %v2643_v27, 5 }
 0x2e0   :  { %v2582_v17 = vsel %vm2580_vm15, %v2581_v15, %v9546_v16  ;;  %v3273_v6 = vmul.f32 0.5, %v3257_v38  ;;  %v2648_v51 = vshll.u32 %v11374_v45, %v2645_v25  ;;  %v2651_v24 = vshll.u32 %v11396_v22, %v2645_v25 }
 0x2e1   :  { %v2583_v12 = vclz %v2582_v17  ;;  %v2649_v21 = vshrl.u32 %v11396_v22, %v2646_v58  ;;  %v2652_v0 = vshrl.u32 %v11397_v11, %v2646_v58  ;;  %v2654_v49 = vshll.u32 %v11397_v11, %v2645_v25 }
 0x2e2   :  { %v2655_v9 = vshrl.u32 %v11399_v14, %v2646_v58  ;;  %v6657_v29 = vpop.eup %6656  ;;  %v9562_v34 = vmul.f32 %v3306_v18, %v3273_v6  ;;  %v2657_v59 = vshll.u32 %v11399_v14, %v2645_v25  ;;  %v2658_v55 = vshrl.u32 %v11400_v4, %v2646_v58 }
 0x2e3   :  { %v6237_v57 = vadd.s32 4294967294, %v2583_v12  ;;  %v6659_v26 = vpop.eup %6658  ;;  %v2650_v31 = vor.u32 %v2649_v21, %v2648_v51  ;;  %v9566_v36 = vor.u32 %v2652_v0, %v2651_v24  ;;  %v2660_v42 = vshll.u32 %v11400_v4, %v2645_v25 }
 0x2e4   :  { %11497 = vst [vmem:[#allocation6_spill] sm:$0xff] %v9562_v34  ;;  %v2661_v27 = vshrl.u32 %v11401_v23, %v2646_v58  ;;  %v3536_v33 = vmul.f32 %v6657_v29, %v9562_v34  ;;  %v3826_v44 = vmul.f32 %v6659_v26, %v9562_v34  ;;  %v2659_v15 = vor.u32 %v2658_v55, %v2657_v59 }
 0x2e5   :  { %vm6238_vm0 = vcmp.lt.s32.totalorder %v6237_v57, 0  ;;  %v6310_v18 = vadd.f32 -1.5, %v11486_v7  ;;  %v2656_v17 = vor.u32 %v2655_v9, %v2654_v49  ;;  %v2571_v12 = vadd.s32 %v9501_v39, %v9503_v41 }
 0x2e6   :  { %v2586_v38 = vsel %vm6238_vm0, 0, %v6237_v57  ;;  %v2662_v6 = vor.u32 %v2661_v27, %v2660_v42  ;;  %3588 = vmatmul.f32.gmra.mxu2 %v3536_v33  ;;  %3878 = vmatmul.f32.gmra.mxu0 %v3826_v44  ;;  %vm2663_vm1 = vcmp.lt.s32.totalorder %v9554_v5, 1  ;;  %vm2666_vm2 = vcmp.lt.s32.totalorder %v9554_v5, 4 }
 0x2e7   :  { %v2587_v51 = vsub.s32 32, %v2586_v38  ;;  %v2591_v25 = vsub.s32 4294967266, %v2586_v38  ;;  %v2588_v21 = vshll.u32 %v9546_v16, %v2586_v38  ;;  %v2671_v24 = vsel %vm2663_vm1, %v2650_v31, %v9566_v36 }
 0x2e8   :  { %v9581_v0 = vshll.u32 %v2639_v48, 8  ;;  %vm2665_vm3 = vcmp.lt.s32.totalorder %v9554_v5, 3  ;;  %v2672_v39 = vsel %vm2666_vm2, %v2659_v15, 920167782  ;;  %vm2664_vm4 = vcmp.lt.s32.totalorder %v9554_v5, 2 }
 0x2e9   :  { %v2589_v49 = vshrl.u32 %v2571_v12, %v2587_v51  ;;  %v2592_v9 = vadd.s32 127, %v2591_v25  ;;  %v2673_v41 = vsel %vm2665_vm3, %v2656_v17, %v2672_v39  ;;  %v2675_v16 = vsel %vm2663_vm1, %v9566_v36, %v2656_v17 }
 0x2ea   :  { %v2676_v48 = vsel %vm2666_vm2, %v2662_v6, 1326507024  ;;  %v9594_v59 = vmul.f32 %v6278_v56, %v6278_v56  ;;  %v2674_v55 = vsel %vm2664_vm4, %v2671_v24, %v2673_v41  ;;  %vm2479_vm5 = vcmp.lt.s32.totalorder %v9364_v40, 0 }
 0x2eb   :  { %v2590_v29 = vor.u32 %v2589_v49, %v2588_v21  ;;  %v2593_v57 = vshll.u32 %v2592_v9, 23  ;;  %v2677_v26 = vsel %vm2665_vm3, %v2659_v15, %v2676_v48  ;;  %v2680_v42 = vand.u32 65535, %v9581_v0 }
 0x2ec   :  { %v2704_v27 = vand.u32 65535, %v2674_v55  ;;  %v2705_v33 = vshrl.u32 %v2674_v55, 16  ;;  %v11498_v44 = vand.u32 2147483647, %v9364_v40  ;;  %v2647_v6 = vshrl.u32 %v11374_v45, %v2646_v58 }
 0x2ed   :  { %v2594_v56 = vor.u32 4788187, %v2593_v57  ;;  %v2678_v12 = vsel %vm2664_vm4, %v2675_v16, %v2677_v26  ;;  %v2681_v51 = vshrl.u32 %v9581_v0, 16  ;;  %vm9615_vm7 = vcmp.eq.s32.totalorder %v594_v19, %v11422_v35 }
 0x2ee   :  { %vm9604_vm6 = vcmp.le.f32.partialorder %v11498_v44, 0.7853982  ;;  %vm627_vm8 = vcmp.ne.s32.totalorder %v9541_v32, %v11425_v13  ;;  %v9621_v25 = vmul.f32 %v6310_v18, %v6310_v18  ;;  %v2682_v21 = vand.u32 65535, %v2678_v12 }
 0x2ef   :  { %v2683_v24 = vshrl.u32 %v2678_v12, 16  ;;  %v2707_v58 = vmul.u32 %v2705_v33, %v2680_v42  ;;  %v2595_v49 = vand.u32 2147483647, %v2594_v56  ;;  %v2597_v9 = vcvt.s32.f32 %v2590_v29  ;;  %vm643_vm15 = vmand %vm9615_vm7, %vm627_vm8 }
 0x2f0   :  { %v2667_v39 = vsel %vm2663_vm1, %v2647_v6, %v2650_v31  ;;  %v2708_v41 = vmul.u32 %v2704_v27, %v2681_v51  ;;  %v2668_v19 = vsel %vm2666_vm2, %v2656_v17, 2102212464  ;;  %v2686_v48 = vmul.u32 %v2682_v21, %v2681_v51 }
 0x2f1   :  { %v2685_v16 = vmul.u32 %v2683_v24, %v2680_v42  ;;  %v748_v57 = vmul.f32 %v7159_v20, %v9388_v61  ;;  %v2598_v55 = vmul.f32 %v2597_v9, %v2595_v49  ;;  %v2706_v18 = vmul.u32 %v2704_v27, %v2680_v42 }
 0x2f2   :  { %v2709_v26 = vmul.u32 %v2705_v33, %v2681_v51  ;;  %v2710_v44 = vshll.u32 %v2707_v58, 16  ;;  %v2684_v12 = vmul.u32 %v2682_v21, %v2680_v42  ;;  %v2687_v46 = vmul.u32 %v2683_v24, %v2681_v51 }
 0x2f3   :  { %v2688_v56 = vshll.u32 %v2685_v16, 16  ;;  %v2712_v29 = vshll.u32 %v2708_v41, 16  ;;  %v2599_v34 = vxor.u32 2147483648, %v2598_v55  ;;  %v2690_v50 = vshll.u32 %v2686_v48, 16 }
 0x2f4   :  { %vm2714_vm9 = vc.u32 %v2706_v18, %v2710_v44  ;;  %v2716_v31 = vadd.s32 %v2710_v44, %v2706_v18  ;;  %v764_v37 = vmin.f32 %v748_v57, 1.0  ;;  %vm691_vm11 = vcmp.lt.f32.partialorder %v11486_v7, 6.0 }
 0x2f5   :  { %vm2692_vm10 = vc.u32 %v2684_v12, %v2688_v56  ;;  %v2694_v6 = vadd.s32 %v2688_v56, %v2684_v12  ;;  %v2715_v17 = vsel %vm2714_vm9, 1, %v11379_v28  ;;  %v2600_v27 = vsel %vm2479_vm5, %v2599_v34, %v2598_v55 }
 0x2f6   :  { %v2693_v33 = vsel %vm2692_vm10, 1, %v11379_v28  ;;  %v2717_v42 = vadd.s32 %v2715_v17, %v2709_v26  ;;  %vm2718_vm13 = vc.u32 %v2716_v31, %v2712_v29  ;;  %v9637_v51 = vsel %vm9604_vm6, %v9364_v40, %v2600_v27 }
 0x2f7   :  { %v2695_v21 = vadd.s32 %v2693_v33, %v2687_v46  ;;  %vm2696_vm14 = vc.u32 %v2694_v6, %v2690_v50  ;;  %v2719_v24 = vsel %vm2718_vm13, 1, %v11379_v28  ;;  %v2605_v49 = vmul.f32 %v9637_v51, %v9637_v51 }
 0x2f8   :  { %v2697_v9 = vsel %vm2696_vm14, 1, %v11379_v28  ;;  %v2711_v57 = vshrl.u32 %v2707_v58, 16  ;;  %v2721_v34 = vadd.s32 %v2719_v24, %v2717_v42  ;;  %v2669_v55 = vsel %vm2665_vm3, %v9566_v36, %v2668_v19 }
 0x2f9   :  { %v2689_v18 = vshrl.u32 %v2685_v16, 16  ;;  %v2699_v26 = vadd.s32 %v2697_v9, %v2695_v21  ;;  %v9646_v44 = vmul.f32 3.1415927, %v764_v37  ;;  %v2606_v50 = vmul.f32 -0.001358992, %v2605_v49 }
 0x2fa   :  { %v2613_v46 = vmul.f32 -0.00019511016, %v2605_v49  ;;  %v2713_v12 = vshrl.u32 %v2708_v41, 16  ;;  %v2722_v56 = vadd.s32 %v2721_v34, %v2711_v57  ;;  %v2601_v58 = vsub.s32 4, %v9537_v2 }
 0x2fb   :  { %v2691_v6 = vshrl.u32 %v2686_v48, 16  ;;  %v2700_v17 = vadd.s32 %v2699_v26, %v2689_v18  ;;  %v2788_v36 = vand.u32 2139095040, %v9646_v44  ;;  %vm549_vm0 = vcmp.eq.f32.partialorder %v8801_v47, 0.0 }
 0x2fc   :  { %v2607_v37 = vadd.f32 0.041655596, %v2606_v50  ;;  %v2614_v19 = vadd.f32 0.008332121, %v2613_v46  ;;  %v2670_v32 = vsel %vm2664_vm4, %v2667_v39, %v2669_v55  ;;  %v2723_v16 = vadd.s32 %v2722_v56, %v2713_v12 }
 0x2fd   :  { %v6182_v15 = vsel %vm643_vm15, 1.0, %v11427_v53  ;;  %v9659_v27 = vadd.s32 %v2700_v17, %v2691_v6  ;;  %v9661_v41 = vadd.s32 %v2716_v31, %v2712_v29  ;;  %v2789_v33 = vshrl.u32 %v2788_v36, 23 }
 0x2fe   :  { %v2608_v42 = vmul.f32 %v2607_v37, %v2605_v49  ;;  %v2615_v48 = vmul.f32 %v2614_v19, %v2605_v49  ;;  %v3489_v21 = vmul.f32 -2.0, %v9594_v59  ;;  %v2727_v24 = vadd.s32 1, %v2723_v16 }
 0x2ff   :  { %v2602_v9 = vsel %vm2479_vm5, %v2601_v58, %v9537_v2  ;;  %v2724_v5 = vmul.u32 %v9581_v0, %v2670_v32  ;;  %vm2726_vm1 = vc.u32 %v9659_v27, %v9661_v41  ;;  %v6242_v39 = vadd.s32 4294967169, %v2789_v33 }
 0x300   :  { %v2609_v57 = vadd.f32 -0.4999988, %v2608_v42  ;;  %v2616_v34 = vadd.f32 -0.16666654, %v2615_v48  ;;  %v3779_v29 = vmul.f32 -2.0, %v9621_v25  ;;  %v2728_v31 = vsel %vm2726_vm1, %v2727_v24, %v2723_v16 }
 0x301   :  { %v9672_v55 = vmul.f32 0.5, %v9530_v30  ;;  %v6198_v59 = vsel %vm691_vm11, 1.0, %v11427_v53  ;;  %v2729_v18 = vadd.s32 %v2728_v31, %v2724_v5  ;;  %v2795_v2 = vadd.s32 1, %v6242_v39 }
 0x302   :  { %v2604_v0 = vsel %vm9604_vm6, 0, %v2602_v9  ;;  %v2610_v26 = vmul.f32 %v2609_v57, %v2605_v49  ;;  %v2617_v50 = vmul.f32 %v2616_v34, %v2605_v49  ;;  %v2785_v46 = vand.u32 2147483647, %v9646_v44 }
 0x303   :  { %v3291_v12 = vmul.f32 %v6182_v15, %v7260_v52  ;;  %v3516_v25 = vmul.f32 1.442695, %v3489_v21  ;;  %v2730_v56 = vadd.s32 536870912, %v2729_v18  ;;  %vm2796_vm2 = vcmp.gt.s32.totalorder %v2795_v2, 0 }
 0x304   :  { %v2611_v30 = vadd.f32 1.0, %v2610_v26  ;;  %v2618_v58 = vadd.f32 1.0, %v2617_v50  ;;  %v3806_v6 = vmul.f32 1.442695, %v3779_v29  ;;  %v2797_v17 = vsel %vm2796_vm2, %v2795_v2, 0 }
 0x305   :  { %v11503_v36 = vand.u32 2147483648, %v8801_v47  ;;  %v2621_v37 = vand.u32 3, %v2604_v0  ;;  %v9688_v49 = vshrl.u32 %v2730_v56, 30  ;;  %v2799_v19 = vand.u32 31, %v2797_v17 }
 0x306   :  { %v556_v32 = vsub.f32 1.5, %v9672_v55  ;;  %v2619_v16 = vmul.f32 %v2618_v58, %v9637_v51  ;;  %v2627_v15 = vxor.u32 2147483648, %v2611_v30  ;;  %v2792_v33 = vand.u32 8388607, %v2785_v46 }
 0x307   :  { %v9686_v38 = vsel %vm549_vm0, %v11503_v36, %v9527_v8  ;;  %v3307_v42 = vmul.f32 %v6198_v59, %v3291_v12  ;;  %6660 = vpow2.f32 %v3516_v25  ;;  %v2732_v48 = vshll.u32 %v9688_v49, 30 }
 0x308   :  { %v9695_v21 = vsub.s32 32, %v2799_v19  ;;  %vm2620_vm3 = vweird.f32 %v9364_v40  ;;  %v2624_v47 = vxor.u32 2147483648, %v2619_v16  ;;  %6662 = vpow2.f32 %v3806_v6 }
 0x309   :  { %v9699_v8 = vadd.s32 96, %v11416_v62  ;;  %vm2622_vm4 = vcmp.lt.s32.totalorder %v2621_v37, 2  ;;  %vm2623_vm5 = vcmp.eq.s32.totalorder %v2621_v37, 0  ;;  %vm2626_vm6 = vcmp.eq.s32.totalorder %v2621_v37, 2 }
 0x30a   :  { %v2733_v51 = vsub.s32 %v2729_v18, %v2732_v48  ;;  %v2625_v24 = vsel %vm2623_vm5, %v2611_v30, %v2624_v47  ;;  %v2628_v9 = vsel %vm2626_vm6, %v2627_v15, %v2619_v16  ;;  %v2793_v5 = vor.u32 8388608, %v2792_v33 }
 0x30b   :  { %v2803_v39 = vshrl.u32 %v11396_v22, %v9695_v21  ;;  %v2629_v57 = vsel %vm2622_vm4, %v2625_v24, %v2628_v9  ;;  %v2806_v29 = vshrl.u32 %v11397_v11, %v9695_v21  ;;  %v9707_v59 = vshrl.u32 %v2797_v17, 5 }
 0x30c   :  { %vm2734_vm7 = vcmp.lt.s32.totalorder %v2733_v51, 0  ;;  %v2735_v34 = vsub.s32 0, %v2733_v51  ;;  %v2630_v31 = vsel %vm2620_vm3, nan, %v2629_v57  ;;  %v2802_v2 = vshll.u32 %v11374_v45, %v2799_v19 }
 0x30d   :  { %v2805_v18 = vshll.u32 %v11396_v22, %v2799_v19  ;;  %v6661_v0 = vpop.eup %6660  ;;  %v3258_v26 = vadd.f32 1.0, %v2630_v31  ;;  %v2808_v12 = vshll.u32 %v11397_v11, %v2799_v19  ;;  %v2809_v25 = vshrl.u32 %v11399_v14, %v9695_v21 }
 0x30e   :  { %v2736_v50 = vsel %vm2734_vm7, %v2735_v34, %v2733_v51  ;;  %v6663_v56 = vpop.eup %6662  ;;  %v9714_v58 = vor.u32 %v2803_v39, %v2802_v2  ;;  %v2811_v40 = vshll.u32 %v11399_v14, %v2799_v19  ;;  %v2812_v6 = vshrl.u32 %v11400_v4, %v9695_v21 }
 0x30f   :  { %v2737_v30 = vclz %v2736_v50  ;;  %v3274_v17 = vmul.f32 0.5, %v3258_v26  ;;  %v9719_v36 = vor.u32 %v2806_v29, %v2805_v18  ;;  %v2814_v37 = vshll.u32 %v11400_v4, %v2799_v19 }
 0x310   :  { %v2815_v16 = vshrl.u32 %v11401_v23, %v9695_v21  ;;  %v595_v15 = vshra.s32 %v9699_v8, 4  ;;  %v2725_v33 = vadd.s32 %v9661_v41, %v9659_v27  ;;  %v2813_v47 = vor.u32 %v2812_v6, %v2811_v40 }
 0x311   :  { %v6240_v48 = vadd.s32 4294967294, %v2737_v30  ;;  %v9727_v24 = vmul.f32 %v3307_v42, %v3274_v17  ;;  %v9729_v9 = vor.u32 %v2809_v25, %v2808_v12  ;;  %vm2820_vm8 = vcmp.lt.s32.totalorder %v9707_v59, 4 }
 0x312   :  { %v2816_v39 = vor.u32 %v2815_v16, %v2814_v37  ;;  %vm2817_vm10 = vcmp.lt.s32.totalorder %v9707_v59, 1  ;;  %v2826_v19 = vsel %vm2820_vm8, %v2813_v47, 920167782  ;;  %v9735_v57 = vshll.u32 %v2793_v5, 8 }
 0x313   :  { %vm6241_vm9 = vcmp.lt.s32.totalorder %v6240_v48, 0  ;;  %v3537_v34 = vmul.f32 %v6661_v0, %v9727_v24  ;;  %v3827_v27 = vmul.f32 %v6663_v56, %v9727_v24  ;;  %v2825_v42 = vsel %vm2817_vm10, %v9714_v58, %v9719_v36 }
 0x314   :  { %v2740_v41 = vsel %vm6241_vm9, 0, %v6240_v48  ;;  %vm2818_vm11 = vcmp.lt.s32.totalorder %v9707_v59, 2  ;;  %vm2819_vm13 = vcmp.lt.s32.totalorder %v9707_v59, 3  ;;  %v2829_v18 = vsel %vm2817_vm10, %v9719_v36, %v9729_v9 }
 0x315   :  { %v2741_v29 = vsub.s32 32, %v2740_v41  ;;  %v2745_v31 = vsub.s32 4294967266, %v2740_v41  ;;  %3591 = vmatmul.f32.gmra.mxu2 %v3537_v34  ;;  %3881 = vmatmul.f32.gmra.mxu0 %v3827_v27  ;;  %v2742_v5 = vshll.u32 %v2733_v51, %v2740_v41  ;;  %v2827_v2 = vsel %vm2819_vm13, %v9729_v9, %v2826_v19 }
 0x316   :  { %v2830_v0 = vsel %vm2820_vm8, %v2816_v39, 1326507024  ;;  %v2828_v12 = vsel %vm2818_vm11, %v2825_v42, %v2827_v2  ;;  %v2834_v56 = vand.u32 65535, %v9735_v57  ;;  %v6279_v48 = vadd.f32 -0.75, %v9086_v54 }
 0x317   :  { %v2743_v26 = vshrl.u32 %v2725_v33, %v2741_v29  ;;  %v2746_v50 = vadd.s32 127, %v2745_v31  ;;  %v2831_v51 = vsel %vm2819_vm13, %v2813_v47, %v2830_v0  ;;  %v2858_v30 = vand.u32 65535, %v2828_v12 }
 0x318   :  { %v2832_v25 = vsel %vm2818_vm11, %v2829_v18, %v2831_v51  ;;  %v2859_v40 = vshrl.u32 %v2828_v12, 16  ;;  %v9764_v33 = vmul.f32 %v9133_v3, %v556_v32  ;;  %v2835_v47 = vshrl.u32 %v9735_v57, 16 }
 0x319   :  { %v2744_v6 = vor.u32 %v2743_v26, %v2742_v5  ;;  %v2747_v17 = vshll.u32 %v2746_v50, 23  ;;  %v2836_v37 = vand.u32 65535, %v2832_v25  ;;  %v2837_v16 = vshrl.u32 %v2832_v25, 16 }
 0x31a   :  { %v2861_v39 = vmul.u32 %v2859_v40, %v2834_v56  ;;  %vm2633_vm14 = vcmp.lt.s32.totalorder %v9505_v43, 0  ;;  %v2801_v34 = vshrl.u32 %v11374_v45, %v9695_v21  ;;  %vm9772_vm15 = vcmp.eq.s32.totalorder %v595_v15, %v11422_v35 }
 0x31b   :  { %v2748_v19 = vor.u32 4788187, %v2747_v17  ;;  %v2839_v27 = vmul.u32 %v2837_v16, %v2834_v56  ;;  %vm628_vm0 = vcmp.ne.s32.totalorder %v9699_v8, %v11425_v13  ;;  %v2840_v3 = vmul.u32 %v2836_v37, %v2835_v47 }
 0x31c   :  { %v2860_v55 = vmul.u32 %v2858_v30, %v2834_v56  ;;  %v2862_v32 = vmul.u32 %v2858_v30, %v2835_v47  ;;  %v2864_v42 = vshll.u32 %v2861_v39, 16  ;;  %v2751_v31 = vcvt.s32.f32 %v2744_v6 }
 0x31d   :  { %v2749_v29 = vand.u32 2147483647, %v2748_v19  ;;  %v2838_v5 = vmul.u32 %v2836_v37, %v2834_v56  ;;  %v2842_v2 = vshll.u32 %v2839_v27, 16  ;;  %v2841_v18 = vmul.u32 %v2837_v16, %v2835_v47 }
 0x31e   :  { %v2844_v0 = vshll.u32 %v2840_v3, 16  ;;  %v2863_v21 = vmul.u32 %v2859_v40, %v2835_v47  ;;  %vm2868_vm1 = vc.u32 %v2860_v55, %v2864_v42  ;;  %v2866_v51 = vshll.u32 %v2862_v32, 16 }
 0x31f   :  { %v2752_v26 = vmul.f32 %v2751_v31, %v2749_v29  ;;  %vm2846_vm2 = vc.u32 %v2838_v5, %v2842_v2  ;;  %v2848_v15 = vadd.s32 %v2842_v2, %v2838_v5  ;;  %v2869_v50 = vsel %vm2868_vm1, 1, %v11379_v28 }
 0x320   :  { %v2847_v12 = vsel %vm2846_vm2, 1, %v11379_v28  ;;  %v2870_v25 = vadd.s32 %v2864_v42, %v2860_v55  ;;  %v2871_v17 = vadd.s32 %v2869_v50, %v2863_v21  ;;  %v2822_v56 = vsel %vm2820_vm8, %v9729_v9, 2102212464  ;;  %vm644_vm8 = vmand %vm9772_vm15, %vm628_vm0 }
 0x321   :  { %v2753_v30 = vxor.u32 2147483648, %v2752_v26  ;;  %v2849_v6 = vadd.s32 %v2847_v12, %v2841_v18  ;;  %vm2850_vm3 = vc.u32 %v2848_v15, %v2844_v0  ;;  %v11506_v40 = vand.u32 2147483647, %v9505_v43 }
 0x322   :  { %v2821_v16 = vsel %vm2817_vm10, %v2801_v34, %v9714_v58  ;;  %v2851_v47 = vsel %vm2850_vm3, 1, %v11379_v28  ;;  %vm2872_vm5 = vc.u32 %v2870_v25, %v2866_v51  ;;  %v2843_v55 = vshrl.u32 %v2839_v27, 16 }
 0x323   :  { %vm9785_vm4 = vcmp.le.f32.partialorder %v11506_v40, 0.7853982  ;;  %v2754_v19 = vsel %vm2633_vm14, %v2753_v30, %v2752_v26  ;;  %v2853_v9 = vadd.s32 %v2851_v47, %v2849_v6  ;;  %v2873_v42 = vsel %vm2872_vm5, 1, %v11379_v28 }
 0x324   :  { %vm559_vm6 = vcmp.eq.f32.partialorder %v9090_v10, inf  ;;  %v2757_v29 = vsel %vm9785_vm4, %v9505_v43, %v2754_v19  ;;  %v2823_v58 = vsel %vm2819_vm13, %v9719_v36, %v2822_v56  ;;  %v2865_v34 = vshrl.u32 %v2861_v39, 16 }
 0x325   :  { %v2875_v31 = vadd.s32 %v2873_v42, %v2871_v17  ;;  %v2759_v5 = vmul.f32 %v2757_v29, %v2757_v29  ;;  %v2845_v2 = vshrl.u32 %v2840_v3, 16  ;;  %v2854_v18 = vadd.s32 %v2853_v9, %v2843_v55 }
 0x326   :  { %v749_v27 = vmul.f32 %v7159_v20, %v9686_v38  ;;  %v2755_v0 = vsub.s32 4, %v9688_v49  ;;  %v2867_v21 = vshrl.u32 %v2862_v32, 16  ;;  %v9806_v26 = vadd.s32 %v2870_v25, %v2866_v51 }
 0x327   :  { %v2876_v15 = vadd.s32 %v2875_v31, %v2865_v34  ;;  %vm561_vm7 = vcmp.eq.f32.partialorder %v9090_v10, 0.0  ;;  %v2760_v36 = vmul.f32 -0.001358992, %v2759_v5  ;;  %v2767_v39 = vmul.f32 -0.00019511016, %v2759_v5 }
 0x328   :  { %v9814_v3 = vadd.s32 %v2854_v18, %v2845_v2  ;;  %v765_v50 = vmin.f32 %v749_v27, 1.0  ;;  %v3474_v12 = vmul.f32 %v6279_v48, %v6279_v48  ;;  %v6311_v17 = vadd.f32 -1.5, %v9086_v54 }
 0x329   :  { %v2824_v32 = vsel %vm2818_vm11, %v2821_v16, %v2823_v58  ;;  %v2877_v51 = vadd.s32 %v2876_v15, %v2867_v21  ;;  %v558_v25 = vmul.f32 %v9764_v33, %v9090_v10  ;;  %v2761_v30 = vadd.f32 0.041655596, %v2760_v36 }
 0x32a   :  { %v2768_v8 = vadd.f32 0.008332121, %v2767_v39  ;;  %vm2880_vm9 = vc.u32 %v9814_v3, %v9806_v26  ;;  %v6183_v41 = vsel %vm644_vm8, 1.0, %v11427_v53  ;;  %vm692_vm10 = vcmp.lt.f32.partialorder %v9086_v54, 6.0 }
 0x32b   :  { %v2881_v56 = vadd.s32 1, %v2877_v51  ;;  %v9825_v48 = vmul.f32 3.1415927, %v765_v50  ;;  %v2756_v59 = vsel %vm2633_vm14, %v2755_v0, %v9688_v49  ;;  %v2762_v6 = vmul.f32 %v2761_v30, %v2759_v5 }
 0x32c   :  { %v2769_v40 = vmul.f32 %v2768_v8, %v2759_v5  ;;  %v2878_v33 = vmul.u32 %v9735_v57, %v2824_v32  ;;  %v3490_v16 = vmul.f32 -2.0, %v3474_v12  ;;  %v3764_v47 = vmul.f32 %v6311_v17, %v6311_v17 }
 0x32d   :  { %v2882_v19 = vsel %vm2880_vm9, %v2881_v56, %v2877_v51  ;;  %v2942_v55 = vand.u32 2139095040, %v9825_v48  ;;  %v560_v9 = vsel %vm559_vm6, %v9090_v10, %v558_v25  ;;  %v2763_v42 = vadd.f32 -0.4999988, %v2762_v6 }
 0x32e   :  { %v2770_v58 = vadd.f32 -0.16666654, %v2769_v40  ;;  %v2883_v34 = vadd.s32 %v2882_v19, %v2878_v33  ;;  %v562_v31 = vand.u32 2147483648, %v9090_v10  ;;  %v2758_v49 = vsel %vm9785_vm4, 0, %v2756_v59 }
 0x32f   :  { %v3292_v2 = vmul.f32 %v6183_v41, %v7260_v52  ;;  %v2943_v57 = vshrl.u32 %v2942_v55, 23  ;;  %v6199_v18 = vsel %vm692_vm10, 1.0, %v11427_v53  ;;  %v2764_v27 = vmul.f32 %v2763_v42, %v2759_v5 }
 0x330   :  { %v2771_v0 = vmul.f32 %v2770_v58, %v2759_v5  ;;  %v2884_v21 = vadd.s32 536870912, %v2883_v34  ;;  %v9844_v15 = vsel %vm561_vm7, %v562_v31, %v560_v9  ;;  %v3518_v36 = vmul.f32 1.442695, %v3490_v16 }
 0x331   :  { %v3780_v39 = vmul.f32 -2.0, %v3764_v47  ;;  %v6245_v50 = vadd.s32 4294967169, %v2943_v57  ;;  %v2765_v12 = vadd.f32 1.0, %v2764_v27  ;;  %v2775_v17 = vand.u32 3, %v2758_v49 }
 0x332   :  { %v2772_v37 = vadd.f32 1.0, %v2771_v0  ;;  %v9846_v32 = vshrl.u32 %v2884_v21, 30  ;;  %v3308_v51 = vmul.f32 %v6199_v18, %v3292_v2  ;;  %v9849_v25 = vadd.s32 104, %v11416_v62 }
 0x333   :  { %v2939_v30 = vand.u32 2147483647, %v9825_v48  ;;  %v2949_v5 = vadd.s32 1, %v6245_v50  ;;  %vm2774_vm11 = vweird.f32 %v9505_v43  ;;  %v2781_v10 = vxor.u32 2147483648, %v2765_v12 }
 0x334   :  { %v2773_v8 = vmul.f32 %v2772_v37, %v2757_v29  ;;  %v2886_v41 = vshll.u32 %v9846_v32, 30  ;;  %6664 = vpow2.f32 %v3518_v36  ;;  %v3808_v56 = vmul.f32 1.442695, %v3780_v39 }
 0x335   :  { %v6280_v59 = vadd.f32 -0.75, %v9388_v61  ;;  %vm2950_vm13 = vcmp.gt.s32.totalorder %v2949_v5, 0  ;;  %vm2776_vm14 = vcmp.lt.s32.totalorder %v2775_v17, 2  ;;  %v6312_v33 = vadd.f32 -1.5, %v9388_v61 }
 0x336   :  { %v2778_v6 = vxor.u32 2147483648, %v2773_v8  ;;  %v9855_v40 = vsub.s32 %v2883_v34, %v2886_v41  ;;  %vm2777_vm15 = vcmp.eq.s32.totalorder %v2775_v17, 0  ;;  %vm2780_vm0 = vcmp.eq.s32.totalorder %v2775_v17, 2 }
 0x337   :  { %v2946_v29 = vand.u32 8388607, %v2939_v30  ;;  %v2951_v16 = vsel %vm2950_vm13, %v2949_v5, 0  ;;  %v2782_v19 = vsel %vm2780_vm0, %v2781_v10, %v2773_v8  ;;  %6666 = vpow2.f32 %v3808_v56 }
 0x338   :  { %v2779_v47 = vsel %vm2777_vm15, %v2765_v12, %v2778_v6  ;;  %vm2888_vm1 = vcmp.lt.s32.totalorder %v9855_v40, 0  ;;  %v2889_v55 = vsub.s32 0, %v9855_v40  ;;  %v596_v42 = vshra.s32 %v9849_v25, 4 }
 0x339   :  { %v2783_v9 = vsel %vm2776_vm14, %v2779_v47, %v2782_v19  ;;  %v2953_v58 = vand.u32 31, %v2951_v16  ;;  %v3475_v49 = vmul.f32 %v6280_v59, %v6280_v59  ;;  %v9866_v2 = vmul.f32 %v6312_v33, %v6312_v33 }
 0x33a   :  { %v2784_v34 = vsel %vm2774_vm11, nan, %v2783_v9  ;;  %v2890_v31 = vsel %vm2888_vm1, %v2889_v55, %v9855_v40  ;;  %v6665_v57 = vpop.eup %6664  ;;  %v2879_v27 = vadd.s32 %v9806_v26, %v9814_v3  ;;  %v2947_v36 = vor.u32 8388608, %v2946_v29 }
 0x33b   :  { %v3259_v18 = vadd.f32 1.0, %v2784_v34  ;;  %v2891_v0 = vclz %v2890_v31  ;;  %v2954_v21 = vsub.s32 32, %v2953_v58  ;;  %v9870_v39 = vshrl.u32 %v2951_v16, 5 }
 0x33c   :  { %v2956_v50 = vshll.u32 %v11374_v45, %v2953_v58  ;;  %v2959_v43 = vshll.u32 %v11396_v22, %v2953_v58  ;;  %v2962_v5 = vshll.u32 %v11397_v11, %v2953_v58  ;;  %v2965_v26 = vshll.u32 %v11399_v14, %v2953_v58 }
 0x33d   :  { %v3275_v12 = vmul.f32 0.5, %v3259_v18  ;;  %v6243_v37 = vadd.s32 4294967294, %v2891_v0  ;;  %v2957_v17 = vshrl.u32 %v11396_v22, %v2954_v21  ;;  %v2960_v8 = vshrl.u32 %v11397_v11, %v2954_v21  ;;  %v6667_v41 = vpop.eup %6666 }
 0x33e   :  { %v2963_v10 = vshrl.u32 %v11399_v14, %v2954_v21  ;;  %v2966_v3 = vshrl.u32 %v11400_v4, %v2954_v21  ;;  %v2968_v59 = vshll.u32 %v11400_v4, %v2953_v58  ;;  %v2969_v6 = vshrl.u32 %v11401_v23, %v2954_v21 }
 0x33f   :  { %v9880_v56 = vmul.f32 %v3308_v51, %v3275_v12  ;;  %vm6244_vm2 = vcmp.lt.s32.totalorder %v6243_v37, 0  ;;  %v2958_v29 = vor.u32 %v2957_v17, %v2956_v50  ;;  %v9884_v16 = vor.u32 %v2960_v8, %v2959_v43 }
 0x340   :  { %v2894_v33 = vsel %vm6244_vm2, 0, %v6243_v37  ;;  %v2967_v47 = vor.u32 %v2966_v3, %v2965_v26  ;;  %v2964_v34 = vor.u32 %v2963_v10, %v2962_v5  ;;  %v2970_v18 = vor.u32 %v2969_v6, %v2968_v59 }
 0x341   :  { %v3538_v19 = vmul.f32 %v6665_v57, %v9880_v56  ;;  %v3828_v55 = vmul.f32 %v6667_v41, %v9880_v56  ;;  %v2895_v9 = vsub.s32 32, %v2894_v33  ;;  %v2899_v31 = vsub.s32 4294967266, %v2894_v33 }
 0x342   :  { %v9888_v51 = vshll.u32 %v2947_v36, 8  ;;  %v750_v58 = vmul.f32 %v7159_v20, %v9844_v15  ;;  %v2896_v0 = vshll.u32 %v9855_v40, %v2894_v33  ;;  %vm2971_vm3 = vcmp.lt.s32.totalorder %v9870_v39, 1 }
 0x343   :  { %3594 = vmatmul.f32.gmra.mxu2 %v3538_v19  ;;  %3884 = vmatmul.f32.gmra.mxu0 %v3828_v55  ;;  %v2897_v50 = vshrl.u32 %v2879_v27, %v2895_v9  ;;  %vm2974_vm4 = vcmp.lt.s32.totalorder %v9870_v39, 4  ;;  %v2900_v57 = vadd.s32 127, %v2899_v31  ;;  %vm2973_vm5 = vcmp.lt.s32.totalorder %v9870_v39, 3 }
 0x344   :  { %v2979_v36 = vsel %vm2971_vm3, %v2958_v29, %v9884_v16  ;;  %v2980_v43 = vsel %vm2974_vm4, %v2967_v47, 920167782  ;;  %v9901_v20 = vmul.f32 -2.0, %v3475_v49  ;;  %vm2972_vm6 = vcmp.lt.s32.totalorder %v9870_v39, 2 }
 0x345   :  { %v2981_v40 = vsel %vm2973_vm5, %v2964_v34, %v2980_v43  ;;  %v2983_v27 = vsel %vm2971_vm3, %v9884_v16, %v2964_v34  ;;  %v2898_v12 = vor.u32 %v2897_v50, %v2896_v0  ;;  %v2901_v37 = vshll.u32 %v2900_v57, 23 }
 0x346   :  { %v2982_v17 = vsel %vm2972_vm6, %v2979_v36, %v2981_v40  ;;  %v2984_v5 = vsel %vm2974_vm4, %v2970_v18, 1326507024  ;;  %vm2787_vm7 = vcmp.lt.s32.totalorder %v9646_v44, 0  ;;  %v2988_v8 = vand.u32 65535, %v9888_v51 }
 0x347   :  { %v2985_v49 = vsel %vm2973_vm5, %v2967_v47, %v2984_v5  ;;  %v3012_v10 = vand.u32 65535, %v2982_v17  ;;  %v3013_v26 = vshrl.u32 %v2982_v17, 16  ;;  %vm9919_vm8 = vcmp.le.f32.partialorder %v2785_v46, 0.7853982 }
 0x348   :  { %v2902_v41 = vor.u32 4788187, %v2901_v37  ;;  %v2986_v59 = vsel %vm2972_vm6, %v2983_v27, %v2985_v49  ;;  %v2989_v6 = vshrl.u32 %v9888_v51, 16  ;;  %v766_v33 = vmin.f32 %v750_v58, 1.0 }
 0x349   :  { %v2955_v19 = vshrl.u32 %v11374_v45, %v2954_v21  ;;  %v2990_v47 = vand.u32 65535, %v2986_v59  ;;  %v2991_v55 = vshrl.u32 %v2986_v59, 16  ;;  %v3015_v9 = vmul.u32 %v3013_v26, %v2988_v8 }
 0x34a   :  { %v2903_v31 = vand.u32 2147483647, %v2902_v41  ;;  %v2905_v18 = vcvt.s32.f32 %v2898_v12  ;;  %v2909_v0 = vsub.s32 4, %v9846_v32  ;;  %v3016_v46 = vmul.u32 %v3012_v10, %v2989_v6 }
 0x34b   :  { %v2975_v50 = vsel %vm2971_vm3, %v2955_v19, %v2958_v29  ;;  %v2976_v57 = vsel %vm2974_vm4, %v2964_v34, 2102212464  ;;  %v2993_v36 = vmul.u32 %v2991_v55, %v2988_v8  ;;  %v2994_v43 = vmul.u32 %v2990_v47, %v2989_v6 }
 0x34c   :  { %v2906_v40 = vmul.f32 %v2905_v18, %v2903_v31  ;;  %v3014_v58 = vmul.u32 %v3012_v10, %v2988_v8  ;;  %v3018_v27 = vshll.u32 %v3015_v9, 16  ;;  %v9932_v21 = vmul.f32 3.1415927, %v766_v33 }
 0x34d   :  { %vm9937_vm9 = vcmp.eq.s32.totalorder %v596_v42, %v11422_v35  ;;  %vm629_vm10 = vcmp.ne.s32.totalorder %v9849_v25, %v11425_v13  ;;  %v2992_v29 = vmul.u32 %v2990_v47, %v2988_v8  ;;  %v2995_v37 = vmul.u32 %v2991_v55, %v2989_v6 }
 0x34e   :  { %v2996_v34 = vshll.u32 %v2993_v36, 16  ;;  %v3017_v17 = vmul.u32 %v3013_v26, %v2989_v6  ;;  %v2907_v5 = vxor.u32 2147483648, %v2906_v40  ;;  %v3020_v49 = vshll.u32 %v3016_v46, 16  ;;  %vm645_vm1 = vmand %vm9937_vm9, %vm629_vm10 }
 0x34f   :  { %vm3022_vm11 = vc.u32 %v3014_v58, %v3018_v27  ;;  %v3024_v10 = vadd.s32 %v3018_v27, %v3014_v58  ;;  %v2998_v41 = vshll.u32 %v2994_v43, 16  ;;  %vm693_vm0 = vcmp.lt.f32.partialorder %v9388_v61, 6.0 }
 0x350   :  { %vm3000_vm13 = vc.u32 %v2992_v29, %v2996_v34  ;;  %v3002_v59 = vadd.s32 %v2996_v34, %v2992_v29  ;;  %v3023_v33 = vsel %vm3022_vm11, 1, %v11379_v28  ;;  %v2908_v42 = vsel %vm2787_vm7, %v2907_v5, %v2906_v40 }
 0x351   :  { %v3001_v19 = vsel %vm3000_vm13, 1, %v11379_v28  ;;  %v3025_v31 = vadd.s32 %v3023_v33, %v3017_v17  ;;  %vm3026_vm14 = vc.u32 %v3024_v10, %v3020_v49  ;;  %v2911_v8 = vsel %vm9919_vm8, %v9646_v44, %v2908_v42 }
 0x352   :  { %v3003_v26 = vadd.s32 %v3001_v19, %v2995_v37  ;;  %vm3004_vm15 = vc.u32 %v3002_v59, %v2998_v41  ;;  %v3027_v6 = vsel %vm3026_vm14, 1, %v11379_v28  ;;  %v2913_v47 = vmul.f32 %v2911_v8, %v2911_v8 }
 0x353   :  { %v3005_v55 = vsel %vm3004_vm15, 1, %v11379_v28  ;;  %v3019_v18 = vshrl.u32 %v3015_v9, 16  ;;  %v3029_v58 = vadd.s32 %v3027_v6, %v3025_v31  ;;  %v2977_v40 = vsel %vm2973_vm5, %v9884_v16, %v2976_v57 }
 0x354   :  { %v2997_v27 = vshrl.u32 %v2993_v36, 16  ;;  %v3007_v29 = vadd.s32 %v3005_v55, %v3003_v26  ;;  %v3096_v34 = vand.u32 2139095040, %v9932_v21  ;;  %v2914_v17 = vmul.f32 -0.001358992, %v2913_v47 }
 0x355   :  { %v2921_v37 = vmul.f32 -0.00019511016, %v2913_v47  ;;  %v3021_v5 = vshrl.u32 %v3016_v46, 16  ;;  %v3030_v41 = vadd.s32 %v3029_v58, %v3019_v18  ;;  %v2910_v59 = vsel %vm2787_vm7, %v2909_v0, %v9846_v32 }
 0x356   :  { %v2999_v33 = vshrl.u32 %v2994_v43, 16  ;;  %v3008_v42 = vadd.s32 %v3007_v29, %v2997_v27  ;;  %v3097_v9 = vshrl.u32 %v3096_v34, 23  ;;  %v2915_v19 = vadd.f32 0.041655596, %v2914_v17 }
 0x357   :  { %v2922_v31 = vadd.f32 0.008332121, %v2921_v37  ;;  %v2978_v16 = vsel %vm2972_vm6, %v2975_v50, %v2977_v40  ;;  %v3031_v57 = vadd.s32 %v3030_v41, %v3021_v5  ;;  %v3781_v36 = vmul.f32 -2.0, %v9866_v2 }
 0x358   :  { %v9963_v26 = vadd.s32 %v3008_v42, %v2999_v33  ;;  %v9965_v6 = vadd.s32 %v3024_v10, %v3020_v49  ;;  %v6248_v46 = vadd.s32 4294967169, %v3097_v9  ;;  %v2912_v32 = vsel %vm9919_vm8, 0, %v2910_v59 }
 0x359   :  { %v2916_v0 = vmul.f32 %v2915_v19, %v2913_v47  ;;  %v2923_v39 = vmul.f32 %v2922_v31, %v2913_v47  ;;  %v3035_v50 = vadd.s32 1, %v3031_v57  ;;  %v3032_v43 = vmul.u32 %v9888_v51, %v2978_v16 }
 0x35a   :  { %vm3034_vm2 = vc.u32 %v9963_v26, %v9965_v6  ;;  %v3093_v2 = vand.u32 2147483647, %v9932_v21  ;;  %v3103_v49 = vadd.s32 1, %v6248_v46  ;;  %v3520_v25 = vmul.f32 1.442695, %v9901_v20 }
 0x35b   :  { %v2917_v10 = vadd.f32 -0.4999988, %v2916_v0  ;;  %v2924_v55 = vadd.f32 -0.16666654, %v2923_v39  ;;  %v3036_v12 = vsel %vm3034_vm2, %v3035_v50, %v3031_v57  ;;  %v6184_v18 = vsel %vm645_vm1, 1.0, %v11427_v53 }
 0x35c   :  { %v3810_v3 = vmul.f32 1.442695, %v3781_v36  ;;  %v3037_v58 = vadd.s32 %v3036_v12, %v3032_v43  ;;  %vm3104_vm3 = vcmp.gt.s32.totalorder %v3103_v49, 0  ;;  %v2929_v29 = vand.u32 3, %v2912_v32 }
 0x35d   :  { %v2918_v40 = vmul.f32 %v2917_v10, %v2913_v47  ;;  %v2925_v27 = vmul.f32 %v2924_v55, %v2913_v47  ;;  %v3105_v51 = vsel %vm3104_vm3, %v3103_v49, 0  ;;  %v6200_v34 = vsel %vm693_vm0, 1.0, %v11427_v53 }
 0x35e   :  { %v3038_v17 = vadd.s32 536870912, %v3037_v58  ;;  %v3100_v37 = vand.u32 8388607, %v3093_v2  ;;  %v3107_v5 = vand.u32 31, %v3105_v51  ;;  %v3293_v59 = vmul.f32 %v6184_v18, %v7260_v52 }
 0x35f   :  { %v2919_v20 = vadd.f32 1.0, %v2918_v40  ;;  %v2926_v41 = vadd.f32 1.0, %v2925_v27  ;;  %6668 = vpow2.f32 %v3520_v25  ;;  %vm2928_vm4 = vweird.f32 %v9646_v44 }
 0x360   :  { %6670 = vpow2.f32 %v3810_v3  ;;  %v9987_v47 = vshrl.u32 %v3038_v17, 30  ;;  %v9989_v33 = vsub.s32 32, %v3107_v5  ;;  %vm2930_vm5 = vcmp.lt.s32.totalorder %v2929_v29, 2 }
 0x361   :  { %v2927_v42 = vmul.f32 %v2926_v41, %v2911_v8  ;;  %vm2931_vm6 = vcmp.eq.s32.totalorder %v2929_v29, 0  ;;  %v2935_v9 = vxor.u32 2147483648, %v2919_v20  ;;  %vm2934_vm7 = vcmp.eq.s32.totalorder %v2929_v29, 2 }
 0x362   :  { %v3040_v19 = vshll.u32 %v9987_v47, 30  ;;  %v3101_v31 = vor.u32 8388608, %v3100_v37  ;;  %v3111_v16 = vshrl.u32 %v11396_v22, %v9989_v33  ;;  %v9994_v36 = vshrl.u32 %v3105_v51, 5 }
 0x363   :  { %v2932_v57 = vxor.u32 2147483648, %v2927_v42  ;;  %v3110_v46 = vshll.u32 %v11374_v45, %v3107_v5  ;;  %v3114_v32 = vshrl.u32 %v11397_v11, %v9989_v33  ;;  %v3113_v8 = vshll.u32 %v11396_v22, %v3107_v5 }
 0x364   :  { %v3041_v0 = vsub.s32 %v3037_v58, %v3040_v19  ;;  %v3116_v39 = vshll.u32 %v11397_v11, %v3107_v5  ;;  %v3120_v50 = vshrl.u32 %v11400_v4, %v9989_v33  ;;  %v2936_v10 = vsel %vm2934_vm7, %v2935_v9, %v2927_v42 }
 0x365   :  { %v6669_v43 = vpop.eup %6668  ;;  %v2933_v49 = vsel %vm2931_vm6, %v2919_v20, %v2932_v57  ;;  %v3117_v55 = vshrl.u32 %v11399_v14, %v9989_v33  ;;  %v3119_v25 = vshll.u32 %v11399_v14, %v3107_v5  ;;  %v10007_v58 = vor.u32 %v3111_v16, %v3110_v46 }
 0x366   :  { %v6671_v12 = vpop.eup %6670  ;;  %v2937_v18 = vsel %vm2930_vm5, %v2933_v49, %v2936_v10  ;;  %vm3042_vm8 = vcmp.lt.s32.totalorder %v3041_v0, 0  ;;  %v3043_v3 = vsub.s32 0, %v3041_v0  ;;  %v10011_v11 = vor.u32 %v3114_v32, %v3113_v8 }
 0x367   :  { %v2938_v22 = vsel %vm2928_vm4, nan, %v2937_v18  ;;  %v3122_v40 = vshll.u32 %v11400_v4, %v3107_v5  ;;  %v3123_v27 = vshrl.u32 %v11401_v23, %v9989_v33  ;;  %v3121_v14 = vor.u32 %v3120_v50, %v3119_v25 }
 0x368   :  { %v3260_v51 = vadd.f32 1.0, %v2938_v22  ;;  %v3044_v17 = vsel %vm3042_vm8, %v3043_v3, %v3041_v0  ;;  %v10016_v29 = vor.u32 %v3117_v55, %v3116_v39  ;;  %v3309_v42 = vmul.f32 %v6200_v34, %v3293_v59 }
 0x369   :  { %v3045_v37 = vclz %v3044_v17  ;;  %v3124_v20 = vor.u32 %v3123_v27, %v3122_v40  ;;  %vm3125_vm9 = vcmp.lt.s32.totalorder %v9994_v36, 1  ;;  %v10019_v44 = vshll.u32 %v3101_v31, 8 }
 0x36a   :  { %v3276_v41 = vmul.f32 0.5, %v3260_v51  ;;  %v3033_v9 = vadd.s32 %v9965_v6, %v9963_v26  ;;  %vm3128_vm10 = vcmp.lt.s32.totalorder %v9994_v36, 4  ;;  %v3133_v23 = vsel %vm3125_vm9, %v10007_v58, %v10011_v11 }
 0x36b   :  { %v6246_v4 = vadd.s32 4294967294, %v3045_v37  ;;  %vm3126_vm11 = vcmp.lt.s32.totalorder %v9994_v36, 2  ;;  %vm3127_vm13 = vcmp.lt.s32.totalorder %v9994_v36, 3  ;;  %v3134_v34 = vsel %vm3128_vm10, %v3121_v14, 920167782 }
 0x36c   :  { %v10028_v5 = vmul.f32 %v3309_v42, %v3276_v41  ;;  %v3135_v26 = vsel %vm3127_vm13, %v10016_v29, %v3134_v34  ;;  %v3137_v6 = vsel %vm3125_vm9, %v10011_v11, %v10016_v29  ;;  %v3138_v59 = vsel %vm3128_vm10, %v3124_v20, 1326507024 }
 0x36d   :  { %vm6247_vm14 = vcmp.lt.s32.totalorder %v6246_v4, 0  ;;  %v3136_v57 = vsel %vm3126_vm11, %v3133_v23, %v3135_v26  ;;  %v3139_v8 = vsel %vm3127_vm13, %v3121_v14, %v3138_v59  ;;  %v3142_v39 = vand.u32 65535, %v10019_v44 }
 0x36e   :  { %v3539_v19 = vmul.f32 %v6669_v43, %v10028_v5  ;;  %v3829_v31 = vmul.f32 %v6671_v12, %v10028_v5  ;;  %v3048_v16 = vsel %vm6247_vm14, 0, %v6246_v4  ;;  %v3140_v49 = vsel %vm3126_vm11, %v3137_v6, %v3139_v8 }
 0x36f   :  { %v3049_v46 = vsub.s32 32, %v3048_v16  ;;  %v3053_v32 = vsub.s32 4294967266, %v3048_v16  ;;  %v3050_v50 = vshll.u32 %v3041_v0, %v3048_v16  ;;  %v3166_v43 = vand.u32 65535, %v3136_v57 }
 0x370   :  { %3597 = vmatmul.f32.gmra.mxu2 %v3539_v19  ;;  %3887 = vmatmul.f32.gmra.mxu0 %v3829_v31  ;;  %v3167_v10 = vshrl.u32 %v3136_v57, 16  ;;  %v3144_v12 = vand.u32 65535, %v3140_v49  ;;  %v3145_v18 = vshrl.u32 %v3140_v49, 16  ;;  %v3143_v3 = vshrl.u32 %v10019_v44, 16 }
 0x371   :  { %v3051_v55 = vshrl.u32 %v3033_v9, %v3049_v46  ;;  %v3054_v25 = vadd.s32 127, %v3053_v32  ;;  %vm2941_vm15 = vcmp.lt.s32.totalorder %v9825_v48, 0  ;;  %v3168_v42 = vmul.u32 %v3166_v43, %v3142_v39 }
 0x372   :  { %v3169_v22 = vmul.u32 %v3167_v10, %v3142_v39  ;;  %v3147_v51 = vmul.u32 %v3145_v18, %v3142_v39  ;;  %v3148_v17 = vmul.u32 %v3144_v12, %v3143_v3  ;;  %v3170_v14 = vmul.u32 %v3166_v43, %v3143_v3 }
 0x373   :  { %v3052_v40 = vor.u32 %v3051_v55, %v3050_v50  ;;  %v3055_v27 = vshll.u32 %v3054_v25, 23  ;;  %v3146_v20 = vmul.u32 %v3144_v12, %v3142_v39  ;;  %v3149_v9 = vmul.u32 %v3145_v18, %v3143_v3 }
 0x374   :  { %v3172_v0 = vshll.u32 %v3169_v22, 16  ;;  %v3150_v41 = vshll.u32 %v3147_v51, 16  ;;  %v3152_v23 = vshll.u32 %v3148_v17, 16  ;;  %v3171_v34 = vmul.u32 %v3167_v10, %v3143_v3 }
 0x375   :  { %v3056_v37 = vor.u32 4788187, %v3055_v27  ;;  %v3059_v4 = vcvt.s32.f32 %v3052_v40  ;;  %v3174_v19 = vshll.u32 %v3170_v14, 16  ;;  %v3109_v8 = vshrl.u32 %v11374_v45, %v9989_v33  ;;  %v73_v45 = vld [vmem:[%s11217_s3 + $0x38] sm:$0xff] }
 0x376   :  { %vm3154_vm0 = vc.u32 %v3146_v20, %v3150_v41  ;;  %v3156_v6 = vadd.s32 %v3150_v41, %v3146_v20  ;;  %vm3176_vm1 = vc.u32 %v3168_v42, %v3172_v0  ;;  %v3178_v16 = vadd.s32 %v3172_v0, %v3168_v42  ;;  %3957 = vmatpush.msrb.mxu1 %v73_v45 }
 0x377   :  { %v3057_v26 = vand.u32 2147483647, %v3056_v37  ;;  %v3155_v59 = vsel %vm3154_vm0, 1, %v11379_v28  ;;  %v3177_v31 = vsel %vm3176_vm1, 1, %v11379_v28  ;;  %v3130_v39 = vsel %vm3128_vm10, %v10016_v29, 2102212464 }
 0x378   :  { %v3157_v46 = vadd.s32 %v3155_v59, %v3149_v9  ;;  %vm3158_vm2 = vc.u32 %v3156_v6, %v3152_v23  ;;  %v3179_v32 = vadd.s32 %v3177_v31, %v3171_v34  ;;  %vm3180_vm3 = vc.u32 %v3178_v16, %v3174_v19 }
 0x379   :  { %v3060_v57 = vmul.f32 %v3059_v4, %v3057_v26  ;;  %v3159_v50 = vsel %vm3158_vm2, 1, %v11379_v28  ;;  %v3151_v43 = vshrl.u32 %v3147_v51, 16  ;;  %v3181_v55 = vsel %vm3180_vm3, 1, %v11379_v28 }
 0x37a   :  { %v3161_v10 = vadd.s32 %v3159_v50, %v3157_v46  ;;  %vm10065_vm4 = vcmp.le.f32.partialorder %v2939_v30, 0.7853982  ;;  %v3129_v33 = vsel %vm3125_vm9, %v3109_v8, %v10007_v58  ;;  %v3173_v29 = vshrl.u32 %v3169_v22, 16 }
 0x37b   :  { %v3061_v49 = vxor.u32 2147483648, %v3060_v57  ;;  %v3183_v12 = vadd.s32 %v3181_v55, %v3179_v32  ;;  %v3131_v28 = vsel %vm3127_vm13, %v10011_v11, %v3130_v39  ;;  %v3153_v30 = vshrl.u32 %v3148_v17, 16 }
 0x37c   :  { %v3162_v3 = vadd.s32 %v3161_v10, %v3151_v43  ;;  %v579_v40 = vadd.s32 112, %v11416_v62  ;;  %v3175_v51 = vshrl.u32 %v3170_v14, 16  ;;  %v10086_v37 = vadd.s32 %v3178_v16, %v3174_v19 }
 0x37d   :  { %v3062_v18 = vsel %vm2941_vm15, %v3061_v49, %v3060_v57  ;;  %v3184_v58 = vadd.s32 %v3183_v12, %v3173_v29  ;;  %v3132_v20 = vsel %vm3126_vm11, %v3129_v33, %v3131_v28  ;;  %v3063_v4 = vsub.s32 4, %v9987_v47 }
 0x37e   :  { %v3065_v27 = vsel %vm10065_vm4, %v9825_v48, %v3062_v18  ;;  %v10084_v0 = vadd.s32 %v3162_v3, %v3153_v30  ;;  %v597_v42 = vshra.s32 %v579_v40, 4  ;;  %v6281_v14 = vadd.f32 -0.75, %v9686_v38 }
 0x37f   :  { %v3067_v22 = vmul.f32 %v3065_v27, %v3065_v27  ;;  %v3185_v41 = vadd.s32 %v3184_v58, %v3175_v51  ;;  %v6313_v26 = vadd.f32 -1.5, %v9686_v38  ;;  %v3186_v6 = vmul.u32 %v10019_v44, %v3132_v20 }
 0x380   :  { %vm3188_vm5 = vc.u32 %v10084_v0, %v10086_v37  ;;  %vm614_vm6 = vcmp.eq.s32.totalorder %v597_v42, %v11422_v35  ;;  %vm630_vm7 = vcmp.ne.s32.totalorder %v579_v40, %v11425_v13  ;;  %v3064_v16 = vsel %vm2941_vm15, %v3063_v4, %v9987_v47 }
 0x381   :  { %v3068_v11 = vmul.f32 -0.001358992, %v3067_v22  ;;  %v3075_v17 = vmul.f32 -0.00019511016, %v3067_v22  ;;  %v3189_v9 = vadd.s32 1, %v3185_v41  ;;  %v3476_v57 = vmul.f32 %v6281_v14, %v6281_v14  ;;  %vm646_vm8 = vmand %vm614_vm6, %vm630_vm7 }
 0x382   :  { %v3766_v8 = vmul.f32 %v6313_v26, %v6313_v26  ;;  %v3066_v44 = vsel %vm10065_vm4, 0, %v3064_v16  ;;  %v6185_v12 = vsel %vm646_vm8, 1.0, %v11427_v53  ;;  %vm694_vm10 = vcmp.lt.f32.partialorder %v9686_v38, 6.0 }
 0x383   :  { %v3069_v23 = vadd.f32 0.041655596, %v3068_v11  ;;  %v3076_v34 = vadd.f32 0.008332121, %v3075_v17  ;;  %v3190_v36 = vsel %vm3188_vm5, %v3189_v9, %v3185_v41  ;;  %v3492_v10 = vmul.f32 -2.0, %v3476_v57 }
 0x384   :  { %v3191_v31 = vadd.s32 %v3190_v36, %v3186_v6  ;;  %v3782_v33 = vmul.f32 -2.0, %v3766_v8  ;;  %v3083_v47 = vand.u32 3, %v3066_v44  ;;  %v3294_v58 = vmul.f32 %v6185_v12, %v7260_v52  ;;  %v69_v12 = vld [vmem:[%s11217_s3 + $0x18] sm:$0xff] }
 0x385   :  { %v3070_v59 = vmul.f32 %v3069_v23, %v3067_v22  ;;  %v3077_v19 = vmul.f32 %v3076_v34, %v3067_v22  ;;  %v3522_v3 = vmul.f32 1.442695, %v3492_v10  ;;  %vm3082_vm15 = vweird.f32 %v9825_v48  ;;  %3667 = vmatpush.msra.mxu3 %v69_v12 }
 0x386   :  { %v3192_v39 = vadd.s32 536870912, %v3191_v31  ;;  %v3812_v40 = vmul.f32 1.442695, %v3782_v33  ;;  %vm3085_vm11 = vcmp.eq.s32.totalorder %v3083_v47, 0  ;;  %vm3088_vm13 = vcmp.eq.s32.totalorder %v3083_v47, 2  ;;  %v3849_v33 = vpop.f32.mrf.mxu0 }
 0x387   :  { %v3071_v46 = vadd.f32 -0.4999988, %v3070_v59  ;;  %v3078_v32 = vadd.f32 -0.16666654, %v3077_v19  ;;  %vm3084_vm14 = vcmp.lt.s32.totalorder %v3083_v47, 2  ;;  %6672 = vpow2.f32 %v3522_v3 }
 0x388   :  { %v10103_v43 = vshrl.u32 %v3192_v39, 30  ;;  %v6201_v17 = vsel %vm694_vm10, 1.0, %v11427_v53  ;;  %6674 = vpow2.f32 %v3812_v40  ;;  %v3187_v36 = vadd.s32 %v10086_v37, %v10084_v0  ;;  %v72_v0 = vld [vmem:[%s11217_s3 + $0x30] sm:$0xff]  ;;  %v10121_v37 = vpop.f32.mrf.mxu1 }
 0x389   :  { %v3072_v50 = vmul.f32 %v3071_v46, %v3067_v22  ;;  %v3079_v49 = vmul.f32 %v3078_v32, %v3067_v22  ;;  %v3310_v23 = vmul.f32 %v6201_v17, %v3294_v58  ;;  %vm3095_vm1 = vcmp.lt.s32.totalorder %v9932_v21, 0  ;;  %11515 = vst [vmem:[#allocation8_spill] sm:$0xff] %v10121_v37  ;;  %3958 = vmatpush.msrb.mxu1 %v72_v0  ;;  %v66_v17 = vld [vmem:[%s11217_s3] sm:$0xff] }
 0x38a   :  { %v3194_v29 = vshll.u32 %v10103_v43, 30  ;;  %vm10128_vm2 = vcmp.le.f32.partialorder %v3093_v2, 0.7853982  ;;  %v70_v2 = vld [vmem:[%s11217_s3 + $0x20] sm:$0xff]  ;;  %v580_v3 = vadd.s32 120, %v11416_v62  ;;  %v6282_v58 = vadd.f32 -0.75, %v9844_v15  ;;  %v3559_v62 = vpop.f32.mrf.mxu2 }
 0x38b   :  { %v3073_v55 = vadd.f32 1.0, %v3072_v50  ;;  %v3080_v45 = vadd.f32 1.0, %v3079_v49  ;;  %vm695_vm6 = vcmp.lt.f32.partialorder %v9844_v15, 6.0  ;;  %vm3236_vm10 = vweird.f32 %v9932_v21 }
 0x38c   :  { %v3195_v30 = vsub.s32 %v3191_v31, %v3194_v29  ;;  %vm631_vm3 = vcmp.ne.s32.totalorder %v580_v3, %v11425_v13 }
 0x38d   :  { %v3081_v18 = vmul.f32 %v3080_v45, %v3065_v27  ;;  %v3089_v28 = vxor.u32 2147483648, %v3073_v55  ;;  %v6673_v26 = vpop.eup %6672  ;;  %v71_v45 = vld [vmem:[%s11217_s3 + $0x28] sm:$0xff] }
 0x38e   :  { %vm3196_vm9 = vcmp.lt.s32.totalorder %v3195_v30, 0  ;;  %v3197_v51 = vsub.s32 0, %v3195_v30  ;;  %v6675_v19 = vpop.eup %6674  ;;  %3959 = vmatpush.msrb.mxu1 %v71_v45  ;;  %v10188_v45 = vld [vmem:[%s11216_s2 + $0x68] sm:$0xff] }
 0x38f   :  { %v3086_v25 = vxor.u32 2147483648, %v3081_v18  ;;  %v3090_v20 = vsel %vm3088_vm13, %v3089_v28, %v3081_v18  ;;  %v68_v18 = vld [vmem:[%s11217_s3 + $0x10] sm:$0xff] }
 0x390   :  { %v3198_v41 = vsel %vm3196_vm9, %v3197_v51, %v3195_v30  ;;  %3668 = vmatpush.msra.mxu3 %v68_v18  ;;  %3960 = vmatpush.msrb.mxu1 %v70_v2  ;;  %v3217_v51 = vsub.s32 4, %v10103_v43  ;;  %v10196_v18 = vld [vmem:[%s11216_s2 + $0x60] sm:$0xff] }
 0x391   :  { %v3087_v22 = vsel %vm3085_vm11, %v3073_v55, %v3086_v25  ;;  %v3199_v11 = vclz %v3198_v41  ;;  %6315 = vmatmul.msk.f32.vlgmr.msrb.gmra.mxu1 %vm3332_vm12, %v3849_v33  ;;  %v6314_v41 = vadd.f32 -1.5, %v9844_v15 }
 0x392   :  { %v3091_v27 = vsel %vm3084_vm14, %v3087_v22, %v3090_v20 }
 0x393   :  { %v3092_v42 = vsel %vm3082_vm15, nan, %v3091_v27  ;;  %v6249_v14 = vadd.s32 4294967294, %v3199_v11  ;;  %v67_v27 = vld [vmem:[%s11217_s3 + $0x8] sm:$0xff]  ;;  %v10154_v11 = vpop.f32.mrf.mxu1 }
 0x394   :  { %v3261_v4 = vadd.f32 1.0, %v3092_v42  ;;  %11518 = vst [vmem:[#allocation7_spill] sm:$0xff] %v10154_v11  ;;  %v598_v42 = vshra.s32 %v580_v3, 4  ;;  %3669 = vmatpush.msra.mxu3 %v67_v27  ;;  %v10204_v3 = vld [vmem:[%s11216_s2 + $0x58] sm:$0xff] }
 0x395   :  { %vm6250_vm0 = vcmp.lt.s32.totalorder %v6249_v14, 0 }
 0x396   :  { %v3277_v9 = vmul.f32 0.5, %v3261_v4  ;;  %v3202_v34 = vsel %vm6250_vm0, 0, %v6249_v14  ;;  %3670 = vmatpush.msra.mxu3 %v66_v17  ;;  %vm615_vm4 = vcmp.eq.s32.totalorder %v598_v42, %v11422_v35 }
 0x397   :  { %v3203_v48 = vsub.s32 32, %v3202_v34  ;;  %v3207_v59 = vsub.s32 4294967266, %v3202_v34  ;;  %v3204_v31 = vshll.u32 %v3195_v30, %v3202_v34  ;;  %v3477_v34 = vmul.f32 %v6282_v58, %v6282_v58  ;;  %6283 = vmatmul.msk.f32.vlgmr.msra.gmra.mxu3 %vm3332_vm12, %v3559_v62  ;;  %vm647_vm5 = vmand %vm615_vm4, %vm631_vm3  ;;  %v11521_v58 = vld [vmem:[#allocation9_spill] sm:$0xff]  ;;  %v10222_v62 = vld [vmem:[%s11216_s2 + $0x48] sm:$0xff] }
 0x398   :  { %v10111_v6 = vmul.f32 %v3310_v23, %v3277_v9  ;;  %v3852_v9 = vpop.f32.mrf.mxu0  ;;  %v3218_v23 = vsel %vm3095_vm1, %v3217_v51, %v10103_v43  ;;  %v10170_v43 = vld [vmem:[%s11216_s2 + $0x78] sm:$0xff]  ;;  %v6186_v13 = vsel %vm647_vm5, 1.0, %v11427_v53  ;;  %v6428_v37 = vadd.f32 -4.5, %v11521_v58 }
 0x399   :  { %v3205_v46 = vshrl.u32 %v3187_v36, %v3203_v48  ;;  %v3208_v32 = vadd.s32 127, %v3207_v59  ;;  %v3767_v48 = vmul.f32 %v6314_v41, %v6314_v41  ;;  %v3220_v59 = vsel %vm10128_vm2, 0, %v3218_v23  ;;  %4122 = vmatpush.msrb.mxu3 %v10170_v43  ;;  %6316 = vmatmul.msk.f32.gmra.mxu1 %vm3332_vm12, %v3852_v9  ;;  %v10228_v9 = vld [vmem:[%s11216_s2 + $0x40] sm:$0xff] }
 0x39a   :  { %v3540_v16 = vmul.f32 %v6673_v26, %v10111_v6  ;;  %v3830_v57 = vmul.f32 %v6675_v19, %v10111_v6 }
 0x39b   :  { %v3206_v8 = vor.u32 %v3205_v46, %v3204_v31  ;;  %v3209_v39 = vshll.u32 %v3208_v32, 23  ;;  %v3783_v32 = vmul.f32 -2.0, %v3767_v48 }
 0x39c   :  { %3600 = vmatmul.f32.gmra.mxu2 %v3540_v16  ;;  %3890 = vmatmul.f32.gmra.mxu0 %v3830_v57  ;;  %v3493_v16 = vmul.f32 -2.0, %v3477_v34 }
 0x39d   :  { %v3210_v44 = vor.u32 4788187, %v3209_v39  ;;  %v3213_v49 = vcvt.s32.f32 %v3206_v8  ;;  %v11519_v8 = vld [vmem:[#allocation5_spill] sm:$0xff]  ;;  %v10178_v39 = vld [vmem:[%s11216_s2 + $0x70] sm:$0xff] }
 0x39e   :  { %v6363_v35 = vadd.f32 -3.0, %v11519_v8  ;;  %4123 = vmatpush.msrb.mxu3 %v10178_v39  ;;  %v3524_v33 = vmul.f32 1.442695, %v3493_v16 }
 0x39f   :  { %v3211_v50 = vand.u32 2147483647, %v3210_v44  ;;  %v3237_v44 = vand.u32 3, %v3220_v59 }
 0x3a0   :  { %v3855_v0 = vpop.f32.mrf.mxu0  ;;  %4124 = vmatpush.msrb.mxu3 %v10188_v45  ;;  %v4332_v12 = vmul.f32 %v6363_v35, %v6363_v35  ;;  %6676 = vpow2.f32 %v3524_v33  ;;  %v10268_v33 = vld [vmem:[%s11216_s2 + $0x18] sm:$0xff] }
 0x3a1   :  { %v3214_v10 = vmul.f32 %v3213_v49, %v3211_v50  ;;  %v10183_v50 = vpop.f32.mrf.mxu1  ;;  %v3562_v49 = vpop.f32.mrf.mxu2  ;;  %vm3239_vm7 = vcmp.eq.s32.totalorder %v3237_v44, 0  ;;  %vm3242_vm8 = vcmp.eq.s32.totalorder %v3237_v44, 2  ;;  %vm3238_vm9 = vcmp.lt.s32.totalorder %v3237_v44, 2  ;;  %6317 = vmatmul.msk.f32.gmra.mxu1 %vm3332_vm12, %v3855_v0  ;;  %v10255_v44 = vld [vmem:[%s11216_s2 + $0x28] sm:$0xff] }
 0x3a2   :  { %11520 = vst [vmem:[#allocation30_spill] sm:$0xff] %v10183_v50  ;;  %4125 = vmatpush.msrb.mxu3 %v10196_v18 }
 0x3a3   :  { %v3215_v55 = vxor.u32 2147483648, %v3214_v10  ;;  %6284 = vmatmul.msk.f32.gmra.mxu3 %vm3332_vm12, %v3562_v49 }
 0x3a4   :  { %4126 = vmatpush.msrb.mxu3 %v10204_v3 }
 0x3a5   :  { %v3216_v47 = vsel %vm3095_vm1, %v3215_v55, %v3214_v10 }
 0x3a6   :  { %v3219_v28 = vsel %vm10128_vm2, %v9932_v21, %v3216_v47  ;;  %v3814_v47 = vmul.f32 1.442695, %v3783_v32  ;;  %v6677_v23 = vpop.eup %6676 }
 0x3a7   :  { %v3221_v30 = vmul.f32 %v3219_v28, %v3219_v28 }
 0x3a8   :  { %6678 = vpow2.f32 %v3814_v47 }
 0x3a9   :  { %v3222_v25 = vmul.f32 -0.001358992, %v3221_v30  ;;  %v3229_v40 = vmul.f32 -0.00019511016, %v3221_v30  ;;  %v10217_v21 = vpop.f32.mrf.mxu1  ;;  %v3565_v27 = vpop.f32.mrf.mxu2 }
 0x3aa   :  { %11522 = vst [vmem:[#allocation18_spill] sm:$0xff] %v10217_v21 }
 0x3ab   :  { %v3223_v22 = vadd.f32 0.041655596, %v3222_v25  ;;  %v3230_v20 = vadd.f32 0.008332121, %v3229_v40  ;;  %v3295_v40 = vmul.f32 %v6186_v13, %v7260_v52  ;;  %v3858_v52 = vpop.f32.mrf.mxu0  ;;  %6285 = vmatmul.msk.f32.gmra.mxu3 %vm3332_vm12, %v3565_v27  ;;  %v11525_v13 = vld [vmem:[#allocation32_spill] sm:$0xff] }
 0x3ac   :  { %6318 = vmatmul.msk.f32.gmra.mxu1 %vm3332_vm12, %v3858_v52  ;;  %v11528_v52 = vld [vmem:[#allocation12_spill] sm:$0xff] }
 0x3ad   :  { %v3224_v4 = vmul.f32 %v3223_v22, %v3221_v30  ;;  %v3231_v14 = vmul.f32 %v3230_v20, %v3221_v30  ;;  %v6364_v22 = vadd.f32 -3.0, %v11521_v58  ;;  %v10214_v20 = vld [vmem:[%s11216_s2 + $0x50] sm:$0xff] }
 0x3ae   :  { %4127 = vmatpush.msrb.mxu3 %v10214_v20 }
 0x3af   :  { %v3225_v26 = vadd.f32 -0.4999988, %v3224_v4  ;;  %v3232_v36 = vadd.f32 -0.16666654, %v3231_v14  ;;  %v4333_v14 = vmul.f32 %v6364_v22, %v6364_v22 }
 0x3b0   :  { %4128 = vmatpush.msrb.mxu3 %v10222_v62 }
 0x3b1   :  { %v3226_v19 = vmul.f32 %v3225_v26, %v3221_v30  ;;  %v3233_v31 = vmul.f32 %v3232_v36, %v3221_v30  ;;  %v6679_v26 = vpop.eup %6678  ;;  %v10237_v36 = vld [vmem:[%s11216_s2 + $0x38] sm:$0xff]  ;;  %v3568_v32 = vpop.f32.mrf.mxu2 }
 0x3b2   :  { %4129 = vmatpush.msrb.mxu3 %v10228_v9 }
 0x3b3   :  { %v3227_v57 = vadd.f32 1.0, %v3226_v19  ;;  %v3234_v46 = vadd.f32 1.0, %v3233_v31  ;;  %v4349_v19 = vmul.f32 -2.0, %v4333_v14  ;;  %v11523_v31 = vld [vmem:[#allocation24_spill] sm:$0xff]  ;;  %v3861_v35 = vpop.f32.mrf.mxu0  ;;  %6286 = vmatmul.msk.f32.gmra.mxu3 %vm3332_vm12, %v3568_v32  ;;  %v11531_v32 = vld [vmem:[#allocation13_spill] sm:$0xff] }
 0x3b4   :  { %4130 = vmatpush.msrb.mxu3 %v10237_v36  ;;  %v6365_v16 = vadd.f32 -3.0, %v11523_v31  ;;  %6319 = vmatmul.msk.f32.gmra.mxu1 %vm3332_vm12, %v3861_v35 }
 0x3b5   :  { %v3235_v10 = vmul.f32 %v3234_v46, %v3219_v28  ;;  %v3243_v55 = vxor.u32 2147483648, %v3227_v57  ;;  %v6202_v28 = vsel %vm695_vm6, 1.0, %v11427_v53  ;;  %v4348_v53 = vmul.f32 -2.0, %v4332_v12  ;;  %v10250_v46 = vpop.f32.mrf.mxu1  ;;  %v11526_v12 = vld [vmem:[#allocation26_spill] sm:$0xff] }
 0x3b6   :  { %v3311_v42 = vmul.f32 %v6202_v28, %v3295_v40  ;;  %11524 = vst [vmem:[#allocation31_spill] sm:$0xff] %v10250_v46  ;;  %v4366_v49 = vmul.f32 1.442695, %v4349_v19  ;;  %v6366_v28 = vadd.f32 -3.0, %v11526_v12  ;;  %v10283_v40 = vld [vmem:[%s11216_s2 + $0x8] sm:$0xff] }
 0x3b7   :  { %v3240_v29 = vxor.u32 2147483648, %v3235_v10  ;;  %v3244_v30 = vsel %vm3242_vm8, %v3243_v55, %v3235_v10  ;;  %v4364_v4 = vmul.f32 1.442695, %v4348_v53  ;;  %v4334_v10 = vmul.f32 %v6365_v16, %v6365_v16  ;;  %v10261_v55 = vld [vmem:[%s11216_s2 + $0x20] sm:$0xff] }
 0x3b8   :  { %v4335_v22 = vmul.f32 %v6366_v28, %v6366_v28 }
 0x3b9   :  { %v3241_v2 = vsel %vm3239_vm7, %v3227_v57, %v3240_v29  ;;  %6680 = vpow2.f32 %v4364_v4  ;;  %v10247_v57 = vld [vmem:[%s11216_s2 + $0x30] sm:$0xff]  ;;  %v4350_v47 = vmul.f32 -2.0, %v4334_v10  ;;  %v11532_v10 = vld [vmem:[#allocation28_spill] sm:$0xff] }
 0x3ba   :  { %v3245_v25 = vsel %vm3238_vm9, %v3241_v2, %v3244_v30  ;;  %4131 = vmatpush.msrb.mxu3 %v10247_v57  ;;  %6682 = vpow2.f32 %v4366_v49  ;;  %v10277_v2 = vld [vmem:[%s11216_s2 + $0x10] sm:$0xff]  ;;  %v3571_v30 = vpop.f32.mrf.mxu2 }
 0x3bb   :  { %v3246_v51 = vsel %vm3236_vm10, nan, %v3245_v25  ;;  %v3864_v25 = vpop.f32.mrf.mxu0  ;;  %v4368_v53 = vmul.f32 1.442695, %v4350_v47  ;;  %6287 = vmatmul.msk.f32.gmra.mxu3 %vm3332_vm12, %v3571_v30  ;;  %v11529_v4 = vld [vmem:[#allocation27_spill] sm:$0xff] }
 0x3bc   :  { %v3262_v41 = vadd.f32 1.0, %v3246_v51  ;;  %4132 = vmatpush.msrb.mxu3 %v10255_v44  ;;  %6320 = vmatmul.msk.f32.gmra.mxu1 %vm3332_vm12, %v3864_v25  ;;  %v6367_v14 = vadd.f32 -3.0, %v11529_v4 }
 0x3bd   :  { %v10287_v51 = vpop.f32.mrf.mxu1  ;;  %6684 = vpow2.f32 %v4368_v53  ;;  %v11533_v53 = vld [vmem:[#allocation14_spill] sm:$0xff] }
 0x3be   :  { %v3278_v17 = vmul.f32 0.5, %v3262_v41  ;;  %4133 = vmatpush.msrb.mxu3 %v10261_v55  ;;  %11527 = vst [vmem:[#allocation11_spill] sm:$0xff] %v10287_v51  ;;  %v10292_v41 = vld [vmem:[%s11216_s2] sm:$0xff] }
 0x3bf   :  { %v6681_v0 = vpop.eup %6680 }
 0x3c0   :  { %v10231_v34 = vmul.f32 %v3311_v42, %v3278_v17  ;;  %4134 = vmatpush.msrb.mxu3 %v10268_v33  ;;  %v4396_v29 = vmul.f32 %v6681_v0, %v11525_v13  ;;  %v6683_v27 = vpop.eup %6682  ;;  %v4351_v42 = vmul.f32 -2.0, %v4335_v22  ;;  %v6368_v0 = vadd.f32 -3.0, %v11532_v10 }
 0x3c1   :  { %v4397_v17 = vmul.f32 %v6683_v27, %v11528_v52 }
 0x3c2   :  { %v3541_v48 = vmul.f32 %v6677_v23, %v10231_v34  ;;  %v3831_v59 = vmul.f32 %v6679_v26, %v10231_v34  ;;  %4135 = vmatpush.msrb.mxu3 %v10277_v2  ;;  %v3574_v23 = vpop.f32.mrf.mxu2  ;;  %v4337_v30 = vmul.f32 %v6368_v0, %v6368_v0 }
 0x3c3   :  { %v3867_v26 = vpop.f32.mrf.mxu0  ;;  %6288 = vmatmul.msk.f32.gmra.mxu3 %vm3332_vm12, %v3574_v23  ;;  %v6685_v16 = vpop.eup %6684 }
 0x3c4   :  { %3603 = vmatmul.f32.gmra.mxu2 %v3541_v48  ;;  %3893 = vmatmul.f32.gmra.mxu0 %v3831_v59  ;;  %v4370_v48 = vmul.f32 1.442695, %v4351_v42  ;;  %v4336_v59 = vmul.f32 %v6367_v14, %v6367_v14  ;;  %v4398_v35 = vmul.f32 %v6685_v16, %v11531_v32  ;;  %v11535_v42 = vld [vmem:[#allocation29_spill] sm:$0xff] }
 0x3c5   :  { %4136 = vmatpush.msrb.mxu3 %v10283_v40  ;;  %v10308_v19 = vpop.f32.mrf.mxu1  ;;  %6321 = vmatmul.msk.f32.gmra.mxu1 %vm3332_vm12, %v3867_v26  ;;  %v6369_v14 = vadd.f32 -3.0, %v11535_v42 }
 0x3c6   :  { %11530 = vst [vmem:[#allocation33_spill] sm:$0xff] %v10308_v19  ;;  %6686 = vpow2.f32 %v4370_v48  ;;  %v4352_v49 = vmul.f32 -2.0, %v4336_v59 }
 0x3c7   :  { %4137 = vmatpush.msrb.mxu3 %v10292_v41  ;;  %v4338_v59 = vmul.f32 %v6369_v14, %v6369_v14  ;;  %v11538_v14 = vld [vmem:[#allocation16_spill] sm:$0xff] }
 0x3c8   :  { %v4372_v28 = vmul.f32 1.442695, %v4352_v49 }
 0x3c9   :  { %4702 = vmatpush.msra.mxu3 %v10170_v43  ;;  %v4354_v0 = vmul.f32 -2.0, %v4338_v59 }
 0x3ca   :  { %6688 = vpow2.f32 %v4372_v28 }
 0x3cb   :  { %4703 = vmatpush.msra.mxu3 %v10178_v39  ;;  %v3870_v47 = vpop.f32.mrf.mxu0 }
 0x3cc   :  { %4428 = vmatmul.f32.vlgmr.msra.gmra.mxu0 %v4396_v29  ;;  %v3577_v29 = vpop.f32.mrf.mxu2  ;;  %v6687_v25 = vpop.eup %6686 }
 0x3cd   :  { %5572 = vmatpush.msra.mxu0 %v10170_v43  ;;  %4704 = vmatpush.msra.mxu3 %v10188_v45  ;;  %v4399_v22 = vmul.f32 %v6687_v25, %v11533_v53  ;;  %v10326_v27 = vpop.f32.mrf.mxu1  ;;  %v4376_v25 = vmul.f32 1.442695, %v4354_v0 }
 0x3ce   :  { %6289 = vmatmul.msk.f32.gmra.mxu3 %vm3332_vm12, %v3577_v29  ;;  %11534 = vst [vmem:[#allocation34_spill] sm:$0xff] %v10326_v27  ;;  %6322 = vmatmul.msk.f32.gmra.mxu1 %vm3332_vm12, %v3870_v47  ;;  %v6370_v29 = vadd.f32 -3.0, %v7887_v1 }
 0x3cf   :  { %5573 = vmatpush.msra.mxu0 %v10178_v39  ;;  %4705 = vmatpush.msra.mxu3 %v10196_v18 }
 0x3d0   :  { %v6689_v16 = vpop.eup %6688 }
 0x3d1   :  { %5574 = vmatpush.msra.mxu0 %v10188_v45  ;;  %4706 = vmatpush.msra.mxu3 %v10204_v3 }
 0x3d3   :  { %5575 = vmatpush.msra.mxu0 %v10196_v18  ;;  %4707 = vmatpush.msra.mxu3 %v10214_v20  ;;  %v3873_v26 = vpop.f32.mrf.mxu0 }
 0x3d4   :  { %4431 = vmatmul.f32.gmra.mxu0 %v4397_v17  ;;  %v4353_v17 = vmul.f32 -2.0, %v4337_v30  ;;  %v3580_v23 = vpop.f32.mrf.mxu2 }
 0x3d5   :  { %5576 = vmatpush.msra.mxu0 %v10204_v3  ;;  %4708 = vmatpush.msra.mxu3 %v10222_v62  ;;  %v10344_v47 = vpop.f32.mrf.mxu1 }
 0x3d6   :  { %v4374_v48 = vmul.f32 1.442695, %v4353_v17  ;;  %6290 = vmatmul.msk.f32.gmra.mxu3 %vm3332_vm12, %v3580_v23  ;;  %6323 = vmatmul.msk.f32.gmra.mxu1 %vm3332_vm12, %v3873_v26  ;;  %11537 = vst [vmem:[#allocation10_spill] sm:$0xff] %v10344_v47 }
 0x3d7   :  { %5577 = vmatpush.msra.mxu0 %v10214_v20  ;;  %4709 = vmatpush.msra.mxu3 %v10228_v9 }
 0x3d8   :  { %6690 = vpow2.f32 %v4374_v48  ;;  %v6371_v48 = vadd.f32 -3.0, %v11458_v63 }
 0x3d9   :  { %5578 = vmatpush.msra.mxu0 %v10222_v62  ;;  %4710 = vmatpush.msra.mxu3 %v10237_v36  ;;  %6692 = vpow2.f32 %v4376_v25  ;;  %v6372_v25 = vadd.f32 -3.0, %v11471_v60 }
 0x3db   :  { %5579 = vmatpush.msra.mxu0 %v10228_v9  ;;  %4711 = vmatpush.msra.mxu3 %v10247_v57  ;;  %v3876_v30 = vpop.f32.mrf.mxu0  ;;  %v4341_v19 = vmul.f32 %v6372_v25, %v6372_v25  ;;  %v11544_v25 = vld [vmem:[#allocation22_spill] sm:$0xff] }
 0x3dc   :  { %4434 = vmatmul.f32.gmra.mxu0 %v4398_v35  ;;  %v11536_v35 = vld [vmem:[#allocation15_spill] sm:$0xff]  ;;  %v3583_v28 = vpop.f32.mrf.mxu2 }
 0x3dd   :  { %5580 = vmatpush.msra.mxu0 %v10237_v36  ;;  %4712 = vmatpush.msra.mxu3 %v10255_v44  ;;  %v4400_v49 = vmul.f32 %v6689_v16, %v11536_v35 }
 0x3de   :  { %6291 = vmatmul.msk.f32.gmra.mxu3 %vm3332_vm12, %v3583_v28  ;;  %v6691_v17 = vpop.eup %6690  ;;  %6324 = vmatmul.msk.f32.gmra.mxu1 %vm3332_vm12, %v3876_v30  ;;  %v11540_v28 = vld [vmem:[#allocation20_spill] sm:$0xff] }
 0x3df   :  { %5581 = vmatpush.msra.mxu0 %v10247_v57  ;;  %4713 = vmatpush.msra.mxu3 %v10261_v55  ;;  %v4401_v23 = vmul.f32 %v6691_v17, %v11538_v14  ;;  %v6693_v47 = vpop.eup %6692 }
 0x3e0   :  { %v4402_v27 = vmul.f32 %v6693_v47, %v11540_v28  ;;  %v4357_v47 = vmul.f32 -2.0, %v4341_v19  ;;  %v6374_v19 = vadd.f32 -3.0, %v11486_v7 }
 0x3e1   :  { %5582 = vmatpush.msra.mxu0 %v10255_v44  ;;  %4714 = vmatpush.msra.mxu3 %v10268_v33 }
 0x3e2   :  { %v4343_v21 = vmul.f32 %v6374_v19, %v6374_v19 }
 0x3e3   :  { %5583 = vmatpush.msra.mxu0 %v10261_v55  ;;  %4715 = vmatpush.msra.mxu3 %v10277_v2  ;;  %v3879_v16 = vpop.f32.mrf.mxu0 }
 0x3e4   :  { %4437 = vmatmul.f32.gmra.mxu0 %v4399_v22  ;;  %v4339_v22 = vmul.f32 %v6370_v29, %v6370_v29  ;;  %v3586_v59 = vpop.f32.mrf.mxu2  ;;  %v4340_v29 = vmul.f32 %v6371_v48, %v6371_v48  ;;  %v11542_v48 = vld [vmem:[#allocation21_spill] sm:$0xff] }
 0x3e5   :  { %5584 = vmatpush.msra.mxu0 %v10268_v33  ;;  %4716 = vmatpush.msra.mxu3 %v10283_v40 }
 0x3e6   :  { %v4355_v26 = vmul.f32 -2.0, %v4339_v22  ;;  %6292 = vmatmul.msk.f32.gmra.mxu3 %vm3332_vm12, %v3586_v59  ;;  %6325 = vmatmul.msk.f32.gmra.mxu1 %vm3332_vm12, %v3879_v16  ;;  %v4356_v30 = vmul.f32 -2.0, %v4340_v29  ;;  %v11543_v16 = vld [vmem:[#allocation25_spill] sm:$0xff] }
 0x3e7   :  { %5585 = vmatpush.msra.mxu0 %v10277_v2  ;;  %4717 = vmatpush.msra.mxu3 %v10292_v41 }
 0x3e8   :  { %v4378_v0 = vmul.f32 1.442695, %v4355_v26 }
 0x3e9   :  { %5586 = vmatpush.msra.mxu0 %v10283_v40 }
 0x3ea   :  { %6694 = vpow2.f32 %v4378_v0  ;;  %v6373_v0 = vadd.f32 -3.0, %v11543_v16 }
 0x3eb   :  { %5587 = vmatpush.msra.mxu0 %v10292_v41  ;;  %v3882_v17 = vpop.f32.mrf.mxu0 }
 0x3ec   :  { %4440 = vmatmul.f32.gmra.mxu0 %v4400_v49  ;;  %v10352_v49 = vpop.f32.mrf.mxu1  ;;  %v3589_v22 = vpop.f32.mrf.mxu2  ;;  %v4342_v46 = vmul.f32 %v6373_v0, %v6373_v0  ;;  %v11546_v0 = vld [vmem:[#allocation23_spill] sm:$0xff] }
 0x3ed   :  { %11539 = vst [vmem:[#allocation19_spill] sm:$0xff] %v10352_v49  ;;  %v4382_v49 = vmul.f32 1.442695, %v4357_v47 }
 0x3ee   :  { %6293 = vmatmul.msk.f32.gmra.mxu3 %vm3332_vm12, %v3589_v22  ;;  %6326 = vmatmul.msk.f32.gmra.mxu1 %vm3332_vm12, %v3882_v17  ;;  %v4358_v17 = vmul.f32 -2.0, %v4342_v46 }
 0x3f0   :  { %v6695_v26 = vpop.eup %6694 }
 0x3f1   :  { %v4403_v59 = vmul.f32 %v6695_v26, %v11542_v48 }
 0x3f4   :  { %4443 = vmatmul.f32.gmra.mxu0 %v4401_v23  ;;  %v4380_v23 = vmul.f32 1.442695, %v4356_v30  ;;  %v10358_v51 = vpop.f32.mrf.mxu1  ;;  %v3592_v29 = vpop.f32.mrf.mxu2 }
 0x3f5   :  { %11541 = vst [vmem:[#allocation35_spill] sm:$0xff] %v10358_v51 }
 0x3f6   :  { %6696 = vpow2.f32 %v4380_v23  ;;  %6294 = vmatmul.msk.f32.gmra.mxu3 %vm3332_vm12, %v3592_v29 }
 0x3f7   :  { %6698 = vpow2.f32 %v4382_v49 }
 0x3fc   :  { %4446 = vmatmul.f32.gmra.mxu0 %v4402_v27  ;;  %v3885_v27 = vpop.f32.mrf.mxu0  ;;  %v6697_v30 = vpop.eup %6696 }
 0x3fd   :  { %v4404_v51 = vmul.f32 %v6697_v30, %v11544_v25  ;;  %v10366_v22 = vpop.f32.mrf.mxu1  ;;  %6327 = vmatmul.msk.f32.gmra.mxu1 %vm3332_vm12, %v3885_v27  ;;  %v3595_v23 = vpop.f32.mrf.mxu2  ;;  %v4359_v30 = vmul.f32 -2.0, %v4343_v21  ;;  %v6375_v27 = vadd.f32 -3.0, %v9086_v54  ;;  %v6376_v21 = vadd.f32 -3.0, %v9388_v61 }
 0x3fe   :  { %11545 = vst [vmem:[#allocation17_spill] sm:$0xff] %v10366_v22  ;;  %6295 = vmatmul.msk.f32.gmra.mxu3 %vm3332_vm12, %v3595_v23  ;;  %v6699_v47 = vpop.eup %6698  ;;  %v11548_v23 = vld [vmem:[#allocation6_spill] sm:$0xff] }
 0x3ff   :  { %v4405_v29 = vmul.f32 %v6699_v47, %v11546_v0  ;;  %v4344_v22 = vmul.f32 %v6375_v27, %v6375_v27 }
 0x404   :  { %4449 = vmatmul.f32.gmra.mxu0 %v4403_v59  ;;  %v3888_v26 = vpop.f32.mrf.mxu0  ;;  %v4384_v59 = vmul.f32 1.442695, %v4358_v17 }
 0x405   :  { %6328 = vmatmul.msk.f32.gmra.mxu1 %vm3332_vm12, %v3888_v26  ;;  %v10374_v46 = vpop.f32.mrf.mxu1  ;;  %v3598_v49 = vpop.f32.mrf.mxu2  ;;  %v4360_v26 = vmul.f32 -2.0, %v4344_v22  ;;  %v6377_v22 = vadd.f32 -3.0, %v9686_v38 }
 0x406   :  { %6700 = vpow2.f32 %v4384_v59  ;;  %11547 = vst [vmem:[#allocation5_spill] sm:$0xff] %v10374_v46  ;;  %6296 = vmatmul.msk.f32.gmra.mxu3 %vm3332_vm12, %v3598_v49  ;;  %v4345_v46 = vmul.f32 %v6376_v21, %v6376_v21  ;;  %v81_v49 = vld [vmem:[%s11217_s3 + $0x78] sm:$0xff] }
 0x407   :  { %4537 = vmatpush.msra.mxu1 %v81_v49 }
 0x40c   :  { %4452 = vmatmul.f32.gmra.mxu0 %v4404_v51  ;;  %v4386_v51 = vmul.f32 1.442695, %v4359_v30  ;;  %v6701_v19 = vpop.eup %6700 }
 0x40d   :  { %v4406_v50 = vmul.f32 %v6701_v19, %v11548_v23  ;;  %v10380_v59 = vpop.f32.mrf.mxu1  ;;  %v4346_v19 = vmul.f32 %v6377_v22, %v6377_v22 }
 0x40e   :  { %6702 = vpow2.f32 %v4386_v51  ;;  %11549 = vst [vmem:[#allocation24_spill] sm:$0xff] %v10380_v59  ;;  %v4361_v51 = vmul.f32 -2.0, %v4345_v46  ;;  %v78_v46 = vld [vmem:[%s11217_s3 + $0x60] sm:$0xff] }
 0x414   :  { %4455 = vmatmul.f32.gmra.mxu0 %v4405_v29  ;;  %v4388_v29 = vmul.f32 1.442695, %v4360_v26  ;;  %v6703_v30 = vpop.eup %6702  ;;  %v79_v26 = vld [vmem:[%s11217_s3 + $0x68] sm:$0xff] }
 0x415   :  { %v4407_v27 = vmul.f32 %v6703_v30, %v9727_v24  ;;  %v10394_v21 = vpop.f32.mrf.mxu1  ;;  %v4362_v30 = vmul.f32 -2.0, %v4346_v19 }
 0x416   :  { %6704 = vpow2.f32 %v4388_v29  ;;  %11550 = vst [vmem:[#allocation32_spill] sm:$0xff] %v10394_v21 }
 0x417   :  { %v4392_v49 = vmul.f32 1.442695, %v4362_v30 }
 0x419   :  { %v3891_v17 = vpop.f32.mrf.mxu0 }
 0x41a   :  { %6329 = vmatmul.msk.f32.gmra.mxu1 %vm3332_vm12, %v3891_v17  ;;  %v4390_v17 = vmul.f32 1.442695, %v4361_v51 }
 0x41c   :  { %4458 = vmatmul.f32.gmra.mxu0 %v4406_v50  ;;  %v80_v50 = vld [vmem:[%s11217_s3 + $0x70] sm:$0xff]  ;;  %6706 = vpow2.f32 %v4390_v17  ;;  %v10408_v17 = vpop.f32.mrf.mxu3 }
 0x41d   :  { %4538 = vmatpush.msra.mxu1 %v80_v50  ;;  %v10402_v21 = vpop.f32.mrf.mxu1  ;;  %6708 = vpow2.f32 %v4392_v49  ;;  %11552 = vst [vmem:[#allocation12_spill] sm:$0xff] %v10408_v17  ;;  %v4913_v17 = vmul.f32 %v6428_v37, %v6428_v37 }
 0x41e   :  { %11551 = vst [vmem:[#allocation26_spill] sm:$0xff] %v10402_v21 }
 0x41f   :  { %v3601_v47 = vpop.f32.mrf.mxu2  ;;  %4539 = vmatpush.msra.mxu1 %v79_v26  ;;  %v77_v26 = vld [vmem:[%s11217_s3 + $0x58] sm:$0xff] }
 0x420   :  { %6297 = vmatmul.msk.f32.gmra.mxu3 %vm3332_vm12, %v3601_v47  ;;  %v6705_v47 = vpop.eup %6704  ;;  %4247 = vmatpush.msrb.mxu2 %v77_v26 }
 0x421   :  { %v4408_v29 = vmul.f32 %v6705_v47, %v9880_v56  ;;  %4540 = vmatpush.msra.mxu1 %v78_v46  ;;  %v6427_v47 = vadd.f32 -4.5, %v11519_v8 }
 0x422   :  { %v6707_v22 = vpop.eup %6706 }
 0x423   :  { %v4409_v50 = vmul.f32 %v6707_v22, %v10028_v5  ;;  %v4912_v46 = vmul.f32 %v6427_v47, %v6427_v47  ;;  %v6709_v30 = vpop.eup %6708 }
 0x424   :  { %4461 = vmatmul.f32.gmra.mxu0 %v4407_v27  ;;  %v6378_v27 = vadd.f32 -3.0, %v9844_v15 }
 0x425   :  { %v4928_v22 = vmul.f32 -2.0, %v4912_v46  ;;  %v10413_v49 = vpop.f32.mrf.mxu1 }
 0x426   :  { %v4347_v51 = vmul.f32 %v6378_v27, %v6378_v27  ;;  %v4410_v27 = vmul.f32 %v6709_v30, %v10111_v6  ;;  %11553 = vst [vmem:[#allocation27_spill] sm:$0xff] %v10413_v49  ;;  %v4929_v30 = vmul.f32 -2.0, %v4913_v17 }
 0x428   :  { %v4363_v59 = vmul.f32 -2.0, %v4347_v51  ;;  %v6332_v51 = vadd.f32 -2.25, %v11521_v58  ;;  %v4946_v37 = vmul.f32 1.442695, %v4929_v30  ;;  %v6333_v58 = vadd.f32 -2.25, %v11523_v31 }
 0x42a   :  { %v4394_v19 = vmul.f32 1.442695, %v4363_v59  ;;  %v10416_v59 = vpop.f32.mrf.mxu3  ;;  %v4043_v46 = vmul.f32 %v6332_v51, %v6332_v51 }
 0x42b   :  { %11554 = vst [vmem:[#allocation13_spill] sm:$0xff] %v10416_v59 }
 0x42c   :  { %4464 = vmatmul.f32.gmra.mxu0 %v4408_v29  ;;  %v6331_v29 = vadd.f32 -2.25, %v11519_v8  ;;  %6710 = vpow2.f32 %v4394_v19 }
 0x42d   :  { %v10421_v49 = vpop.f32.mrf.mxu1 }
 0x42e   :  { %v4042_v11 = vmul.f32 %v6331_v29, %v6331_v29  ;;  %11555 = vst [vmem:[#allocation28_spill] sm:$0xff] %v10421_v49 }
 0x430   :  { %v4058_v26 = vmul.f32 -2.0, %v4042_v11 }
 0x432   :  { %v6711_v47 = vpop.eup %6710  ;;  %v4074_v29 = vmul.f32 1.442695, %v4058_v26  ;;  %v10425_v51 = vpop.f32.mrf.mxu3 }
 0x433   :  { %v4411_v19 = vmul.f32 %v6711_v47, %v10231_v34  ;;  %11556 = vst [vmem:[#allocation14_spill] sm:$0xff] %v10425_v51  ;;  %v6334_v51 = vadd.f32 -2.25, %v11526_v12 }
 0x434   :  { %4467 = vmatmul.f32.gmra.mxu0 %v4409_v50  ;;  %v4944_v50 = vmul.f32 1.442695, %v4928_v22  ;;  %v4059_v22 = vmul.f32 -2.0, %v4043_v46  ;;  %v6430_v46 = vadd.f32 -4.5, %v11526_v12 }
 0x436   :  { %6712 = vpow2.f32 %v4944_v50  ;;  %v4076_v50 = vmul.f32 1.442695, %v4059_v22  ;;  %v4915_v49 = vmul.f32 %v6430_v46, %v6430_v46 }
 0x437   :  { %6714 = vpow2.f32 %v4074_v29 }
 0x438   :  { %6716 = vpow2.f32 %v4946_v37  ;;  %v76_v37 = vld [vmem:[%s11217_s3 + $0x50] sm:$0xff] }
 0x439   :  { %6718 = vpow2.f32 %v4076_v50  ;;  %v4931_v50 = vmul.f32 -2.0, %v4915_v49  ;;  %4248 = vmatpush.msrb.mxu2 %v76_v37  ;;  %v6432_v37 = vadd.f32 -4.5, %v11532_v10 }
 0x43c   :  { %4470 = vmatmul.f32.gmra.mxu0 %v4410_v27  ;;  %v6429_v27 = vadd.f32 -4.5, %v11523_v31 }
 0x43e   :  { %v4914_v59 = vmul.f32 %v6429_v27, %v6429_v27 }
 0x440   :  { %v4930_v26 = vmul.f32 -2.0, %v4914_v59  ;;  %v6431_v59 = vadd.f32 -4.5, %v11529_v4 }
 0x441   :  { %v3894_v21 = vpop.f32.mrf.mxu0 }
 0x442   :  { %6330 = vmatmul.msk.f32.gmra.mxu1 %vm3332_vm12, %v3894_v21  ;;  %v6713_v21 = vpop.eup %6712  ;;  %v4948_v27 = vmul.f32 1.442695, %v4930_v26  ;;  %v4045_v26 = vmul.f32 %v6334_v51, %v6334_v51 }
 0x443   :  { %v4976_v17 = vmul.f32 %v6713_v21, %v11525_v13  ;;  %v6715_v29 = vpop.eup %6714 }
 0x444   :  { %4473 = vmatmul.f32.gmra.mxu0 %v4411_v19  ;;  %v4044_v19 = vmul.f32 %v6333_v58, %v6333_v58  ;;  %v4106_v30 = vmul.f32 %v6715_v29, %v11525_v13  ;;  %v6717_v21 = vpop.eup %6716  ;;  %6720 = vpow2.f32 %v4948_v27  ;;  %v6335_v29 = vadd.f32 -2.25, %v11529_v4 }
 0x445   :  { %v4977_v58 = vmul.f32 %v6717_v21, %v11528_v52  ;;  %v4061_v21 = vmul.f32 -2.0, %v4045_v26  ;;  %v4916_v27 = vmul.f32 %v6431_v59, %v6431_v59  ;;  %v4917_v26 = vmul.f32 %v6432_v37, %v6432_v37 }
 0x447   :  { %v3604_v11 = vpop.f32.mrf.mxu2 }
 0x448   :  { %6298 = vmatmul.msk.f32.gmra.mxu3 %vm3332_vm12, %v3604_v11  ;;  %v4060_v11 = vmul.f32 -2.0, %v4044_v19  ;;  %v10441_v19 = vpop.f32.mrf.mxu3 }
 0x449   :  { %v4429_v47 = vpop.f32.mrf.mxu0 }
 0x44a   :  { %6379 = vmatmul.msk.f32.vlgmr.msra.gmra.mxu1 %vm3332_vm12, %v4429_v47  ;;  %v10432_v47 = vpop.f32.mrf.mxu1 }
 0x44c   :  { %5008 = vmatmul.f32.vlgmr.msrb.gmra.mxu0 %v4976_v17  ;;  %v4078_v17 = vmul.f32 1.442695, %v4060_v11  ;;  %v4046_v11 = vmul.f32 %v6335_v29, %v6335_v29 }
 0x44e   :  { %6722 = vpow2.f32 %v4078_v17  ;;  %v4062_v17 = vmul.f32 -2.0, %v4046_v11 }
 0x450   :  { %4138 = vmatmul.f32.vlgmr.msrb.gmra.mxu3 %v4106_v30  ;;  %v4950_v30 = vmul.f32 1.442695, %v4931_v50  ;;  %v10455_v59 = vpop.f32.mrf.mxu3 }
 0x451   :  { %v4432_v22 = vpop.f32.mrf.mxu0  ;;  %5282 = vmatpush.msrb.mxu3 %v10170_v43  ;;  %v6719_v43 = vpop.eup %6718 }
 0x452   :  { %6380 = vmatmul.msk.f32.gmra.mxu1 %vm3332_vm12, %v4432_v22  ;;  %v4107_v46 = vmul.f32 %v6719_v43, %v11528_v52  ;;  %v6721_v49 = vpop.eup %6720  ;;  %6724 = vpow2.f32 %v4950_v30  ;;  %v4080_v22 = vmul.f32 1.442695, %v4061_v21  ;;  %v6336_v43 = vadd.f32 -2.25, %v11532_v10 }
 0x453   :  { %5283 = vmatpush.msrb.mxu3 %v10178_v39  ;;  %v4978_v39 = vmul.f32 %v6721_v49, %v11531_v32  ;;  %v4933_v30 = vmul.f32 -2.0, %v4917_v26 }
 0x454   :  { %5011 = vmatmul.f32.gmra.mxu0 %v4977_v58  ;;  %v4932_v58 = vmul.f32 -2.0, %v4916_v27  ;;  %6726 = vpow2.f32 %v4080_v22  ;;  %v4047_v21 = vmul.f32 %v6336_v43, %v6336_v43  ;;  %v6433_v27 = vadd.f32 -4.5, %v11535_v42 }
 0x455   :  { %5284 = vmatpush.msrb.mxu3 %v10188_v45  ;;  %v10451_v45 = vpop.f32.mrf.mxu1 }
 0x456   :  { %v4952_v50 = vmul.f32 1.442695, %v4932_v58  ;;  %v4918_v22 = vmul.f32 %v6433_v27, %v6433_v27  ;;  %v6337_v58 = vadd.f32 -2.25, %v11535_v42  ;;  %v75_v27 = vld [vmem:[%s11217_s3 + $0x48] sm:$0xff] }
 0x457   :  { %5285 = vmatpush.msrb.mxu3 %v10196_v18  ;;  %v6723_v18 = vpop.eup %6722  ;;  %4249 = vmatpush.msrb.mxu2 %v75_v27 }
 0x458   :  { %4141 = vmatmul.f32.gmra.mxu3 %v4107_v46  ;;  %v6725_v46 = vpop.eup %6724  ;;  %6728 = vpow2.f32 %v4952_v50  ;;  %v10470_v11 = vpop.f32.mrf.mxu3  ;;  %v4048_v50 = vmul.f32 %v6337_v58, %v6337_v58 }
 0x459   :  { %v4435_v51 = vpop.f32.mrf.mxu0  ;;  %5286 = vmatpush.msrb.mxu3 %v10204_v3  ;;  %v4108_v3 = vmul.f32 %v6723_v18, %v11531_v32  ;;  %v6434_v18 = vadd.f32 -4.5, %v7887_v1 }
 0x45a   :  { %6381 = vmatmul.msk.f32.gmra.mxu1 %vm3332_vm12, %v4435_v51  ;;  %v4954_v51 = vmul.f32 1.442695, %v4933_v30 }
 0x45b   :  { %5287 = vmatpush.msrb.mxu3 %v10214_v20  ;;  %v4979_v20 = vmul.f32 %v6725_v46, %v11533_v53  ;;  %v4919_v43 = vmul.f32 %v6434_v18, %v6434_v18 }
 0x45c   :  { %5014 = vmatmul.f32.gmra.mxu0 %v4978_v39  ;;  %v4063_v39 = vmul.f32 -2.0, %v4047_v21 }
 0x45d   :  { %5288 = vmatpush.msrb.mxu3 %v10222_v62  ;;  %v4082_v62 = vmul.f32 1.442695, %v4062_v17  ;;  %v10466_v49 = vpop.f32.mrf.mxu1  ;;  %v4934_v17 = vmul.f32 -2.0, %v4918_v22  ;;  %v4935_v21 = vmul.f32 -2.0, %v4919_v43 }
 0x45f   :  { %5289 = vmatpush.msrb.mxu3 %v10228_v9  ;;  %v6727_v9 = vpop.eup %6726  ;;  %6730 = vpow2.f32 %v4082_v62  ;;  %v4956_v46 = vmul.f32 1.442695, %v4934_v17  ;;  %v4958_v22 = vmul.f32 1.442695, %v4935_v21  ;;  %v6340_v21 = vadd.f32 -2.25, %v11471_v60 }
 0x460   :  { %4144 = vmatmul.f32.gmra.mxu3 %v4108_v3  ;;  %6732 = vpow2.f32 %v4954_v51  ;;  %v4084_v3 = vmul.f32 1.442695, %v4063_v39  ;;  %v6435_v51 = vadd.f32 -4.5, %v11458_v63 }
 0x461   :  { %v4438_v29 = vpop.f32.mrf.mxu0  ;;  %5290 = vmatpush.msrb.mxu3 %v10237_v36  ;;  %v4109_v36 = vmul.f32 %v6727_v9, %v11533_v53 }
 0x462   :  { %6382 = vmatmul.msk.f32.gmra.mxu1 %vm3332_vm12, %v4438_v29  ;;  %6734 = vpow2.f32 %v4084_v3  ;;  %v4064_v29 = vmul.f32 -2.0, %v4048_v50  ;;  %v6436_v50 = vadd.f32 -4.5, %v11471_v60 }
 0x463   :  { %5291 = vmatpush.msrb.mxu3 %v10247_v57  ;;  %v6729_v57 = vpop.eup %6728  ;;  %6736 = vpow2.f32 %v4956_v46 }
 0x464   :  { %5017 = vmatmul.f32.gmra.mxu0 %v4979_v20  ;;  %v6338_v20 = vadd.f32 -2.25, %v7887_v1  ;;  %v4086_v9 = vmul.f32 1.442695, %v4064_v29 }
 0x465   :  { %5292 = vmatpush.msrb.mxu3 %v10255_v44  ;;  %v4980_v44 = vmul.f32 %v6729_v57, %v11536_v35  ;;  %v6731_v26 = vpop.eup %6730  ;;  %v4920_v57 = vmul.f32 %v6435_v51, %v6435_v51 }
 0x466   :  { %v6733_v62 = vpop.eup %6732  ;;  %6738 = vpow2.f32 %v4086_v9 }
 0x467   :  { %5293 = vmatpush.msrb.mxu3 %v10261_v55  ;;  %v10480_v55 = vpop.f32.mrf.mxu1  ;;  %6740 = vpow2.f32 %v4958_v22  ;;  %v4936_v43 = vmul.f32 -2.0, %v4920_v57  ;;  %v4051_v22 = vmul.f32 %v6340_v21, %v6340_v21 }
 0x468   :  { %4147 = vmatmul.f32.gmra.mxu3 %v4109_v36  ;;  %v4049_v36 = vmul.f32 %v6338_v20, %v6338_v20 }
 0x469   :  { %v4441_v37 = vpop.f32.mrf.mxu0  ;;  %5294 = vmatpush.msrb.mxu3 %v10268_v33  ;;  %v4110_v33 = vmul.f32 %v6731_v26, %v11536_v35 }
 0x46a   :  { %6383 = vmatmul.msk.f32.gmra.mxu1 %vm3332_vm12, %v4441_v37  ;;  %v4065_v58 = vmul.f32 -2.0, %v4049_v36  ;;  %v6339_v37 = vadd.f32 -2.25, %v11458_v63 }
 0x46b   :  { %5295 = vmatpush.msrb.mxu3 %v10277_v2  ;;  %v10485_v2 = vpop.f32.mrf.mxu3 }
 0x46c   :  { %5020 = vmatmul.f32.gmra.mxu0 %v4980_v44  ;;  %11557 = vst [vmem:[#allocation29_spill] sm:$0xff] %v10485_v2  ;;  %v4088_v26 = vmul.f32 1.442695, %v4065_v58  ;;  %v4050_v46 = vmul.f32 %v6339_v37, %v6339_v37  ;;  %v6437_v58 = vadd.f32 -4.5, %v11543_v16  ;;  %v6505_v2 = vadd.f32 -6.0, %v9686_v38 }
 0x46d   :  { %5296 = vmatpush.msrb.mxu3 %v10283_v40  ;;  %v4981_v40 = vmul.f32 %v6733_v62, %v11538_v14  ;;  %v4921_v62 = vmul.f32 %v6436_v50, %v6436_v50 }
 0x46e   :  { %6742 = vpow2.f32 %v4088_v26  ;;  %v4922_v50 = vmul.f32 %v6437_v58, %v6437_v58  ;;  %v6341_v26 = vadd.f32 -2.25, %v11543_v16 }
 0x46f   :  { %5297 = vmatpush.msrb.mxu3 %v10292_v41  ;;  %v6735_v41 = vpop.eup %6734  ;;  %v10495_v44 = vpop.f32.mrf.mxu1 }
 0x470   :  { %4150 = vmatmul.f32.gmra.mxu3 %v4110_v33  ;;  %v4111_v39 = vmul.f32 %v6735_v41, %v11538_v14  ;;  %11558 = vst [vmem:[#allocation15_spill] sm:$0xff] %v10495_v44  ;;  %v6737_v18 = vpop.eup %6736  ;;  %v4937_v41 = vmul.f32 -2.0, %v4921_v62  ;;  %v4938_v62 = vmul.f32 -2.0, %v4922_v50  ;;  %v74_v50 = vld [vmem:[%s11217_s3 + $0x40] sm:$0xff] }
 0x471   :  { %v4444_v30 = vpop.f32.mrf.mxu0  ;;  %v4982_v17 = vmul.f32 %v6737_v18, %v11540_v28  ;;  %v6739_v29 = vpop.eup %6738  ;;  %4250 = vmatpush.msrb.mxu2 %v74_v50 }
 0x472   :  { %6384 = vmatmul.msk.f32.gmra.mxu1 %vm3332_vm12, %v4444_v30  ;;  %v4112_v20 = vmul.f32 %v6739_v29, %v11540_v28  ;;  %v4960_v30 = vmul.f32 1.442695, %v4936_v43  ;;  %v6741_v27 = vpop.eup %6740 }
 0x473   :  { %v10500_v33 = vpop.f32.mrf.mxu3  ;;  %v4983_v51 = vmul.f32 %v6741_v27, %v11542_v48 }
 0x474   :  { %5023 = vmatmul.f32.gmra.mxu0 %v4981_v40  ;;  %11559 = vst [vmem:[#allocation16_spill] sm:$0xff] %v10500_v33  ;;  %v4066_v40 = vmul.f32 -2.0, %v4050_v46  ;;  %6744 = vpow2.f32 %v4960_v30  ;;  %v6743_v57 = vpop.eup %6742  ;;  %v4052_v30 = vmul.f32 %v6341_v26, %v6341_v26 }
 0x475   :  { %v4113_v18 = vmul.f32 %v6743_v57, %v11542_v48 }
 0x477   :  { %v10504_v36 = vpop.f32.mrf.mxu1 }
 0x478   :  { %4153 = vmatmul.f32.gmra.mxu3 %v4111_v39  ;;  %11560 = vst [vmem:[#allocation20_spill] sm:$0xff] %v10504_v36  ;;  %v4090_v39 = vmul.f32 1.442695, %v4066_v40  ;;  %v6438_v40 = vadd.f32 -4.5, %v11486_v7  ;;  %v6499_v36 = vadd.f32 -6.0, %v11458_v63 }
 0x479   :  { %v4447_v3 = vpop.f32.mrf.mxu0 }
 0x47a   :  { %6385 = vmatmul.msk.f32.gmra.mxu1 %vm3332_vm12, %v4447_v3  ;;  %v4962_v3 = vmul.f32 1.442695, %v4937_v41  ;;  %6746 = vpow2.f32 %v4090_v39  ;;  %v6745_v43 = vpop.eup %6744  ;;  %v4964_v39 = vmul.f32 1.442695, %v4938_v62  ;;  %v4923_v58 = vmul.f32 %v6438_v40, %v6438_v40 }
 0x47b   :  { %v10509_v37 = vpop.f32.mrf.mxu3  ;;  %v4984_v29 = vmul.f32 %v6745_v43, %v11544_v25 }
 0x47c   :  { %5026 = vmatmul.f32.gmra.mxu0 %v4982_v17  ;;  %11561 = vst [vmem:[#allocation21_spill] sm:$0xff] %v10509_v37  ;;  %v4067_v17 = vmul.f32 -2.0, %v4051_v22  ;;  %6748 = vpow2.f32 %v4962_v3  ;;  %v4068_v22 = vmul.f32 -2.0, %v4052_v30  ;;  %v4939_v43 = vmul.f32 -2.0, %v4923_v58 }
 0x47e   :  { %v4094_v26 = vmul.f32 1.442695, %v4068_v22  ;;  %v4966_v40 = vmul.f32 1.442695, %v4939_v43  ;;  %v6344_v43 = vadd.f32 -2.25, %v9388_v61 }
 0x47f   :  { %v10516_v21 = vpop.f32.mrf.mxu1 }
 0x480   :  { %4156 = vmatmul.f32.gmra.mxu3 %v4112_v20  ;;  %v4092_v20 = vmul.f32 1.442695, %v4067_v17  ;;  %11562 = vst [vmem:[#allocation25_spill] sm:$0xff] %v10516_v21  ;;  %v6747_v27 = vpop.eup %6746 }
 0x481   :  { %v4450_v9 = vpop.f32.mrf.mxu0 }
 0x482   :  { %6386 = vmatmul.msk.f32.gmra.mxu1 %vm3332_vm12, %v4450_v9  ;;  %v4114_v9 = vmul.f32 %v6747_v27, %v11544_v25  ;;  %6750 = vpow2.f32 %v4092_v20  ;;  %v6749_v57 = vpop.eup %6748 }
 0x483   :  { %v10520_v41 = vpop.f32.mrf.mxu3  ;;  %v4985_v3 = vmul.f32 %v6749_v57, %v11546_v0  ;;  %6752 = vpow2.f32 %v4964_v39 }
 0x484   :  { %5029 = vmatmul.f32.gmra.mxu0 %v4983_v51  ;;  %v6342_v51 = vadd.f32 -2.25, %v11486_v7  ;;  %11563 = vst [vmem:[#allocation22_spill] sm:$0xff] %v10520_v41  ;;  %6754 = vpow2.f32 %v4094_v26 }
 0x485   :  { %6756 = vpow2.f32 %v4966_v40 }
 0x486   :  { %v4053_v17 = vmul.f32 %v6342_v51, %v6342_v51 }
 0x487   :  { %v10528_v20 = vpop.f32.mrf.mxu1 }
 0x488   :  { %4159 = vmatmul.f32.gmra.mxu3 %v4113_v18  ;;  %11564 = vst [vmem:[#allocation23_spill] sm:$0xff] %v10528_v20  ;;  %v4069_v30 = vmul.f32 -2.0, %v4053_v17  ;;  %v6440_v17 = vadd.f32 -4.5, %v9388_v61 }
 0x489   :  { %v4453_v46 = vpop.f32.mrf.mxu0 }
 0x48a   :  { %6387 = vmatmul.msk.f32.gmra.mxu1 %vm3332_vm12, %v4453_v46  ;;  %v6439_v46 = vadd.f32 -4.5, %v9086_v54  ;;  %v4096_v57 = vmul.f32 1.442695, %v4069_v30 }
 0x48b   :  { %v10532_v22 = vpop.f32.mrf.mxu3 }
 0x48c   :  { %5032 = vmatmul.f32.gmra.mxu0 %v4984_v29  ;;  %v6751_v29 = vpop.eup %6750  ;;  %v4924_v27 = vmul.f32 %v6439_v46, %v6439_v46  ;;  %11565 = vst [vmem:[#allocation6_spill] sm:$0xff] %v10532_v22  ;;  %6758 = vpow2.f32 %v4096_v57 }
 0x48d   :  { %v4115_v62 = vmul.f32 %v6751_v29, %v11546_v0  ;;  %v6753_v51 = vpop.eup %6752 }
 0x48e   :  { %v4986_v58 = vmul.f32 %v6753_v51, %v11548_v23  ;;  %v6755_v50 = vpop.eup %6754 }
 0x48f   :  { %v4116_v26 = vmul.f32 %v6755_v50, %v11548_v23  ;;  %v10539_v22 = vpop.f32.mrf.mxu1  ;;  %v6757_v51 = vpop.eup %6756 }
 0x490   :  { %4162 = vmatmul.f32.gmra.mxu3 %v4114_v9  ;;  %v6343_v9 = vadd.f32 -2.25, %v9086_v54  ;;  %11566 = vst [vmem:[#allocation36_spill] sm:$0xff] %v10539_v22  ;;  %v4987_v40 = vmul.f32 %v6757_v51, %v9727_v24 }
 0x491   :  { %v4456_v18 = vpop.f32.mrf.mxu0 }
 0x492   :  { %6388 = vmatmul.msk.f32.gmra.mxu1 %vm3332_vm12, %v4456_v18  ;;  %v4940_v18 = vmul.f32 -2.0, %v4924_v27  ;;  %v4055_v27 = vmul.f32 %v6344_v43, %v6344_v43 }
 0x494   :  { %5035 = vmatmul.f32.gmra.mxu0 %v4985_v3  ;;  %v4054_v3 = vmul.f32 %v6343_v9, %v6343_v9  ;;  %v4968_v46 = vmul.f32 1.442695, %v4940_v18  ;;  %v89_v9 = vld [vmem:[%s11217_s3 + $0xb8] sm:$0xff]  ;;  %v6441_v18 = vadd.f32 -4.5, %v9686_v38 }
 0x495   :  { %5117 = vmatpush.msrb.mxu1 %v89_v9 }
 0x496   :  { %v4070_v29 = vmul.f32 -2.0, %v4054_v3  ;;  %6760 = vpow2.f32 %v4968_v46  ;;  %v88_v3 = vld [vmem:[%s11217_s3 + $0xb0] sm:$0xff]  ;;  %v4926_v51 = vmul.f32 %v6441_v18, %v6441_v18  ;;  %v6345_v46 = vadd.f32 -2.25, %v9686_v38 }
 0x497   :  { %5118 = vmatpush.msrb.mxu1 %v88_v3  ;;  %v10560_v9 = vpop.f32.mrf.mxu1  ;;  %v6442_v3 = vadd.f32 -4.5, %v9844_v15 }
 0x498   :  { %4165 = vmatmul.f32.gmra.mxu3 %v4115_v62  ;;  %v4925_v62 = vmul.f32 %v6440_v17, %v6440_v17  ;;  %v6759_v17 = vpop.eup %6758  ;;  %11568 = vst [vmem:[#allocation38_spill] sm:$0xff] %v10560_v9  ;;  %v4056_v18 = vmul.f32 %v6345_v46, %v6345_v46  ;;  %v6491_v46 = vadd.f32 -6.0, %v11519_v8 }
 0x499   :  { %v4459_v39 = vpop.f32.mrf.mxu0  ;;  %v4117_v50 = vmul.f32 %v6759_v17, %v9727_v24  ;;  %v4927_v22 = vmul.f32 %v6442_v3, %v6442_v3  ;;  %v6395_v3 = vadd.f32 -3.75, %v11519_v8 }
 0x49a   :  { %6389 = vmatmul.msk.f32.gmra.mxu1 %vm3332_vm12, %v4459_v39  ;;  %v10546_v39 = vpop.f32.mrf.mxu3  ;;  %v4941_v57 = vmul.f32 -2.0, %v4925_v62  ;;  %v4072_v9 = vmul.f32 -2.0, %v4056_v18 }
 0x49b   :  { %11567 = vst [vmem:[#allocation37_spill] sm:$0xff] %v10546_v39 }
 0x49c   :  { %5038 = vmatmul.f32.gmra.mxu0 %v4986_v58  ;;  %v4098_v58 = vmul.f32 1.442695, %v4070_v29  ;;  %v4970_v43 = vmul.f32 1.442695, %v4941_v57  ;;  %v87_v29 = vld [vmem:[%s11217_s3 + $0xa8] sm:$0xff]  ;;  %v6761_v62 = vpop.eup %6760  ;;  %v4942_v57 = vmul.f32 -2.0, %v4926_v51 }
 0x49d   :  { %5119 = vmatpush.msrb.mxu1 %v87_v29 }
 0x49e   :  { %6762 = vpow2.f32 %v4098_v58  ;;  %v4972_v39 = vmul.f32 1.442695, %v4942_v57  ;;  %v85_v57 = vld [vmem:[%s11217_s3 + $0x98] sm:$0xff] }
 0x49f   :  { %6764 = vpow2.f32 %v4970_v43  ;;  %4827 = vmatpush.msra.mxu2 %v85_v57 }
 0x4a0   :  { %4168 = vmatmul.f32.gmra.mxu3 %v4116_v26  ;;  %v4071_v26 = vmul.f32 -2.0, %v4055_v27  ;;  %v4988_v27 = vmul.f32 %v6761_v62, %v9880_v56  ;;  %v4102_v62 = vmul.f32 1.442695, %v4072_v9 }
 0x4a1   :  { %v4462_v30 = vpop.f32.mrf.mxu0 }
 0x4a2   :  { %6390 = vmatmul.msk.f32.gmra.mxu1 %vm3332_vm12, %v4462_v30  ;;  %v4100_v58 = vmul.f32 1.442695, %v4071_v26 }
 0x4a4   :  { %5041 = vmatmul.f32.gmra.mxu0 %v4987_v40  ;;  %v86_v40 = vld [vmem:[%s11217_s3 + $0xa0] sm:$0xff]  ;;  %v6763_v17 = vpop.eup %6762  ;;  %6766 = vpow2.f32 %v4100_v58  ;;  %v10572_v58 = vpop.f32.mrf.mxu1 }
 0x4a5   :  { %5120 = vmatpush.msrb.mxu1 %v86_v40  ;;  %v4118_v29 = vmul.f32 %v6763_v17, %v9880_v56  ;;  %v6765_v26 = vpop.eup %6764  ;;  %6768 = vpow2.f32 %v4972_v39  ;;  %v4943_v40 = vmul.f32 -2.0, %v4927_v22  ;;  %11570 = vst [vmem:[#allocation40_spill] sm:$0xff] %v10572_v58  ;;  %v5492_v22 = vmul.f32 %v6491_v46, %v6491_v46 }
 0x4a6   :  { %v4989_v51 = vmul.f32 %v6765_v26, %v10028_v5  ;;  %6770 = vpow2.f32 %v4102_v62 }
 0x4a7   :  { %v4974_v39 = vmul.f32 1.442695, %v4943_v40  ;;  %v5508_v58 = vmul.f32 -2.0, %v5492_v22  ;;  %v6493_v22 = vadd.f32 -6.0, %v11523_v31 }
 0x4a8   :  { %4171 = vmatmul.f32.gmra.mxu3 %v4117_v50  ;;  %v10565_v50 = vpop.f32.mrf.mxu3 }
 0x4a9   :  { %v4465_v30 = vpop.f32.mrf.mxu0  ;;  %11569 = vst [vmem:[#allocation39_spill] sm:$0xff] %v10565_v50  ;;  %6772 = vpow2.f32 %v4974_v39  ;;  %v5524_v40 = vmul.f32 1.442695, %v5508_v58 }
 0x4aa   :  { %6391 = vmatmul.msk.f32.gmra.mxu1 %vm3332_vm12, %v4465_v30  ;;  %v6346_v30 = vadd.f32 -2.25, %v9844_v15  ;;  %v6767_v17 = vpop.eup %6766 }
 0x4ab   :  { %v4119_v18 = vmul.f32 %v6767_v17, %v10028_v5  ;;  %v11572_v17 = vld [vmem:[#allocation9_spill] sm:$0xff] }
 0x4ac   :  { %5044 = vmatmul.f32.gmra.mxu0 %v4988_v27  ;;  %v4057_v27 = vmul.f32 %v6346_v30, %v6346_v30  ;;  %v6769_v30 = vpop.eup %6768  ;;  %v6492_v50 = vadd.f32 -6.0, %v11572_v17 }
 0x4ad   :  { %v6771_v20 = vpop.eup %6770 }
 0x4ae   :  { %v4073_v9 = vmul.f32 -2.0, %v4057_v27  ;;  %v4120_v62 = vmul.f32 %v6771_v20, %v10111_v6  ;;  %v5493_v27 = vmul.f32 %v6492_v50, %v6492_v50 }
 0x4b0   :  { %4174 = vmatmul.f32.gmra.mxu3 %v4118_v29  ;;  %v10579_v29 = vpop.f32.mrf.mxu3  ;;  %v4104_v57 = vmul.f32 1.442695, %v4073_v9  ;;  %v5509_v20 = vmul.f32 -2.0, %v5493_v27 }
 0x4b1   :  { %v4468_v43 = vpop.f32.mrf.mxu0  ;;  %11571 = vst [vmem:[#allocation41_spill] sm:$0xff] %v10579_v29  ;;  %v10584_v29 = vpop.f32.mrf.mxu1 }
 0x4b2   :  { %6392 = vmatmul.msk.f32.gmra.mxu1 %vm3332_vm12, %v4468_v43  ;;  %v4990_v43 = vmul.f32 %v6769_v30, %v10111_v6  ;;  %11573 = vst [vmem:[#allocation9_spill] sm:$0xff] %v10584_v29  ;;  %6774 = vpow2.f32 %v4104_v57  ;;  %v6773_v30 = vpop.eup %6772  ;;  %v5526_v57 = vmul.f32 1.442695, %v5509_v20 }
 0x4b3   :  { %v4991_v9 = vmul.f32 %v6773_v30, %v10231_v34  ;;  %6776 = vpow2.f32 %v5524_v40 }
 0x4b4   :  { %5047 = vmatmul.f32.gmra.mxu0 %v4989_v51  ;;  %v4622_v51 = vmul.f32 %v6395_v3, %v6395_v3 }
 0x4b6   :  { %v4638_v46 = vmul.f32 -2.0, %v4622_v51  ;;  %v5494_v51 = vmul.f32 %v6493_v22, %v6493_v22  ;;  %v6494_v22 = vadd.f32 -6.0, %v11526_v12 }
 0x4b8   :  { %4177 = vmatmul.f32.gmra.mxu3 %v4119_v18  ;;  %v6396_v18 = vadd.f32 -3.75, %v11572_v17  ;;  %v10588_v39 = vpop.f32.mrf.mxu3  ;;  %v6775_v58 = vpop.eup %6774  ;;  %v5510_v40 = vmul.f32 -2.0, %v5494_v51 }
 0x4b9   :  { %v4471_v26 = vpop.f32.mrf.mxu0  ;;  %11574 = vst [vmem:[#allocation42_spill] sm:$0xff] %v10588_v39  ;;  %v4121_v50 = vmul.f32 %v6775_v58, %v10231_v34  ;;  %v6397_v39 = vadd.f32 -3.75, %v11523_v31  ;;  %v10595_v29 = vpop.f32.mrf.mxu1 }
 0x4ba   :  { %6393 = vmatmul.msk.f32.gmra.mxu1 %vm3332_vm12, %v4471_v26  ;;  %v4654_v26 = vmul.f32 1.442695, %v4638_v46  ;;  %11575 = vst [vmem:[#allocation43_spill] sm:$0xff] %v10595_v29  ;;  %v6777_v30 = vpop.eup %6776 }
 0x4bb   :  { %v5556_v46 = vmul.f32 %v6777_v30, %v11525_v13 }
 0x4bc   :  { %5050 = vmatmul.f32.gmra.mxu0 %v4990_v43  ;;  %v4623_v43 = vmul.f32 %v6396_v18, %v6396_v18  ;;  %6778 = vpow2.f32 %v4654_v26 }
 0x4bd   :  { %6780 = vpow2.f32 %v5526_v57 }
 0x4c0   :  { %4180 = vmatmul.f32.gmra.mxu3 %v4120_v62  ;;  %v4639_v62 = vmul.f32 -2.0, %v4623_v43  ;;  %v5528_v43 = vmul.f32 1.442695, %v5510_v40  ;;  %v6495_v40 = vadd.f32 -6.0, %v11529_v4 }
 0x4c1   :  { %v4474_v3 = vpop.f32.mrf.mxu0  ;;  %v10604_v29 = vpop.f32.mrf.mxu1 }
 0x4c2   :  { %6394 = vmatmul.msk.f32.gmra.mxu1 %vm3332_vm12, %v4474_v3  ;;  %v4656_v18 = vmul.f32 1.442695, %v4639_v62  ;;  %v6779_v26 = vpop.eup %6778 }
 0x4c3   :  { %v4686_v20 = vmul.f32 %v6779_v26, %v11525_v13  ;;  %v6781_v30 = vpop.eup %6780 }
 0x4c4   :  { %5053 = vmatmul.f32.gmra.mxu0 %v4991_v9  ;;  %v4624_v9 = vmul.f32 %v6397_v39, %v6397_v39  ;;  %6782 = vpow2.f32 %v4656_v18  ;;  %v5557_v39 = vmul.f32 %v6781_v30, %v11528_v52  ;;  %v84_v18 = vld [vmem:[%s11217_s3 + $0x90] sm:$0xff] }
 0x4c5   :  { %6784 = vpow2.f32 %v5528_v43  ;;  %4828 = vmatpush.msra.mxu2 %v84_v18 }
 0x4c6   :  { %v4640_v58 = vmul.f32 -2.0, %v4624_v9 }
 0x4c8   :  { %4183 = vmatmul.f32.gmra.mxu3 %v4121_v50  ;;  %v5495_v50 = vmul.f32 %v6494_v22, %v6494_v22  ;;  %v4658_v62 = vmul.f32 1.442695, %v4640_v58 }
 0x4c9   :  { %v5009_v3 = vpop.f32.mrf.mxu0  ;;  %v10618_v21 = vpop.f32.mrf.mxu1 }
 0x4ca   :  { %6443 = vmatmul.msk.f32.vlgmr.msrb.gmra.mxu1 %vm3332_vm12, %v5009_v3  ;;  %v6398_v3 = vadd.f32 -3.75, %v11526_v12  ;;  %v6783_v9 = vpop.eup %6782  ;;  %6786 = vpow2.f32 %v4658_v62 }
 0x4cb   :  { %v10599_v27 = vpop.f32.mrf.mxu3  ;;  %v4687_v22 = vmul.f32 %v6783_v9, %v11528_v52 }
 0x4cc   :  { %5588 = vmatmul.f32.vlgmr.msra.gmra.mxu0 %v5556_v46  ;;  %v5511_v46 = vmul.f32 -2.0, %v5495_v50  ;;  %v4625_v26 = vmul.f32 %v6398_v3, %v6398_v3  ;;  %v5496_v50 = vmul.f32 %v6495_v40, %v6495_v40  ;;  %v6785_v3 = vpop.eup %6784 }
 0x4ce   :  { %v5530_v43 = vmul.f32 1.442695, %v5511_v46  ;;  %v4641_v58 = vmul.f32 -2.0, %v4625_v26  ;;  %v5512_v41 = vmul.f32 -2.0, %v5496_v50 }
 0x4d0   :  { %4718 = vmatmul.f32.vlgmr.msra.gmra.mxu3 %v4686_v20  ;;  %v6399_v20 = vadd.f32 -3.75, %v11529_v4  ;;  %6788 = vpow2.f32 %v5530_v43  ;;  %v4660_v18 = vmul.f32 1.442695, %v4641_v58  ;;  %v6787_v62 = vpop.eup %6786  ;;  %v5532_v40 = vmul.f32 1.442695, %v5512_v41 }
 0x4d1   :  { %v5012_v51 = vpop.f32.mrf.mxu0  ;;  %v4688_v46 = vmul.f32 %v6787_v62, %v11531_v32  ;;  %v6497_v62 = vadd.f32 -6.0, %v11535_v42 }
 0x4d2   :  { %6444 = vmatmul.msk.f32.gmra.mxu1 %vm3332_vm12, %v5012_v51  ;;  %v5558_v51 = vmul.f32 %v6785_v3, %v11531_v32  ;;  %v4626_v9 = vmul.f32 %v6399_v20, %v6399_v20  ;;  %6790 = vpow2.f32 %v4660_v18  ;;  %v6400_v3 = vadd.f32 -3.75, %v11532_v10 }
 0x4d3   :  { %v4139_v57 = vpop.f32.mrf.mxu3  ;;  %6792 = vpow2.f32 %v5532_v40 }
 0x4d4   :  { %6347 = vmatmul.msk.f32.vlgmr.msrb.gmra.mxu2 %vm3332_vm12, %v4139_v57  ;;  %5591 = vmatmul.f32.gmra.mxu0 %v5557_v39  ;;  %v6496_v39 = vadd.f32 -6.0, %v11532_v10 }
 0x4d6   :  { %v5497_v26 = vmul.f32 %v6496_v39, %v6496_v39  ;;  %v10627_v39 = vpop.f32.mrf.mxu1 }
 0x4d8   :  { %4721 = vmatmul.f32.gmra.mxu3 %v4687_v22  ;;  %v4642_v22 = vmul.f32 -2.0, %v4626_v9  ;;  %v5513_v58 = vmul.f32 -2.0, %v5497_v26  ;;  %v6401_v26 = vadd.f32 -3.75, %v11535_v42 }
 0x4d9   :  { %v5015_v30 = vpop.f32.mrf.mxu0 }
 0x4da   :  { %6445 = vmatmul.msk.f32.gmra.mxu1 %vm3332_vm12, %v5015_v30  ;;  %v6789_v30 = vpop.eup %6788  ;;  %v5534_v9 = vmul.f32 1.442695, %v5513_v58  ;;  %v4628_v37 = vmul.f32 %v6401_v26, %v6401_v26 }
 0x4db   :  { %v4142_v57 = vpop.f32.mrf.mxu3  ;;  %v5559_v20 = vmul.f32 %v6789_v30, %v11533_v53  ;;  %v6791_v41 = vpop.eup %6790 }
 0x4dc   :  { %6348 = vmatmul.msk.f32.gmra.mxu2 %vm3332_vm12, %v4142_v57  ;;  %5594 = vmatmul.f32.gmra.mxu0 %v5558_v51  ;;  %v4662_v51 = vmul.f32 1.442695, %v4642_v22  ;;  %v4627_v57 = vmul.f32 %v6400_v3, %v6400_v3  ;;  %v4689_v18 = vmul.f32 %v6791_v41, %v11533_v53  ;;  %v6793_v40 = vpop.eup %6792  ;;  %v6498_v41 = vadd.f32 -6.0, %v7887_v1 }
 0x4dd   :  { %v5560_v3 = vmul.f32 %v6793_v40, %v11536_v35 }
 0x4de   :  { %6794 = vpow2.f32 %v4662_v51 }
 0x4df   :  { %6796 = vpow2.f32 %v5534_v9  ;;  %v10637_v9 = vpop.f32.mrf.mxu1 }
 0x4e0   :  { %4724 = vmatmul.f32.gmra.mxu3 %v4688_v46  ;;  %v4643_v46 = vmul.f32 -2.0, %v4627_v57  ;;  %v6402_v57 = vadd.f32 -3.75, %v7887_v1 }
 0x4e1   :  { %v5018_v43 = vpop.f32.mrf.mxu0 }
 0x4e2   :  { %6446 = vmatmul.msk.f32.gmra.mxu1 %vm3332_vm12, %v5018_v43  ;;  %v5498_v43 = vmul.f32 %v6497_v62, %v6497_v62  ;;  %v4629_v26 = vmul.f32 %v6402_v57, %v6402_v57  ;;  %v5500_v57 = vmul.f32 %v6499_v36, %v6499_v36 }
 0x4e3   :  { %v4145_v50 = vpop.f32.mrf.mxu3 }
 0x4e4   :  { %6349 = vmatmul.msk.f32.gmra.mxu2 %vm3332_vm12, %v4145_v50  ;;  %5597 = vmatmul.f32.gmra.mxu0 %v5559_v20  ;;  %v4664_v20 = vmul.f32 1.442695, %v4643_v46  ;;  %v5514_v50 = vmul.f32 -2.0, %v5498_v43  ;;  %v6795_v58 = vpop.eup %6794 }
 0x4e5   :  { %v4690_v51 = vmul.f32 %v6795_v58, %v11536_v35  ;;  %v6797_v40 = vpop.eup %6796 }
 0x4e6   :  { %6798 = vpow2.f32 %v4664_v20  ;;  %v5536_v62 = vmul.f32 1.442695, %v5514_v50  ;;  %v5561_v43 = vmul.f32 %v6797_v40, %v11538_v14 }
 0x4e7   :  { %v10648_v40 = vpop.f32.mrf.mxu1 }
 0x4e8   :  { %4727 = vmatmul.f32.gmra.mxu3 %v4689_v18  ;;  %v4644_v18 = vmul.f32 -2.0, %v4628_v37  ;;  %6800 = vpow2.f32 %v5536_v62  ;;  %v83_v37 = vld [vmem:[%s11217_s3 + $0x88] sm:$0xff]  ;;  %v6403_v62 = vadd.f32 -3.75, %v11458_v63 }
 0x4e9   :  { %v5021_v22 = vpop.f32.mrf.mxu0  ;;  %4829 = vmatpush.msra.mxu2 %v83_v37  ;;  %v5516_v37 = vmul.f32 -2.0, %v5500_v57 }
 0x4ea   :  { %6447 = vmatmul.msk.f32.gmra.mxu1 %vm3332_vm12, %v5021_v22  ;;  %v5499_v22 = vmul.f32 %v6498_v41, %v6498_v41  ;;  %v4645_v41 = vmul.f32 -2.0, %v4629_v26  ;;  %v6500_v26 = vadd.f32 -6.0, %v11471_v60 }
 0x4eb   :  { %v4148_v30 = vpop.f32.mrf.mxu3 }
 0x4ec   :  { %6350 = vmatmul.msk.f32.gmra.mxu2 %vm3332_vm12, %v4148_v30  ;;  %5600 = vmatmul.f32.gmra.mxu0 %v5560_v3  ;;  %v4666_v30 = vmul.f32 1.442695, %v4644_v18  ;;  %v5515_v58 = vmul.f32 -2.0, %v5499_v22  ;;  %v6799_v20 = vpop.eup %6798  ;;  %v5501_v33 = vmul.f32 %v6500_v26, %v6500_v26 }
 0x4ed   :  { %v4691_v50 = vmul.f32 %v6799_v20, %v11538_v14  ;;  %v4630_v20 = vmul.f32 %v6403_v62, %v6403_v62 }
 0x4ee   :  { %6802 = vpow2.f32 %v4666_v30  ;;  %v6801_v18 = vpop.eup %6800 }
 0x4ef   :  { %v10659_v44 = vpop.f32.mrf.mxu1 }
 0x4f0   :  { %4730 = vmatmul.f32.gmra.mxu3 %v4690_v51  ;;  %v5538_v51 = vmul.f32 1.442695, %v5515_v58  ;;  %v6404_v58 = vadd.f32 -3.75, %v11471_v60 }
 0x4f1   :  { %v5024_v46 = vpop.f32.mrf.mxu0 }
 0x4f2   :  { %6448 = vmatmul.msk.f32.gmra.mxu1 %vm3332_vm12, %v5024_v46  ;;  %v5562_v46 = vmul.f32 %v6801_v18, %v11540_v28  ;;  %6804 = vpow2.f32 %v5538_v51  ;;  %v4631_v57 = vmul.f32 %v6404_v58, %v6404_v58  ;;  %v6405_v58 = vadd.f32 -3.75, %v11543_v16 }
 0x4f3   :  { %v4151_v3 = vpop.f32.mrf.mxu3 }
 0x4f4   :  { %6351 = vmatmul.msk.f32.gmra.mxu2 %vm3332_vm12, %v4151_v3  ;;  %5603 = vmatmul.f32.gmra.mxu0 %v5561_v43  ;;  %v4668_v43 = vmul.f32 1.442695, %v4645_v41  ;;  %v6803_v36 = vpop.eup %6802 }
 0x4f5   :  { %v4692_v30 = vmul.f32 %v6803_v36, %v11540_v28  ;;  %v6501_v36 = vadd.f32 -6.0, %v11543_v16 }
 0x4f6   :  { %6806 = vpow2.f32 %v4668_v43 }
 0x4f8   :  { %4733 = vmatmul.f32.gmra.mxu3 %v4691_v50  ;;  %v5540_v50 = vmul.f32 1.442695, %v5516_v37  ;;  %v6805_v41 = vpop.eup %6804 }
 0x4f9   :  { %v5027_v22 = vpop.f32.mrf.mxu0  ;;  %v5563_v51 = vmul.f32 %v6805_v41, %v11542_v48 }
 0x4fa   :  { %6449 = vmatmul.msk.f32.gmra.mxu1 %vm3332_vm12, %v5027_v22  ;;  %v4646_v22 = vmul.f32 -2.0, %v4630_v20  ;;  %6808 = vpow2.f32 %v5540_v50  ;;  %v4647_v20 = vmul.f32 -2.0, %v4631_v57 }
 0x4fb   :  { %v4154_v3 = vpop.f32.mrf.mxu3 }
 0x4fc   :  { %6352 = vmatmul.msk.f32.gmra.mxu2 %vm3332_vm12, %v4154_v3  ;;  %5606 = vmatmul.f32.gmra.mxu0 %v5562_v46  ;;  %v4670_v46 = vmul.f32 1.442695, %v4646_v22  ;;  %v5517_v3 = vmul.f32 -2.0, %v5501_v33  ;;  %v6807_v43 = vpop.eup %6806  ;;  %v4672_v41 = vmul.f32 1.442695, %v4647_v20 }
 0x4fd   :  { %v4693_v37 = vmul.f32 %v6807_v43, %v11542_v48  ;;  %v6502_v43 = vadd.f32 -6.0, %v11486_v7 }
 0x4fe   :  { %6810 = vpow2.f32 %v4670_v46  ;;  %v5542_v26 = vmul.f32 1.442695, %v5517_v3  ;;  %v10668_v46 = vpop.f32.mrf.mxu1 }
 0x4ff   :  { %11576 = vst [vmem:[#allocation44_spill] sm:$0xff] %v10668_v46  ;;  %v5503_v20 = vmul.f32 %v6502_v43, %v6502_v43 }
 0x500   :  { %4736 = vmatmul.f32.gmra.mxu3 %v4692_v30  ;;  %v5502_v30 = vmul.f32 %v6501_v36, %v6501_v36  ;;  %v6809_v50 = vpop.eup %6808  ;;  %6812 = vpow2.f32 %v5542_v26  ;;  %v6406_v36 = vadd.f32 -3.75, %v11486_v7 }
 0x501   :  { %v5030_v18 = vpop.f32.mrf.mxu0  ;;  %v5564_v33 = vmul.f32 %v6809_v50, %v11544_v25  ;;  %6814 = vpow2.f32 %v4672_v41  ;;  %v5519_v46 = vmul.f32 -2.0, %v5503_v20  ;;  %v82_v41 = vld [vmem:[%s11217_s3 + $0x80] sm:$0xff] }
 0x502   :  { %6450 = vmatmul.msk.f32.gmra.mxu1 %vm3332_vm12, %v5030_v18  ;;  %4830 = vmatpush.msra.mxu2 %v82_v41 }
 0x503   :  { %v4157_v62 = vpop.f32.mrf.mxu3 }
 0x504   :  { %6353 = vmatmul.msk.f32.gmra.mxu2 %vm3332_vm12, %v4157_v62  ;;  %5609 = vmatmul.f32.gmra.mxu0 %v5563_v51  ;;  %v5518_v51 = vmul.f32 -2.0, %v5502_v30  ;;  %v4632_v62 = vmul.f32 %v6405_v58, %v6405_v58  ;;  %v6811_v57 = vpop.eup %6810 }
 0x505   :  { %v4694_v3 = vmul.f32 %v6811_v57, %v11544_v25  ;;  %v6503_v57 = vadd.f32 -6.0, %v9086_v54 }
 0x506   :  { %v4648_v50 = vmul.f32 -2.0, %v4632_v62  ;;  %v6813_v26 = vpop.eup %6812 }
 0x507   :  { %v5565_v58 = vmul.f32 %v6813_v26, %v11546_v0 }
 0x508   :  { %4739 = vmatmul.f32.gmra.mxu3 %v4693_v37  ;;  %v5544_v37 = vmul.f32 1.442695, %v5518_v51  ;;  %v6815_v51 = vpop.eup %6814 }
 0x509   :  { %v5033_v22 = vpop.f32.mrf.mxu0  ;;  %v4695_v62 = vmul.f32 %v6815_v51, %v11546_v0 }
 0x50a   :  { %6451 = vmatmul.msk.f32.gmra.mxu1 %vm3332_vm12, %v5033_v22  ;;  %v4633_v22 = vmul.f32 %v6406_v36, %v6406_v36  ;;  %6816 = vpow2.f32 %v5544_v37  ;;  %v5504_v36 = vmul.f32 %v6503_v57, %v6503_v57  ;;  %v6407_v37 = vadd.f32 -3.75, %v9086_v54 }
 0x50b   :  { %v4160_v18 = vpop.f32.mrf.mxu3  ;;  %v6408_v57 = vadd.f32 -3.75, %v9388_v61 }
 0x50c   :  { %6354 = vmatmul.msk.f32.gmra.mxu2 %vm3332_vm12, %v4160_v18  ;;  %5612 = vmatmul.f32.gmra.mxu0 %v5564_v33  ;;  %v4674_v18 = vmul.f32 1.442695, %v4648_v50  ;;  %v4649_v43 = vmul.f32 -2.0, %v4633_v22  ;;  %v10681_v50 = vpop.f32.mrf.mxu1  ;;  %v5520_v41 = vmul.f32 -2.0, %v5504_v36  ;;  %v4634_v51 = vmul.f32 %v6407_v37, %v6407_v37 }
 0x50d   :  { %11577 = vst [vmem:[#allocation45_spill] sm:$0xff] %v10681_v50  ;;  %v6504_v22 = vadd.f32 -6.0, %v9388_v61  ;;  %v4635_v37 = vmul.f32 %v6408_v57, %v6408_v57  ;;  %v5506_v57 = vmul.f32 %v6505_v2, %v6505_v2 }
 0x50e   :  { %6818 = vpow2.f32 %v4674_v18 }
 0x50f   :  { %v5505_v50 = vmul.f32 %v6504_v22, %v6504_v22 }
 0x510   :  { %4742 = vmatmul.f32.gmra.mxu3 %v4694_v3  ;;  %v5546_v3 = vmul.f32 1.442695, %v5519_v46  ;;  %v6817_v20 = vpop.eup %6816 }
 0x511   :  { %v5036_v30 = vpop.f32.mrf.mxu0 }
 0x512   :  { %6452 = vmatmul.msk.f32.gmra.mxu1 %vm3332_vm12, %v5036_v30  ;;  %v5566_v30 = vmul.f32 %v6817_v20, %v11548_v23  ;;  %6820 = vpow2.f32 %v5546_v3 }
 0x513   :  { %v4163_v33 = vpop.f32.mrf.mxu3 }
 0x514   :  { %6355 = vmatmul.msk.f32.gmra.mxu2 %vm3332_vm12, %v4163_v33  ;;  %5615 = vmatmul.f32.gmra.mxu0 %v5565_v58  ;;  %v4676_v58 = vmul.f32 1.442695, %v4649_v43  ;;  %v6819_v46 = vpop.eup %6818  ;;  %v10689_v3 = vpop.f32.mrf.mxu1 }
 0x515   :  { %v4696_v18 = vmul.f32 %v6819_v46, %v11548_v23  ;;  %11578 = vst [vmem:[#allocation46_spill] sm:$0xff] %v10689_v3  ;;  %v5521_v46 = vmul.f32 -2.0, %v5505_v50 }
 0x516   :  { %6822 = vpow2.f32 %v4676_v58  ;;  %v97_v58 = vld [vmem:[%s11217_s3 + $0xf8] sm:$0xff] }
 0x517   :  { %5697 = vmatpush.msra.mxu1 %v97_v58  ;;  %v5550_v50 = vmul.f32 1.442695, %v5521_v46  ;;  %v6506_v58 = vadd.f32 -6.0, %v9844_v15 }
 0x518   :  { %4745 = vmatmul.f32.gmra.mxu3 %v4695_v62  ;;  %v5548_v62 = vmul.f32 1.442695, %v5520_v41  ;;  %v6821_v43 = vpop.eup %6820  ;;  %v96_v41 = vld [vmem:[%s11217_s3 + $0xf0] sm:$0xff] }
 0x519   :  { %v5039_v26 = vpop.f32.mrf.mxu0  ;;  %v5567_v36 = vmul.f32 %v6821_v43, %v9727_v24  ;;  %5698 = vmatpush.msra.mxu1 %v96_v41 }
 0x51a   :  { %6453 = vmatmul.msk.f32.gmra.mxu1 %vm3332_vm12, %v5039_v26  ;;  %v4650_v26 = vmul.f32 -2.0, %v4634_v51  ;;  %6824 = vpow2.f32 %v5548_v62  ;;  %v6409_v62 = vadd.f32 -3.75, %v9686_v38 }
 0x51b   :  { %v4166_v33 = vpop.f32.mrf.mxu3 }
 0x51c   :  { %6356 = vmatmul.msk.f32.gmra.mxu2 %vm3332_vm12, %v4166_v33  ;;  %5618 = vmatmul.f32.gmra.mxu0 %v5566_v30  ;;  %v4678_v33 = vmul.f32 1.442695, %v4650_v26  ;;  %v6823_v51 = vpop.eup %6822  ;;  %v95_v26 = vld [vmem:[%s11217_s3 + $0xe8] sm:$0xff]  ;;  %v4636_v46 = vmul.f32 %v6409_v62, %v6409_v62  ;;  %v10712_v41 = vpop.f32.mrf.mxu1 }
 0x51d   :  { %v4697_v22 = vmul.f32 %v6823_v51, %v9727_v24  ;;  %5699 = vmatpush.msra.mxu1 %v95_v26  ;;  %11579 = vst [vmem:[#allocation47_spill] sm:$0xff] %v10712_v41 }
 0x51e   :  { %6826 = vpow2.f32 %v4678_v33  ;;  %v5522_v33 = vmul.f32 -2.0, %v5506_v57 }
 0x51f   :  { %6828 = vpow2.f32 %v5550_v50 }
 0x520   :  { %4748 = vmatmul.f32.gmra.mxu3 %v4696_v18  ;;  %v4651_v18 = vmul.f32 -2.0, %v4635_v37  ;;  %v6825_v43 = vpop.eup %6824  ;;  %v5552_v26 = vmul.f32 1.442695, %v5522_v33 }
 0x521   :  { %v5042_v20 = vpop.f32.mrf.mxu0  ;;  %v5568_v37 = vmul.f32 %v6825_v43, %v9880_v56  ;;  %v5507_v43 = vmul.f32 %v6506_v58, %v6506_v58 }
 0x522   :  { %6454 = vmatmul.msk.f32.gmra.mxu1 %vm3332_vm12, %v5042_v20  ;;  %v4680_v2 = vmul.f32 1.442695, %v4651_v18  ;;  %v6410_v18 = vadd.f32 -3.75, %v9844_v15 }
 0x523   :  { %v4169_v30 = vpop.f32.mrf.mxu3 }
 0x524   :  { %6357 = vmatmul.msk.f32.gmra.mxu2 %vm3332_vm12, %v4169_v30  ;;  %5621 = vmatmul.f32.gmra.mxu0 %v5567_v36  ;;  %v94_v36 = vld [vmem:[%s11217_s3 + $0xe0] sm:$0xff]  ;;  %v6827_v51 = vpop.eup %6826  ;;  %6830 = vpow2.f32 %v4680_v2  ;;  %v4637_v41 = vmul.f32 %v6410_v18, %v6410_v18  ;;  %v93_v2 = vld [vmem:[%s11217_s3 + $0xd8] sm:$0xff]  ;;  %v10723_v33 = vpop.f32.mrf.mxu1 }
 0x525   :  { %5700 = vmatpush.msra.mxu1 %v94_v36  ;;  %v6829_v50 = vpop.eup %6828  ;;  %6832 = vpow2.f32 %v5552_v26  ;;  %5407 = vmatpush.msrb.mxu2 %v93_v2 }
 0x526   :  { %v5569_v62 = vmul.f32 %v6829_v50, %v10028_v5 }
 0x528   :  { %4751 = vmatmul.f32.gmra.mxu3 %v4697_v22  ;;  %v4698_v22 = vmul.f32 %v6827_v51, %v9880_v56  ;;  %v4653_v51 = vmul.f32 -2.0, %v4637_v41 }
 0x529   :  { %v5045_v20 = vpop.f32.mrf.mxu0 }
 0x52a   :  { %6455 = vmatmul.msk.f32.gmra.mxu1 %vm3332_vm12, %v5045_v20  ;;  %v4652_v20 = vmul.f32 -2.0, %v4636_v46  ;;  %v6831_v3 = vpop.eup %6830  ;;  %v4684_v50 = vmul.f32 1.442695, %v4653_v51 }
 0x52b   :  { %v4172_v30 = vpop.f32.mrf.mxu3  ;;  %v4699_v46 = vmul.f32 %v6831_v3, %v10028_v5  ;;  %v6833_v26 = vpop.eup %6832 }
 0x52c   :  { %6358 = vmatmul.msk.f32.gmra.mxu2 %vm3332_vm12, %v4172_v30  ;;  %5624 = vmatmul.f32.gmra.mxu0 %v5568_v37  ;;  %v4682_v30 = vmul.f32 1.442695, %v4652_v20  ;;  %v5523_v37 = vmul.f32 -2.0, %v5507_v43  ;;  %v5570_v43 = vmul.f32 %v6833_v26, %v10111_v6 }
 0x52e   :  { %6834 = vpow2.f32 %v4682_v30  ;;  %v5554_v58 = vmul.f32 1.442695, %v5523_v37 }
 0x530   :  { %4754 = vmatmul.f32.gmra.mxu3 %v4698_v22  ;;  %v6459_v22 = vadd.f32 -5.25, %v11519_v8  ;;  %6836 = vpow2.f32 %v5554_v58  ;;  %v6460_v8 = vadd.f32 -5.25, %v11572_v17 }
 0x531   :  { %v5048_v57 = vpop.f32.mrf.mxu0  ;;  %6838 = vpow2.f32 %v4684_v50 }
 0x532   :  { %6456 = vmatmul.msk.f32.gmra.mxu1 %vm3332_vm12, %v5048_v57  ;;  %v5202_v57 = vmul.f32 %v6459_v22, %v6459_v22  ;;  %v5203_v51 = vmul.f32 %v6460_v8, %v6460_v8 }
 0x533   :  { %v4175_v36 = vpop.f32.mrf.mxu3 }
 0x534   :  { %6359 = vmatmul.msk.f32.gmra.mxu2 %vm3332_vm12, %v4175_v36  ;;  %5627 = vmatmul.f32.gmra.mxu0 %v5569_v62  ;;  %v6835_v3 = vpop.eup %6834  ;;  %v5218_v41 = vmul.f32 -2.0, %v5202_v57  ;;  %v10732_v36 = vpop.f32.mrf.mxu1  ;;  %v5219_v17 = vmul.f32 -2.0, %v5203_v51  ;;  %v92_v51 = vld [vmem:[%s11217_s3 + $0xd0] sm:$0xff] }
 0x535   :  { %v4700_v62 = vmul.f32 %v6835_v3, %v10111_v6  ;;  %5408 = vmatpush.msrb.mxu2 %v92_v51 }
 0x536   :  { %v6837_v30 = vpop.eup %6836  ;;  %v5234_v58 = vmul.f32 1.442695, %v5218_v41  ;;  %v5236_v57 = vmul.f32 1.442695, %v5219_v17  ;;  %v6463_v17 = vadd.f32 -5.25, %v11529_v4  ;;  %v6464_v4 = vadd.f32 -5.25, %v11532_v10 }
 0x537   :  { %v5571_v2 = vmul.f32 %v6837_v30, %v10231_v34  ;;  %v6839_v22 = vpop.eup %6838  ;;  %v6462_v30 = vadd.f32 -5.25, %v11526_v12 }
 0x538   :  { %4757 = vmatmul.f32.gmra.mxu3 %v4699_v46  ;;  %v4701_v26 = vmul.f32 %v6839_v22, %v10231_v34  ;;  %6840 = vpow2.f32 %v5234_v58 }
 0x539   :  { %v5051_v20 = vpop.f32.mrf.mxu0  ;;  %6842 = vpow2.f32 %v5236_v57  ;;  %v5206_v57 = vmul.f32 %v6463_v17, %v6463_v17 }
 0x53a   :  { %6457 = vmatmul.msk.f32.gmra.mxu1 %vm3332_vm12, %v5051_v20  ;;  %v6461_v20 = vadd.f32 -5.25, %v11523_v31 }
 0x53b   :  { %v4178_v18 = vpop.f32.mrf.mxu3 }
 0x53c   :  { %6360 = vmatmul.msk.f32.gmra.mxu2 %vm3332_vm12, %v4178_v18  ;;  %5630 = vmatmul.f32.gmra.mxu0 %v5570_v43  ;;  %v10739_v18 = vpop.f32.mrf.mxu1  ;;  %v5204_v3 = vmul.f32 %v6461_v20, %v6461_v20 }
 0x53e   :  { %v5220_v8 = vmul.f32 -2.0, %v5204_v3 }
 0x540   :  { %4760 = vmatmul.f32.gmra.mxu3 %v4700_v62  ;;  %v6841_v62 = vpop.eup %6840 }
 0x541   :  { %v5054_v37 = vpop.f32.mrf.mxu0  ;;  %v5266_v41 = vmul.f32 %v6841_v62, %v11525_v13  ;;  %v6843_v13 = vpop.eup %6842 }
 0x542   :  { %6458 = vmatmul.msk.f32.gmra.mxu1 %vm3332_vm12, %v5054_v37  ;;  %v5267_v22 = vmul.f32 %v6843_v13, %v11528_v52 }
 0x543   :  { %v4181_v46 = vpop.f32.mrf.mxu3 }
 0x544   :  { %6361 = vmatmul.msk.f32.gmra.mxu2 %vm3332_vm12, %v4181_v46  ;;  %5633 = vmatmul.f32.gmra.mxu0 %v5571_v2  ;;  %v5238_v2 = vmul.f32 1.442695, %v5220_v8  ;;  %v5205_v46 = vmul.f32 %v6462_v30, %v6462_v30  ;;  %v10746_v58 = vpop.f32.mrf.mxu1  ;;  %v5222_v8 = vmul.f32 -2.0, %v5206_v57 }
 0x546   :  { %6844 = vpow2.f32 %v5238_v2  ;;  %v5207_v2 = vmul.f32 %v6464_v4, %v6464_v4 }
 0x548   :  { %4763 = vmatmul.f32.gmra.mxu3 %v4701_v26  ;;  %v5221_v26 = vmul.f32 -2.0, %v5205_v46 }
 0x549   :  { %v5589_v43 = vpop.f32.mrf.mxu0 }
 0x54a   :  { %6507 = vmatmul.msk.f32.vlgmr.msra.gmra.mxu1 %vm3332_vm12, %v5589_v43 }
 0x54b   :  { %v4184_v50 = vpop.f32.mrf.mxu3 }
 0x54c   :  { %6362 = vmatmul.msk.f32.gmra.mxu2 %vm3332_vm12, %v4184_v50  ;;  %v5240_v50 = vmul.f32 1.442695, %v5221_v26  ;;  %v6845_v3 = vpop.eup %6844  ;;  %v10758_v62 = vpop.f32.mrf.mxu1 }
 0x54d   :  { %v5268_v52 = vmul.f32 %v6845_v3, %v11531_v32  ;;  %v5223_v32 = vmul.f32 -2.0, %v5207_v2 }
 0x54e   :  { %6846 = vpow2.f32 %v5240_v50 }
 0x550   :  { %5298 = vmatmul.f32.vlgmr.msrb.gmra.mxu3 %v5266_v41 }
 0x551   :  { %v5592_v31 = vpop.f32.mrf.mxu0 }
 0x552   :  { %6508 = vmatmul.msk.f32.gmra.mxu1 %vm3332_vm12, %v5592_v31 }
 0x553   :  { %v4719_v37 = vpop.f32.mrf.mxu3 }
 0x554   :  { %6411 = vmatmul.msk.f32.vlgmr.msra.gmra.mxu2 %vm3332_vm12, %v4719_v37  ;;  %v5242_v37 = vmul.f32 1.442695, %v5222_v8  ;;  %v6847_v46 = vpop.eup %6846  ;;  %v10770_v26 = vpop.f32.mrf.mxu1 }
 0x555   :  { %v5269_v51 = vmul.f32 %v6847_v46, %v11533_v53 }
 0x556   :  { %6848 = vpow2.f32 %v5242_v37 }
 0x557   :  { %v10753_v12 = vpop.f32.mrf.mxu2 }
 0x558   :  { %5301 = vmatmul.f32.gmra.mxu3 %v5267_v22  ;;  %v6465_v22 = vadd.f32 -5.25, %v11535_v42  ;;  %v6466_v42 = vadd.f32 -5.25, %v7887_v1 }
 0x559   :  { %v5595_v20 = vpop.f32.mrf.mxu0 }
 0x55a   :  { %6509 = vmatmul.msk.f32.gmra.mxu1 %vm3332_vm12, %v5595_v20  ;;  %v5244_v20 = vmul.f32 1.442695, %v5223_v32 }
 0x55b   :  { %v4722_v43 = vpop.f32.mrf.mxu3 }
 0x55c   :  { %6412 = vmatmul.msk.f32.gmra.mxu2 %vm3332_vm12, %v4722_v43  ;;  %v5208_v43 = vmul.f32 %v6465_v22, %v6465_v22  ;;  %v6849_v50 = vpop.eup %6848  ;;  %6850 = vpow2.f32 %v5244_v20  ;;  %v10778_v8 = vpop.f32.mrf.mxu1 }
 0x55d   :  { %v5270_v53 = vmul.f32 %v6849_v50, %v11536_v35  ;;  %v91_v35 = vld [vmem:[%s11217_s3 + $0xc8] sm:$0xff] }
 0x55e   :  { %v5224_v3 = vmul.f32 -2.0, %v5208_v43  ;;  %5409 = vmatpush.msrb.mxu2 %v91_v35 }
 0x55f   :  { %v10761_v41 = vpop.f32.mrf.mxu2 }
 0x560   :  { %5304 = vmatmul.f32.gmra.mxu3 %v5268_v52 }
 0x561   :  { %v5598_v30 = vpop.f32.mrf.mxu0 }
 0x562   :  { %6510 = vmatmul.msk.f32.gmra.mxu1 %vm3332_vm12, %v5598_v30  ;;  %v5246_v30 = vmul.f32 1.442695, %v5224_v3  ;;  %v6851_v37 = vpop.eup %6850 }
 0x563   :  { %v4725_v31 = vpop.f32.mrf.mxu3  ;;  %v5271_v2 = vmul.f32 %v6851_v37, %v11538_v14 }
 0x564   :  { %6413 = vmatmul.msk.f32.gmra.mxu2 %vm3332_vm12, %v4725_v31  ;;  %v5209_v31 = vmul.f32 %v6466_v42, %v6466_v42  ;;  %6852 = vpow2.f32 %v5246_v30  ;;  %v10790_v20 = vpop.f32.mrf.mxu1 }
 0x566   :  { %v5225_v46 = vmul.f32 -2.0, %v5209_v31 }
 0x567   :  { %v10767_v13 = vpop.f32.mrf.mxu2 }
 0x568   :  { %5307 = vmatmul.f32.gmra.mxu3 %v5269_v51  ;;  %v6467_v51 = vadd.f32 -5.25, %v11458_v63  ;;  %v6468_v63 = vadd.f32 -5.25, %v11471_v60  ;;  %v6469_v60 = vadd.f32 -5.25, %v11543_v16 }
 0x569   :  { %v5601_v10 = vpop.f32.mrf.mxu0 }
 0x56a   :  { %6511 = vmatmul.msk.f32.gmra.mxu1 %vm3332_vm12, %v5601_v10  ;;  %v5248_v10 = vmul.f32 1.442695, %v5225_v46  ;;  %v6853_v43 = vpop.eup %6852 }
 0x56b   :  { %v4728_v17 = vpop.f32.mrf.mxu3  ;;  %v5272_v14 = vmul.f32 %v6853_v43, %v11540_v28  ;;  %v6470_v43 = vadd.f32 -5.25, %v11486_v7 }
 0x56c   :  { %6414 = vmatmul.msk.f32.gmra.mxu2 %vm3332_vm12, %v4728_v17  ;;  %v5210_v17 = vmul.f32 %v6467_v51, %v6467_v51  ;;  %6854 = vpow2.f32 %v5248_v10  ;;  %v10799_v31 = vpop.f32.mrf.mxu1 }
 0x56f   :  { %v10775_v57 = vpop.f32.mrf.mxu2 }
 0x570   :  { %5310 = vmatmul.f32.gmra.mxu3 %v5270_v53  ;;  %v5226_v53 = vmul.f32 -2.0, %v5210_v17 }
 0x571   :  { %v5604_v52 = vpop.f32.mrf.mxu0 }
 0x572   :  { %6512 = vmatmul.msk.f32.gmra.mxu1 %vm3332_vm12, %v5604_v52  ;;  %v5250_v52 = vmul.f32 1.442695, %v5226_v53  ;;  %v6855_v30 = vpop.eup %6854 }
 0x573   :  { %v4731_v4 = vpop.f32.mrf.mxu3  ;;  %v5273_v28 = vmul.f32 %v6855_v30, %v11542_v48  ;;  %v6471_v30 = vadd.f32 -5.25, %v9086_v54  ;;  %v6472_v54 = vadd.f32 -5.25, %v9388_v61  ;;  %v6473_v61 = vadd.f32 -5.25, %v9686_v38 }
 0x574   :  { %6415 = vmatmul.msk.f32.gmra.mxu2 %vm3332_vm12, %v4731_v4  ;;  %v5211_v4 = vmul.f32 %v6468_v63, %v6468_v63  ;;  %6856 = vpow2.f32 %v5250_v52  ;;  %v6474_v38 = vadd.f32 -5.25, %v9844_v15 }
 0x576   :  { %v5227_v37 = vmul.f32 -2.0, %v5211_v4 }
 0x577   :  { %v10786_v1 = vpop.f32.mrf.mxu2 }
 0x578   :  { %5313 = vmatmul.f32.gmra.mxu3 %v5271_v2  ;;  %v5252_v51 = vmul.f32 1.442695, %v5227_v37 }
 0x579   :  { %v5607_v32 = vpop.f32.mrf.mxu0 }
 0x57a   :  { %6513 = vmatmul.msk.f32.gmra.mxu1 %vm3332_vm12, %v5607_v32  ;;  %v5212_v32 = vmul.f32 %v6469_v60, %v6469_v60  ;;  %6858 = vpow2.f32 %v5252_v51 }
 0x57b   :  { %v4734_v22 = vpop.f32.mrf.mxu3 }
 0x57c   :  { %6416 = vmatmul.msk.f32.gmra.mxu2 %vm3332_vm12, %v4734_v22  ;;  %v6857_v22 = vpop.eup %6856  ;;  %v5228_v48 = vmul.f32 -2.0, %v5212_v32 }
 0x57d   :  { %v5274_v10 = vmul.f32 %v6857_v22, %v11544_v25  ;;  %v90_v25 = vld [vmem:[%s11217_s3 + $0xc0] sm:$0xff] }
 0x57e   :  { %v5254_v63 = vmul.f32 1.442695, %v5228_v48  ;;  %5410 = vmatpush.msrb.mxu2 %v90_v25 }
 0x57f   :  { %v10794_v50 = vpop.f32.mrf.mxu2 }
 0x580   :  { %5316 = vmatmul.f32.gmra.mxu3 %v5272_v14  ;;  %v10811_v14 = vpop.f32.mrf.mxu1  ;;  %6860 = vpow2.f32 %v5254_v63 }
 0x581   :  { %v5610_v3 = vpop.f32.mrf.mxu0 }
 0x582   :  { %6514 = vmatmul.msk.f32.gmra.mxu1 %vm3332_vm12, %v5610_v3  ;;  %v5213_v3 = vmul.f32 %v6470_v43, %v6470_v43 }
 0x583   :  { %v4737_v42 = vpop.f32.mrf.mxu3 }
 0x584   :  { %6417 = vmatmul.msk.f32.gmra.mxu2 %vm3332_vm12, %v4737_v42  ;;  %v6859_v42 = vpop.eup %6858  ;;  %v5229_v4 = vmul.f32 -2.0, %v5213_v3 }
 0x585   :  { %v5275_v52 = vmul.f32 %v6859_v42, %v11546_v0 }
 0x586   :  { %v6861_v51 = vpop.eup %6860 }
 0x587   :  { %v10802_v35 = vpop.f32.mrf.mxu2  ;;  %v5276_v0 = vmul.f32 %v6861_v51, %v11548_v23 }
 0x588   :  { %5319 = vmatmul.f32.gmra.mxu3 %v5273_v28  ;;  %v10822_v37 = vpop.f32.mrf.mxu1 }
 0x589   :  { %v5613_v2 = vpop.f32.mrf.mxu0 }
 0x58a   :  { %6515 = vmatmul.msk.f32.gmra.mxu1 %vm3332_vm12, %v5613_v2  ;;  %v5256_v2 = vmul.f32 1.442695, %v5229_v4 }
 0x58b   :  { %v4740_v46 = vpop.f32.mrf.mxu3 }
 0x58c   :  { %6418 = vmatmul.msk.f32.gmra.mxu2 %vm3332_vm12, %v4740_v46  ;;  %v5214_v46 = vmul.f32 %v6471_v30, %v6471_v30  ;;  %6862 = vpow2.f32 %v5256_v2  ;;  %v5216_v30 = vmul.f32 %v6473_v61, %v6473_v61 }
 0x58e   :  { %v5230_v22 = vmul.f32 -2.0, %v5214_v46  ;;  %v5232_v46 = vmul.f32 -2.0, %v5216_v30  ;;  %v5785_v30 = vld [vmem:[%s11219_s5 + $0x18] sm:$0xff] }
 0x58f   :  { %v10808_v17 = vpop.f32.mrf.mxu2  ;;  %5850 = vmatpush.msra.mxu3 %v5785_v30 }
 0x590   :  { %5322 = vmatmul.f32.gmra.mxu3 %v5274_v10  ;;  %v5258_v43 = vmul.f32 1.442695, %v5230_v22  ;;  %v5262_v22 = vmul.f32 1.442695, %v5232_v46 }
 0x591   :  { %v5616_v16 = vpop.f32.mrf.mxu0 }
 0x592   :  { %6516 = vmatmul.msk.f32.gmra.mxu1 %vm3332_vm12, %v5616_v16  ;;  %v5215_v16 = vmul.f32 %v6472_v54, %v6472_v54  ;;  %v6863_v63 = vpop.eup %6862  ;;  %6864 = vpow2.f32 %v5258_v43  ;;  %v5217_v54 = vmul.f32 %v6474_v38, %v6474_v38 }
 0x593   :  { %v4743_v53 = vpop.f32.mrf.mxu3  ;;  %v5277_v23 = vmul.f32 %v6863_v63, %v9727_v24 }
 0x594   :  { %6419 = vmatmul.msk.f32.gmra.mxu2 %vm3332_vm12, %v4743_v53  ;;  %v10831_v53 = vpop.f32.mrf.mxu1  ;;  %v5231_v25 = vmul.f32 -2.0, %v5215_v16 }
 0x596   :  { %v5260_v4 = vmul.f32 1.442695, %v5231_v25 }
 0x597   :  { %v10819_v7 = vpop.f32.mrf.mxu2 }
 0x598   :  { %5325 = vmatmul.f32.gmra.mxu3 %v5275_v52  ;;  %6866 = vpow2.f32 %v5260_v4 }
 0x599   :  { %v5619_v28 = vpop.f32.mrf.mxu0  ;;  %6868 = vpow2.f32 %v5262_v22 }
 0x59a   :  { %6517 = vmatmul.msk.f32.gmra.mxu1 %vm3332_vm12, %v5619_v28  ;;  %v6865_v28 = vpop.eup %6864 }
 0x59b   :  { %v4746_v60 = vpop.f32.mrf.mxu3  ;;  %v5278_v24 = vmul.f32 %v6865_v28, %v9880_v56  ;;  %v5233_v56 = vmul.f32 -2.0, %v5217_v54  ;;  %v10867_v28 = vld [vmem:[%s11218_s4] ss:$0 sm:$0xff] }
 0x59c   :  { %6420 = vmatmul.msk.f32.gmra.mxu2 %vm3332_vm12, %v4746_v60  ;;  %v10840_v60 = vpop.f32.mrf.mxu1 }
 0x59f   :  { %v10827_v32 = vpop.f32.mrf.mxu2 }
 0x5a0   :  { %5328 = vmatmul.f32.gmra.mxu3 %v5276_v0 }
 0x5a1   :  { %v5622_v10 = vpop.f32.mrf.mxu0 }
 0x5a2   :  { %6518 = vmatmul.msk.f32.gmra.mxu1 %vm3332_vm12, %v5622_v10  ;;  %v6867_v10 = vpop.eup %6866 }
 0x5a3   :  { %v4749_v48 = vpop.f32.mrf.mxu3  ;;  %v6869_v25 = vpop.eup %6868 }
 0x5a4   :  { %6421 = vmatmul.msk.f32.gmra.mxu2 %vm3332_vm12, %v4749_v48  ;;  %v5279_v48 = vmul.f32 %v6867_v10, %v10028_v5  ;;  %v10851_v16 = vpop.f32.mrf.mxu1  ;;  %v5280_v61 = vmul.f32 %v6869_v25, %v10111_v6 }
 0x5a7   :  { %v10835_v3 = vpop.f32.mrf.mxu2 }
 0x5a8   :  { %5331 = vmatmul.f32.gmra.mxu3 %v5277_v23  ;;  %v5264_v23 = vmul.f32 1.442695, %v5233_v56 }
 0x5a9   :  { %v5625_v42 = vpop.f32.mrf.mxu0 }
 0x5aa   :  { %6519 = vmatmul.msk.f32.gmra.mxu1 %vm3332_vm12, %v5625_v42  ;;  %6870 = vpow2.f32 %v5264_v23  ;;  %v11583_v23 = vld [vmem:[#allocation7_spill] sm:$0xff] }
 0x5ab   :  { %v4752_v52 = vpop.f32.mrf.mxu3  ;;  %v3402_v25 = vadd.f32 %v10867_v28, %v11583_v23  ;;  %v11589_v23 = vld [vmem:[#allocation18_spill] sm:$0xff] }
 0x5ac   :  { %6422 = vmatmul.msk.f32.gmra.mxu2 %vm3332_vm12, %v4752_v52  ;;  %v10858_v52 = vpop.f32.mrf.mxu1 }
 0x5af   :  { %v10843_v2 = vpop.f32.mrf.mxu2 }
 0x5b0   :  { %5334 = vmatmul.f32.gmra.mxu3 %v5278_v24  ;;  %v6871_v6 = vpop.eup %6870  ;;  %v11580_v24 = vld [vmem:[#allocation26_spill] sm:$0xff] }
 0x5b1   :  { %v5628_v51 = vpop.f32.mrf.mxu0  ;;  %v3444_v46 = vadd.f32 %v10867_v28, %v11580_v24  ;;  %v5281_v38 = vmul.f32 %v6871_v6, %v10231_v34  ;;  %v11584_v34 = vld [vmem:[#allocation27_spill] sm:$0xff]  ;;  %v11585_v6 = vld [vmem:[#allocation13_spill] sm:$0xff] }
 0x5b2   :  { %6520 = vmatmul.msk.f32.gmra.mxu1 %vm3332_vm12, %v5628_v51 }
 0x5b3   :  { %v4755_v0 = vpop.f32.mrf.mxu3  ;;  %v3735_v54 = vadd.f32 %v10599_v27, %v3444_v46  ;;  %v3721_v27 = vadd.f32 %v11585_v6, %v3402_v25 }
 0x5b4   :  { %6423 = vmatmul.msk.f32.gmra.mxu2 %vm3332_vm12, %v4755_v0  ;;  %v11581_v0 = vld [vmem:[#allocation8_spill] sm:$0xff] }
 0x5b5   :  { %v3399_v22 = vadd.f32 %v10867_v28, %v11581_v0  ;;  %v11587_v0 = vld [vmem:[#allocation28_spill] sm:$0xff] }
 0x5b7   :  { %v10849_v43 = vpop.f32.mrf.mxu2 }
 0x5b8   :  { %5337 = vmatmul.f32.gmra.mxu3 %v5279_v48  ;;  %v11582_v48 = vld [vmem:[#allocation12_spill] sm:$0xff] }
 0x5b9   :  { %v5631_v15 = vpop.f32.mrf.mxu0  ;;  %v3720_v56 = vadd.f32 %v11582_v48, %v3399_v22  ;;  %v4011_v22 = vadd.f32 %v11587_v0, %v3721_v27  ;;  %v11590_v27 = vld [vmem:[#allocation31_spill] sm:$0xff] }
 0x5ba   :  { %6521 = vmatmul.msk.f32.gmra.mxu1 %vm3332_vm12, %v5631_v15  ;;  %v4025_v15 = vadd.f32 %v10604_v29, %v3735_v54 }
 0x5bb   :  { %v4758_v63 = vpop.f32.mrf.mxu3 }
 0x5bc   :  { %6424 = vmatmul.msk.f32.gmra.mxu2 %vm3332_vm12, %v4758_v63 }
 0x5bf   :  { %v10856_v42 = vpop.f32.mrf.mxu2 }
 0x5c0   :  { %5340 = vmatmul.f32.gmra.mxu3 %v5280_v61  ;;  %v4010_v61 = vadd.f32 %v11584_v34, %v3720_v56  ;;  %v11588_v56 = vld [vmem:[#allocation14_spill] sm:$0xff] }
 0x5c1   :  { %v5634_v5 = vpop.f32.mrf.mxu0 }
 0x5c2   :  { %6522 = vmatmul.msk.f32.gmra.mxu1 %vm3332_vm12, %v5634_v5 }
 0x5c3   :  { %v4761_v4 = vpop.f32.mrf.mxu3 }
 0x5c4   :  { %6425 = vmatmul.msk.f32.gmra.mxu2 %vm3332_vm12, %v4761_v4  ;;  %v4300_v4 = vadd.f32 %v10753_v12, %v4010_v61 }
 0x5c6   :  { %v4590_v24 = vadd.f32 %v10618_v21, %v4300_v4  ;;  %v3408_v21 = vadd.f32 %v10867_v28, %v11589_v23 }
 0x5c7   :  { %v10873_v51 = vpop.f32.mrf.mxu2 }
 0x5c8   :  { %5343 = vmatmul.f32.gmra.mxu3 %v5281_v38  ;;  %v11586_v38 = vld [vmem:[#allocation30_spill] sm:$0xff] }
 0x5c9   :  { %v3405_v29 = vadd.f32 %v10867_v28, %v11586_v38  ;;  %v10917_v38 = vpop.f32.mrf.mxu1 }
 0x5cb   :  { %v4764_v10 = vpop.f32.mrf.mxu3  ;;  %v3722_v12 = vadd.f32 %v11588_v56, %v3405_v29 }
 0x5cc   :  { %6426 = vmatmul.msk.f32.gmra.mxu2 %vm3332_vm12, %v4764_v10  ;;  %v4301_v10 = vadd.f32 %v10761_v41, %v4011_v22  ;;  %v5784_v41 = vld [vmem:[%s11219_s5 + $0x10] sm:$0xff] }
 0x5cd   :  { %v4012_v25 = vadd.f32 %v10432_v47, %v3722_v12  ;;  %5851 = vmatpush.msra.mxu3 %v5784_v41  ;;  %v3411_v47 = vadd.f32 %v10867_v28, %v11590_v27  ;;  %v11591_v22 = vld [vmem:[#allocation11_spill] sm:$0xff] }
 0x5ce   :  { %v11596_v27 = vld [vmem:[#allocation15_spill] sm:$0xff] }
 0x5cf   :  { %v4297_v63 = vpop.f32.mrf.mxu2  ;;  %v4302_v61 = vadd.f32 %v10767_v13, %v4012_v25 }
 0x5d0   :  { %v10884_v5 = vadd.f32 %v4297_v63, %v4025_v15  ;;  %v4591_v15 = vadd.f32 %v10627_v39, %v4301_v10  ;;  %v3414_v10 = vadd.f32 %v10867_v28, %v11591_v22 }
 0x5d1   :  { %v4592_v39 = vadd.f32 %v10637_v9, %v4302_v61  ;;  %v11593_v61 = vld [vmem:[#allocation29_spill] sm:$0xff] }
 0x5d2   :  { %v3725_v12 = vadd.f32 %v10470_v11, %v3414_v10  ;;  %v11594_v11 = vld [vmem:[#allocation44_spill] sm:$0xff] }
 0x5d3   :  { %v5299_v30 = vpop.f32.mrf.mxu3  ;;  %v11599_v10 = vld [vmem:[#allocation20_spill] sm:$0xff] }
 0x5d4   :  { %6475 = vmatmul.msk.f32.vlgmr.msrb.gmra.mxu2 %vm3332_vm12, %v5299_v30  ;;  %v3723_v30 = vadd.f32 %v10441_v19, %v3408_v21  ;;  %v3724_v19 = vadd.f32 %v10455_v59, %v3411_v47  ;;  %v10930_v59 = vpop.f32.mrf.mxu1  ;;  %v4015_v21 = vadd.f32 %v10480_v55, %v3725_v12 }
 0x5d6   :  { %v4305_v25 = vadd.f32 %v10794_v50, %v4015_v21 }
 0x5d7   :  { %v4832_v46 = vpop.f32.mrf.mxu2 }
 0x5d8   :  { %v10893_v54 = vadd.f32 %v4832_v46, %v4590_v24  ;;  %v4013_v24 = vadd.f32 %v10451_v45, %v3723_v30  ;;  %v4595_v41 = vadd.f32 %v11594_v11, %v4305_v25 }
 0x5da   :  { %v4303_v13 = vadd.f32 %v10775_v57, %v4013_v24 }
 0x5db   :  { %v5302_v48 = vpop.f32.mrf.mxu3 }
 0x5dc   :  { %6476 = vmatmul.msk.f32.gmra.mxu2 %vm3332_vm12, %v5302_v48  ;;  %v4593_v0 = vadd.f32 %v10648_v40, %v4303_v13  ;;  %v4014_v48 = vadd.f32 %v10466_v49, %v3724_v19  ;;  %v10942_v30 = vpop.f32.mrf.mxu1  ;;  %v5783_v13 = vld [vmem:[%s11219_s5 + $0x8] sm:$0xff] }
 0x5dd   :  { %5852 = vmatpush.msra.mxu3 %v5783_v13 }
 0x5de   :  { %v4304_v56 = vadd.f32 %v10786_v1, %v4014_v48 }
 0x5df   :  { %v4835_v63 = vpop.f32.mrf.mxu2 }
 0x5e0   :  { %v10902_v34 = vadd.f32 %v4835_v63, %v4591_v15  ;;  %v4594_v15 = vadd.f32 %v10659_v44, %v4304_v56  ;;  %v11592_v63 = vld [vmem:[#allocation33_spill] sm:$0xff] }
 0x5e1   :  { %v3417_v23 = vadd.f32 %v10867_v28, %v11592_v63 }
 0x5e3   :  { %v5305_v4 = vpop.f32.mrf.mxu3 }
 0x5e4   :  { %6477 = vmatmul.msk.f32.gmra.mxu2 %vm3332_vm12, %v5305_v4  ;;  %v3726_v4 = vadd.f32 %v11593_v61, %v3417_v23 }
 0x5e6   :  { %v4016_v47 = vadd.f32 %v11596_v27, %v3726_v4 }
 0x5e7   :  { %v4838_v6 = vpop.f32.mrf.mxu2 }
 0x5e8   :  { %v10914_v46 = vadd.f32 %v4838_v6, %v4592_v39  ;;  %v11595_v39 = vld [vmem:[#allocation34_spill] sm:$0xff]  ;;  %v4306_v24 = vadd.f32 %v10802_v35, %v4016_v47 }
 0x5e9   :  { %v3420_v6 = vadd.f32 %v10867_v28, %v11595_v39 }
 0x5eb   :  { %v5308_v29 = vpop.f32.mrf.mxu3 }
 0x5ec   :  { %6478 = vmatmul.msk.f32.gmra.mxu2 %vm3332_vm12, %v5308_v29  ;;  %v11597_v29 = vld [vmem:[#allocation16_spill] sm:$0xff] }
 0x5ed   :  { %v3727_v19 = vadd.f32 %v11597_v29, %v3420_v6 }
 0x5ef   :  { %v4841_v9 = vpop.f32.mrf.mxu2  ;;  %v4017_v48 = vadd.f32 %v11599_v10, %v3727_v19 }
 0x5f0   :  { %v10925_v45 = vadd.f32 %v4841_v9, %v4593_v0  ;;  %v11598_v0 = vld [vmem:[#allocation45_spill] sm:$0xff] }
 0x5f1   :  { %v4596_v9 = vadd.f32 %v11598_v0, %v4306_v24  ;;  %v4307_v35 = vadd.f32 %v10808_v17, %v4017_v48 }
 0x5f3   :  { %v5311_v57 = vpop.f32.mrf.mxu3 }
 0x5f4   :  { %6479 = vmatmul.msk.f32.gmra.mxu2 %vm3332_vm12, %v5311_v57  ;;  %v10959_v57 = vpop.f32.mrf.mxu1 }
 0x5f7   :  { %v4844_v40 = vpop.f32.mrf.mxu2 }
 0x5f8   :  { %v10936_v49 = vadd.f32 %v4844_v40, %v4594_v15  ;;  %v11600_v15 = vld [vmem:[#allocation46_spill] sm:$0xff] }
 0x5f9   :  { %v4597_v40 = vadd.f32 %v11600_v15, %v4307_v35 }
 0x5fb   :  { %v5314_v1 = vpop.f32.mrf.mxu3 }
 0x5fc   :  { %6480 = vmatmul.msk.f32.gmra.mxu2 %vm3332_vm12, %v5314_v1  ;;  %v10966_v21 = vpop.f32.mrf.mxu1 }
 0x5ff   :  { %v4847_v44 = vpop.f32.mrf.mxu2 }
 0x600   :  { %v10947_v55 = vadd.f32 %v4847_v44, %v4595_v41  ;;  %v5782_v41 = vld [vmem:[%s11219_s5] sm:$0xff] }
 0x601   :  { %5853 = vmatpush.msra.mxu3 %v5782_v41 }
 0x603   :  { %v5317_v50 = vpop.f32.mrf.mxu3 }
 0x604   :  { %6481 = vmatmul.msk.f32.gmra.mxu2 %vm3332_vm12, %v5317_v50  ;;  %v10972_v4 = vpop.f32.mrf.mxu1 }
 0x607   :  { %v4850_v22 = vpop.f32.mrf.mxu2 }
 0x608   :  { %v10957_v56 = vadd.f32 %v4850_v22, %v4596_v9 }
 0x60b   :  { %v5320_v12 = vpop.f32.mrf.mxu3 }
 0x60c   :  { %6482 = vmatmul.msk.f32.gmra.mxu2 %vm3332_vm12, %v5320_v12  ;;  %v10980_v44 = vpop.f32.mrf.mxu1  ;;  %v5170_v12 = vadd.f32 %v10790_v20, %v10893_v54  ;;  %v5922_v20 = vld [vmem:[%s11221_s7 + $0x18] sm:$0xff]  ;;  %v5172_v54 = vadd.f32 %v10811_v14, %v10914_v46  ;;  %v5174_v14 = vadd.f32 %v10831_v53, %v10936_v49  ;;  %v5921_v53 = vld [vmem:[%s11221_s7 + $0x10] sm:$0xff]  ;;  %v11602_v49 = vld [vmem:[#allocation21_spill] sm:$0xff] }
 0x60d   :  { %6556 = vmatpush.msra.mxu2 %v5922_v20  ;;  %5987 = vmatpush.msrb.mxu0 %v5922_v20 }
 0x60e   :  { %6555 = vmatpush.msrb.mxu1 %v5922_v20  ;;  %v11601_v20 = vld [vmem:[#allocation10_spill] sm:$0xff] }
 0x60f   :  { %v4853_v63 = vpop.f32.mrf.mxu2  ;;  %6558 = vmatpush.msra.mxu2 %v5921_v53  ;;  %5988 = vmatpush.msrb.mxu0 %v5921_v53 }
 0x610   :  { %v10964_v23 = vadd.f32 %v4853_v63, %v4597_v40  ;;  %6557 = vmatpush.msrb.mxu1 %v5921_v53 }
 0x613   :  { %v5323_v25 = vpop.f32.mrf.mxu3 }
 0x614   :  { %6483 = vmatmul.msk.f32.gmra.mxu2 %vm3332_vm12, %v5323_v25  ;;  %v10987_v47 = vpop.f32.mrf.mxu1 }
 0x617   :  { %v10969_v1 = vpop.f32.mrf.mxu2 }
 0x61b   :  { %v5326_v61 = vpop.f32.mrf.mxu3 }
 0x61c   :  { %6484 = vmatmul.msk.f32.gmra.mxu2 %vm3332_vm12, %v5326_v61  ;;  %v5702_v13 = vpop.f32.mrf.mxu1  ;;  %v5171_v61 = vadd.f32 %v10799_v31, %v10902_v34 }
 0x61f   :  { %v10974_v17 = vpop.f32.mrf.mxu2 }
 0x623   :  { %v5329_v11 = vpop.f32.mrf.mxu3 }
 0x624   :  { %6485 = vmatmul.msk.f32.gmra.mxu2 %vm3332_vm12, %v5329_v11  ;;  %v5705_v9 = vpop.f32.mrf.mxu1 }
 0x627   :  { %v10982_v39 = vpop.f32.mrf.mxu2 }
 0x62b   :  { %v5332_v6 = vpop.f32.mrf.mxu3 }
 0x62c   :  { %6486 = vmatmul.msk.f32.gmra.mxu2 %vm3332_vm12, %v5332_v6  ;;  %v5708_v48 = vpop.f32.mrf.mxu1 }
 0x62f   :  { %v10985_v27 = vpop.f32.mrf.mxu2 }
 0x633   :  { %v5335_v24 = vpop.f32.mrf.mxu3 }
 0x634   :  { %6487 = vmatmul.msk.f32.gmra.mxu2 %vm3332_vm12, %v5335_v24  ;;  %v5711_v63 = vpop.f32.mrf.mxu1 }
 0x637   :  { %v10990_v50 = vpop.f32.mrf.mxu2 }
 0x63b   :  { %v5338_v29 = vpop.f32.mrf.mxu3 }
 0x63c   :  { %6488 = vmatmul.msk.f32.gmra.mxu2 %vm3332_vm12, %v5338_v29  ;;  %v5714_v29 = vpop.f32.mrf.mxu1 }
 0x63f   :  { %v10993_v19 = vpop.f32.mrf.mxu2 }
 0x643   :  { %v5341_v0 = vpop.f32.mrf.mxu3 }
 0x644   :  { %6489 = vmatmul.msk.f32.gmra.mxu2 %vm3332_vm12, %v5341_v0 }
 0x647   :  { %v10996_v22 = vpop.f32.mrf.mxu2 }
 0x64b   :  { %v5344_v10 = vpop.f32.mrf.mxu3 }
 0x64c   :  { %6490 = vmatmul.msk.f32.gmra.mxu2 %vm3332_vm12, %v5344_v10  ;;  %v5173_v10 = vadd.f32 %v10822_v37, %v10925_v45  ;;  %v5175_v37 = vadd.f32 %v10840_v60, %v10947_v55  ;;  %v5176_v60 = vadd.f32 %v10851_v16, %v10957_v56  ;;  %v5177_v16 = vadd.f32 %v10858_v52, %v10964_v23  ;;  %v11609_v52 = vld [vmem:[#allocation6_spill] sm:$0xff] }
 0x64f   :  { %v10999_v35 = vpop.f32.mrf.mxu2 }
 0x657   :  { %v5412_v15 = vpop.f32.mrf.mxu2 }
 0x658   :  { %v5460_v40 = vadd.f32 %v5412_v15, %v5170_v12 }
 0x65a   :  { %v5750_v25 = vadd.f32 %v5702_v13, %v5460_v40 }
 0x65c   :  { %6872 = vtanh.f32 %v5750_v25 }
 0x65f   :  { %v5415_v11 = vpop.f32.mrf.mxu2 }
 0x660   :  { %v5461_v41 = vadd.f32 %v5415_v11, %v5171_v61 }
 0x662   :  { %v6873_v6 = vpop.eup %6872  ;;  %v5751_v24 = vadd.f32 %v5705_v9, %v5461_v41  ;;  %v5717_v9 = vpop.f32.mrf.mxu1 }
 0x663   :  { %6523 = vmatmul.msk.f32.vlgmr.msra.gmra.mxu3 %vm3332_vm12, %v6873_v6 }
 0x664   :  { %6874 = vtanh.f32 %v5751_v24 }
 0x667   :  { %v5418_v13 = vpop.f32.mrf.mxu2 }
 0x668   :  { %v5462_v31 = vadd.f32 %v5418_v13, %v5172_v54  ;;  %v3423_v54 = vadd.f32 %v10867_v28, %v11601_v20 }
 0x66a   :  { %v6875_v34 = vpop.eup %6874  ;;  %v5752_v0 = vadd.f32 %v5708_v48, %v5462_v31  ;;  %v5720_v46 = vpop.f32.mrf.mxu1 }
 0x66b   :  { %6524 = vmatmul.msk.f32.gmra.mxu3 %vm3332_vm12, %v6875_v34 }
 0x66c   :  { %6876 = vtanh.f32 %v5752_v0  ;;  %v11603_v0 = vld [vmem:[#allocation19_spill] sm:$0xff] }
 0x66f   :  { %v5421_v12 = vpop.f32.mrf.mxu2 }
 0x670   :  { %v5463_v15 = vadd.f32 %v5421_v12, %v5173_v10  ;;  %v11604_v10 = vld [vmem:[#allocation25_spill] sm:$0xff] }
 0x672   :  { %v6877_v40 = vpop.eup %6876  ;;  %v5753_v25 = vadd.f32 %v5711_v63, %v5463_v15  ;;  %v5723_v63 = vpop.f32.mrf.mxu1 }
 0x673   :  { %6525 = vmatmul.msk.f32.gmra.mxu3 %vm3332_vm12, %v6877_v40 }
 0x674   :  { %6878 = vtanh.f32 %v5753_v25 }
 0x677   :  { %v5424_v61 = vpop.f32.mrf.mxu2 }
 0x678   :  { %v5464_v48 = vadd.f32 %v5424_v61, %v5174_v14  ;;  %v11605_v14 = vld [vmem:[#allocation22_spill] sm:$0xff] }
 0x67a   :  { %v6879_v11 = vpop.eup %6878  ;;  %v5754_v41 = vadd.f32 %v5714_v29, %v5464_v48  ;;  %v3728_v29 = vadd.f32 %v11602_v49, %v3423_v54  ;;  %v5726_v40 = vpop.f32.mrf.mxu1  ;;  %v11606_v48 = vld [vmem:[#allocation47_spill] sm:$0xff] }
 0x67b   :  { %6526 = vmatmul.msk.f32.gmra.mxu3 %vm3332_vm12, %v6879_v11 }
 0x67c   :  { %6880 = vtanh.f32 %v5754_v41  ;;  %v4018_v12 = vadd.f32 %v11604_v10, %v3728_v29  ;;  %v11612_v10 = vld [vmem:[#allocation37_spill] sm:$0xff] }
 0x67e   :  { %v4308_v25 = vadd.f32 %v10819_v7, %v4018_v12 }
 0x67f   :  { %v5427_v45 = vpop.f32.mrf.mxu2 }
 0x680   :  { %v5465_v6 = vadd.f32 %v5427_v45, %v5175_v37  ;;  %v4598_v11 = vadd.f32 %v11606_v48, %v4308_v25  ;;  %v11607_v45 = vld [vmem:[#allocation35_spill] sm:$0xff] }
 0x682   :  { %v6881_v24 = vpop.eup %6880  ;;  %v5755_v13 = vadd.f32 %v5717_v9, %v5465_v6  ;;  %v3426_v9 = vadd.f32 %v10867_v28, %v11603_v0  ;;  %v3429_v6 = vadd.f32 %v10867_v28, %v11607_v45  ;;  %v4888_v20 = vadd.f32 %v10969_v1, %v4598_v11  ;;  %v11611_v1 = vld [vmem:[#allocation36_spill] sm:$0xff] }
 0x683   :  { %6527 = vmatmul.msk.f32.gmra.mxu3 %vm3332_vm12, %v6881_v24 }
 0x684   :  { %6882 = vtanh.f32 %v5755_v13  ;;  %v3729_v61 = vadd.f32 %v11605_v14, %v3426_v9  ;;  %v5729_v13 = vpop.f32.mrf.mxu1  ;;  %v3730_v23 = vadd.f32 %v11609_v52, %v3429_v6  ;;  %v5178_v53 = vadd.f32 %v10917_v38, %v4888_v20  ;;  %v11616_v20 = vld [vmem:[#allocation24_spill] sm:$0xff] }
 0x687   :  { %v5430_v55 = vpop.f32.mrf.mxu2 }
 0x688   :  { %v5466_v31 = vadd.f32 %v5430_v55, %v5176_v60 }
 0x68a   :  { %v6883_v34 = vpop.eup %6882  ;;  %v5756_v15 = vadd.f32 %v5720_v46, %v5466_v31  ;;  %v11608_v46 = vld [vmem:[#allocation23_spill] sm:$0xff]  ;;  %v11610_v31 = vld [vmem:[#allocation17_spill] sm:$0xff] }
 0x68b   :  { %6528 = vmatmul.msk.f32.gmra.mxu3 %vm3332_vm12, %v6883_v34  ;;  %v4019_v24 = vadd.f32 %v11608_v46, %v3729_v61  ;;  %v3432_v34 = vadd.f32 %v10867_v28, %v11610_v31  ;;  %v11619_v31 = vld [vmem:[#allocation32_spill] sm:$0xff] }
 0x68c   :  { %6884 = vtanh.f32 %v5756_v15 }
 0x68d   :  { %v4309_v7 = vadd.f32 %v10827_v32, %v4019_v24  ;;  %v3731_v38 = vadd.f32 %v11612_v10, %v3432_v34  ;;  %v3441_v34 = vadd.f32 %v10867_v28, %v11619_v31 }
 0x68f   :  { %v5433_v56 = vpop.f32.mrf.mxu2  ;;  %v4599_v29 = vadd.f32 %v10723_v33, %v4309_v7  ;;  %v5732_v33 = vpop.f32.mrf.mxu1 }
 0x690   :  { %v5467_v41 = vadd.f32 %v5433_v56, %v5177_v16  ;;  %v11613_v16 = vld [vmem:[#allocation5_spill] sm:$0xff] }
 0x691   :  { %v4889_v0 = vadd.f32 %v10974_v17, %v4599_v29  ;;  %v3435_v56 = vadd.f32 %v10867_v28, %v11613_v16  ;;  %v11614_v17 = vld [vmem:[#allocation38_spill] sm:$0xff] }
 0x692   :  { %v6885_v37 = vpop.eup %6884  ;;  %v5757_v54 = vadd.f32 %v5723_v63, %v5467_v41  ;;  %v4020_v63 = vadd.f32 %v11611_v1, %v3730_v23  ;;  %v11620_v1 = vld [vmem:[#allocation9_spill] sm:$0xff] }
 0x693   :  { %6529 = vmatmul.msk.f32.gmra.mxu3 %vm3332_vm12, %v6885_v37  ;;  %v5179_v12 = vadd.f32 %v10930_v59, %v4889_v0  ;;  %v5920_v59 = vld [vmem:[%s11221_s7 + $0x8] sm:$0xff] }
 0x694   :  { %6886 = vtanh.f32 %v5757_v54  ;;  %v4310_v32 = vadd.f32 %v10835_v3, %v4020_v63  ;;  %6560 = vmatpush.msra.mxu2 %v5920_v59  ;;  %5989 = vmatpush.msrb.mxu0 %v5920_v59  ;;  %v11617_v54 = vld [vmem:[#allocation40_spill] sm:$0xff] }
 0x695   :  { %6559 = vmatpush.msrb.mxu1 %v5920_v59 }
 0x696   :  { %v4600_v25 = vadd.f32 %v10732_v36, %v4310_v32  ;;  %v11615_v36 = vld [vmem:[#allocation39_spill] sm:$0xff] }
 0x697   :  { %v5436_v49 = vpop.f32.mrf.mxu2  ;;  %v3732_v41 = vadd.f32 %v11615_v36, %v3435_v56  ;;  %v5735_v46 = vpop.f32.mrf.mxu1 }
 0x698   :  { %v5468_v60 = vadd.f32 %v5436_v49, %v5178_v53  ;;  %v4890_v48 = vadd.f32 %v10982_v39, %v4600_v25 }
 0x699   :  { %v4022_v7 = vadd.f32 %v11617_v54, %v3732_v41 }
 0x69a   :  { %v6887_v55 = vpop.eup %6886  ;;  %v5758_v9 = vadd.f32 %v5726_v40, %v5468_v60  ;;  %v4021_v40 = vadd.f32 %v11614_v17, %v3731_v38  ;;  %v5180_v37 = vadd.f32 %v10942_v30, %v4890_v48  ;;  %v11618_v30 = vld [vmem:[#allocation41_spill] sm:$0xff] }
 0x69b   :  { %6530 = vmatmul.msk.f32.gmra.mxu3 %vm3332_vm12, %v6887_v55  ;;  %v4312_v23 = vadd.f32 %v10849_v43, %v4022_v7 }
 0x69c   :  { %6888 = vtanh.f32 %v5758_v9  ;;  %v4311_v3 = vadd.f32 %v10843_v2, %v4021_v40  ;;  %v3438_v2 = vadd.f32 %v10867_v28, %v11616_v20  ;;  %v6962_v20 = vld [vmem:[%s11214_s0 + $0x48] sm:$0xff] }
 0x69d   :  { %v4602_v29 = vadd.f32 %v10746_v58, %v4312_v23  ;;  %v6966_v23 = vld [vmem:[%s11214_s0 + $0x28] sm:$0xff] }
 0x69e   :  { %v4601_v39 = vadd.f32 %v10739_v18, %v4311_v3  ;;  %v3733_v53 = vadd.f32 %v11618_v30, %v3438_v2  ;;  %v4605_v3 = vadd.f32 %v10778_v8, %v10884_v5  ;;  %v7009_v8 = vmov 3   ;;  %v6958_v5 = vld [vmem:[%s11214_s0] sm:$0xff]  ;;  %v6963_v2 = vld [vmem:[%s11214_s0 + $0x18] sm:$0xff] }
 0x69f   :  { %v5439_v15 = vpop.f32.mrf.mxu2  ;;  %v4892_v63 = vadd.f32 %v10990_v50, %v4602_v29  ;;  %v5738_v9 = vpop.f32.mrf.mxu1  ;;  %6576 = vset.pattern.permute.xlu1 %v7009_v8  ;;  %6578 = vset.pattern.permute.xlu0 %v7009_v8  ;;  %v6968_v29 = vld [vmem:[%s11214_s0 + $0x78] sm:$0xff] }
 0x6a0   :  { %v5469_v14 = vadd.f32 %v5439_v15, %v5179_v12  ;;  %v4895_v36 = vadd.f32 %v10999_v35, %v4605_v3  ;;  %6041 = vperm.xlu1 %6576, %v6958_v5   ;;  %6577 = vset.pattern.permute.xlu2 %v7009_v8  ;;  %v6960_v35 = vld [vmem:[%s11214_s0 + $0x8] sm:$0xff] }
 0x6a1   :  { %v5182_v58 = vadd.f32 %v10966_v21, %v4892_v63  ;;  %6045 = vperm.xlu2 %6577, %v6960_v35  }
 0x6a2   :  { %v6889_v61 = vpop.eup %6888  ;;  %v5759_v11 = vadd.f32 %v5729_v13, %v5469_v14  ;;  %v4891_v13 = vadd.f32 %v10985_v27, %v4601_v39  ;;  %v4023_v27 = vadd.f32 %v11620_v1, %v3733_v53  ;;  %v6970_v1 = vld [vmem:[%s11214_s0 + $0x58] sm:$0xff] }
 0x6a3   :  { %6531 = vmatmul.msk.f32.gmra.mxu3 %vm3332_vm12, %v6889_v61 }
 0x6a4   :  { %6890 = vtanh.f32 %v5759_v11  ;;  %v5181_v18 = vadd.f32 %v10959_v57, %v4891_v13  ;;  %v4313_v43 = vadd.f32 %v10856_v42, %v4023_v27  ;;  %v11621_v57 = vld [vmem:[#allocation42_spill] sm:$0xff]  ;;  %v5919_v42 = vld [vmem:[%s11221_s7] sm:$0xff]  ;;  %v6964_v13 = vld [vmem:[%s11214_s0 + $0x30] sm:$0xff] }
 0x6a5   :  { %v3734_v32 = vadd.f32 %v11621_v57, %v3441_v34  ;;  %6562 = vmatpush.msra.mxu2 %v5919_v42  ;;  %5990 = vmatpush.msrb.mxu0 %v5919_v42  ;;  %v6971_v27 = vld [vmem:[%s11214_s0 + $0x50] sm:$0xff]  ;;  %v6973_v57 = vld [vmem:[%s11214_s0 + $0x68] sm:$0xff] }
 0x6a6   :  { %v4603_v38 = vadd.f32 %v10758_v62, %v4313_v43  ;;  %6561 = vmatpush.msrb.mxu1 %v5919_v42  ;;  %v6972_v43 = vld [vmem:[%s11214_s0 + $0x70] sm:$0xff] }
 0x6a7   :  { %v5442_v45 = vpop.f32.mrf.mxu2  ;;  %v5741_v21 = vpop.f32.mrf.mxu1 }
 0x6a8   :  { %v5470_v6 = vadd.f32 %v5442_v45, %v5180_v37  ;;  %v4893_v50 = vadd.f32 %v10993_v19, %v4603_v38 }
 0x6a9   :  { %6053 = vperm.xlu2 %6577, %v6963_v2  }
 0x6aa   :  { %v6891_v24 = vpop.eup %6890  ;;  %v5760_v52 = vadd.f32 %v5732_v33, %v5470_v6  ;;  %v11622_v33 = vld [vmem:[#allocation43_spill] sm:$0xff]  ;;  %v5183_v62 = vadd.f32 %v10972_v4, %v4893_v50 }
 0x6ab   :  { %6532 = vmatmul.msk.f32.gmra.mxu3 %vm3332_vm12, %v6891_v24  ;;  %v4024_v15 = vadd.f32 %v11622_v33, %v3734_v32  ;;  %v6961_v24 = vld [vmem:[%s11214_s0 + $0x20] sm:$0xff] }
 0x6ac   :  { %6892 = vtanh.f32 %v5760_v52  ;;  %6057 = vperm.xlu1 %6576, %v6961_v24   ;;  %v6965_v52 = vld [vmem:[%s11214_s0 + $0x60] sm:$0xff] }
 0x6ad   :  { %v4314_v14 = vadd.f32 %v10873_v51, %v4024_v15 }
 0x6af   :  { %v5445_v49 = vpop.f32.mrf.mxu2  ;;  %v4604_v16 = vadd.f32 %v10770_v26, %v4314_v14  ;;  %v5744_v48 = vpop.f32.mrf.mxu1 }
 0x6b0   :  { %v5471_v60 = vadd.f32 %v5445_v49, %v5181_v18  ;;  %v6967_v49 = vld [vmem:[%s11214_s0 + $0x40] sm:$0xff] }
 0x6b1   :  { %v4894_v17 = vadd.f32 %v10996_v22, %v4604_v16  ;;  %v5185_v22 = vadd.f32 %v10987_v47, %v4895_v36  ;;  %v6959_v47 = vld [vmem:[%s11214_s0 + $0x10] sm:$0xff]  ;;  %6061 = vperm.xlu2 %6577, %v6966_v23  }
 0x6b2   :  { %v6893_v55 = vpop.eup %6892  ;;  %v5761_v0 = vadd.f32 %v5735_v46, %v5471_v60  ;;  %6049 = vperm.xlu0 %6578, %v6959_v47   ;;  %v11117_v46 = vld [vmem:[%s11220_s6] ss:$0 sm:$0xff]  ;;  %v6969_v60 = vld [vmem:[%s11214_s0 + $0x38] sm:$0xff] }
 0x6b3   :  { %6533 = vmatmul.msk.f32.gmra.mxu3 %vm3332_vm12, %v6893_v55  ;;  %v5184_v51 = vadd.f32 %v10980_v44, %v4894_v17  ;;  %v11193_v47 = vld [vmem:[%s11222_s8] ss:$0 sm:$0xff]  ;;  %s7010_s8 = smov [#allocation2]  }
 0x6b4   :  { %6894 = vtanh.f32 %v5761_v0  ;;  %6065 = vperm.xlu1 %6576, %v6964_v13   ;;  %s6140_s2 = sshll.u32 %s7010_s8, 4  ;;  %s6141_s2 = int_to_ptr.vmem [resolvable:$true] %s6140_s2 }
 0x6b7   :  { %v5448_v10 = vpop.f32.mrf.mxu2  ;;  %v5747_v45 = vpop.f32.mrf.mxu1 }
 0x6b8   :  { %v5472_v12 = vadd.f32 %v5448_v10, %v5182_v58 }
 0x6b9   :  { %6069 = vperm.xlu2 %6577, %v6969_v60  }
 0x6ba   :  { %v6895_v28 = vpop.eup %6894  ;;  %v5762_v25 = vadd.f32 %v5738_v9, %v5472_v12  ;;  %6077 = vperm.xlu0 %6578, %v6962_v20  }
 0x6bb   :  { %6534 = vmatmul.msk.f32.gmra.mxu3 %vm3332_vm12, %v6895_v28 }
 0x6bc   :  { %6896 = vtanh.f32 %v5762_v25  ;;  %6073 = vperm.xlu1 %6576, %v6967_v49  }
 0x6bf   :  { %v5451_v61 = vpop.f32.mrf.mxu2 }
 0x6c0   :  { %v5473_v19 = vadd.f32 %v5451_v61, %v5183_v62 }
 0x6c1   :  { %6081 = vperm.xlu2 %6577, %v6971_v27  }
 0x6c2   :  { %v6897_v56 = vpop.eup %6896  ;;  %v5763_v40 = vadd.f32 %v5741_v21, %v5473_v19  ;;  %6089 = vperm.xlu0 %6578, %v6965_v52  }
 0x6c3   :  { %6535 = vmatmul.msk.f32.gmra.mxu3 %vm3332_vm12, %v6897_v56 }
 0x6c4   :  { %6898 = vtanh.f32 %v5763_v40  ;;  %6085 = vperm.xlu1 %6576, %v6970_v1  }
 0x6c7   :  { %v5454_v11 = vpop.f32.mrf.mxu2 }
 0x6c8   :  { %v5474_v59 = vadd.f32 %v5454_v11, %v5184_v51 }
 0x6c9   :  { %6093 = vperm.xlu2 %6577, %v6973_v57  }
 0x6ca   :  { %v6899_v4 = vpop.eup %6898  ;;  %v5764_v26 = vadd.f32 %v5744_v48, %v5474_v59  ;;  %6101 = vperm.xlu0 %6578, %v6968_v29  }
 0x6cb   :  { %6536 = vmatmul.msk.f32.gmra.mxu3 %vm3332_vm12, %v6899_v4 }
 0x6cc   :  { %6900 = vtanh.f32 %v5764_v26  ;;  %6097 = vperm.xlu1 %6576, %v6972_v43  }
 0x6cf   :  { %v5457_v41 = vpop.f32.mrf.mxu2 }
 0x6d0   :  { %v5475_v37 = vadd.f32 %v5457_v41, %v5185_v22 }
 0x6d2   :  { %v6901_v39 = vpop.eup %6900  ;;  %v5765_v44 = vadd.f32 %v5747_v45, %v5475_v37 }
 0x6d3   :  { %6537 = vmatmul.msk.f32.gmra.mxu3 %vm3332_vm12, %v6901_v39 }
 0x6d4   :  { %6902 = vtanh.f32 %v5765_v44 }
 0x6da   :  { %v6903_v6 = vpop.eup %6902 }
 0x6db   :  { %6538 = vmatmul.msk.f32.gmra.mxu3 %vm3332_vm12, %v6903_v6 }
 0x6e6   :  { %v5855_v54 = vpop.f32.mrf.mxu3 }
 0x6e7   :  { %v5856_v7 = vadd.f32 %v11117_v46, %v5855_v54 }
 0x6e9   :  { %6904 = vtanh.f32 %v5856_v7 }
 0x6ee   :  { %v5858_v30 = vpop.f32.mrf.mxu3 }
 0x6ef   :  { %v6905_v53 = vpop.eup %6904  ;;  %v5859_v18 = vadd.f32 %v11117_v46, %v5858_v30 }
 0x6f0   :  { %6539 = vmatmul.msk.f32.vlgmr.msrb.gmra.mxu0 %vm3332_vm12, %v6905_v53 }
 0x6f1   :  { %6906 = vtanh.f32 %v5859_v18 }
 0x6f6   :  { %v5861_v55 = vpop.f32.mrf.mxu3 }
 0x6f7   :  { %v6907_v31 = vpop.eup %6906  ;;  %v5862_v34 = vadd.f32 %v11117_v46, %v5861_v55 }
 0x6f8   :  { %6540 = vmatmul.msk.f32.vlgmr.msrb.gmra.mxu1 %vm3332_vm12, %v6907_v31 }
 0x6f9   :  { %6908 = vtanh.f32 %v5862_v34 }
 0x6fb   :  { %v6046_v7 = vpop.permute.xlu2 %6045 }
 0x6fe   :  { %v5864_v63 = vpop.f32.mrf.mxu3 }
 0x6ff   :  { %v6909_v0 = vpop.eup %6908  ;;  %v5865_v9 = vadd.f32 %v11117_v46, %v5864_v63 }
 0x700   :  { %6541 = vmatmul.msk.f32.vlgmr.msra.gmra.mxu2 %vm3332_vm12, %v6909_v0 }
 0x701   :  { %6910 = vtanh.f32 %v5865_v9 }
 0x703   :  { %v6054_v49 = vpop.permute.xlu2 %6053 }
 0x706   :  { %v5867_v32 = vpop.f32.mrf.mxu3 }
 0x707   :  { %v6911_v58 = vpop.eup %6910  ;;  %v5868_v10 = vadd.f32 %v11117_v46, %v5867_v32 }
 0x708   :  { %6542 = vmatmul.msk.f32.gmra.mxu2 %vm3332_vm12, %v6911_v58 }
 0x709   :  { %6912 = vtanh.f32 %v5868_v10 }
 0x70b   :  { %v6062_v63 = vpop.permute.xlu2 %6061 }
 0x70e   :  { %v5870_v38 = vpop.f32.mrf.mxu3 }
 0x70f   :  { %v6913_v12 = vpop.eup %6912  ;;  %v5871_v28 = vadd.f32 %v11117_v46, %v5870_v38 }
 0x710   :  { %6543 = vmatmul.msk.f32.gmra.mxu2 %vm3332_vm12, %v6913_v12 }
 0x711   :  { %6914 = vtanh.f32 %v5871_v28 }
 0x712   :  { %v6042_v24 = vpop.permute.xlu1 %6041 }
 0x713   :  { %v6070_v38 = vpop.permute.xlu2 %6069 }
 0x716   :  { %v5873_v33 = vpop.f32.mrf.mxu3 }
 0x717   :  { %v6915_v15 = vpop.eup %6914  ;;  %v5874_v50 = vadd.f32 %v11117_v46, %v5873_v33 }
 0x718   :  { %6544 = vmatmul.msk.f32.gmra.mxu2 %vm3332_vm12, %v6915_v15 }
 0x719   :  { %6916 = vtanh.f32 %v5874_v50 }
 0x71e   :  { %v5876_v25 = vpop.f32.mrf.mxu3  ;;  %v6058_v31 = vpop.permute.xlu1 %6057 }
 0x71f   :  { %v6917_v42 = vpop.eup %6916  ;;  %v5877_v14 = vadd.f32 %v11117_v46, %v5876_v25 }
 0x720   :  { %6545 = vmatmul.msk.f32.gmra.mxu2 %vm3332_vm12, %v6917_v42 }
 0x721   :  { %6918 = vtanh.f32 %v5877_v14 }
 0x724   :  { %v6050_v23 = vpop.permute.xlu0 %6049 }
 0x726   :  { %v5879_v21 = vpop.f32.mrf.mxu3  ;;  %v6066_v57 = vpop.permute.xlu1 %6065 }
 0x727   :  { %v6919_v62 = vpop.eup %6918  ;;  %v5880_v61 = vadd.f32 %v11117_v46, %v5879_v21 }
 0x728   :  { %6546 = vmatmul.msk.f32.gmra.mxu2 %vm3332_vm12, %v6919_v62 }
 0x729   :  { %6920 = vtanh.f32 %v5880_v61 }
 0x72c   :  { %v6078_v14 = vpop.permute.xlu0 %6077 }
 0x72e   :  { %v5882_v16 = vpop.f32.mrf.mxu3  ;;  %v6074_v15 = vpop.permute.xlu1 %6073 }
 0x72f   :  { %v6921_v19 = vpop.eup %6920  ;;  %v5883_v56 = vadd.f32 %v11117_v46, %v5882_v16 }
 0x730   :  { %6547 = vmatmul.msk.f32.gmra.mxu2 %vm3332_vm12, %v6921_v19  ;;  %v6082_v19 = vpop.permute.xlu2 %6081 }
 0x731   :  { %6922 = vtanh.f32 %v5883_v56 }
 0x736   :  { %v5885_v17 = vpop.f32.mrf.mxu3 }
 0x737   :  { %v6923_v40 = vpop.eup %6922  ;;  %v5886_v51 = vadd.f32 %v11117_v46, %v5885_v17 }
 0x738   :  { %6548 = vmatmul.msk.f32.gmra.mxu2 %vm3332_vm12, %v6923_v40 }
 0x739   :  { %6924 = vtanh.f32 %v5886_v51  ;;  %v6086_v51 = vpop.permute.xlu1 %6085 }
 0x73e   :  { %v5888_v48 = vpop.f32.mrf.mxu3 }
 0x73f   :  { %v6925_v11 = vpop.eup %6924  ;;  %v5889_v3 = vadd.f32 %v11117_v46, %v5888_v48 }
 0x740   :  { %6549 = vmatmul.msk.f32.gmra.mxu2 %vm3332_vm12, %v6925_v11 }
 0x741   :  { %6926 = vtanh.f32 %v5889_v3 }
 0x746   :  { %v5891_v59 = vpop.f32.mrf.mxu3 }
 0x747   :  { %v6927_v4 = vpop.eup %6926  ;;  %v5892_v36 = vadd.f32 %v11117_v46, %v5891_v59  ;;  %v6090_v59 = vpop.permute.xlu0 %6089 }
 0x748   :  { %6550 = vmatmul.msk.f32.gmra.mxu2 %vm3332_vm12, %v6927_v4 }
 0x749   :  { %6928 = vtanh.f32 %v5892_v36 }
 0x74e   :  { %v5894_v26 = vpop.f32.mrf.mxu3 }
 0x74f   :  { %v6929_v22 = vpop.eup %6928  ;;  %v5895_v41 = vadd.f32 %v11117_v46, %v5894_v26 }
 0x750   :  { %6551 = vmatmul.msk.f32.gmra.mxu2 %vm3332_vm12, %v6929_v22  ;;  %v6094_v22 = vpop.permute.xlu2 %6093 }
 0x751   :  { %6930 = vtanh.f32 %v5895_v41 }
 0x756   :  { %v5897_v37 = vpop.f32.mrf.mxu3 }
 0x757   :  { %v6931_v45 = vpop.eup %6930  ;;  %v5898_v39 = vadd.f32 %v11117_v46, %v5897_v37 }
 0x758   :  { %6552 = vmatmul.msk.f32.gmra.mxu2 %vm3332_vm12, %v6931_v45 }
 0x759   :  { %6932 = vtanh.f32 %v5898_v39  ;;  %v6098_v39 = vpop.permute.xlu1 %6097 }
 0x75e   :  { %v5900_v44 = vpop.f32.mrf.mxu3 }
 0x75f   :  { %v6933_v6 = vpop.eup %6932  ;;  %v5901_v8 = vadd.f32 %v11117_v46, %v5900_v44 }
 0x760   :  { %6553 = vmatmul.msk.f32.gmra.mxu2 %vm3332_vm12, %v6933_v6 }
 0x761   :  { %6934 = vtanh.f32 %v5901_v8 }
 0x767   :  { %v6935_v5 = vpop.eup %6934 }
 0x768   :  { %6554 = vmatmul.msk.f32.gmra.mxu2 %vm3332_vm12, %v6935_v5  ;;  %v6102_v5 = vpop.permute.xlu0 %6101 }
 0x76d   :  { %v5992_v35 = vpop.f32.mrf.mxu0 }
 0x76e   :  { %v5993_v20 = vadd.f32 %v11193_v47, %v5992_v35 }
 0x770   :  { %v6104_v2 = vmul.f32 %v6042_v24, %v5993_v20 }
 0x772   :  { %6120 = vst [vmem:[#allocation2] sm:$0xff] %v6104_v2 }
 0x775   :  { %v5995_v54 = vpop.f32.mrf.mxu1 }
 0x776   :  { %v5996_v46 = vadd.f32 %v11193_v47, %v5995_v54 }
 0x778   :  { %v6105_v13 = vmul.f32 %v6046_v7, %v5996_v46 }
 0x77a   :  { %6121 = vst [vmem:[#allocation2 + $0x8] sm:$0xff] %v6105_v13 }
 0x783   :  { %v5998_v52 = vpop.f32.mrf.mxu2 }
 0x784   :  { %v5999_v30 = vadd.f32 %v11193_v47, %v5998_v52 }
 0x786   :  { %v6106_v53 = vmul.f32 %v6050_v23, %v5999_v30 }
 0x788   :  { %6122 = vst [vmem:[#allocation2 + $0x10] sm:$0xff] %v6106_v53 }
 0x78b   :  { %v6001_v18 = vpop.f32.mrf.mxu2 }
 0x78c   :  { %v6002_v29 = vadd.f32 %v11193_v47, %v6001_v18 }
 0x78e   :  { %v6107_v60 = vmul.f32 %v6054_v49, %v6002_v29 }
 0x790   :  { %6123 = vst [vmem:[#allocation2 + $0x18] sm:$0xff] %v6107_v60 }
 0x793   :  { %v6004_v55 = vpop.f32.mrf.mxu2 }
 0x794   :  { %v6005_v34 = vadd.f32 %v11193_v47, %v6004_v55 }
 0x796   :  { %v6108_v1 = vmul.f32 %v6058_v31, %v6005_v34 }
 0x798   :  { %6124 = vst [vmem:[#allocation2 + $0x20] sm:$0xff] %v6108_v1 }
 0x79b   :  { %v6007_v27 = vpop.f32.mrf.mxu2 }
 0x79c   :  { %v6008_v0 = vadd.f32 %v11193_v47, %v6007_v27 }
 0x79e   :  { %v6109_v9 = vmul.f32 %v6062_v63, %v6008_v0 }
 0x7a0   :  { %6125 = vst [vmem:[#allocation2 + $0x28] sm:$0xff] %v6109_v9 }
 0x7a3   :  { %v6010_v43 = vpop.f32.mrf.mxu2 }
 0x7a4   :  { %v6011_v32 = vadd.f32 %v11193_v47, %v6010_v43 }
 0x7a6   :  { %v6110_v58 = vmul.f32 %v6066_v57, %v6011_v32 }
 0x7a8   :  { %6126 = vst [vmem:[#allocation2 + $0x30] sm:$0xff] %v6110_v58 }
 0x7ab   :  { %v6013_v10 = vpop.f32.mrf.mxu2 }
 0x7ac   :  { %v6014_v12 = vadd.f32 %v11193_v47, %v6013_v10 }
 0x7ae   :  { %v6111_v28 = vmul.f32 %v6070_v38, %v6014_v12 }
 0x7b0   :  { %6127 = vst [vmem:[#allocation2 + $0x38] sm:$0xff] %v6111_v28 }
 0x7b3   :  { %v6016_v33 = vpop.f32.mrf.mxu2 }
 0x7b4   :  { %v6017_v50 = vadd.f32 %v11193_v47, %v6016_v33 }
 0x7b6   :  { %v6112_v25 = vmul.f32 %v6074_v15, %v6017_v50 }
 0x7b8   :  { %6128 = vst [vmem:[#allocation2 + $0x40] sm:$0xff] %v6112_v25 }
 0x7bb   :  { %v6019_v42 = vpop.f32.mrf.mxu2 }
 0x7bc   :  { %v6020_v21 = vadd.f32 %v11193_v47, %v6019_v42 }
 0x7be   :  { %v6113_v62 = vmul.f32 %v6078_v14, %v6020_v21 }
 0x7c0   :  { %6129 = vst [vmem:[#allocation2 + $0x48] sm:$0xff] %v6113_v62 }
 0x7c3   :  { %v6022_v61 = vpop.f32.mrf.mxu2 }
 0x7c4   :  { %v6023_v16 = vadd.f32 %v11193_v47, %v6022_v61 }
 0x7c6   :  { %v6114_v56 = vmul.f32 %v6082_v19, %v6023_v16 }
 0x7c8   :  { %6130 = vst [vmem:[#allocation2 + $0x50] sm:$0xff] %v6114_v56 }
 0x7cb   :  { %v6025_v17 = vpop.f32.mrf.mxu2 }
 0x7cc   :  { %v6026_v40 = vadd.f32 %v11193_v47, %v6025_v17 }
 0x7ce   :  { %v6115_v48 = vmul.f32 %v6086_v51, %v6026_v40 }
 0x7d0   :  { %6131 = vst [vmem:[#allocation2 + $0x58] sm:$0xff] %v6115_v48 }
 0x7d3   :  { %v6028_v11 = vpop.f32.mrf.mxu2 }
 0x7d4   :  { %v6029_v3 = vadd.f32 %v11193_v47, %v6028_v11 }
 0x7d6   :  { %v6116_v4 = vmul.f32 %v6090_v59, %v6029_v3 }
 0x7d8   :  { %6132 = vst [vmem:[#allocation2 + $0x60] sm:$0xff] %v6116_v4 }
 0x7db   :  { %v6031_v36 = vpop.f32.mrf.mxu2 }
 0x7dc   :  { %v6032_v26 = vadd.f32 %v11193_v47, %v6031_v36 }
 0x7de   :  { %v6117_v41 = vmul.f32 %v6094_v22, %v6032_v26 }
 0x7e0   :  { %6133 = vst [vmem:[#allocation2 + $0x68] sm:$0xff] %v6117_v41 }
 0x7e3   :  { %v6034_v37 = vpop.f32.mrf.mxu2 }
 0x7e4   :  { %v6035_v45 = vadd.f32 %v11193_v47, %v6034_v37 }
 0x7e6   :  { %v6118_v44 = vmul.f32 %v6098_v39, %v6035_v45 }
 0x7e8   :  { %6134 = vst [vmem:[#allocation2 + $0x70] sm:$0xff] %v6118_v44 }
 0x7eb   :  { %v6037_v6 = vpop.f32.mrf.mxu2 }
 0x7ec   :  { %v6038_v8 = vadd.f32 %v11193_v47, %v6037_v6 }
 0x7ee   :  { %v6119_v35 = vmul.f32 %v6102_v5, %v6038_v8 }
 0x7f0   :  { %6135 = vst [vmem:[#allocation2 + $0x78] sm:$0xff] %v6119_v35 }
 0x7f1   :  { %6148 = dma.vmem_to_hbm [thread:$0]  %s6141_s2, 2048, %s6143_s12, [#allocation3], %s7011_s13, %s7011_s13, %s7012_s14  }
 0x7f2   :  { %6998 = dma.done.wait [#allocation3], 2048  }
 0x7f3   :  { %6999 = vsyncadd [#allocation3], 4294965248 }
 0x7f4   :  { %6153 = vsyncpa [#allocation3], 1 }

</bundles_post_ra>
